<compile_context>
chip_gen: v7x
topology: tpu7x:2x2x1
jax: 0.10.0
libtpu: 0.0.40
codegen_flags: <defaults>
</compile_context>

<pallas_src>
import jax
import jax.numpy as jnp
from jax.experimental import pallas as pl
from jax.experimental.pallas import tpu as pltpu


# =============================================================================
# Kernel 1: conv1(3x3,p=1)+ReLU+pool2  ->  conv2(3x3,p=1)+ReLU+pool2
# One image per grid step ("parallel").  Channel-major everywhere.
#
# Spatial orderings (all chosen at patch-build / prep time, free at runtime):
#   conv1 patch column for conv1-output pixel (h, w), h,w in [0,64):
#     col = psi*1024 + phi*256 + (p*16 + q)
#       psi = (h%2)*2 + (w%2)            pool-1 phase  (4 blocks of 1024)
#       phi = ((h//2)%2)*2 + ((w//2)%2)  pool-2 phase  (4 blocks of 256)
#       p,q = h//4, w//4                 final 16x16 position
#   pooled conv1 output y1 (conv2 input pixel (i,j), i,j in [0,32)):
#     col = phi*256 + p*16 + q,  phi=(i%2)*2+(j%2), p=i//2, q=j//2
#   conv2 output uses the same ordering, so pool-2 is again a max of four
#   contiguous phi blocks and the final feature order is c*256 + h*16 + w,
#   i.e. exactly PyTorch's flatten order.
# =============================================================================
def _conv_stack_kernel(p1_ref, w1_ref, b1_ref, w2_ref, b2_ref, mask_ref,
                       o_ref, p2_ref):
    # p1_ref  : (1, 27, 4096) bf16  transposed im2col patches of one image
    # w1_ref  : (32, 27)      bf16  conv1 weight, col = (ky*3+kx)*3 + ci
    # b1_ref  : (32, 1)       f32
    # w2_ref  : (64, 288)     f32   conv2 weight, col = (ky*3+kx)*32 + ci
    # b2_ref  : (64, 1)       f32
    # mask_ref: (9, 256)      f32   border masks indexed by (ci+1)*3+(cj+1)
    # o_ref   : (1, 64, 256)  bf16  pooled conv2 features (PyTorch flatten order)
    # p2_ref  : (288, 1024)   f32   VMEM conv2 im2col scratch
    f32 = jnp.float32

    # ---- conv1: one deep MXU contraction ----
    a1 = jnp.dot(w1_ref[...], p1_ref[0], preferred_element_type=f32)  # (32,4096)
    a1 = jnp.maximum(a1 + b1_ref[...], 0.0)

    # ---- pool1: max of the four contiguous psi blocks (no reshapes) ----
    y1 = jnp.maximum(jnp.maximum(a1[:, 0:1024], a1[:, 1024:2048]),
                     jnp.maximum(a1[:, 2048:3072], a1[:, 3072:4096]))  # (32,1024)

    # ---- conv2 im2col: 9 taps x 4 output phases, each one masked lane-roll
    #      of a contiguous 256-column phase block of y1.  All stores are
    #      (32,256) dense slabs at aligned offsets.  The 36 slabs cover the
    #      scratch completely, so it never needs zero-initialisation. ----
    for k in range(9):
        dh, dw = divmod(k, 3)
        dh -= 1
        dw -= 1
        for phi in range(4):
            a, b = divmod(phi, 2)                 # output-pixel parities
            ci, a_src = divmod(a + dh, 2)         # carry into p, source parity
            cj, b_src = divmod(b + dw, 2)         # carry into q, source parity
            src_phi = a_src * 2 + b_src
            shift = (-(ci * 16 + cj)) % 256       # static lane-roll amount
            src = y1[:, src_phi * 256:(src_phi + 1) * 256]          # (32,256)
            if shift:
                src = pltpu.roll(src, shift=shift, axis=1)
            mid = (ci + 1) * 3 + (cj + 1)
            p2_ref[32 * k:32 * (k + 1), 256 * phi:256 * (phi + 1)] = (
                src * mask_ref[mid:mid + 1, :])

    # ---- conv2: one deep MXU contraction ----
    a2 = jnp.dot(w2_ref[...], p2_ref[...], preferred_element_type=f32)  # (64,1024)
    a2 = jnp.maximum(a2 + b2_ref[...], 0.0)

    # ---- pool2: max of the four contiguous phi blocks ----
    z = jnp.maximum(jnp.maximum(a2[:, 0:256], a2[:, 256:512]),
                    jnp.maximum(a2[:, 512:768], a2[:, 768:1024]))       # (64,256)

    # lane-dense bf16 feature hand-off (row = channel, col = h*16 + w)
    o_ref[...] = z[None, :, :].astype(o_ref.dtype)


def conv_stack(p1, w1, b1, w2, b2, masks):
    """p1: (B, 27, 4096) bf16  ->  (B, 64, 256) bf16 pooled conv2 features."""
    B = p1.shape[0]
    flops = B * 2 * (32 * 27 * 4096 + 64 * 288 * 1024)
    bytes_acc = (B * 27 * 4096 * 2 + B * 64 * 256 * 2
                 + 32 * 27 * 2 + 64 * 288 * 4 + 9 * 256 * 4 + (32 + 64) * 4)
    return pl.pallas_call(
        _conv_stack_kernel,
        out_shape=jax.ShapeDtypeStruct((B, 64, 256), jnp.bfloat16),
        grid=(B,),
        in_specs=[
            pl.BlockSpec((1, 27, 4096), lambda b: (b, 0, 0)),
            pl.BlockSpec((32, 27), lambda b: (0, 0)),
            pl.BlockSpec((32, 1), lambda b: (0, 0)),
            pl.BlockSpec((64, 288), lambda b: (0, 0)),
            pl.BlockSpec((64, 1), lambda b: (0, 0)),
            pl.BlockSpec((9, 256), lambda b: (0, 0)),
        ],
        out_specs=pl.BlockSpec((1, 64, 256), lambda b: (b, 0, 0)),
        scratch_shapes=[pltpu.VMEM((288, 1024), jnp.float32)],
        compiler_params=pltpu.CompilerParams(
            dimension_semantics=("parallel",),
            vmem_limit_bytes=32 * 1024 * 1024,
        ),
        cost_estimate=pl.CostEstimate(flops=int(flops), transcendentals=0,
                                      bytes_accessed=int(bytes_acc)),
    )(p1, w1, b1, w2, b2, masks)


# =============================================================================
# Kernel 2: fc1 (bf16, f32 accumulation) + ReLU + fc2 (f32), split 2-way over
# the 128 fc1 outputs ("parallel" -> both TensorCores on v7x).  Each grid step
# holds its 2 MiB half of the fc1 weight resident and emits a partial fc2
# product; the two partials are summed in the wrapper.
# =============================================================================
def _mlp_kernel(x_ref, w1_ref, b1_ref, w2_ref, b2_ref, o_ref):
    # x_ref : (B, 16384)      bf16   flattened conv features
    # w1_ref: (1, 16384, 64)  bf16   one half of fc1 weight (in-major)
    # b1_ref: (1, 1, 64)      f32
    # w2_ref: (1, 64, 128)    f32    matching fc2 rows, padded to 128 lanes
    # b2_ref: (1, 1, 128)     f32    fc2 bias on half 0, zeros on half 1
    # o_ref : (1, B, 128)     f32    partial logits
    h = jnp.dot(x_ref[...], w1_ref[0], preferred_element_type=jnp.float32)
    h = jnp.maximum(h + b1_ref[0], 0.0)                              # (B, 64)
    part = jnp.dot(h, w2_ref[0], preferred_element_type=jnp.float32) + b2_ref[0]
    o_ref[...] = part[None, :, :].astype(o_ref.dtype)


def mlp(x, w1, b1, w2, b2):
    """x: (B,16384) bf16; w1: (2,16384,64) bf16; returns (2, B, 128) partials."""
    B, K = x.shape
    flops = 2 * B * K * 128 + 2 * B * 128 * 128
    bytes_acc = K * 128 * 2 + B * K * 2 + 2 * 64 * 128 * 4 + 2 * B * 128 * 4
    return pl.pallas_call(
        _mlp_kernel,
        out_shape=jax.ShapeDtypeStruct((2, B, 128), jnp.float32),
        grid=(2,),
        in_specs=[
            pl.BlockSpec((B, K), lambda j: (0, 0)),
            pl.BlockSpec((1, K, 64), lambda j: (j, 0, 0)),
            pl.BlockSpec((1, 1, 64), lambda j: (j, 0, 0)),
            pl.BlockSpec((1, 64, 128), lambda j: (j, 0, 0)),
            pl.BlockSpec((1, 1, 128), lambda j: (j, 0, 0)),
        ],
        out_specs=pl.BlockSpec((1, B, 128), lambda j: (j, 0, 0)),
        compiler_params=pltpu.CompilerParams(
            dimension_semantics=("parallel",),
            vmem_limit_bytes=32 * 1024 * 1024,
        ),
        cost_estimate=pl.CostEstimate(flops=int(flops), transcendentals=0,
                                      bytes_accessed=int(bytes_acc)),
    )(x, w1, b1, w2, b2)


# =============================================================================
# XLA wrapper pieces (cheap, outside the kernels)
# =============================================================================
def _build_conv1_patches(x_nchw):
    """(B,3,64,64) f32 -> (B,27,4096) bf16 transposed im2col patches.

    Row index = (ky*3+kx)*3 + ci.  Column order: psi*1024 + phi*256 + p*16 + q
    (see kernel-1 header), so both in-kernel pools are contiguous-block maxima.
    """
    B = x_nchw.shape[0]
    xp = jnp.pad(x_nchw, ((0, 0), (0, 0), (1, 1), (1, 1)))          # (B,3,66,66)
    taps = [xp[:, :, ky:ky + 64, kx:kx + 64]
            for ky in range(3) for kx in range(3)]                  # 9x (B,3,64,64)
    p1 = jnp.stack(taps, axis=1)                                    # (B,9,3,64,64)
    # h = ph*4 + phih*2 + psih ; w = pw*4 + phiw*2 + psiw
    p1 = p1.reshape(B, 9, 3, 16, 2, 2, 16, 2, 2)
    # -> [B, k, ci, psih, psiw, phih, phiw, ph, pw]
    p1 = p1.transpose(0, 1, 2, 5, 8, 4, 7, 3, 6)
    return p1.reshape(B, 27, 4096).astype(jnp.bfloat16)


def prepare_params(params):
    """One-time parameter prep (outside the hot path)."""
    f32 = jnp.float32
    # conv weights: torch OIHW -> (O, KH*KW*I) matching the patch row order.
    w1 = jnp.transpose(params["conv1_w"], (0, 2, 3, 1)).reshape(32, 27)
    w2 = jnp.transpose(params["conv2_w"], (0, 2, 3, 1)).reshape(64, 288)

    # border masks for the conv2 im2col rolls, indexed by (ci+1)*3 + (cj+1).
    idx = jnp.arange(256)
    p_idx, q_idx = idx // 16, idx % 16
    rows = []
    for ci in (-1, 0, 1):
        for cj in (-1, 0, 1):
            ok = jnp.ones((256,), f32)
            if ci == 1:
                ok = ok * (p_idx < 15)
            if ci == -1:
                ok = ok * (p_idx > 0)
            if cj == 1:
                ok = ok * (q_idx < 15)
            if cj == -1:
                ok = ok * (q_idx > 0)
            rows.append(ok)
    masks = jnp.stack(rows, axis=0).astype(f32)                     # (9, 256)

    # fc1: feature order already matches torch's flatten -> plain transpose,
    # split into two 64-wide output halves (one per grid step / TensorCore).
    w1t = params["fc1_w"].T                                         # (16384, 128)
    fc1_w = jnp.stack([w1t[:, :64], w1t[:, 64:]], axis=0).astype(jnp.bfloat16)
    fc1_b = params["fc1_b"].reshape(2, 1, 64).astype(f32)

    # fc2: per-half rows, logits padded to 128 lanes; bias only on half 0.
    fc2 = params["fc2_w"].astype(f32)                               # (2, 128)
    fc2_w = jnp.zeros((2, 64, 128), f32)
    fc2_w = fc2_w.at[0, :, :2].set(fc2[:, :64].T)
    fc2_w = fc2_w.at[1, :, :2].set(fc2[:, 64:].T)
    fc2_b = jnp.zeros((2, 1, 128), f32).at[0, 0, :2].set(params["fc2_b"].astype(f32))

    return {
        "w1": w1.astype(jnp.bfloat16),
        "b1": params["conv1_b"].reshape(32, 1).astype(f32),
        "w2": w2.astype(f32),
        "b2": params["conv2_b"].reshape(64, 1).astype(f32),
        "masks": masks,
        "fc1_w": fc1_w, "fc1_b": fc1_b,
        "fc2_w": fc2_w, "fc2_b": fc2_b,
    }


def anime_cnn_forward(x_nchw, prepared):
    B = x_nchw.shape[0]
    p1 = _build_conv1_patches(x_nchw)                               # (B,27,4096) bf16
    feats = conv_stack(p1, prepared["w1"], prepared["b1"],
                       prepared["w2"], prepared["b2"],
                       prepared["masks"])                           # (B,64,256) bf16
    parts = mlp(feats.reshape(B, 64 * 256),
                prepared["fc1_w"], prepared["fc1_b"],
                prepared["fc2_w"], prepared["fc2_b"])               # (2,B,128) f32
    return (parts[0] + parts[1])[:, :2]


# =============================================================================
# Pure-JAX reference (correctness check; f32 throughout — the Pallas path uses
# bf16 for conv1 operands, the feature hand-off and fc1, a deliberate choice
# that stays well inside the 5e-2 tolerance).
# =============================================================================
def reference_forward(x_nchw, params):
    def conv(x, w, b):
        y = jax.lax.conv_general_dilated(
            x, w, window_strides=(1, 1), padding=((1, 1), (1, 1)),
            dimension_numbers=("NCHW", "OIHW", "NCHW"))
        return y + b[None, :, None, None]

    def pool(x):
        return jax.lax.reduce_window(x, -jnp.inf, jax.lax.max,
                                     (1, 1, 2, 2), (1, 1, 2, 2), "VALID")

    h = pool(jax.nn.relu(conv(x_nchw, params["conv1_w"], params["conv1_b"])))
    h = pool(jax.nn.relu(conv(h, params["conv2_w"], params["conv2_b"])))
    h = h.reshape(h.shape[0], -1)
    h = jax.nn.relu(h @ params["fc1_w"].T + params["fc1_b"])
    return h @ params["fc2_w"].T + params["fc2_b"]


if __name__ == "__main__":
    key = jax.random.PRNGKey(0)
    ks = jax.random.split(key, 9)

    # Deterministic synthetic parameters (same shapes as AnimeCNN.__init__).
    params = {
        "conv1_w": jax.random.normal(ks[0], (32, 3, 3, 3), jnp.float32) * 0.05,
        "conv1_b": jax.random.normal(ks[1], (32,), jnp.float32) * 0.05,
        "conv2_w": jax.random.normal(ks[2], (64, 32, 3, 3), jnp.float32) * 0.05,
        "conv2_b": jax.random.normal(ks[3], (64,), jnp.float32) * 0.05,
        "fc1_w": jax.random.normal(ks[4], (128, 64 * 16 * 16), jnp.float32) * 0.01,
        "fc1_b": jax.random.normal(ks[5], (128,), jnp.float32) * 0.01,
        "fc2_w": jax.random.normal(ks[6], (2, 128), jnp.float32) * 0.05,
        "fc2_b": jax.random.normal(ks[7], (2,), jnp.float32) * 0.05,
    }

    # batch=2; fc1 (64*16*16) implies a 64x64 spatial input with 3 channels.
    x = jax.random.normal(ks[8], (2, 3, 64, 64), jnp.float32)

    prepared = prepare_params(params)
    forward = jax.jit(anime_cnn_forward)

    out = jax.block_until_ready(forward(x, prepared))
    ref = jax.block_until_ready(reference_forward(x, params))

    assert out.shape == (2, 2) and out.dtype == jnp.float32
    assert bool(jnp.all(jnp.isfinite(out)))
    assert bool(jnp.allclose(out, ref, rtol=5e-2, atol=5e-2)), (out, ref)

    print("KERNEL_OK")
</pallas_src>

<mosaic_0001>
module attributes {stable_mosaic.version = 11 : i64} {
  func.func @_conv_stack_kernel(%arg0: i32, %arg1: memref<1x27x4096xbf16, #tpu.memory_space<vmem>>, %arg2: memref<32x27xbf16, #tpu.memory_space<vmem>>, %arg3: memref<32x1xf32, #tpu.memory_space<vmem>>, %arg4: memref<64x288xf32, #tpu.memory_space<vmem>>, %arg5: memref<64x1xf32, #tpu.memory_space<vmem>>, %arg6: memref<9x256xf32, #tpu.memory_space<vmem>>, %arg7: memref<1x64x256xbf16, #tpu.memory_space<vmem>>, %arg8: memref<288x1024xf32, #tpu.memory_space<vmem>>) attributes {dimension_semantics = [#tpu.dimension_semantics<parallel>], iteration_bounds = array<i64: 2>, scalar_prefetch = 0 : i64, scratch_operands = 1 : i64, tpu.core_type = #tpu.core_type<tc>, window_params = [{transform_indices = @transform_0, window_bounds = array<i64: 1, 27, 4096>}, {pipeline_mode = #tpu.pipeline_mode<synchronous>, transform_indices = @transform_1, window_bounds = array<i64: 32, 27>}, {pipeline_mode = #tpu.pipeline_mode<synchronous>, transform_indices = @transform_2, window_bounds = array<i64: 32, 1>}, {pipeline_mode = #tpu.pipeline_mode<synchronous>, transform_indices = @transform_3, window_bounds = array<i64: 64, 288>}, {pipeline_mode = #tpu.pipeline_mode<synchronous>, transform_indices = @transform_4, window_bounds = array<i64: 64, 1>}, {pipeline_mode = #tpu.pipeline_mode<synchronous>, transform_indices = @transform_5, window_bounds = array<i64: 9, 256>}, {transform_indices = @transform_6, window_bounds = array<i64: 1, 64, 256>}]} {
    %c0 = arith.constant 0 : index
    %c0_0 = arith.constant 0 : index
    %0 = vector.load %arg2[%c0, %c0_0] : memref<32x27xbf16, #tpu.memory_space<vmem>>, vector<32x27xbf16>
    %c0_1 = arith.constant 0 : index
    %c0_2 = arith.constant 0 : index
    %c0_3 = arith.constant 0 : index
    %1 = vector.load %arg1[%c0_1, %c0_2, %c0_3] : memref<1x27x4096xbf16, #tpu.memory_space<vmem>>, vector<1x27x4096xbf16>
    %2 = vector.shape_cast %1 : vector<1x27x4096xbf16> to vector<27x4096xbf16>
    %cst = arith.constant dense<0.000000e+00> : vector<32x4096xf32>
    %3 = tpu.matmul %0, %2, %cst {dimension_numbers = #tpu.dot_dimension_numbers<[1], [0], [0], [1], [0, 0, 1, 1], [], []>} : vector<32x27xbf16>, vector<27x4096xbf16>, vector<32x4096xf32> -> vector<32x4096xf32>
    %c0_4 = arith.constant 0 : index
    %c0_5 = arith.constant 0 : index
    %4 = vector.load %arg3[%c0_4, %c0_5] : memref<32x1xf32, #tpu.memory_space<vmem>>, vector<32x1xf32>
    %5 = vector.broadcast %4 : vector<32x1xf32> to vector<32x4096xf32>
    %6 = arith.addf %3, %5 : vector<32x4096xf32>
    %cst_6 = arith.constant 0.000000e+00 : f32
    %7 = vector.broadcast %cst_6 : f32 to vector<32x4096xf32>
    %8 = arith.maximumf %6, %7 : vector<32x4096xf32>
    %9 = vector.extract_strided_slice %8 {offsets = [0, 0], sizes = [32, 1024], strides = [1, 1]} : vector<32x4096xf32> to vector<32x1024xf32>
    %10 = vector.extract_strided_slice %8 {offsets = [0, 1024], sizes = [32, 1024], strides = [1, 1]} : vector<32x4096xf32> to vector<32x1024xf32>
    %11 = arith.maximumf %9, %10 : vector<32x1024xf32>
    %12 = vector.extract_strided_slice %8 {offsets = [0, 2048], sizes = [32, 1024], strides = [1, 1]} : vector<32x4096xf32> to vector<32x1024xf32>
    %13 = vector.extract_strided_slice %8 {offsets = [0, 3072], sizes = [32, 1024], strides = [1, 1]} : vector<32x4096xf32> to vector<32x1024xf32>
    %14 = arith.maximumf %12, %13 : vector<32x1024xf32>
    %15 = arith.maximumf %11, %14 : vector<32x1024xf32>
    %16 = vector.extract_strided_slice %15 {offsets = [0, 768], sizes = [32, 256], strides = [1, 1]} : vector<32x1024xf32> to vector<32x256xf32>
    %c17_i32 = arith.constant 17 : i32
    %17 = tpu.dynamic_rotate %16 by %c17_i32 dim 1 : vector<32x256xf32>, i32 -> vector<32x256xf32>
    %c0_7 = arith.constant 0 : index
    %c0_8 = arith.constant 0 : index
    %18 = vector.load %arg6[%c0_7, %c0_8] : memref<9x256xf32, #tpu.memory_space<vmem>>, vector<1x256xf32>
    %19 = vector.broadcast %18 : vector<1x256xf32> to vector<32x256xf32>
    %20 = arith.mulf %17, %19 : vector<32x256xf32>
    %c0_9 = arith.constant 0 : index
    %c0_10 = arith.constant 0 : index
    %21 = vector.load %arg8[%c0_9, %c0_10] : memref<288x1024xf32, #tpu.memory_space<vmem>>, vector<32x256xf32>
    tpu.vector_store %arg8[%c0_9, %c0_10], %20 {strides = array<i32>} : memref<288x1024xf32, #tpu.memory_space<vmem>>, vector<32x256xf32>,
    %22 = vector.extract_strided_slice %15 {offsets = [0, 512], sizes = [32, 256], strides = [1, 1]} : vector<32x1024xf32> to vector<32x256xf32>
    %c16_i32 = arith.constant 16 : i32
    %23 = tpu.dynamic_rotate %22 by %c16_i32 dim 1 : vector<32x256xf32>, i32 -> vector<32x256xf32>
    %c1 = arith.constant 1 : index
    %c0_11 = arith.constant 0 : index
    %24 = vector.load %arg6[%c1, %c0_11] : memref<9x256xf32, #tpu.memory_space<vmem>>, vector<1x256xf32>
    %25 = vector.broadcast %24 : vector<1x256xf32> to vector<32x256xf32>
    %26 = arith.mulf %23, %25 : vector<32x256xf32>
    %c0_12 = arith.constant 0 : index
    %c256 = arith.constant 256 : index
    %27 = vector.load %arg8[%c0_12, %c256] : memref<288x1024xf32, #tpu.memory_space<vmem>>, vector<32x256xf32>
    tpu.vector_store %arg8[%c0_12, %c256], %26 {strides = array<i32>} : memref<288x1024xf32, #tpu.memory_space<vmem>>, vector<32x256xf32>,
    %28 = vector.extract_strided_slice %15 {offsets = [0, 256], sizes = [32, 256], strides = [1, 1]} : vector<32x1024xf32> to vector<32x256xf32>
    %c1_i32 = arith.constant 1 : i32
    %29 = tpu.dynamic_rotate %28 by %c1_i32 dim 1 : vector<32x256xf32>, i32 -> vector<32x256xf32>
    %c3 = arith.constant 3 : index
    %c0_13 = arith.constant 0 : index
    %30 = vector.load %arg6[%c3, %c0_13] : memref<9x256xf32, #tpu.memory_space<vmem>>, vector<1x256xf32>
    %31 = vector.broadcast %30 : vector<1x256xf32> to vector<32x256xf32>
    %32 = arith.mulf %29, %31 : vector<32x256xf32>
    %c0_14 = arith.constant 0 : index
    %c512 = arith.constant 512 : index
    %33 = vector.load %arg8[%c0_14, %c512] : memref<288x1024xf32, #tpu.memory_space<vmem>>, vector<32x256xf32>
    tpu.vector_store %arg8[%c0_14, %c512], %32 {strides = array<i32>} : memref<288x1024xf32, #tpu.memory_space<vmem>>, vector<32x256xf32>,
    %34 = vector.extract_strided_slice %15 {offsets = [0, 0], sizes = [32, 256], strides = [1, 1]} : vector<32x1024xf32> to vector<32x256xf32>
    %c4 = arith.constant 4 : index
    %c0_15 = arith.constant 0 : index
    %35 = vector.load %arg6[%c4, %c0_15] : memref<9x256xf32, #tpu.memory_space<vmem>>, vector<1x256xf32>
    %36 = vector.broadcast %35 : vector<1x256xf32> to vector<32x256xf32>
    %37 = arith.mulf %34, %36 : vector<32x256xf32>
    %c0_16 = arith.constant 0 : index
    %c768 = arith.constant 768 : index
    %38 = vector.load %arg8[%c0_16, %c768] : memref<288x1024xf32, #tpu.memory_space<vmem>>, vector<32x256xf32>
    tpu.vector_store %arg8[%c0_16, %c768], %37 {strides = array<i32>} : memref<288x1024xf32, #tpu.memory_space<vmem>>, vector<32x256xf32>,
    %39 = vector.extract_strided_slice %15 {offsets = [0, 512], sizes = [32, 256], strides = [1, 1]} : vector<32x1024xf32> to vector<32x256xf32>
    %c16_i32_17 = arith.constant 16 : i32
    %40 = tpu.dynamic_rotate %39 by %c16_i32_17 dim 1 : vector<32x256xf32>, i32 -> vector<32x256xf32>
    %c1_18 = arith.constant 1 : index
    %c0_19 = arith.constant 0 : index
    %41 = vector.load %arg6[%c1_18, %c0_19] : memref<9x256xf32, #tpu.memory_space<vmem>>, vector<1x256xf32>
    %42 = vector.broadcast %41 : vector<1x256xf32> to vector<32x256xf32>
    %43 = arith.mulf %40, %42 : vector<32x256xf32>
    %c32 = arith.constant 32 : index
    %c0_20 = arith.constant 0 : index
    %44 = vector.load %arg8[%c32, %c0_20] : memref<288x1024xf32, #tpu.memory_space<vmem>>, vector<32x256xf32>
    tpu.vector_store %arg8[%c32, %c0_20], %43 {strides = array<i32>} : memref<288x1024xf32, #tpu.memory_space<vmem>>, vector<32x256xf32>,
    %45 = vector.extract_strided_slice %15 {offsets = [0, 768], sizes = [32, 256], strides = [1, 1]} : vector<32x1024xf32> to vector<32x256xf32>
    %c16_i32_21 = arith.constant 16 : i32
    %46 = tpu.dynamic_rotate %45 by %c16_i32_21 dim 1 : vector<32x256xf32>, i32 -> vector<32x256xf32>
    %c1_22 = arith.constant 1 : index
    %c0_23 = arith.constant 0 : index
    %47 = vector.load %arg6[%c1_22, %c0_23] : memref<9x256xf32, #tpu.memory_space<vmem>>, vector<1x256xf32>
    %48 = vector.broadcast %47 : vector<1x256xf32> to vector<32x256xf32>
    %49 = arith.mulf %46, %48 : vector<32x256xf32>
    %c32_24 = arith.constant 32 : index
    %c256_25 = arith.constant 256 : index
    %50 = vector.load %arg8[%c32_24, %c256_25] : memref<288x1024xf32, #tpu.memory_space<vmem>>, vector<32x256xf32>
    tpu.vector_store %arg8[%c32_24, %c256_25], %49 {strides = array<i32>} : memref<288x1024xf32, #tpu.memory_space<vmem>>, vector<32x256xf32>,
    %51 = vector.extract_strided_slice %15 {offsets = [0, 0], sizes = [32, 256], strides = [1, 1]} : vector<32x1024xf32> to vector<32x256xf32>
    %c4_26 = arith.constant 4 : index
    %c0_27 = arith.constant 0 : index
    %52 = vector.load %arg6[%c4_26, %c0_27] : memref<9x256xf32, #tpu.memory_space<vmem>>, vector<1x256xf32>
    %53 = vector.broadcast %52 : vector<1x256xf32> to vector<32x256xf32>
    %54 = arith.mulf %51, %53 : vector<32x256xf32>
    %c32_28 = arith.constant 32 : index
    %c512_29 = arith.constant 512 : index
    %55 = vector.load %arg8[%c32_28, %c512_29] : memref<288x1024xf32, #tpu.memory_space<vmem>>, vector<32x256xf32>
    tpu.vector_store %arg8[%c32_28, %c512_29], %54 {strides = array<i32>} : memref<288x1024xf32, #tpu.memory_space<vmem>>, vector<32x256xf32>,
    %56 = vector.extract_strided_slice %15 {offsets = [0, 256], sizes = [32, 256], strides = [1, 1]} : vector<32x1024xf32> to vector<32x256xf32>
    %c4_30 = arith.constant 4 : index
    %c0_31 = arith.constant 0 : index
    %57 = vector.load %arg6[%c4_30, %c0_31] : memref<9x256xf32, #tpu.memory_space<vmem>>, vector<1x256xf32>
    %58 = vector.broadcast %57 : vector<1x256xf32> to vector<32x256xf32>
    %59 = arith.mulf %56, %58 : vector<32x256xf32>
    %c32_32 = arith.constant 32 : index
    %c768_33 = arith.constant 768 : index
    %60 = vector.load %arg8[%c32_32, %c768_33] : memref<288x1024xf32, #tpu.memory_space<vmem>>, vector<32x256xf32>
    tpu.vector_store %arg8[%c32_32, %c768_33], %59 {strides = array<i32>} : memref<288x1024xf32, #tpu.memory_space<vmem>>, vector<32x256xf32>,
    %61 = vector.extract_strided_slice %15 {offsets = [0, 768], sizes = [32, 256], strides = [1, 1]} : vector<32x1024xf32> to vector<32x256xf32>
    %c16_i32_34 = arith.constant 16 : i32
    %62 = tpu.dynamic_rotate %61 by %c16_i32_34 dim 1 : vector<32x256xf32>, i32 -> vector<32x256xf32>
    %c1_35 = arith.constant 1 : index
    %c0_36 = arith.constant 0 : index
    %63 = vector.load %arg6[%c1_35, %c0_36] : memref<9x256xf32, #tpu.memory_space<vmem>>, vector<1x256xf32>
    %64 = vector.broadcast %63 : vector<1x256xf32> to vector<32x256xf32>
    %65 = arith.mulf %62, %64 : vector<32x256xf32>
    %c64 = arith.constant 64 : index
    %c0_37 = arith.constant 0 : index
    %66 = vector.load %arg8[%c64, %c0_37] : memref<288x1024xf32, #tpu.memory_space<vmem>>, vector<32x256xf32>
    tpu.vector_store %arg8[%c64, %c0_37], %65 {strides = array<i32>} : memref<288x1024xf32, #tpu.memory_space<vmem>>, vector<32x256xf32>,
    %67 = vector.extract_strided_slice %15 {offsets = [0, 512], sizes = [32, 256], strides = [1, 1]} : vector<32x1024xf32> to vector<32x256xf32>
    %c15_i32 = arith.constant 15 : i32
    %68 = tpu.dynamic_rotate %67 by %c15_i32 dim 1 : vector<32x256xf32>, i32 -> vector<32x256xf32>
    %c2 = arith.constant 2 : index
    %c0_38 = arith.constant 0 : index
    %69 = vector.load %arg6[%c2, %c0_38] : memref<9x256xf32, #tpu.memory_space<vmem>>, vector<1x256xf32>
    %70 = vector.broadcast %69 : vector<1x256xf32> to vector<32x256xf32>
    %71 = arith.mulf %68, %70 : vector<32x256xf32>
    %c64_39 = arith.constant 64 : index
    %c256_40 = arith.constant 256 : index
    %72 = vector.load %arg8[%c64_39, %c256_40] : memref<288x1024xf32, #tpu.memory_space<vmem>>, vector<32x256xf32>
    tpu.vector_store %arg8[%c64_39, %c256_40], %71 {strides = array<i32>} : memref<288x1024xf32, #tpu.memory_space<vmem>>, vector<32x256xf32>,
    %73 = vector.extract_strided_slice %15 {offsets = [0, 256], sizes = [32, 256], strides = [1, 1]} : vector<32x1024xf32> to vector<32x256xf32>
    %c4_41 = arith.constant 4 : index
    %c0_42 = arith.constant 0 : index
    %74 = vector.load %arg6[%c4_41, %c0_42] : memref<9x256xf32, #tpu.memory_space<vmem>>, vector<1x256xf32>
    %75 = vector.broadcast %74 : vector<1x256xf32> to vector<32x256xf32>
    %76 = arith.mulf %73, %75 : vector<32x256xf32>
    %c64_43 = arith.constant 64 : index
    %c512_44 = arith.constant 512 : index
    %77 = vector.load %arg8[%c64_43, %c512_44] : memref<288x1024xf32, #tpu.memory_space<vmem>>, vector<32x256xf32>
    tpu.vector_store %arg8[%c64_43, %c512_44], %76 {strides = array<i32>} : memref<288x1024xf32, #tpu.memory_space<vmem>>, vector<32x256xf32>,
    %78 = vector.extract_strided_slice %15 {offsets = [0, 0], sizes = [32, 256], strides = [1, 1]} : vector<32x1024xf32> to vector<32x256xf32>
    %c255_i32 = arith.constant 255 : i32
    %79 = tpu.dynamic_rotate %78 by %c255_i32 dim 1 : vector<32x256xf32>, i32 -> vector<32x256xf32>
    %c5 = arith.constant 5 : index
    %c0_45 = arith.constant 0 : index
    %80 = vector.load %arg6[%c5, %c0_45] : memref<9x256xf32, #tpu.memory_space<vmem>>, vector<1x256xf32>
    %81 = vector.broadcast %80 : vector<1x256xf32> to vector<32x256xf32>
    %82 = arith.mulf %79, %81 : vector<32x256xf32>
    %c64_46 = arith.constant 64 : index
    %c768_47 = arith.constant 768 : index
    %83 = vector.load %arg8[%c64_46, %c768_47] : memref<288x1024xf32, #tpu.memory_space<vmem>>, vector<32x256xf32>
    tpu.vector_store %arg8[%c64_46, %c768_47], %82 {strides = array<i32>} : memref<288x1024xf32, #tpu.memory_space<vmem>>, vector<32x256xf32>,
    %84 = vector.extract_strided_slice %15 {offsets = [0, 256], sizes = [32, 256], strides = [1, 1]} : vector<32x1024xf32> to vector<32x256xf32>
    %c1_i32_48 = arith.constant 1 : i32
    %85 = tpu.dynamic_rotate %84 by %c1_i32_48 dim 1 : vector<32x256xf32>, i32 -> vector<32x256xf32>
    %c3_49 = arith.constant 3 : index
    %c0_50 = arith.constant 0 : index
    %86 = vector.load %arg6[%c3_49, %c0_50] : memref<9x256xf32, #tpu.memory_space<vmem>>, vector<1x256xf32>
    %87 = vector.broadcast %86 : vector<1x256xf32> to vector<32x256xf32>
    %88 = arith.mulf %85, %87 : vector<32x256xf32>
    %c96 = arith.constant 96 : index
    %c0_51 = arith.constant 0 : index
    %89 = vector.load %arg8[%c96, %c0_51] : memref<288x1024xf32, #tpu.memory_space<vmem>>, vector<32x256xf32>
    tpu.vector_store %arg8[%c96, %c0_51], %88 {strides = array<i32>} : memref<288x1024xf32, #tpu.memory_space<vmem>>, vector<32x256xf32>,
    %90 = vector.extract_strided_slice %15 {offsets = [0, 0], sizes = [32, 256], strides = [1, 1]} : vector<32x1024xf32> to vector<32x256xf32>
    %c4_52 = arith.constant 4 : index
    %c0_53 = arith.constant 0 : index
    %91 = vector.load %arg6[%c4_52, %c0_53] : memref<9x256xf32, #tpu.memory_space<vmem>>, vector<1x256xf32>
    %92 = vector.broadcast %91 : vector<1x256xf32> to vector<32x256xf32>
    %93 = arith.mulf %90, %92 : vector<32x256xf32>
    %c96_54 = arith.constant 96 : index
    %c256_55 = arith.constant 256 : index
    %94 = vector.load %arg8[%c96_54, %c256_55] : memref<288x1024xf32, #tpu.memory_space<vmem>>, vector<32x256xf32>
    tpu.vector_store %arg8[%c96_54, %c256_55], %93 {strides = array<i32>} : memref<288x1024xf32, #tpu.memory_space<vmem>>, vector<32x256xf32>,
    %95 = vector.extract_strided_slice %15 {offsets = [0, 768], sizes = [32, 256], strides = [1, 1]} : vector<32x1024xf32> to vector<32x256xf32>
    %c1_i32_56 = arith.constant 1 : i32
    %96 = tpu.dynamic_rotate %95 by %c1_i32_56 dim 1 : vector<32x256xf32>, i32 -> vector<32x256xf32>
    %c3_57 = arith.constant 3 : index
    %c0_58 = arith.constant 0 : index
    %97 = vector.load %arg6[%c3_57, %c0_58] : memref<9x256xf32, #tpu.memory_space<vmem>>, vector<1x256xf32>
    %98 = vector.broadcast %97 : vector<1x256xf32> to vector<32x256xf32>
    %99 = arith.mulf %96, %98 : vector<32x256xf32>
    %c96_59 = arith.constant 96 : index
    %c512_60 = arith.constant 512 : index
    %100 = vector.load %arg8[%c96_59, %c512_60] : memref<288x1024xf32, #tpu.memory_space<vmem>>, vector<32x256xf32>
    tpu.vector_store %arg8[%c96_59, %c512_60], %99 {strides = array<i32>} : memref<288x1024xf32, #tpu.memory_space<vmem>>, vector<32x256xf32>,
    %101 = vector.extract_strided_slice %15 {offsets = [0, 512], sizes = [32, 256], strides = [1, 1]} : vector<32x1024xf32> to vector<32x256xf32>
    %c4_61 = arith.constant 4 : index
    %c0_62 = arith.constant 0 : index
    %102 = vector.load %arg6[%c4_61, %c0_62] : memref<9x256xf32, #tpu.memory_space<vmem>>, vector<1x256xf32>
    %103 = vector.broadcast %102 : vector<1x256xf32> to vector<32x256xf32>
    %104 = arith.mulf %101, %103 : vector<32x256xf32>
    %c96_63 = arith.constant 96 : index
    %c768_64 = arith.constant 768 : index
    %105 = vector.load %arg8[%c96_63, %c768_64] : memref<288x1024xf32, #tpu.memory_space<vmem>>, vector<32x256xf32>
    tpu.vector_store %arg8[%c96_63, %c768_64], %104 {strides = array<i32>} : memref<288x1024xf32, #tpu.memory_space<vmem>>, vector<32x256xf32>,
    %106 = vector.extract_strided_slice %15 {offsets = [0, 0], sizes = [32, 256], strides = [1, 1]} : vector<32x1024xf32> to vector<32x256xf32>
    %c4_65 = arith.constant 4 : index
    %c0_66 = arith.constant 0 : index
    %107 = vector.load %arg6[%c4_65, %c0_66] : memref<9x256xf32, #tpu.memory_space<vmem>>, vector<1x256xf32>
    %108 = vector.broadcast %107 : vector<1x256xf32> to vector<32x256xf32>
    %109 = arith.mulf %106, %108 : vector<32x256xf32>
    %c128 = arith.constant 128 : index
    %c0_67 = arith.constant 0 : index
    %110 = vector.load %arg8[%c128, %c0_67] : memref<288x1024xf32, #tpu.memory_space<vmem>>, vector<32x256xf32>
    tpu.vector_store %arg8[%c128, %c0_67], %109 {strides = array<i32>} : memref<288x1024xf32, #tpu.memory_space<vmem>>, vector<32x256xf32>,
    %111 = vector.extract_strided_slice %15 {offsets = [0, 256], sizes = [32, 256], strides = [1, 1]} : vector<32x1024xf32> to vector<32x256xf32>
    %c4_68 = arith.constant 4 : index
    %c0_69 = arith.constant 0 : index
    %112 = vector.load %arg6[%c4_68, %c0_69] : memref<9x256xf32, #tpu.memory_space<vmem>>, vector<1x256xf32>
    %113 = vector.broadcast %112 : vector<1x256xf32> to vector<32x256xf32>
    %114 = arith.mulf %111, %113 : vector<32x256xf32>
    %c128_70 = arith.constant 128 : index
    %c256_71 = arith.constant 256 : index
    %115 = vector.load %arg8[%c128_70, %c256_71] : memref<288x1024xf32, #tpu.memory_space<vmem>>, vector<32x256xf32>
    tpu.vector_store %arg8[%c128_70, %c256_71], %114 {strides = array<i32>} : memref<288x1024xf32, #tpu.memory_space<vmem>>, vector<32x256xf32>,
    %116 = vector.extract_strided_slice %15 {offsets = [0, 512], sizes = [32, 256], strides = [1, 1]} : vector<32x1024xf32> to vector<32x256xf32>
    %c4_72 = arith.constant 4 : index
    %c0_73 = arith.constant 0 : index
    %117 = vector.load %arg6[%c4_72, %c0_73] : memref<9x256xf32, #tpu.memory_space<vmem>>, vector<1x256xf32>
    %118 = vector.broadcast %117 : vector<1x256xf32> to vector<32x256xf32>
    %119 = arith.mulf %116, %118 : vector<32x256xf32>
    %c128_74 = arith.constant 128 : index
    %c512_75 = arith.constant 512 : index
    %120 = vector.load %arg8[%c128_74, %c512_75] : memref<288x1024xf32, #tpu.memory_space<vmem>>, vector<32x256xf32>
    tpu.vector_store %arg8[%c128_74, %c512_75], %119 {strides = array<i32>} : memref<288x1024xf32, #tpu.memory_space<vmem>>, vector<32x256xf32>,
    %121 = vector.extract_strided_slice %15 {offsets = [0, 768], sizes = [32, 256], strides = [1, 1]} : vector<32x1024xf32> to vector<32x256xf32>
    %c4_76 = arith.constant 4 : index
    %c0_77 = arith.constant 0 : index
    %122 = vector.load %arg6[%c4_76, %c0_77] : memref<9x256xf32, #tpu.memory_space<vmem>>, vector<1x256xf32>
    %123 = vector.broadcast %122 : vector<1x256xf32> to vector<32x256xf32>
    %124 = arith.mulf %121, %123 : vector<32x256xf32>
    %c128_78 = arith.constant 128 : index
    %c768_79 = arith.constant 768 : index
    %125 = vector.load %arg8[%c128_78, %c768_79] : memref<288x1024xf32, #tpu.memory_space<vmem>>, vector<32x256xf32>
    tpu.vector_store %arg8[%c128_78, %c768_79], %124 {strides = array<i32>} : memref<288x1024xf32, #tpu.memory_space<vmem>>, vector<32x256xf32>,
    %126 = vector.extract_strided_slice %15 {offsets = [0, 256], sizes = [32, 256], strides = [1, 1]} : vector<32x1024xf32> to vector<32x256xf32>
    %c4_80 = arith.constant 4 : index
    %c0_81 = arith.constant 0 : index
    %127 = vector.load %arg6[%c4_80, %c0_81] : memref<9x256xf32, #tpu.memory_space<vmem>>, vector<1x256xf32>
    %128 = vector.broadcast %127 : vector<1x256xf32> to vector<32x256xf32>
    %129 = arith.mulf %126, %128 : vector<32x256xf32>
    %c160 = arith.constant 160 : index
    %c0_82 = arith.constant 0 : index
    %130 = vector.load %arg8[%c160, %c0_82] : memref<288x1024xf32, #tpu.memory_space<vmem>>, vector<32x256xf32>
    tpu.vector_store %arg8[%c160, %c0_82], %129 {strides = array<i32>} : memref<288x1024xf32, #tpu.memory_space<vmem>>, vector<32x256xf32>,
    %131 = vector.extract_strided_slice %15 {offsets = [0, 0], sizes = [32, 256], strides = [1, 1]} : vector<32x1024xf32> to vector<32x256xf32>
    %c255_i32_83 = arith.constant 255 : i32
    %132 = tpu.dynamic_rotate %131 by %c255_i32_83 dim 1 : vector<32x256xf32>, i32 -> vector<32x256xf32>
    %c5_84 = arith.constant 5 : index
    %c0_85 = arith.constant 0 : index
    %133 = vector.load %arg6[%c5_84, %c0_85] : memref<9x256xf32, #tpu.memory_space<vmem>>, vector<1x256xf32>
    %134 = vector.broadcast %133 : vector<1x256xf32> to vector<32x256xf32>
    %135 = arith.mulf %132, %134 : vector<32x256xf32>
    %c160_86 = arith.constant 160 : index
    %c256_87 = arith.constant 256 : index
    %136 = vector.load %arg8[%c160_86, %c256_87] : memref<288x1024xf32, #tpu.memory_space<vmem>>, vector<32x256xf32>
    tpu.vector_store %arg8[%c160_86, %c256_87], %135 {strides = array<i32>} : memref<288x1024xf32, #tpu.memory_space<vmem>>, vector<32x256xf32>,
    %137 = vector.extract_strided_slice %15 {offsets = [0, 768], sizes = [32, 256], strides = [1, 1]} : vector<32x1024xf32> to vector<32x256xf32>
    %c4_88 = arith.constant 4 : index
    %c0_89 = arith.constant 0 : index
    %138 = vector.load %arg6[%c4_88, %c0_89] : memref<9x256xf32, #tpu.memory_space<vmem>>, vector<1x256xf32>
    %139 = vector.broadcast %138 : vector<1x256xf32> to vector<32x256xf32>
    %140 = arith.mulf %137, %139 : vector<32x256xf32>
    %c160_90 = arith.constant 160 : index
    %c512_91 = arith.constant 512 : index
    %141 = vector.load %arg8[%c160_90, %c512_91] : memref<288x1024xf32, #tpu.memory_space<vmem>>, vector<32x256xf32>
    tpu.vector_store %arg8[%c160_90, %c512_91], %140 {strides = array<i32>} : memref<288x1024xf32, #tpu.memory_space<vmem>>, vector<32x256xf32>,
    %142 = vector.extract_strided_slice %15 {offsets = [0, 512], sizes = [32, 256], strides = [1, 1]} : vector<32x1024xf32> to vector<32x256xf32>
    %c255_i32_92 = arith.constant 255 : i32
    %143 = tpu.dynamic_rotate %142 by %c255_i32_92 dim 1 : vector<32x256xf32>, i32 -> vector<32x256xf32>
    %c5_93 = arith.constant 5 : index
    %c0_94 = arith.constant 0 : index
    %144 = vector.load %arg6[%c5_93, %c0_94] : memref<9x256xf32, #tpu.memory_space<vmem>>, vector<1x256xf32>
    %145 = vector.broadcast %144 : vector<1x256xf32> to vector<32x256xf32>
    %146 = arith.mulf %143, %145 : vector<32x256xf32>
    %c160_95 = arith.constant 160 : index
    %c768_96 = arith.constant 768 : index
    %147 = vector.load %arg8[%c160_95, %c768_96] : memref<288x1024xf32, #tpu.memory_space<vmem>>, vector<32x256xf32>
    tpu.vector_store %arg8[%c160_95, %c768_96], %146 {strides = array<i32>} : memref<288x1024xf32, #tpu.memory_space<vmem>>, vector<32x256xf32>,
    %148 = vector.extract_strided_slice %15 {offsets = [0, 768], sizes = [32, 256], strides = [1, 1]} : vector<32x1024xf32> to vector<32x256xf32>
    %c1_i32_97 = arith.constant 1 : i32
    %149 = tpu.dynamic_rotate %148 by %c1_i32_97 dim 1 : vector<32x256xf32>, i32 -> vector<32x256xf32>
    %c3_98 = arith.constant 3 : index
    %c0_99 = arith.constant 0 : index
    %150 = vector.load %arg6[%c3_98, %c0_99] : memref<9x256xf32, #tpu.memory_space<vmem>>, vector<1x256xf32>
    %151 = vector.broadcast %150 : vector<1x256xf32> to vector<32x256xf32>
    %152 = arith.mulf %149, %151 : vector<32x256xf32>
    %c192 = arith.constant 192 : index
    %c0_100 = arith.constant 0 : index
    %153 = vector.load %arg8[%c192, %c0_100] : memref<288x1024xf32, #tpu.memory_space<vmem>>, vector<32x256xf32>
    tpu.vector_store %arg8[%c192, %c0_100], %152 {strides = array<i32>} : memref<288x1024xf32, #tpu.memory_space<vmem>>, vector<32x256xf32>,
    %154 = vector.extract_strided_slice %15 {offsets = [0, 512], sizes = [32, 256], strides = [1, 1]} : vector<32x1024xf32> to vector<32x256xf32>
    %c4_101 = arith.constant 4 : index
    %c0_102 = arith.constant 0 : index
    %155 = vector.load %arg6[%c4_101, %c0_102] : memref<9x256xf32, #tpu.memory_space<vmem>>, vector<1x256xf32>
    %156 = vector.broadcast %155 : vector<1x256xf32> to vector<32x256xf32>
    %157 = arith.mulf %154, %156 : vector<32x256xf32>
    %c192_103 = arith.constant 192 : index
    %c256_104 = arith.constant 256 : index
    %158 = vector.load %arg8[%c192_103, %c256_104] : memref<288x1024xf32, #tpu.memory_space<vmem>>, vector<32x256xf32>
    tpu.vector_store %arg8[%c192_103, %c256_104], %157 {strides = array<i32>} : memref<288x1024xf32, #tpu.memory_space<vmem>>, vector<32x256xf32>,
    %159 = vector.extract_strided_slice %15 {offsets = [0, 256], sizes = [32, 256], strides = [1, 1]} : vector<32x1024xf32> to vector<32x256xf32>
    %c241_i32 = arith.constant 241 : i32
    %160 = tpu.dynamic_rotate %159 by %c241_i32 dim 1 : vector<32x256xf32>, i32 -> vector<32x256xf32>
    %c6 = arith.constant 6 : index
    %c0_105 = arith.constant 0 : index
    %161 = vector.load %arg6[%c6, %c0_105] : memref<9x256xf32, #tpu.memory_space<vmem>>, vector<1x256xf32>
    %162 = vector.broadcast %161 : vector<1x256xf32> to vector<32x256xf32>
    %163 = arith.mulf %160, %162 : vector<32x256xf32>
    %c192_106 = arith.constant 192 : index
    %c512_107 = arith.constant 512 : index
    %164 = vector.load %arg8[%c192_106, %c512_107] : memref<288x1024xf32, #tpu.memory_space<vmem>>, vector<32x256xf32>
    tpu.vector_store %arg8[%c192_106, %c512_107], %163 {strides = array<i32>} : memref<288x1024xf32, #tpu.memory_space<vmem>>, vector<32x256xf32>,
    %165 = vector.extract_strided_slice %15 {offsets = [0, 0], sizes = [32, 256], strides = [1, 1]} : vector<32x1024xf32> to vector<32x256xf32>
    %c240_i32 = arith.constant 240 : i32
    %166 = tpu.dynamic_rotate %165 by %c240_i32 dim 1 : vector<32x256xf32>, i32 -> vector<32x256xf32>
    %c7 = arith.constant 7 : index
    %c0_108 = arith.constant 0 : index
    %167 = vector.load %arg6[%c7, %c0_108] : memref<9x256xf32, #tpu.memory_space<vmem>>, vector<1x256xf32>
    %168 = vector.broadcast %167 : vector<1x256xf32> to vector<32x256xf32>
    %169 = arith.mulf %166, %168 : vector<32x256xf32>
    %c192_109 = arith.constant 192 : index
    %c768_110 = arith.constant 768 : index
    %170 = vector.load %arg8[%c192_109, %c768_110] : memref<288x1024xf32, #tpu.memory_space<vmem>>, vector<32x256xf32>
    tpu.vector_store %arg8[%c192_109, %c768_110], %169 {strides = array<i32>} : memref<288x1024xf32, #tpu.memory_space<vmem>>, vector<32x256xf32>,
    %171 = vector.extract_strided_slice %15 {offsets = [0, 512], sizes = [32, 256], strides = [1, 1]} : vector<32x1024xf32> to vector<32x256xf32>
    %c4_111 = arith.constant 4 : index
    %c0_112 = arith.constant 0 : index
    %172 = vector.load %arg6[%c4_111, %c0_112] : memref<9x256xf32, #tpu.memory_space<vmem>>, vector<1x256xf32>
    %173 = vector.broadcast %172 : vector<1x256xf32> to vector<32x256xf32>
    %174 = arith.mulf %171, %173 : vector<32x256xf32>
    %c224 = arith.constant 224 : index
    %c0_113 = arith.constant 0 : index
    %175 = vector.load %arg8[%c224, %c0_113] : memref<288x1024xf32, #tpu.memory_space<vmem>>, vector<32x256xf32>
    tpu.vector_store %arg8[%c224, %c0_113], %174 {strides = array<i32>} : memref<288x1024xf32, #tpu.memory_space<vmem>>, vector<32x256xf32>,
    %176 = vector.extract_strided_slice %15 {offsets = [0, 768], sizes = [32, 256], strides = [1, 1]} : vector<32x1024xf32> to vector<32x256xf32>
    %c4_114 = arith.constant 4 : index
    %c0_115 = arith.constant 0 : index
    %177 = vector.load %arg6[%c4_114, %c0_115] : memref<9x256xf32, #tpu.memory_space<vmem>>, vector<1x256xf32>
    %178 = vector.broadcast %177 : vector<1x256xf32> to vector<32x256xf32>
    %179 = arith.mulf %176, %178 : vector<32x256xf32>
    %c224_116 = arith.constant 224 : index
    %c256_117 = arith.constant 256 : index
    %180 = vector.load %arg8[%c224_116, %c256_117] : memref<288x1024xf32, #tpu.memory_space<vmem>>, vector<32x256xf32>
    tpu.vector_store %arg8[%c224_116, %c256_117], %179 {strides = array<i32>} : memref<288x1024xf32, #tpu.memory_space<vmem>>, vector<32x256xf32>,
    %181 = vector.extract_strided_slice %15 {offsets = [0, 0], sizes = [32, 256], strides = [1, 1]} : vector<32x1024xf32> to vector<32x256xf32>
    %c240_i32_118 = arith.constant 240 : i32
    %182 = tpu.dynamic_rotate %181 by %c240_i32_118 dim 1 : vector<32x256xf32>, i32 -> vector<32x256xf32>
    %c7_119 = arith.constant 7 : index
    %c0_120 = arith.constant 0 : index
    %183 = vector.load %arg6[%c7_119, %c0_120] : memref<9x256xf32, #tpu.memory_space<vmem>>, vector<1x256xf32>
    %184 = vector.broadcast %183 : vector<1x256xf32> to vector<32x256xf32>
    %185 = arith.mulf %182, %184 : vector<32x256xf32>
    %c224_121 = arith.constant 224 : index
    %c512_122 = arith.constant 512 : index
    %186 = vector.load %arg8[%c224_121, %c512_122] : memref<288x1024xf32, #tpu.memory_space<vmem>>, vector<32x256xf32>
    tpu.vector_store %arg8[%c224_121, %c512_122], %185 {strides = array<i32>} : memref<288x1024xf32, #tpu.memory_space<vmem>>, vector<32x256xf32>,
    %187 = vector.extract_strided_slice %15 {offsets = [0, 256], sizes = [32, 256], strides = [1, 1]} : vector<32x1024xf32> to vector<32x256xf32>
    %c240_i32_123 = arith.constant 240 : i32
    %188 = tpu.dynamic_rotate %187 by %c240_i32_123 dim 1 : vector<32x256xf32>, i32 -> vector<32x256xf32>
    %c7_124 = arith.constant 7 : index
    %c0_125 = arith.constant 0 : index
    %189 = vector.load %arg6[%c7_124, %c0_125] : memref<9x256xf32, #tpu.memory_space<vmem>>, vector<1x256xf32>
    %190 = vector.broadcast %189 : vector<1x256xf32> to vector<32x256xf32>
    %191 = arith.mulf %188, %190 : vector<32x256xf32>
    %c224_126 = arith.constant 224 : index
    %c768_127 = arith.constant 768 : index
    %192 = vector.load %arg8[%c224_126, %c768_127] : memref<288x1024xf32, #tpu.memory_space<vmem>>, vector<32x256xf32>
    tpu.vector_store %arg8[%c224_126, %c768_127], %191 {strides = array<i32>} : memref<288x1024xf32, #tpu.memory_space<vmem>>, vector<32x256xf32>,
    %193 = vector.extract_strided_slice %15 {offsets = [0, 768], sizes = [32, 256], strides = [1, 1]} : vector<32x1024xf32> to vector<32x256xf32>
    %c4_128 = arith.constant 4 : index
    %c0_129 = arith.constant 0 : index
    %194 = vector.load %arg6[%c4_128, %c0_129] : memref<9x256xf32, #tpu.memory_space<vmem>>, vector<1x256xf32>
    %195 = vector.broadcast %194 : vector<1x256xf32> to vector<32x256xf32>
    %196 = arith.mulf %193, %195 : vector<32x256xf32>
    %c256_130 = arith.constant 256 : index
    %c0_131 = arith.constant 0 : index
    %197 = vector.load %arg8[%c256_130, %c0_131] : memref<288x1024xf32, #tpu.memory_space<vmem>>, vector<32x256xf32>
    tpu.vector_store %arg8[%c256_130, %c0_131], %196 {strides = array<i32>} : memref<288x1024xf32, #tpu.memory_space<vmem>>, vector<32x256xf32>,
    %198 = vector.extract_strided_slice %15 {offsets = [0, 512], sizes = [32, 256], strides = [1, 1]} : vector<32x1024xf32> to vector<32x256xf32>
    %c255_i32_132 = arith.constant 255 : i32
    %199 = tpu.dynamic_rotate %198 by %c255_i32_132 dim 1 : vector<32x256xf32>, i32 -> vector<32x256xf32>
    %c5_133 = arith.constant 5 : index
    %c0_134 = arith.constant 0 : index
    %200 = vector.load %arg6[%c5_133, %c0_134] : memref<9x256xf32, #tpu.memory_space<vmem>>, vector<1x256xf32>
    %201 = vector.broadcast %200 : vector<1x256xf32> to vector<32x256xf32>
    %202 = arith.mulf %199, %201 : vector<32x256xf32>
    %c256_135 = arith.constant 256 : index
    %c256_136 = arith.constant 256 : index
    %203 = vector.load %arg8[%c256_135, %c256_136] : memref<288x1024xf32, #tpu.memory_space<vmem>>, vector<32x256xf32>
    tpu.vector_store %arg8[%c256_135, %c256_136], %202 {strides = array<i32>} : memref<288x1024xf32, #tpu.memory_space<vmem>>, vector<32x256xf32>,
    %204 = vector.extract_strided_slice %15 {offsets = [0, 256], sizes = [32, 256], strides = [1, 1]} : vector<32x1024xf32> to vector<32x256xf32>
    %c240_i32_137 = arith.constant 240 : i32
    %205 = tpu.dynamic_rotate %204 by %c240_i32_137 dim 1 : vector<32x256xf32>, i32 -> vector<32x256xf32>
    %c7_138 = arith.constant 7 : index
    %c0_139 = arith.constant 0 : index
    %206 = vector.load %arg6[%c7_138, %c0_139] : memref<9x256xf32, #tpu.memory_space<vmem>>, vector<1x256xf32>
    %207 = vector.broadcast %206 : vector<1x256xf32> to vector<32x256xf32>
    %208 = arith.mulf %205, %207 : vector<32x256xf32>
    %c256_140 = arith.constant 256 : index
    %c512_141 = arith.constant 512 : index
    %209 = vector.load %arg8[%c256_140, %c512_141] : memref<288x1024xf32, #tpu.memory_space<vmem>>, vector<32x256xf32>
    tpu.vector_store %arg8[%c256_140, %c512_141], %208 {strides = array<i32>} : memref<288x1024xf32, #tpu.memory_space<vmem>>, vector<32x256xf32>,
    %210 = vector.extract_strided_slice %15 {offsets = [0, 0], sizes = [32, 256], strides = [1, 1]} : vector<32x1024xf32> to vector<32x256xf32>
    %c239_i32 = arith.constant 239 : i32
    %211 = tpu.dynamic_rotate %210 by %c239_i32 dim 1 : vector<32x256xf32>, i32 -> vector<32x256xf32>
    %c8 = arith.constant 8 : index
    %c0_142 = arith.constant 0 : index
    %212 = vector.load %arg6[%c8, %c0_142] : memref<9x256xf32, #tpu.memory_space<vmem>>, vector<1x256xf32>
    %213 = vector.broadcast %212 : vector<1x256xf32> to vector<32x256xf32>
    %214 = arith.mulf %211, %213 : vector<32x256xf32>
    %c256_143 = arith.constant 256 : index
    %c768_144 = arith.constant 768 : index
    %215 = vector.load %arg8[%c256_143, %c768_144] : memref<288x1024xf32, #tpu.memory_space<vmem>>, vector<32x256xf32>
    tpu.vector_store %arg8[%c256_143, %c768_144], %214 {strides = array<i32>} : memref<288x1024xf32, #tpu.memory_space<vmem>>, vector<32x256xf32>,
    %c0_145 = arith.constant 0 : index
    %c0_146 = arith.constant 0 : index
    %216 = vector.load %arg4[%c0_145, %c0_146] : memref<64x288xf32, #tpu.memory_space<vmem>>, vector<64x288xf32>
    %c0_147 = arith.constant 0 : index
    %c0_148 = arith.constant 0 : index
    %217 = vector.load %arg8[%c0_147, %c0_148] : memref<288x1024xf32, #tpu.memory_space<vmem>>, vector<288x1024xf32>
    %cst_149 = arith.constant dense<0.000000e+00> : vector<64x1024xf32>
    %218 = tpu.matmul %216, %217, %cst_149 {dimension_numbers = #tpu.dot_dimension_numbers<[1], [0], [0], [1], [0, 0, 1, 1], [], []>} : vector<64x288xf32>, vector<288x1024xf32>, vector<64x1024xf32> -> vector<64x1024xf32>
    %c0_150 = arith.constant 0 : index
    %c0_151 = arith.constant 0 : index
    %219 = vector.load %arg5[%c0_150, %c0_151] : memref<64x1xf32, #tpu.memory_space<vmem>>, vector<64x1xf32>
    %220 = vector.broadcast %219 : vector<64x1xf32> to vector<64x1024xf32>
    %221 = arith.addf %218, %220 : vector<64x1024xf32>
    %cst_152 = arith.constant 0.000000e+00 : f32
    %222 = vector.broadcast %cst_152 : f32 to vector<64x1024xf32>
    %223 = arith.maximumf %221, %222 : vector<64x1024xf32>
    %224 = vector.extract_strided_slice %223 {offsets = [0, 0], sizes = [64, 256], strides = [1, 1]} : vector<64x1024xf32> to vector<64x256xf32>
    %225 = vector.extract_strided_slice %223 {offsets = [0, 256], sizes = [64, 256], strides = [1, 1]} : vector<64x1024xf32> to vector<64x256xf32>
    %226 = arith.maximumf %224, %225 : vector<64x256xf32>
    %227 = vector.extract_strided_slice %223 {offsets = [0, 512], sizes = [64, 256], strides = [1, 1]} : vector<64x1024xf32> to vector<64x256xf32>
    %228 = vector.extract_strided_slice %223 {offsets = [0, 768], sizes = [64, 256], strides = [1, 1]} : vector<64x1024xf32> to vector<64x256xf32>
    %229 = arith.maximumf %227, %228 : vector<64x256xf32>
    %230 = arith.maximumf %226, %229 : vector<64x256xf32>
    %231 = vector.shape_cast %230 : vector<64x256xf32> to vector<1x64x256xf32>
    %232 = arith.truncf %231 : vector<1x64x256xf32> to vector<1x64x256xbf16>
    %c0_153 = arith.constant 0 : index
    %c0_154 = arith.constant 0 : index
    %c0_155 = arith.constant 0 : index
    %233 = vector.load %arg7[%c0_153, %c0_154, %c0_155] : memref<1x64x256xbf16, #tpu.memory_space<vmem>>, vector<1x64x256xbf16>
    tpu.vector_store %arg7[%c0_153, %c0_154, %c0_155], %232 {strides = array<i32>} : memref<1x64x256xbf16, #tpu.memory_space<vmem>>, vector<1x64x256xbf16>,
    return
  }
  func.func @transform_0(%arg0: i32) -> (i32, i32, i32) {
    %c0_i32 = arith.constant 0 : i32
    %c0_i32_0 = arith.constant 0 : i32
    %c0_i32_1 = arith.constant 0 : i32
    return %arg0, %c0_i32, %c0_i32_0 : i32, i32, i32
  }
  func.func @transform_1(%arg0: i32) -> (i32, i32) {
    %c0_i32 = arith.constant 0 : i32
    %c0_i32_0 = arith.constant 0 : i32
    %c0_i32_1 = arith.constant 0 : i32
    return %c0_i32, %c0_i32_0 : i32, i32
  }
  func.func @transform_2(%arg0: i32) -> (i32, i32) {
    %c0_i32 = arith.constant 0 : i32
    %c0_i32_0 = arith.constant 0 : i32
    %c0_i32_1 = arith.constant 0 : i32
    return %c0_i32, %c0_i32_0 : i32, i32
  }
  func.func @transform_3(%arg0: i32) -> (i32, i32) {
    %c0_i32 = arith.constant 0 : i32
    %c0_i32_0 = arith.constant 0 : i32
    %c0_i32_1 = arith.constant 0 : i32
    return %c0_i32, %c0_i32_0 : i32, i32
  }
  func.func @transform_4(%arg0: i32) -> (i32, i32) {
    %c0_i32 = arith.constant 0 : i32
    %c0_i32_0 = arith.constant 0 : i32
    %c0_i32_1 = arith.constant 0 : i32
    return %c0_i32, %c0_i32_0 : i32, i32
  }
  func.func @transform_5(%arg0: i32) -> (i32, i32) {
    %c0_i32 = arith.constant 0 : i32
    %c0_i32_0 = arith.constant 0 : i32
    %c0_i32_1 = arith.constant 0 : i32
    return %c0_i32, %c0_i32_0 : i32, i32
  }
  func.func @transform_6(%arg0: i32) -> (i32, i32, i32) {
    %c0_i32 = arith.constant 0 : i32
    %c0_i32_0 = arith.constant 0 : i32
    %c0_i32_1 = arith.constant 0 : i32
    return %arg0, %c0_i32, %c0_i32_0 : i32, i32, i32
  }
}

module attributes {stable_mosaic.version = 11 : i64} {
  func.func @_mlp_kernel(%arg0: i32, %arg1: memref<2x16384xbf16, #tpu.memory_space<vmem>>, %arg2: memref<1x16384x64xbf16, #tpu.memory_space<vmem>>, %arg3: memref<1x1x64xf32, #tpu.memory_space<vmem>>, %arg4: memref<1x64x128xf32, #tpu.memory_space<vmem>>, %arg5: memref<1x1x128xf32, #tpu.memory_space<vmem>>, %arg6: memref<1x2x128xf32, #tpu.memory_space<vmem>>) attributes {dimension_semantics = [#tpu.dimension_semantics<parallel>], iteration_bounds = array<i64: 2>, scalar_prefetch = 0 : i64, scratch_operands = 0 : i64, tpu.core_type = #tpu.core_type<tc>, window_params = [{pipeline_mode = #tpu.pipeline_mode<synchronous>, transform_indices = @transform_0, window_bounds = array<i64: 2, 16384>}, {transform_indices = @transform_1, window_bounds = array<i64: 1, 16384, 64>}, {transform_indices = @transform_2, window_bounds = array<i64: 1, 1, 64>}, {transform_indices = @transform_3, window_bounds = array<i64: 1, 64, 128>}, {transform_indices = @transform_4, window_bounds = array<i64: 1, 1, 128>}, {transform_indices = @transform_5, window_bounds = array<i64: 1, 2, 128>}]} {
    %c0 = arith.constant 0 : index
    %c0_0 = arith.constant 0 : index
    %0 = vector.load %arg1[%c0, %c0_0] : memref<2x16384xbf16, #tpu.memory_space<vmem>>, vector<2x16384xbf16>
    %c0_1 = arith.constant 0 : index
    %c0_2 = arith.constant 0 : index
    %c0_3 = arith.constant 0 : index
    %1 = vector.load %arg2[%c0_1, %c0_2, %c0_3] : memref<1x16384x64xbf16, #tpu.memory_space<vmem>>, vector<1x16384x64xbf16>
    %2 = vector.shape_cast %1 : vector<1x16384x64xbf16> to vector<16384x64xbf16>
    %cst = arith.constant dense<0.000000e+00> : vector<2x64xf32>
    %3 = tpu.matmul %0, %2, %cst {dimension_numbers = #tpu.dot_dimension_numbers<[1], [0], [0], [1], [0, 0, 1, 1], [], []>} : vector<2x16384xbf16>, vector<16384x64xbf16>, vector<2x64xf32> -> vector<2x64xf32>
    %c0_4 = arith.constant 0 : index
    %c0_5 = arith.constant 0 : index
    %c0_6 = arith.constant 0 : index
    %4 = vector.load %arg3[%c0_4, %c0_5, %c0_6] : memref<1x1x64xf32, #tpu.memory_space<vmem>>, vector<1x1x64xf32>
    %5 = vector.shape_cast %4 : vector<1x1x64xf32> to vector<1x64xf32>
    %6 = vector.broadcast %5 : vector<1x64xf32> to vector<2x64xf32>
    %7 = arith.addf %3, %6 : vector<2x64xf32>
    %cst_7 = arith.constant 0.000000e+00 : f32
    %8 = vector.broadcast %cst_7 : f32 to vector<2x64xf32>
    %9 = arith.maximumf %7, %8 : vector<2x64xf32>
    %c0_8 = arith.constant 0 : index
    %c0_9 = arith.constant 0 : index
    %c0_10 = arith.constant 0 : index
    %10 = vector.load %arg4[%c0_8, %c0_9, %c0_10] : memref<1x64x128xf32, #tpu.memory_space<vmem>>, vector<1x64x128xf32>
    %11 = vector.shape_cast %10 : vector<1x64x128xf32> to vector<64x128xf32>
    %cst_11 = arith.constant dense<0.000000e+00> : vector<2x128xf32>
    %12 = tpu.matmul %9, %11, %cst_11 {dimension_numbers = #tpu.dot_dimension_numbers<[1], [0], [0], [1], [0, 0, 1, 1], [], []>} : vector<2x64xf32>, vector<64x128xf32>, vector<2x128xf32> -> vector<2x128xf32>
    %c0_12 = arith.constant 0 : index
    %c0_13 = arith.constant 0 : index
    %c0_14 = arith.constant 0 : index
    %13 = vector.load %arg5[%c0_12, %c0_13, %c0_14] : memref<1x1x128xf32, #tpu.memory_space<vmem>>, vector<1x1x128xf32>
    %14 = vector.shape_cast %13 : vector<1x1x128xf32> to vector<1x128xf32>
    %15 = vector.broadcast %14 : vector<1x128xf32> to vector<2x128xf32>
    %16 = arith.addf %12, %15 : vector<2x128xf32>
    %17 = vector.shape_cast %16 : vector<2x128xf32> to vector<1x2x128xf32>
    %c0_15 = arith.constant 0 : index
    %c0_16 = arith.constant 0 : index
    %c0_17 = arith.constant 0 : index
    %18 = vector.load %arg6[%c0_15, %c0_16, %c0_17] : memref<1x2x128xf32, #tpu.memory_space<vmem>>, vector<1x2x128xf32>
    tpu.vector_store %arg6[%c0_15, %c0_16, %c0_17], %17 {strides = array<i32>} : memref<1x2x128xf32, #tpu.memory_space<vmem>>, vector<1x2x128xf32>,
    return
  }
  func.func @transform_0(%arg0: i32) -> (i32, i32) {
    %c0_i32 = arith.constant 0 : i32
    %c0_i32_0 = arith.constant 0 : i32
    %c0_i32_1 = arith.constant 0 : i32
    return %c0_i32, %c0_i32_0 : i32, i32
  }
  func.func @transform_1(%arg0: i32) -> (i32, i32, i32) {
    %c0_i32 = arith.constant 0 : i32
    %c0_i32_0 = arith.constant 0 : i32
    %c0_i32_1 = arith.constant 0 : i32
    return %arg0, %c0_i32, %c0_i32_0 : i32, i32, i32
  }
  func.func @transform_2(%arg0: i32) -> (i32, i32, i32) {
    %c0_i32 = arith.constant 0 : i32
    %c0_i32_0 = arith.constant 0 : i32
    %c0_i32_1 = arith.constant 0 : i32
    return %arg0, %c0_i32, %c0_i32_0 : i32, i32, i32
  }
  func.func @transform_3(%arg0: i32) -> (i32, i32, i32) {
    %c0_i32 = arith.constant 0 : i32
    %c0_i32_0 = arith.constant 0 : i32
    %c0_i32_1 = arith.constant 0 : i32
    return %arg0, %c0_i32, %c0_i32_0 : i32, i32, i32
  }
  func.func @transform_4(%arg0: i32) -> (i32, i32, i32) {
    %c0_i32 = arith.constant 0 : i32
    %c0_i32_0 = arith.constant 0 : i32
    %c0_i32_1 = arith.constant 0 : i32
    return %arg0, %c0_i32, %c0_i32_0 : i32, i32, i32
  }
  func.func @transform_5(%arg0: i32) -> (i32, i32, i32) {
    %c0_i32 = arith.constant 0 : i32
    %c0_i32_0 = arith.constant 0 : i32
    %c0_i32_1 = arith.constant 0 : i32
    return %arg0, %c0_i32, %c0_i32_0 : i32, i32, i32
  }
}

</mosaic_0001>

<bundles_post_ra>
// kernel: anime_cnn_forward.2
= control target key start
LH: loop header
LB: loop body
LE: loop exit
PB: predicated region body
PF: predicated region fallthrough
CT: control target
= control target key end

     0   :  { %s5336_s21 = smov 0   ;;  %s8371_s0 = inlined_call_operand.vmem [shape: bf16[2,27,4096], index: 0, kind: input, shape index: {}]   ;;  %s8372_s1 = inlined_call_operand.vmem [shape: bf16[32,27], index: 1, kind: input, shape index: {}]   ;;  %s8373_s2 = inlined_call_operand.vmem [shape: f32[32,1], index: 2, kind: input, shape index: {}]   ;;  %s8374_s3 = inlined_call_operand.vmem [shape: f32[64,288], index: 3, kind: input, shape index: {}]   ;;  %s8375_s4 = inlined_call_operand.vmem [shape: f32[64,1], index: 4, kind: input, shape index: {}]   ;;  %s8376_s5 = inlined_call_operand.vmem [shape: f32[9,256], index: 5, kind: input, shape index: {}]   ;;  %s8377_s6 = inlined_call_operand.vmem [shape: bf16[2,64,256], index: 6, kind: output, shape index: {}]  }
   0x1 LB: > { %s4648_s22 = sadd.s32 4294967295, %s5288_s21   ;;  %p4652_p0 = scmp.ge.s32.totalorder %s5288_s21, 1  ;;  %s5288_s21 = sphi %s5336_s21, %s16_s21  }
   0x2   : > { %p212_p1 = scmp.lt.s32.totalorder %s5288_s21, 3 }
   0x4   : > { %p213_p2 = pnand %p4652_p0, %p212_p1 }
   0x6   : > { %216 = sbr.rel (%p213_p2) target bundleno = 994 (0x3e2), region = 44 }
   0xd   : > { %p242_p3 = scmp.lt.s32.totalorder %s4648_s22, 1  ;;  %vm650_vm0 = vcmask 1044480   ;;  %v5290_v0 = vmov 0   ;;  %v321_v1 = vld [vmem:[%s8373_s2] sm:$0xff]  ;;  %vm651_vm1 = vcmask 1045504   ;;  %v5291_v2 = vmov 65535  }
   0xe   : > { %782 = vmatprep.mubr.bf16.mxu0 %v5290_v0  ;;  %835 = vmatprep.mubr.bf16.mxu1 %v5290_v0  ;;  %v652_v3 = vsel %vm650_vm0, 4294967295, %v5291_v2  ;;  %v323_v4 = vld [vmem:[%s8373_s2 + $0x10] sm:$0xff]  ;;  %v322_v5 = vld [vmem:[%s8373_s2 + $0x8] sm:$0xff]  ;;  %v324_v6 = vld [vmem:[%s8373_s2 + $0x18] sm:$0xff]  ;;  %vm643_vm2 = vcmask 220160   ;;  %s5292_s15 = smov 1  }
   0xf   : > { %s8918_s22 = smov (!%p242_p3, %s4648_s22), 1  ;;  %5277 = vset.pattern.permute.xlu0 %v5290_v0  ;;  %5278 = vset.pattern.permute.xlu1 %v5290_v0  ;;  %v5375_v15 = vsel %vm651_vm1, %v652_v3, 0  ;;  %v5394_v39 = vld [vmem:[%s8372_s1] sm:$0xff]   ;;  %v5425_v55 = vld [vmem:[%s8372_s1 + $0x8] sm:$0xff]   ;;  %s5293_s16 = smov 17   ;;  %vm3496_vm8 = vcmask 261120  }
  0x10   : > { %s4832_s25 = sshll.u32 %s8918_s22, 9  ;;  %327 = vperm.xlu0 %5277, %v321_v1   ;;  %337 = vperm.xlu1 %5278, %v323_v4   ;;  %s5294_s17 = smov 16  }
  0x11   : > { %s5360_s30 = scalar_lea.vmem %s8371_s0, %s4832_s25  ;;  %s5295_s18 = smov 15  }
  0x12   : > { %v257_v7 = vld [vmem:[%s5360_s30] sm:$0xff]  ;;  %v258_v9 = vld [vmem:[%s5360_s30 + $0x8] sm:$0xff]  ;;  %v260_v22 = vld [vmem:[%s5360_s30 + $0x18] sm:$0xff]  ;;  %s5296_s19 = smov 127   ;;  %s5297_s26 = smov 113  }
  0x13   : > { %v273_v8 = vld [vmem:[%s5360_s30 + $0x80] sm:$0xff]  ;;  %v274_v11 = vld [vmem:[%s5360_s30 + $0x88] sm:$0xff]  ;;  %v276_v25 = vld [vmem:[%s5360_s30 + $0x98] sm:$0xff]  ;;  %s5298_s29 = smov 112   ;;  %s4833_s8 = sshll.u32 %s8918_s22, 6 }
  0x14   : > { %v4660_v10 = vcombine.high %v257_v7, %v273_v8  ;;  %v4659_v12 = vcombine.low %v257_v7, %v273_v8  ;;  %v289_v13 = vld [vmem:[%s5360_s30 + $0x100] sm:$0xff]  ;;  %v4662_v16 = vcombine.high %v258_v9, %v274_v11  ;;  %v4661_v17 = vcombine.low %v258_v9, %v274_v11  ;;  %v290_v19 = vld [vmem:[%s5360_s30 + $0x108] sm:$0xff]  ;;  %332 = vperm.xlu0 %5277, %v322_v5   ;;  %v259_v26 = vld [vmem:[%s5360_s30 + $0x10] sm:$0xff]  ;;  %s8320_s11 = scalar_lea.vmem %s8377_s6, %s4833_s8 }
  0x15   : > { %v305_v14 = vld [vmem:[%s5360_s30 + $0x180] sm:$0x33]  ;;  %v306_v20 = vld [vmem:[%s5360_s30 + $0x188] sm:$0x33]  ;;  %v275_v27 = vld [vmem:[%s5360_s30 + $0x90] sm:$0xff]  ;;  %342 = vperm.xlu1 %5278, %v324_v6   ;;  %v4666_v36 = vcombine.high %v260_v22, %v276_v25  ;;  %v4665_v43 = vcombine.low %v260_v22, %v276_v25 }
  0x16   : > { %v4692_v18 = vcombine.high %v289_v13, %v305_v14  ;;  %v4691_v21 = vcombine.low %v289_v13, %v305_v14  ;;  %750 = vmatprep.subr.bf16.mxu0 %v4660_v10  ;;  %v4694_v23 = vcombine.high %v290_v19, %v306_v20  ;;  %v4693_v24 = vcombine.low %v290_v19, %v306_v20  ;;  %v292_v30 = vld [vmem:[%s5360_s30 + $0x118] sm:$0xff]  ;;  %v291_v32 = vld [vmem:[%s5360_s30 + $0x110] sm:$0xff]  ;;  %v5398_v46 = vld [vmem:[%s5360_s30 + $0x20] sm:$0xff] }
  0x17   : > { %803 = vmatprep.subr.bf16.mxu1 %v4662_v16  ;;  %751 = vmatpush1.bf16.msra.mxu0 %v4659_v12  ;;  %v308_v31 = vld [vmem:[%s5360_s30 + $0x198] sm:$0x33]  ;;  %v307_v35 = vld [vmem:[%s5360_s30 + $0x190] sm:$0x33]  ;;  %v4664_v37 = vcombine.high %v259_v26, %v275_v27  ;;  %v4663_v41 = vcombine.low %v259_v26, %v275_v27  ;;  %v5401_v47 = vld [vmem:[%s5360_s30 + $0xa0] sm:$0xff] }
  0x18   : > { %v658_v28 = vand.u32 %v4692_v18, %v5375_v15  ;;  %v655_v29 = vand.u32 %v4691_v21, %v5375_v15  ;;  %804 = vmatpush1.bf16.msra.mxu1 %v4661_v17  ;;  %v664_v33 = vand.u32 %v4694_v23, %v5375_v15  ;;  %v661_v34 = vand.u32 %v4693_v24, %v5375_v15  ;;  %v5407_v49 = vld [vmem:[%s5360_s30 + $0x28] sm:$0xff]  ;;  %v300_v56 = vld [vmem:[%s5360_s30 + $0x158] sm:$0xff]  ;;  %v299_v58 = vld [vmem:[%s5360_s30 + $0x150] sm:$0xff] }
  0x19   : > { %v4698_v38 = vcombine.high %v292_v30, %v308_v31  ;;  %v4696_v40 = vcombine.high %v291_v32, %v307_v35  ;;  %v4695_v42 = vcombine.low %v291_v32, %v307_v35  ;;  %v4697_v44 = vcombine.low %v292_v30, %v308_v31  ;;  %v5410_v50 = vld [vmem:[%s5360_s30 + $0xa8] sm:$0xff]  ;;  %v316_v57 = vld [vmem:[%s5360_s30 + $0x1d8] sm:$0x33]  ;;  %v315_v59 = vld [vmem:[%s5360_s30 + $0x1d0] sm:$0x33] }
  0x1a   : > { %752 = vmatprep.subr.bf16.mxu0 %v658_v28  ;;  %805 = vmatprep.subr.bf16.mxu1 %v664_v33  ;;  %v4668_v53 = vcombine.high %v5398_v46, %v5401_v47  ;;  %v4670_v54 = vcombine.high %v5407_v49, %v5410_v50  ;;  %v294_v60 = vld [vmem:[%s5360_s30 + $0x128] sm:$0xff]  ;;  %v293_v62 = vld [vmem:[%s5360_s30 + $0x120] sm:$0xff]  ;;  %v4713_v1 = vcombine.low %v300_v56, %v316_v57  ;;  %v304_v17 = vld [vmem:[%s5360_s30 + $0x178] sm:$0xff] }
  0x1b   : > { %753 = vmatpush1.bf16.msra.mxu0 %v655_v29  ;;  %v676_v45 = vand.u32 %v4698_v38, %v5375_v15  ;;  %v670_v48 = vand.u32 %v4696_v40, %v5375_v15  ;;  %v667_v51 = vand.u32 %v4695_v42, %v5375_v15  ;;  %v673_v52 = vand.u32 %v4697_v44, %v5375_v15  ;;  %v310_v61 = vld [vmem:[%s5360_s30 + $0x1a8] sm:$0x33]  ;;  %v309_v63 = vld [vmem:[%s5360_s30 + $0x1a0] sm:$0x33]  ;;  %v320_v18 = vld [vmem:[%s5360_s30 + $0x1f8] sm:$0x33] }
  0x1c   : > { %806 = vmatpush1.bf16.msra.mxu1 %v661_v34  ;;  %856 = vmatprep.subr.bf16.mxu0 %v4664_v37  ;;  %v4714_v2 = vcombine.high %v300_v56, %v316_v57  ;;  %v302_v3 = vld [vmem:[%s5360_s30 + $0x168] sm:$0xff]  ;;  %v4711_v5 = vcombine.low %v299_v58, %v315_v59  ;;  %v4712_v6 = vcombine.high %v299_v58, %v315_v59  ;;  %v301_v7 = vld [vmem:[%s5360_s30 + $0x160] sm:$0xff]  ;;  %v303_v23 = vld [vmem:[%s5360_s30 + $0x170] sm:$0xff] }
  0x1d   : > { %909 = vmatprep.subr.bf16.mxu1 %v4666_v36  ;;  %v318_v4 = vld [vmem:[%s5360_s30 + $0x1e8] sm:$0x33]  ;;  %v317_v8 = vld [vmem:[%s5360_s30 + $0x1e0] sm:$0x33]  ;;  %v4702_v9 = vcombine.high %v294_v60, %v310_v61  ;;  %v5449_v11 = vand.u32 %v4713_v1, %v5375_v15  ;;  %v4699_v12 = vcombine.low %v293_v62, %v309_v63  ;;  %v4700_v19 = vcombine.high %v293_v62, %v309_v63  ;;  %v319_v24 = vld [vmem:[%s5360_s30 + $0x1f0] sm:$0x33] }
  0x1e   : > { %4723 = vmatmul.mubr.msk.bf16.vlgmr.msra.gmra.mrb[0].mxu0 %vm643_vm2, %v5394_v39  ;;  %v5446_v10 = vand.u32 %v4714_v2, %v5375_v15  ;;  %v5452_v13 = vand.u32 %v4712_v6, %v5375_v15  ;;  %v5455_v14 = vand.u32 %v4711_v5, %v5375_v15  ;;  %v4717_v16 = vcombine.low %v302_v3, %v318_v4  ;;  %v263_v34 = vld [vmem:[%s5360_s30 + $0x30] sm:$0xff]  ;;  %v264_v42 = vld [vmem:[%s5360_s30 + $0x38] sm:$0xff]  ;;  %v265_v63 = vld [vmem:[%s5360_s30 + $0x40] sm:$0xff] }
  0x1f   : > { %4725 = vmatmul.mubr.msk.bf16.vlgmr.msra.gmra.mrb[0].mxu1 %vm643_vm2, %v5394_v39  ;;  %857 = vmatpush1.bf16.msra.mxu0 %v4663_v41  ;;  %v4718_v20 = vcombine.high %v302_v3, %v318_v4  ;;  %v4715_v21 = vcombine.low %v301_v7, %v317_v8  ;;  %v4716_v22 = vcombine.high %v301_v7, %v317_v8  ;;  %v279_v35 = vld [vmem:[%s5360_s30 + $0xb0] sm:$0xff]  ;;  %v281_v1 = vld [vmem:[%s5360_s30 + $0xc0] sm:$0xff]  ;;  %v266_v3 = vld [vmem:[%s5360_s30 + $0x48] sm:$0xff] }
  0x20   : > { %910 = vmatpush1.bf16.msra.mxu1 %v4665_v43  ;;  %792 = vmatprep.mubr.bf16.mxu0 %v5290_v0  ;;  %v4669_v25 = vcombine.low %v5407_v49, %v5410_v50  ;;  %v4667_v26 = vcombine.low %v5398_v46, %v5401_v47  ;;  %v4701_v27 = vcombine.low %v294_v60, %v310_v61  ;;  %v280_v43 = vld [vmem:[%s5360_s30 + $0xb8] sm:$0xff]  ;;  %v282_v4 = vld [vmem:[%s5360_s30 + $0xc8] sm:$0xff] }
  0x21   : > { %845 = vmatprep.mubr.bf16.mxu1 %v5290_v0  ;;  %911 = vmatprep.subr.bf16.mxu1 %v676_v45  ;;  %v5466_v28 = vand.u32 %v4717_v16, %v5375_v15  ;;  %v5469_v29 = vand.u32 %v4718_v20, %v5375_v15  ;;  %v5472_v30 = vand.u32 %v4716_v22, %v5375_v15  ;;  %v297_v16 = vld [vmem:[%s5360_s30 + $0x140] sm:$0xff] }
  0x22   : > { %858 = vmatprep.subr.bf16.mxu0 %v670_v48  ;;  %v5475_v31 = vand.u32 %v4715_v21, %v5375_v15  ;;  %v4721_v32 = vcombine.low %v304_v17, %v320_v18  ;;  %v688_v33 = vand.u32 %v4702_v9, %v5375_v15  ;;  %v4722_v36 = vcombine.high %v304_v17, %v320_v18  ;;  %v298_v9 = vld [vmem:[%s5360_s30 + $0x148] sm:$0xff]  ;;  %v313_v17 = vld [vmem:[%s5360_s30 + $0x1c0] sm:$0x33] }
  0x23   : > { %859 = vmatpush1.bf16.msra.mxu0 %v667_v51  ;;  %v4719_v37 = vcombine.low %v303_v23, %v319_v24  ;;  %v4720_v38 = vcombine.high %v303_v23, %v319_v24  ;;  %v682_v40 = vand.u32 %v4700_v19, %v5375_v15  ;;  %v679_v41 = vand.u32 %v4699_v12, %v5375_v15  ;;  %v296_v51 = vld [vmem:[%s5360_s30 + $0x138] sm:$0xff]  ;;  %v314_v12 = vld [vmem:[%s5360_s30 + $0x1c8] sm:$0x33] }
  0x24   : > { %912 = vmatpush1.bf16.msra.mxu1 %v673_v52  ;;  %962 = vmatprep.subr.bf16.mxu0 %v4668_v53  ;;  %v5487_v44 = vand.u32 %v4721_v32, %v5375_v15  ;;  %v5492_v45 = vand.u32 %v4722_v36, %v5375_v15  ;;  %v685_v48 = vand.u32 %v4701_v27, %v5375_v15  ;;  %v312_v52 = vld [vmem:[%s5360_s30 + $0x1b8] sm:$0x33]  ;;  %v295_v53 = vld [vmem:[%s5360_s30 + $0x130] sm:$0xff] }
  0x25   : > { %1015 = vmatprep.subr.bf16.mxu1 %v4670_v54  ;;  %v5495_v46 = vand.u32 %v4720_v38, %v5375_v15  ;;  %v5498_v47 = vand.u32 %v4719_v37, %v5375_v15  ;;  %v4672_v49 = vcombine.high %v263_v34, %v279_v35  ;;  %v4674_v50 = vcombine.high %v264_v42, %v280_v43  ;;  %v311_v54 = vld [vmem:[%s5360_s30 + $0x1b0] sm:$0x33]  ;;  %v268_v32 = vld [vmem:[%s5360_s30 + $0x58] sm:$0xff] }
  0x26   : > { %4724 = vmatmul.mubr.msk.bf16.gmra.mrb[4].mxu0 %vm643_vm2, %v5425_v55  ;;  %v4706_v56 = vcombine.high %v296_v51, %v312_v52  ;;  %v4704_v57 = vcombine.high %v295_v53, %v311_v54  ;;  %v4671_v58 = vcombine.low %v263_v34, %v279_v35  ;;  %v4703_v59 = vcombine.low %v295_v53, %v311_v54 }
  0x27   : > { %4726 = vmatmul.mubr.msk.bf16.gmra.mrb[4].mxu1 %vm643_vm2, %v5425_v55  ;;  %888 = vmatprep.mubr.bf16.mxu0 %v5290_v0  ;;  %v4673_v60 = vcombine.low %v264_v42, %v280_v43  ;;  %v4705_v61 = vcombine.low %v296_v51, %v312_v52  ;;  %v4676_v7 = vcombine.high %v265_v63, %v281_v1  ;;  %v270_v42 = vld [vmem:[%s5360_s30 + $0x68] sm:$0xff]  ;;  %v271_v51 = vld [vmem:[%s5360_s30 + $0x70] sm:$0xff] }
  0x28   : > { %941 = vmatprep.mubr.bf16.mxu1 %v5290_v0  ;;  %v700_v62 = vand.u32 %v4706_v56, %v5375_v15  ;;  %v694_v2 = vand.u32 %v4704_v57, %v5375_v15  ;;  %v691_v5 = vand.u32 %v4703_v59, %v5375_v15  ;;  %v4678_v8 = vcombine.high %v266_v3, %v282_v4  ;;  %v286_v43 = vld [vmem:[%s5360_s30 + $0xe8] sm:$0xff] }
  0x29   : > { %v697_v6 = vand.u32 %v4705_v61, %v5375_v15  ;;  %v4710_v18 = vcombine.high %v298_v9, %v314_v12  ;;  %v4708_v19 = vcombine.high %v297_v16, %v313_v17  ;;  %v4675_v20 = vcombine.low %v265_v63, %v281_v1 }
  0x2a   : > { %v4707_v21 = vcombine.low %v297_v16, %v313_v17  ;;  %v4677_v22 = vcombine.low %v266_v3, %v282_v4  ;;  %v4709_v23 = vcombine.low %v298_v9, %v314_v12 }
  0x2b   : > { %v712_v24 = vand.u32 %v4710_v18, %v5375_v15  ;;  %v706_v27 = vand.u32 %v4708_v19, %v5375_v15 }
  0x2c   : > { %v703_v34 = vand.u32 %v4707_v21, %v5375_v15  ;;  %v709_v35 = vand.u32 %v4709_v23, %v5375_v15 }
  0x2e   : > { %4727 = vmatmul.mubr.msk.bf16.vlgmr.msra.gmra.mrb[8].mxu0 %vm643_vm2, %v5394_v39 }
  0x2f   : > { %4729 = vmatmul.mubr.msk.bf16.vlgmr.msra.gmra.mrb[8].mxu1 %vm643_vm2, %v5394_v39  ;;  %963 = vmatpush1.bf16.msra.mxu0 %v4667_v26  ;;  %v283_v26 = vld [vmem:[%s5360_s30 + $0xd0] sm:$0xff] }
  0x30   : > { %1016 = vmatpush1.bf16.msra.mxu1 %v4669_v25  ;;  %898 = vmatprep.mubr.bf16.mxu0 %v5290_v0  ;;  %v267_v25 = vld [vmem:[%s5360_s30 + $0x50] sm:$0xff] }
  0x31   : > { %951 = vmatprep.mubr.bf16.mxu1 %v5290_v0  ;;  %1017 = vmatprep.subr.bf16.mxu1 %v688_v33  ;;  %v284_v33 = vld [vmem:[%s5360_s30 + $0xd8] sm:$0xff]  ;;  %v4680_v36 = vcombine.high %v267_v25, %v283_v26  ;;  %v4679_v15 = vcombine.low %v267_v25, %v283_v26 }
  0x32   : > { %964 = vmatprep.subr.bf16.mxu0 %v682_v40  ;;  %v4682_v37 = vcombine.high %v268_v32, %v284_v33  ;;  %v4681_v38 = vcombine.low %v268_v32, %v284_v33  ;;  %v269_v40 = vld [vmem:[%s5360_s30 + $0x60] sm:$0xff] }
  0x33   : > { %965 = vmatpush1.bf16.msra.mxu0 %v679_v41  ;;  %v285_v41 = vld [vmem:[%s5360_s30 + $0xe0] sm:$0xff] }
  0x34   : > { %1018 = vmatpush1.bf16.msra.mxu1 %v685_v48  ;;  %1068 = vmatprep.subr.bf16.mxu0 %v4672_v49  ;;  %v4684_v48 = vcombine.high %v269_v40, %v285_v41  ;;  %v4686_v49 = vcombine.high %v270_v42, %v286_v43 }
  0x35   : > { %1121 = vmatprep.subr.bf16.mxu1 %v4674_v50  ;;  %v4685_v50 = vcombine.low %v270_v42, %v286_v43 }
  0x36   : > { %4728 = vmatmul.mubr.msk.bf16.gmra.mrb[12].mxu0 %vm643_vm2, %v5425_v55 }
  0x37   : > { %4730 = vmatmul.mubr.msk.bf16.gmra.mrb[12].mxu1 %vm643_vm2, %v5425_v55  ;;  %994 = vmatprep.mubr.bf16.mxu0 %v5290_v0 }
  0x38   : > { %1047 = vmatprep.mubr.bf16.mxu1 %v5290_v0 }
  0x3e   : > { %4731 = vmatmul.mubr.msk.bf16.vlgmr.msra.gmra.mrb[16].mxu0 %vm643_vm2, %v5394_v39 }
  0x3f   : > { %4733 = vmatmul.mubr.msk.bf16.vlgmr.msra.gmra.mrb[16].mxu1 %vm643_vm2, %v5394_v39  ;;  %1069 = vmatpush1.bf16.msra.mxu0 %v4671_v58 }
  0x40   : > { %1122 = vmatpush1.bf16.msra.mxu1 %v4673_v60  ;;  %1004 = vmatprep.mubr.bf16.mxu0 %v5290_v0 }
  0x41   : > { %1057 = vmatprep.mubr.bf16.mxu1 %v5290_v0  ;;  %1123 = vmatprep.subr.bf16.mxu1 %v700_v62 }
  0x42   : > { %1070 = vmatprep.subr.bf16.mxu0 %v694_v2 }
  0x43   : > { %1071 = vmatpush1.bf16.msra.mxu0 %v691_v5 }
  0x44   : > { %1124 = vmatpush1.bf16.msra.mxu1 %v697_v6  ;;  %1174 = vmatprep.subr.bf16.mxu0 %v4676_v7 }
  0x45   : > { %1227 = vmatprep.subr.bf16.mxu1 %v4678_v8 }
  0x46   : > { %4732 = vmatmul.mubr.msk.bf16.gmra.mrb[20].mxu0 %vm643_vm2, %v5425_v55 }
  0x47   : > { %4734 = vmatmul.mubr.msk.bf16.gmra.mrb[20].mxu1 %vm643_vm2, %v5425_v55  ;;  %1100 = vmatprep.mubr.bf16.mxu0 %v5290_v0 }
  0x48   : > { %1153 = vmatprep.mubr.bf16.mxu1 %v5290_v0 }
  0x4e   : > { %4735 = vmatmul.mubr.msk.bf16.vlgmr.msra.gmra.mrb[24].mxu0 %vm643_vm2, %v5394_v39 }
  0x4f   : > { %4737 = vmatmul.mubr.msk.bf16.vlgmr.msra.gmra.mrb[24].mxu1 %vm643_vm2, %v5394_v39  ;;  %1175 = vmatpush1.bf16.msra.mxu0 %v4675_v20 }
  0x50   : > { %1228 = vmatpush1.bf16.msra.mxu1 %v4677_v22  ;;  %1110 = vmatprep.mubr.bf16.mxu0 %v5290_v0 }
  0x51   : > { %1163 = vmatprep.mubr.bf16.mxu1 %v5290_v0  ;;  %1229 = vmatprep.subr.bf16.mxu1 %v712_v24 }
  0x52   : > { %1176 = vmatprep.subr.bf16.mxu0 %v706_v27 }
  0x53   : > { %1177 = vmatpush1.bf16.msra.mxu0 %v703_v34 }
  0x54   : > { %1230 = vmatpush1.bf16.msra.mxu1 %v709_v35  ;;  %1280 = vmatprep.subr.bf16.mxu0 %v4680_v36 }
  0x55   : > { %1333 = vmatprep.subr.bf16.mxu1 %v4682_v37 }
  0x56   : > { %4736 = vmatmul.mubr.msk.bf16.gmra.mrb[28].mxu0 %vm643_vm2, %v5425_v55 }
  0x57   : > { %4738 = vmatmul.mubr.msk.bf16.gmra.mrb[28].mxu1 %vm643_vm2, %v5425_v55  ;;  %1206 = vmatprep.mubr.bf16.mxu0 %v5290_v0 }
  0x58   : > { %1259 = vmatprep.mubr.bf16.mxu1 %v5290_v0 }
  0x5e   : > { %4739 = vmatmul.mubr.msk.bf16.vlgmr.msra.gmra.mrb[32].mxu0 %vm643_vm2, %v5394_v39 }
  0x5f   : > { %4741 = vmatmul.mubr.msk.bf16.vlgmr.msra.gmra.mrb[32].mxu1 %vm643_vm2, %v5394_v39  ;;  %1281 = vmatpush1.bf16.msra.mxu0 %v4679_v15 }
  0x60   : > { %1334 = vmatpush1.bf16.msra.mxu1 %v4681_v38  ;;  %1216 = vmatprep.mubr.bf16.mxu0 %v5290_v0 }
  0x61   : > { %1269 = vmatprep.mubr.bf16.mxu1 %v5290_v0  ;;  %1335 = vmatprep.subr.bf16.mxu1 %v5446_v10  ;;  %v4683_v10 = vcombine.low %v269_v40, %v285_v41 }
  0x62   : > { %1282 = vmatprep.subr.bf16.mxu0 %v5452_v13  ;;  %v287_v13 = vld [vmem:[%s5360_s30 + $0xf0] sm:$0xff] }
  0x63   : > { %1283 = vmatpush1.bf16.msra.mxu0 %v5455_v14  ;;  %v288_v14 = vld [vmem:[%s5360_s30 + $0xf8] sm:$0xff]  ;;  %v4688_v52 = vcombine.high %v271_v51, %v287_v13 }
  0x64   : > { %1336 = vmatpush1.bf16.msra.mxu1 %v5449_v11  ;;  %1386 = vmatprep.subr.bf16.mxu0 %v4684_v48  ;;  %v272_v11 = vld [vmem:[%s5360_s30 + $0x78] sm:$0xff] }
  0x65   : > { %1439 = vmatprep.subr.bf16.mxu1 %v4686_v49  ;;  %v4690_v53 = vcombine.high %v272_v11, %v288_v14  ;;  %v4689_v54 = vcombine.low %v272_v11, %v288_v14 }
  0x66   : > { %4740 = vmatmul.mubr.msk.bf16.gmra.mrb[36].mxu0 %vm643_vm2, %v5425_v55 }
  0x67   : > { %4742 = vmatmul.mubr.msk.bf16.gmra.mrb[36].mxu1 %vm643_vm2, %v5425_v55  ;;  %1312 = vmatprep.mubr.bf16.mxu0 %v5290_v0 }
  0x68   : > { %1365 = vmatprep.mubr.bf16.mxu1 %v5290_v0 }
  0x6e   : > { %4743 = vmatmul.mubr.msk.bf16.vlgmr.msra.gmra.mrb[40].mxu0 %vm643_vm2, %v5394_v39 }
  0x6f   : > { %4745 = vmatmul.mubr.msk.bf16.vlgmr.msra.gmra.mrb[40].mxu1 %vm643_vm2, %v5394_v39  ;;  %1387 = vmatpush1.bf16.msra.mxu0 %v4683_v10 }
  0x70   : > { %1440 = vmatpush1.bf16.msra.mxu1 %v4685_v50  ;;  %1322 = vmatprep.mubr.bf16.mxu0 %v5290_v0 }
  0x71   : > { %1375 = vmatprep.mubr.bf16.mxu1 %v5290_v0  ;;  %1441 = vmatprep.subr.bf16.mxu1 %v5469_v29  ;;  %v4687_v29 = vcombine.low %v271_v51, %v287_v13 }
  0x72   : > { %1388 = vmatprep.subr.bf16.mxu0 %v5472_v30 }
  0x73   : > { %1389 = vmatpush1.bf16.msra.mxu0 %v5475_v31 }
  0x74   : > { %1442 = vmatpush1.bf16.msra.mxu1 %v5466_v28  ;;  %1492 = vmatprep.subr.bf16.mxu0 %v4688_v52 }
  0x75   : > { %1545 = vmatprep.subr.bf16.mxu1 %v4690_v53 }
  0x76   : > { %4744 = vmatmul.mubr.msk.bf16.gmra.mrb[44].mxu0 %vm643_vm2, %v5425_v55 }
  0x77   : > { %4746 = vmatmul.mubr.msk.bf16.gmra.mrb[44].mxu1 %vm643_vm2, %v5425_v55  ;;  %1418 = vmatprep.mubr.bf16.mxu0 %v5290_v0 }
  0x78   : > { %1471 = vmatprep.mubr.bf16.mxu1 %v5290_v0 }
  0x7e   : > { %4747 = vmatmul.mubr.msk.bf16.vlgmr.msra.gmra.mrb[48].mxu0 %vm643_vm2, %v5394_v39 }
  0x7f   : > { %4749 = vmatmul.mubr.msk.bf16.vlgmr.msra.gmra.mrb[48].mxu1 %vm643_vm2, %v5394_v39  ;;  %1493 = vmatpush1.bf16.msra.mxu0 %v4687_v29 }
  0x80   : > { %1546 = vmatpush1.bf16.msra.mxu1 %v4689_v54  ;;  %1428 = vmatprep.mubr.bf16.mxu0 %v5290_v0 }
  0x81   : > { %1481 = vmatprep.mubr.bf16.mxu1 %v5290_v0  ;;  %1547 = vmatprep.subr.bf16.mxu1 %v5492_v45 }
  0x82   : > { %1494 = vmatprep.subr.bf16.mxu0 %v5495_v46 }
  0x83   : > { %1495 = vmatpush1.bf16.msra.mxu0 %v5498_v47 }
  0x84   : > { %1548 = vmatpush1.bf16.msra.mxu1 %v5487_v44 }
  0x86   : > { %4748 = vmatmul.mubr.msk.bf16.gmra.mrb[52].mxu0 %vm643_vm2, %v5425_v55 }
  0x87   : > { %4750 = vmatmul.mubr.msk.bf16.gmra.mrb[52].mxu1 %vm643_vm2, %v5425_v55  ;;  %1524 = vmatprep.mubr.bf16.mxu0 %v5290_v0 }
  0x88   : > { %1577 = vmatprep.mubr.bf16.mxu1 %v5290_v0 }
  0x8e   : > { %4751 = vmatmul.mubr.msk.bf16.vlgmr.msra.gmra.mrb[56].mxu0 %vm643_vm2, %v5394_v39 }
  0x8f   : > { %4753 = vmatmul.mubr.msk.bf16.vlgmr.msra.gmra.mrb[56].mxu1 %vm643_vm2, %v5394_v39  ;;  %1534 = vmatprep.mubr.bf16.mxu0 %v5290_v0  ;;  %v5623_v63 = vpop.permute.xlu0 %327  ;;  %v5625_v1 = vpop.permute.xlu1 %337 }
  0x90   : > { %1587 = vmatprep.mubr.bf16.mxu1 %v5290_v0 }
  0x93   : > { %v5634_v12 = vpop.permute.xlu0 %332 }
  0x94   : > { %v5636_v16 = vpop.permute.xlu1 %342 }
  0x96   : > { %4752 = vmatmul.mubr.msk.bf16.gmra.mrb[60].mxu0 %vm643_vm2, %v5425_v55 }
  0x97   : > { %4754 = vmatmul.mubr.msk.bf16.gmra.mrb[60].mxu1 %vm643_vm2, %v5425_v55 }
  0xf1   : > { %v784_v28 = vpop.f32.mrb[0].mxu0 }
  0xf2   : > { %v837_v30 = vpop.f32.mrb[0].mxu1  ;;  %v786_v31 = vpop.f32.mrb[1].mxu0  ;;  %v5632_v9 = vadd.f32 %v784_v28, %v5623_v63 }
  0xf3   : > { %v839_v44 = vpop.f32.mrb[1].mxu1  ;;  %v788_v45 = vpop.f32.mrb[2].mxu0  ;;  %v5641_v18 = vadd.f32 %v837_v30, %v5623_v63  ;;  %v5648_v21 = vadd.f32 %v786_v31, %v5623_v63 }
  0xf4   : > { %v841_v46 = vpop.f32.mrb[2].mxu1  ;;  %v790_v47 = vpop.f32.mrb[3].mxu0  ;;  %v1598_v19 = vmax.f32 %v5632_v9, 0.0  ;;  %v5645_v20 = vadd.f32 %v839_v44, %v5623_v63  ;;  %v5658_v25 = vadd.f32 %v788_v45, %v5634_v12 }
  0xf5   : > { %v843_v56 = vpop.f32.mrb[3].mxu1  ;;  %v5655_v24 = vadd.f32 %v841_v46, %v5634_v12  ;;  %v5664_v27 = vadd.f32 %v790_v47, %v5634_v12  ;;  %v1600_v49 = vmax.f32 %v5641_v18, 0.0  ;;  %v1599_v50 = vmax.f32 %v5648_v21, 0.0 }
  0xf6   : > { %v5661_v26 = vadd.f32 %v843_v56, %v5634_v12  ;;  %v1601_v10 = vmax.f32 %v5645_v20, 0.0  ;;  %v1630_v11 = vmax.f32 %v5658_v25, 0.0 }
  0xf7   : > { %v1632_v13 = vmax.f32 %v5655_v24, 0.0  ;;  %v1631_v52 = vmax.f32 %v5664_v27, 0.0 }
  0xf8   : > { %v1633_v14 = vmax.f32 %v5661_v26, 0.0 }
  0xf9   : > { %v794_v57 = vpop.f32.mrb[4].mxu0 }
  0xfa   : > { %v847_v39 = vpop.f32.mrb[4].mxu1  ;;  %v796_v58 = vpop.f32.mrb[5].mxu0  ;;  %v5674_v35 = vadd.f32 %v794_v57, %v5625_v1 }
  0xfb   : > { %v849_v59 = vpop.f32.mrb[5].mxu1  ;;  %v798_v60 = vpop.f32.mrb[6].mxu0  ;;  %v5671_v34 = vadd.f32 %v847_v39, %v5625_v1  ;;  %v5680_v37 = vadd.f32 %v796_v58, %v5625_v1 }
  0xfc   : > { %v851_v0 = vpop.f32.mrb[6].mxu1  ;;  %v800_v61 = vpop.f32.mrb[7].mxu0  ;;  %v5677_v36 = vadd.f32 %v849_v59, %v5625_v1  ;;  %v5690_v41 = vadd.f32 %v798_v60, %v5636_v16  ;;  %v1662_v29 = vmax.f32 %v5674_v35, 0.0 }
  0xfd   : > { %v853_v62 = vpop.f32.mrb[7].mxu1  ;;  %v5687_v40 = vadd.f32 %v851_v0, %v5636_v16  ;;  %v5696_v43 = vadd.f32 %v800_v61, %v5636_v16  ;;  %v1664_v53 = vmax.f32 %v5671_v34, 0.0  ;;  %v1663_v28 = vmax.f32 %v5680_v37, 0.0 }
  0xfe   : > { %v5693_v42 = vadd.f32 %v853_v62, %v5636_v16  ;;  %v1665_v54 = vmax.f32 %v5677_v36, 0.0  ;;  %v1694_v31 = vmax.f32 %v5690_v41, 0.0 }
  0xff   : > { %v1696_v30 = vmax.f32 %v5687_v40, 0.0  ;;  %v1695_v45 = vmax.f32 %v5696_v43, 0.0 }
 0x100   : > { %v1697_v44 = vmax.f32 %v5693_v42, 0.0 }
 0x101   : > { %v890_v55 = vpop.f32.mrb[8].mxu0 }
 0x102   : > { %v943_v2 = vpop.f32.mrb[8].mxu1  ;;  %v892_v3 = vpop.f32.mrb[9].mxu0  ;;  %v5704_v51 = vadd.f32 %v890_v55, %v5623_v63 }
 0x103   : > { %v945_v4 = vpop.f32.mrb[9].mxu1  ;;  %v894_v5 = vpop.f32.mrb[10].mxu0  ;;  %v5719_v47 = vadd.f32 %v943_v2, %v5623_v63  ;;  %v5723_v57 = vadd.f32 %v892_v3, %v5623_v63 }
 0x104   : > { %v947_v6 = vpop.f32.mrb[10].mxu1  ;;  %v5627_v7 = vpop.f32.mrb[11].mxu0  ;;  %v5727_v60 = vadd.f32 %v945_v4, %v5623_v63  ;;  %v5730_v0 = vadd.f32 %v894_v5, %v5634_v12 }
 0x105   : > { %v5629_v8 = vpop.f32.mrb[11].mxu1  ;;  %v5735_v9 = vadd.f32 %v947_v6, %v5634_v12 }
 0x109   : > { %v5638_v17 = vpop.f32.mrb[12].mxu0 }
 0x10a   : > { %v5650_v22 = vpop.f32.mrb[12].mxu1  ;;  %v5652_v23 = vpop.f32.mrb[13].mxu0 }
 0x10b   : > { %v5666_v32 = vpop.f32.mrb[13].mxu1  ;;  %v5668_v33 = vpop.f32.mrb[14].mxu0  ;;  %v5807_v37 = vadd.f32 %v5650_v22, %v5625_v1 }
 0x10c   : > { %v5682_v15 = vpop.f32.mrb[14].mxu1  ;;  %v5684_v38 = vpop.f32.mrb[15].mxu0  ;;  %v5829_v43 = vadd.f32 %v5666_v32, %v5625_v1 }
 0x10d   : > { %v5698_v48 = vpop.f32.mrb[15].mxu1 }
 0x111   : > { %v996_v46 = vpop.f32.mrb[16].mxu0 }
 0x112   : > { %v997_v39 = vadd.f32 %v996_v46, %v5623_v63  ;;  %v1049_v58 = vpop.f32.mrb[16].mxu1  ;;  %v998_v59 = vpop.f32.mrb[17].mxu0 }
 0x113   : > { %v1050_v61 = vadd.f32 %v1049_v58, %v5623_v63  ;;  %v999_v62 = vadd.f32 %v998_v59, %v5623_v63  ;;  %v1051_v55 = vpop.f32.mrb[17].mxu1  ;;  %v1000_v2 = vpop.f32.mrb[18].mxu0 }
 0x114   : > { %v1606_v3 = vmax.f32 %v997_v39, 0.0  ;;  %v1052_v18 = vadd.f32 %v1051_v55, %v5623_v63  ;;  %v1001_v20 = vadd.f32 %v1000_v2, %v5634_v12  ;;  %v1053_v21 = vpop.f32.mrb[18].mxu1  ;;  %v1002_v4 = vpop.f32.mrb[19].mxu0 }
 0x115   : > { %v1608_v24 = vmax.f32 %v1050_v61, 0.0  ;;  %v1607_v25 = vmax.f32 %v999_v62, 0.0  ;;  %v1054_v5 = vadd.f32 %v1053_v21, %v5634_v12  ;;  %v1003_v26 = vadd.f32 %v1002_v4, %v5634_v12  ;;  %v1055_v27 = vpop.f32.mrb[19].mxu1 }
 0x116   : > { %v5741_v46 = vmax.f32 %v1598_v19, %v1606_v3  ;;  %v1609_v58 = vmax.f32 %v1052_v18, 0.0  ;;  %v1638_v59 = vmax.f32 %v1001_v20, 0.0  ;;  %v1056_v6 = vadd.f32 %v1055_v27, %v5634_v12 }
 0x117   : > { %v5744_v39 = vmax.f32 %v1600_v49, %v1608_v24  ;;  %v5746_v55 = vmax.f32 %v1599_v50, %v1607_v25  ;;  %v1640_v2 = vmax.f32 %v1054_v5, 0.0  ;;  %v1639_v56 = vmax.f32 %v1003_v26, 0.0 }
 0x118   : > { %v1604_v61 = vmax.f32 %v5719_v47, 0.0  ;;  %v5749_v62 = vmax.f32 %v1601_v10, %v1609_v58  ;;  %v5751_v21 = vmax.f32 %v1630_v11, %v1638_v59  ;;  %v1641_v4 = vmax.f32 %v1056_v6, 0.0 }
 0x119   : > { %v1603_v19 = vmax.f32 %v5723_v57, 0.0  ;;  %v5756_v3 = vadd.f32 %v5627_v7, %v5634_v12  ;;  %v5758_v18 = vmax.f32 %v1632_v13, %v1640_v2  ;;  %v5760_v49 = vmax.f32 %v1631_v52, %v1639_v56  ;;  %v1006_v50 = vpop.f32.mrb[20].mxu0 }
 0x11a   : > { %v5764_v10 = vmax.f32 %v1633_v14, %v1641_v4  ;;  %v1007_v11 = vadd.f32 %v1006_v50, %v5625_v1  ;;  %v1059_v25 = vpop.f32.mrb[20].mxu1  ;;  %v1008_v5 = vpop.f32.mrb[21].mxu0  ;;  %v5770_v7 = vadd.f32 %v5629_v8, %v5634_v12  ;;  %v5776_v14 = vadd.f32 %v5638_v17, %v5625_v1 }
 0x11b   : > { %v1060_v13 = vadd.f32 %v1059_v25, %v5625_v1  ;;  %v1009_v52 = vadd.f32 %v1008_v5, %v5625_v1  ;;  %v1061_v56 = vpop.f32.mrb[21].mxu1  ;;  %v1010_v27 = vpop.f32.mrb[22].mxu0 }
 0x11c   : > { %v1670_v58 = vmax.f32 %v1007_v11, 0.0  ;;  %v1062_v59 = vadd.f32 %v1061_v56, %v5625_v1  ;;  %v1011_v6 = vadd.f32 %v1010_v27, %v5636_v16  ;;  %v1063_v2 = vpop.f32.mrb[22].mxu1  ;;  %v1012_v4 = vpop.f32.mrb[23].mxu0  ;;  %v1637_v34 = vmax.f32 %v5770_v7, 0.0 }
 0x11d   : > { %v1672_v50 = vmax.f32 %v1060_v13, 0.0  ;;  %v1671_v8 = vmax.f32 %v1009_v52, 0.0  ;;  %v1064_v26 = vadd.f32 %v1063_v2, %v5636_v16  ;;  %v1013_v25 = vadd.f32 %v1012_v4, %v5636_v16  ;;  %v1065_v5 = vpop.f32.mrb[23].mxu1 }
 0x11e   : > { %v5784_v24 = vmax.f32 %v1662_v29, %v1670_v58  ;;  %v1673_v17 = vmax.f32 %v1062_v59, 0.0  ;;  %v1702_v20 = vmax.f32 %v1011_v6, 0.0  ;;  %v1066_v11 = vadd.f32 %v1065_v5, %v5636_v16 }
 0x11f   : > { %v5789_v56 = vmax.f32 %v1664_v53, %v1672_v50  ;;  %v5793_v13 = vmax.f32 %v1663_v28, %v1671_v8  ;;  %v1704_v52 = vmax.f32 %v1064_v26, 0.0  ;;  %v1703_v27 = vmax.f32 %v1013_v25, 0.0 }
 0x120   : > { %v1635_v2 = vmax.f32 %v5756_v3, 0.0  ;;  %v5798_v35 = vmax.f32 %v1665_v54, %v1673_v17  ;;  %v5802_v29 = vmax.f32 %v1694_v31, %v1702_v20  ;;  %v1705_v58 = vmax.f32 %v1066_v11, 0.0 }
 0x121   : > { %v5811_v53 = vmax.f32 %v1696_v30, %v1704_v52  ;;  %v5815_v36 = vmax.f32 %v1695_v45, %v1703_v27  ;;  %v1102_v54 = vpop.f32.mrb[24].mxu0  ;;  %v1666_v41 = vmax.f32 %v5776_v14, 0.0  ;;  %v5820_v28 = vadd.f32 %v5652_v23, %v5625_v1 }
 0x122   : > { %v5824_v31 = vmax.f32 %v1697_v44, %v1705_v58  ;;  %v1103_v22 = vadd.f32 %v1102_v54, %v5623_v63  ;;  %v1155_v40 = vpop.f32.mrb[24].mxu1  ;;  %v1104_v30 = vpop.f32.mrb[25].mxu0  ;;  %v5833_v45 = vadd.f32 %v5668_v33, %v5636_v16  ;;  %v5839_v44 = vadd.f32 %v5682_v15, %v5636_v16 }
 0x123   : > { %v1156_v3 = vadd.f32 %v1155_v40, %v5623_v63  ;;  %v1105_v23 = vadd.f32 %v1104_v30, %v5623_v63  ;;  %v1157_v20 = vpop.f32.mrb[25].mxu1  ;;  %v1106_v42 = vpop.f32.mrb[26].mxu0  ;;  %v8562_v5 = vmax.f32 %v5704_v51, 0.0  ;;  %v907_v40 = vadd.f32 %v5684_v38, %v5636_v16 }
 0x124   : > { %v1610_v26 = vmax.f32 %v1103_v22, 0.0  ;;  %v1158_v7 = vadd.f32 %v1157_v20, %v5623_v63  ;;  %v1107_v32 = vadd.f32 %v1106_v42, %v5634_v12  ;;  %v1159_v59 = vpop.f32.mrb[26].mxu1  ;;  %v1108_v6 = vpop.f32.mrb[27].mxu0  ;;  %v8565_v51 = vmax.f32 %v5727_v60, 0.0 }
 0x125   : > { %v1612_v4 = vmax.f32 %v1156_v3, 0.0  ;;  %v1611_v33 = vmax.f32 %v1105_v23, 0.0  ;;  %v1160_v50 = vadd.f32 %v1159_v59, %v5634_v12  ;;  %v1109_v8 = vadd.f32 %v1108_v6, %v5634_v12  ;;  %v1161_v25 = vpop.f32.mrb[27].mxu1 }
 0x126   : > { %v5847_v17 = vmax.f32 %v8562_v5, %v1610_v26  ;;  %v1613_v15 = vmax.f32 %v1158_v7, 0.0  ;;  %v1642_v11 = vmax.f32 %v1107_v32, 0.0  ;;  %v1162_v52 = vadd.f32 %v1161_v25, %v5634_v12 }
 0x127   : > { %v5852_v27 = vmax.f32 %v1604_v61, %v1612_v4  ;;  %v5856_v58 = vmax.f32 %v1603_v19, %v1611_v33  ;;  %v1644_v54 = vmax.f32 %v1160_v50, 0.0  ;;  %v1643_v22 = vmax.f32 %v1109_v8, 0.0 }
 0x128   : > { %v5862_v30 = vmax.f32 %v8565_v51, %v1613_v15  ;;  %v8567_v3 = vmax.f32 %v5730_v0, 0.0  ;;  %v1645_v47 = vmax.f32 %v1162_v52, 0.0  ;;  %v1668_v61 = vmax.f32 %v5807_v37, 0.0 }
 0x129   : > { %8563 = vst [vmem:[#allocation3_spill] sm:$0xff] %v5852_v27  ;;  %8564 = vst [vmem:[#allocation4_spill] sm:$0xff] %v5856_v58  ;;  %v1667_v57 = vmax.f32 %v5820_v28, 0.0  ;;  %v8569_v19 = vmax.f32 %v5735_v9, 0.0  ;;  %v5874_v42 = vmax.f32 %v1635_v2, %v1643_v22  ;;  %v1112_v38 = vpop.f32.mrb[28].mxu0  ;;  %v1669_v60 = vmax.f32 %v5829_v43, 0.0 }
 0x12a   : > { %8566 = vst [vmem:[#allocation5_spill] sm:$0xff] %v5862_v30  ;;  %v5866_v23 = vmax.f32 %v8567_v3, %v1642_v11  ;;  %v1698_v26 = vmax.f32 %v5833_v45, 0.0  ;;  %v5878_v7 = vmax.f32 %v1637_v34, %v1645_v47  ;;  %v1113_v0 = vadd.f32 %v1112_v38, %v5625_v1  ;;  %v1165_v32 = vpop.f32.mrb[28].mxu1  ;;  %v1114_v59 = vpop.f32.mrb[29].mxu0 }
 0x12b   : > { %v5872_v20 = vmax.f32 %v8569_v19, %v1644_v54  ;;  %8571 = vst [vmem:[#allocation8_spill] sm:$0xff] %v5874_v42  ;;  %v1700_v37 = vmax.f32 %v5839_v44, 0.0  ;;  %v960_v9 = vadd.f32 %v5698_v48, %v5636_v16  ;;  %v1166_v28 = vadd.f32 %v1165_v32, %v5625_v1  ;;  %v1167_v6 = vpop.f32.mrb[29].mxu1  ;;  %v1116_v4 = vpop.f32.mrb[30].mxu0 }
 0x12c   : > { %8568 = vst [vmem:[#allocation6_spill] sm:$0xff] %v5866_v23  ;;  %8572 = vst [vmem:[#allocation9_spill] sm:$0xff] %v5878_v7  ;;  %v1115_v2 = vadd.f32 %v1114_v59, %v5625_v1  ;;  %v1699_v43 = vmax.f32 %v907_v40, 0.0  ;;  %v1674_v33 = vmax.f32 %v1113_v0, 0.0  ;;  %v1168_v34 = vadd.f32 %v1167_v6, %v5625_v1  ;;  %v1169_v50 = vpop.f32.mrb[30].mxu1  ;;  %v1118_v8 = vpop.f32.mrb[31].mxu0 }
 0x12d   : > { %8570 = vst [vmem:[#allocation7_spill] sm:$0xff] %v5872_v20  ;;  %v1117_v45 = vadd.f32 %v1116_v4, %v5636_v16  ;;  %v1676_v25 = vmax.f32 %v1166_v28, 0.0  ;;  %v1170_v44 = vadd.f32 %v1169_v50, %v5636_v16  ;;  %v1119_v48 = vadd.f32 %v1118_v8, %v5636_v16  ;;  %v1171_v15 = vpop.f32.mrb[31].mxu1 }
 0x12e   : > { %v1675_v5 = vmax.f32 %v1115_v2, 0.0  ;;  %v5892_v11 = vmax.f32 %v1666_v41, %v1674_v33  ;;  %v1677_v52 = vmax.f32 %v1168_v34, 0.0  ;;  %v1172_v22 = vadd.f32 %v1171_v15, %v5636_v16 }
 0x12f   : > { %v1706_v54 = vmax.f32 %v1117_v45, 0.0  ;;  %v5895_v40 = vmax.f32 %v1668_v61, %v1676_v25  ;;  %v1708_v3 = vmax.f32 %v1170_v44, 0.0  ;;  %v1707_v47 = vmax.f32 %v1119_v48, 0.0 }
 0x130   : > { %8573 = vst [vmem:[#allocation10_spill] sm:$0xff] %v5892_v11  ;;  %v5897_v51 = vmax.f32 %v1667_v57, %v1675_v5  ;;  %v1701_v19 = vmax.f32 %v960_v9, 0.0  ;;  %v5899_v38 = vmax.f32 %v1669_v60, %v1677_v52  ;;  %v1709_v32 = vmax.f32 %v1172_v22, 0.0 }
 0x131   : > { %8574 = vst [vmem:[#allocation11_spill] sm:$0xff] %v5895_v40  ;;  %v5901_v0 = vmax.f32 %v1698_v26, %v1706_v54  ;;  %v5903_v59 = vmax.f32 %v1700_v37, %v1708_v3  ;;  %v5905_v14 = vmax.f32 %v1699_v43, %v1707_v47  ;;  %v1208_v41 = vpop.f32.mrb[32].mxu0 }
 0x132   : > { %8575 = vst [vmem:[#allocation12_spill] sm:$0xff] %v5897_v51  ;;  %8576 = vst [vmem:[#allocation13_spill] sm:$0xff] %v5899_v38  ;;  %v5907_v28 = vmax.f32 %v1701_v19, %v1709_v32  ;;  %v1261_v2 = vpop.f32.mrb[32].mxu1  ;;  %v1210_v61 = vpop.f32.mrb[33].mxu0  ;;  %v5910_v5 = vadd.f32 %v1208_v41, %v5623_v63 }
 0x133   : > { %8577 = vst [vmem:[#allocation14_spill] sm:$0xff] %v5901_v0  ;;  %8578 = vst [vmem:[#allocation15_spill] sm:$0xff] %v5903_v59  ;;  %v1263_v6 = vpop.f32.mrb[33].mxu1  ;;  %v1212_v57 = vpop.f32.mrb[34].mxu0  ;;  %v5913_v15 = vadd.f32 %v1261_v2, %v5623_v63  ;;  %v5916_v52 = vadd.f32 %v1210_v61, %v5623_v63 }
 0x134   : > { %8579 = vst [vmem:[#allocation16_spill] sm:$0xff] %v5905_v14  ;;  %8580 = vst [vmem:[#allocation17_spill] sm:$0xff] %v5907_v28  ;;  %v1265_v4 = vpop.f32.mrb[34].mxu1  ;;  %v1214_v33 = vpop.f32.mrb[35].mxu0  ;;  %v5919_v3 = vadd.f32 %v1263_v6, %v5623_v63  ;;  %v5925_v19 = vadd.f32 %v1212_v57, %v5634_v12 }
 0x135   : > { %v1267_v34 = vpop.f32.mrb[35].mxu1  ;;  %v5922_v47 = vadd.f32 %v1265_v4, %v5634_v12  ;;  %v5931_v2 = vadd.f32 %v1214_v33, %v5634_v12 }
 0x136   : > { %v5928_v28 = vadd.f32 %v1267_v34, %v5634_v12 }
 0x139   : > { %v1218_v9 = vpop.f32.mrb[36].mxu0 }
 0x13a   : > { %v1271_v60 = vpop.f32.mrb[36].mxu1  ;;  %v1220_v45 = vpop.f32.mrb[37].mxu0  ;;  %v5937_v6 = vadd.f32 %v1218_v9, %v5625_v1 }
 0x13b   : > { %v1273_v26 = vpop.f32.mrb[37].mxu1  ;;  %v1222_v50 = vpop.f32.mrb[38].mxu0  ;;  %v5934_v61 = vadd.f32 %v1271_v60, %v5625_v1  ;;  %v5944_v59 = vadd.f32 %v1220_v45, %v5625_v1 }
 0x13c   : > { %v1275_v8 = vpop.f32.mrb[38].mxu1  ;;  %v1224_v37 = vpop.f32.mrb[39].mxu0  ;;  %v5941_v57 = vadd.f32 %v1273_v26, %v5625_v1  ;;  %v5947_v34 = vadd.f32 %v1222_v50, %v5636_v16 }
 0x13d   : > { %v1277_v25 = vpop.f32.mrb[39].mxu1  ;;  %v5952_v0 = vadd.f32 %v1275_v8, %v5636_v16  ;;  %v5955_v9 = vadd.f32 %v1224_v37, %v5636_v16 }
 0x13e   : > { %v5961_v38 = vadd.f32 %v1277_v25, %v5636_v16 }
 0x141   : > { %v1314_v43 = vpop.f32.mrb[40].mxu0 }
 0x142   : > { %v1367_v44 = vpop.f32.mrb[40].mxu1  ;;  %v1316_v48 = vpop.f32.mrb[41].mxu0  ;;  %v5971_v45 = vadd.f32 %v1314_v43, %v5623_v63 }
 0x143   : > { %v1369_v54 = vpop.f32.mrb[41].mxu1  ;;  %v1318_v22 = vpop.f32.mrb[42].mxu0  ;;  %v5976_v60 = vadd.f32 %v1367_v44, %v5623_v63  ;;  %v5979_v8 = vadd.f32 %v1316_v48, %v5623_v63 }
 0x144   : > { %v1371_v32 = vpop.f32.mrb[42].mxu1  ;;  %v1320_v41 = vpop.f32.mrb[43].mxu0  ;;  %v5983_v26 = vadd.f32 %v1369_v54, %v5623_v63  ;;  %v5989_v50 = vadd.f32 %v1318_v22, %v5634_v12 }
 0x145   : > { %v1373_v14 = vpop.f32.mrb[43].mxu1  ;;  %v5986_v43 = vadd.f32 %v1371_v32, %v5634_v12  ;;  %v5995_v48 = vadd.f32 %v1320_v41, %v5634_v12 }
 0x146   : > { %v5992_v44 = vadd.f32 %v1373_v14, %v5634_v12 }
 0x147   : > { %8581 = vst [vmem:[#allocation18_spill] sm:$0xff] %v5986_v43  ;;  %8583 = vst [vmem:[#allocation20_spill] sm:$0xff] %v5995_v48 }
 0x148   : > { %8582 = vst [vmem:[#allocation19_spill] sm:$0xff] %v5992_v44 }
 0x149   : > { %v1324_v51 = vpop.f32.mrb[44].mxu0 }
 0x14a   : > { %v1377_v25 = vpop.f32.mrb[44].mxu1  ;;  %v1326_v40 = vpop.f32.mrb[45].mxu0  ;;  %v6001_v54 = vadd.f32 %v1324_v51, %v5625_v1 }
 0x14b   : > { %v1379_v37 = vpop.f32.mrb[45].mxu1  ;;  %v1328_v11 = vpop.f32.mrb[46].mxu0  ;;  %v5998_v42 = vadd.f32 %v1377_v25, %v5625_v1  ;;  %v6008_v20 = vadd.f32 %v1326_v40, %v5625_v1 }
 0x14c   : > { %v1381_v33 = vpop.f32.mrb[46].mxu1  ;;  %v1330_v7 = vpop.f32.mrb[47].mxu0  ;;  %8585 = vst [vmem:[#allocation22_spill] sm:$0xff] %v6001_v54  ;;  %v6005_v22 = vadd.f32 %v1379_v37, %v5625_v1  ;;  %v6011_v14 = vadd.f32 %v1328_v11, %v5636_v16 }
 0x14d   : > { %8584 = vst [vmem:[#allocation21_spill] sm:$0xff] %v5998_v42  ;;  %v1383_v4 = vpop.f32.mrb[47].mxu1  ;;  %8587 = vst [vmem:[#allocation24_spill] sm:$0xff] %v6008_v20  ;;  %v6016_v23 = vadd.f32 %v1381_v33, %v5636_v16  ;;  %v6019_v51 = vadd.f32 %v1330_v7, %v5636_v16 }
 0x14e   : > { %8586 = vst [vmem:[#allocation23_spill] sm:$0xff] %v6005_v22  ;;  %8588 = vst [vmem:[#allocation25_spill] sm:$0xff] %v6011_v14  ;;  %v6025_v30 = vadd.f32 %v1383_v4, %v5636_v16 }
 0x14f   : > { %8589 = vst [vmem:[#allocation26_spill] sm:$0xff] %v6016_v23  ;;  %8590 = vst [vmem:[#allocation27_spill] sm:$0xff] %v6019_v51 }
 0x150   : > { %8591 = vst [vmem:[#allocation28_spill] sm:$0xff] %v6025_v30 }
 0x151   : > { %v1420_v58 = vpop.f32.mrb[48].mxu0 }
 0x152   : > { %v1421_v40 = vadd.f32 %v1420_v58, %v5623_v63  ;;  %v1473_v43 = vpop.f32.mrb[48].mxu1  ;;  %v1422_v4 = vpop.f32.mrb[49].mxu0 }
 0x153   : > { %v1474_v41 = vadd.f32 %v1473_v43, %v5623_v63  ;;  %v1423_v25 = vadd.f32 %v1422_v4, %v5623_v63  ;;  %v1475_v33 = vpop.f32.mrb[49].mxu1  ;;  %v1424_v42 = vpop.f32.mrb[50].mxu0  ;;  %v8592_v4 = vmax.f32 %v5910_v5, 0.0  ;;  %v8597_v5 = vmax.f32 %v5925_v19, 0.0 }
 0x154   : > { %v1622_v22 = vmax.f32 %v1421_v40, 0.0  ;;  %v1476_v32 = vadd.f32 %v1475_v33, %v5623_v63  ;;  %v1425_v37 = vadd.f32 %v1424_v42, %v5634_v12  ;;  %v1477_v58 = vpop.f32.mrb[50].mxu1  ;;  %v1426_v14 = vpop.f32.mrb[51].mxu0  ;;  %v8593_v33 = vmax.f32 %v5913_v15, 0.0 }
 0x155   : > { %v1624_v20 = vmax.f32 %v1474_v41, 0.0  ;;  %v1623_v54 = vmax.f32 %v1423_v25, 0.0  ;;  %v1478_v27 = vadd.f32 %v1477_v58, %v5634_v12  ;;  %v1427_v11 = vadd.f32 %v1426_v14, %v5634_v12  ;;  %v1479_v43 = vpop.f32.mrb[51].mxu1 }
 0x156   : > { %v1758_v51 = vmax.f32 %v8592_v4, %v1622_v22  ;;  %v1625_v23 = vmax.f32 %v1476_v32, 0.0  ;;  %v1654_v44 = vmax.f32 %v1425_v37, 0.0  ;;  %v1480_v40 = vadd.f32 %v1479_v43, %v5634_v12 }
 0x157   : > { %v1760_v7 = vmax.f32 %v8593_v33, %v1624_v20  ;;  %v8594_v42 = vmax.f32 %v5916_v52, 0.0  ;;  %v1656_v41 = vmax.f32 %v1478_v27, 0.0  ;;  %v1655_v25 = vmax.f32 %v1427_v11, 0.0 }
 0x158   : > { %v6052_v58 = vmax.f32 %v5741_v46, %v1758_v51  ;;  %v8596_v14 = vmax.f32 %v5919_v3, 0.0  ;;  %v1766_v32 = vmax.f32 %v8597_v5, %v1654_v44  ;;  %v1657_v22 = vmax.f32 %v1480_v40, 0.0 }
 0x159   : > { %v1759_v30 = vmax.f32 %v8594_v42, %v1623_v54  ;;  %v6059_v37 = vmax.f32 %v5744_v39, %v1760_v7  ;;  %v8600_v15 = vmax.f32 %v5922_v47, 0.0  ;;  %v8601_v52 = vmax.f32 %v5931_v2, 0.0  ;;  %v1430_v54 = vpop.f32.mrb[52].mxu0 }
 0x15a   : > { %8595 = vst [vmem:[#allocation29_spill] sm:$0xff] %v6052_v58  ;;  %v1761_v48 = vmax.f32 %v8596_v14, %v1625_v23  ;;  %v6072_v23 = vmax.f32 %v5751_v21, %v1766_v32  ;;  %v8604_v19 = vmax.f32 %v5928_v28, 0.0  ;;  %v1431_v44 = vadd.f32 %v1430_v54, %v5625_v1 }
 0x15b   : > { %8598 = vst [vmem:[#allocation30_spill] sm:$0xff] %v6059_v37  ;;  %v6062_v20 = vmax.f32 %v5746_v55, %v1759_v30  ;;  %v1768_v27 = vmax.f32 %v8600_v15, %v1656_v41  ;;  %v1767_v46 = vmax.f32 %v8601_v52, %v1655_v25  ;;  %v1483_v55 = vpop.f32.mrb[52].mxu1  ;;  %v1432_v30 = vpop.f32.mrb[53].mxu0  ;;  %1931 = vrot.lane.b32.xlu0 %v6059_v37, %s5292_s15 }
 0x15c   : > { %v6069_v3 = vmax.f32 %v5749_v62, %v1761_v48  ;;  %8603 = vst [vmem:[#allocation33_spill] sm:$0xff] %v6072_v23  ;;  %v1769_v39 = vmax.f32 %v8604_v19, %v1657_v22  ;;  %v1484_v51 = vadd.f32 %v1483_v55, %v5625_v1  ;;  %v1485_v62 = vpop.f32.mrb[53].mxu1  ;;  %v1433_v21 = vadd.f32 %v1432_v30, %v5625_v1  ;;  %v1434_v28 = vpop.f32.mrb[54].mxu0 }
 0x15d   : > { %8599 = vst [vmem:[#allocation31_spill] sm:$0xff] %v6062_v20  ;;  %v6078_v47 = vmax.f32 %v5758_v18, %v1768_v27  ;;  %v6081_v2 = vmax.f32 %v5760_v49, %v1767_v46  ;;  %v1686_v11 = vmax.f32 %v1431_v44, 0.0  ;;  %v1486_v18 = vadd.f32 %v1485_v62, %v5625_v1  ;;  %v1487_v49 = vpop.f32.mrb[54].mxu1  ;;  %v1436_v43 = vpop.f32.mrb[55].mxu0 }
 0x15e   : > { %8602 = vst [vmem:[#allocation32_spill] sm:$0xff] %v6069_v3  ;;  %v6088_v48 = vmax.f32 %v5764_v10, %v1769_v39  ;;  %v1435_v7 = vadd.f32 %v1434_v28, %v5636_v16  ;;  %v1688_v4 = vmax.f32 %v1484_v51, 0.0  ;;  %v1687_v40 = vmax.f32 %v1433_v21, 0.0  ;;  %v1489_v42 = vpop.f32.mrb[55].mxu1 }
 0x15f   : > { %8605 = vst [vmem:[#allocation34_spill] sm:$0xff] %v6081_v2  ;;  %v1488_v33 = vadd.f32 %v1487_v49, %v5636_v16  ;;  %1933 = vrot.lane.b32.xlu1 %v6078_v47, %s5292_s15  ;;  %v1437_v41 = vadd.f32 %v1436_v43, %v5636_v16  ;;  %v8607_v10 = vmax.f32 %v5937_v6, 0.0  ;;  %v1689_v14 = vmax.f32 %v1486_v18, 0.0  ;;  %1939 = vrot.lane.b32.xlu0 %v6069_v3, %s5292_s15 }
 0x160   : > { %8606 = vst [vmem:[#allocation35_spill] sm:$0xff] %v6088_v48  ;;  %v1718_v5 = vmax.f32 %v1435_v7, 0.0  ;;  %v1490_v32 = vadd.f32 %v1489_v42, %v5636_v16  ;;  %v8608_v22 = vmax.f32 %v5934_v61, 0.0  ;;  %v8609_v27 = vmax.f32 %v5944_v59, 0.0 }
 0x161   : > { %v1774_v25 = vmax.f32 %v8607_v10, %v1686_v11  ;;  %v1720_v46 = vmax.f32 %v1488_v33, 0.0  ;;  %v1719_v54 = vmax.f32 %v1437_v41, 0.0  ;;  %v8610_v6 = vmax.f32 %v5941_v57, 0.0  ;;  %v1526_v57 = vpop.f32.mrb[56].mxu0 }
 0x162   : > { %v1776_v15 = vmax.f32 %v8608_v22, %v1688_v4  ;;  %v1775_v52 = vmax.f32 %v8609_v27, %v1687_v40  ;;  %v8611_v44 = vmax.f32 %v5947_v34, 0.0  ;;  %v1721_v30 = vmax.f32 %v1490_v32, 0.0  ;;  %v1528_v18 = vpop.f32.mrb[57].mxu0 }
 0x163   : > { %v6106_v19 = vmax.f32 %v5784_v24, %v1774_v25  ;;  %v1777_v39 = vmax.f32 %v8610_v6, %v1689_v14  ;;  %v8613_v51 = vmax.f32 %v5952_v0, 0.0  ;;  %v8614_v21 = vmax.f32 %v5955_v9, 0.0  ;;  %1941 = vrot.lane.b32.xlu1 %v6088_v48, %s5292_s15  ;;  %v1579_v0 = vpop.f32.mrb[56].mxu1 }
 0x164   : > { %v1782_v55 = vmax.f32 %v8611_v44, %v1718_v5  ;;  %v6113_v61 = vmax.f32 %v5789_v56, %v1776_v15  ;;  %v6116_v59 = vmax.f32 %v5793_v13, %v1775_v52  ;;  %v8616_v56 = vmax.f32 %v5961_v38, 0.0  ;;  %v1581_v43 = vpop.f32.mrb[57].mxu1 }
 0x165   : > { %v1784_v62 = vmax.f32 %v8613_v51, %v1720_v46  ;;  %v1783_v24 = vmax.f32 %v8614_v21, %v1719_v54  ;;  %v6125_v34 = vmax.f32 %v5798_v35, %v1777_v39  ;;  %v1527_v11 = vadd.f32 %v1526_v57, %v5623_v63  ;;  %v1583_v42 = vpop.f32.mrb[58].mxu1 }
 0x166   : > { %8612 = vst [vmem:[#allocation36_spill] sm:$0xff] %v6113_v61  ;;  %v6128_v28 = vmax.f32 %v5802_v29, %v1782_v55  ;;  %v1785_v13 = vmax.f32 %v8616_v56, %v1721_v30  ;;  %v1580_v49 = vadd.f32 %v1579_v0, %v5623_v63  ;;  %v1529_v35 = vadd.f32 %v1528_v18, %v5623_v63  ;;  %v1530_v29 = vpop.f32.mrb[58].mxu0  ;;  %v1585_v14 = vpop.f32.mrb[59].mxu1  ;;  %v8632_v56 = vld [vmem:[#allocation20_spill] sm:$0xff]  ;;  %v8634_v0 = vld [vmem:[#allocation5_spill] sm:$0xff]  ;;  %v8636_v18 = vld [vmem:[#allocation6_spill] sm:$0xff] }
 0x167   : > { %8615 = vst [vmem:[#allocation37_spill] sm:$0xff] %v6125_v34  ;;  %v6134_v9 = vmax.f32 %v5811_v53, %v1784_v62  ;;  %v6137_v7 = vmax.f32 %v5815_v36, %v1783_v24  ;;  %v1626_v38 = vmax.f32 %v1527_v11, 0.0  ;;  %v1582_v40 = vadd.f32 %v1581_v43, %v5623_v63  ;;  %v1532_v53 = vpop.f32.mrb[59].mxu0  ;;  %v8626_v62 = vld [vmem:[#allocation3_spill] sm:$0xff] }
 0x168   : > { %v6142_v4 = vmax.f32 %v5824_v31, %v1785_v13  ;;  %v1531_v33 = vadd.f32 %v1530_v29, %v5634_v12  ;;  %v1628_v41 = vmax.f32 %v1580_v49, 0.0  ;;  %v1627_v10 = vmax.f32 %v1529_v35, 0.0  ;;  %v8638_v49 = vld [vmem:[#allocation19_spill] sm:$0xff] }
 0x169   : > { %8617 = vst [vmem:[#allocation38_spill] sm:$0xff] %v6134_v9  ;;  %8618 = vst [vmem:[#allocation39_spill] sm:$0xff] %v6137_v7  ;;  %v1584_v36 = vadd.f32 %v1583_v42, %v5634_v12  ;;  %v1533_v25 = vadd.f32 %v1532_v53, %v5634_v12  ;;  %v8620_v5 = vmax.f32 %v5971_v45, 0.0  ;;  %v1629_v22 = vmax.f32 %v1582_v40, 0.0  ;;  %v1536_v11 = vpop.f32.mrb[60].mxu0  ;;  %v8642_v53 = vld [vmem:[#allocation8_spill] sm:$0xff] }
 0x16a   : > { %8619 = vst [vmem:[#allocation40_spill] sm:$0xff] %v6142_v4  ;;  %v1658_v31 = vmax.f32 %v1531_v33, 0.0  ;;  %v1586_v15 = vadd.f32 %v1585_v14, %v5634_v12  ;;  %v8621_v63 = vmax.f32 %v5976_v60, 0.0  ;;  %v8622_v52 = vmax.f32 %v5979_v8, 0.0  ;;  %v8628_v60 = vld [vmem:[#allocation4_spill] sm:$0xff]  ;;  %v8630_v8 = vld [vmem:[#allocation18_spill] sm:$0xff] }
 0x16b   : > { %v1762_v32 = vmax.f32 %v8620_v5, %v1626_v38  ;;  %v1660_v54 = vmax.f32 %v1584_v36, 0.0  ;;  %v1659_v6 = vmax.f32 %v1533_v25, 0.0  ;;  %v8624_v44 = vmax.f32 %v5983_v26, 0.0  ;;  %v1589_v38 = vpop.f32.mrb[60].mxu1  ;;  %v1538_v40 = vpop.f32.mrb[61].mxu0  ;;  %v8640_v33 = vld [vmem:[#allocation7_spill] sm:$0xff] }
 0x16c   : > { %v1764_v27 = vmax.f32 %v8621_v63, %v1628_v41  ;;  %v1763_v46 = vmax.f32 %v8622_v52, %v1627_v10  ;;  %v8625_v45 = vmax.f32 %v5989_v50, 0.0  ;;  %v1661_v51 = vmax.f32 %v1586_v15, 0.0  ;;  %v1591_v36 = vpop.f32.mrb[61].mxu1  ;;  %v1540_v14 = vpop.f32.mrb[62].mxu0  ;;  %v8644_v5 = vld [vmem:[#allocation9_spill] sm:$0xff] }
 0x16d   : > { %v6156_v39 = vmax.f32 %v5847_v17, %v1762_v32  ;;  %v1765_v55 = vmax.f32 %v8624_v44, %v1629_v22  ;;  %v8631_v24 = vmax.f32 %v8630_v8, 0.0  ;;  %v8633_v13 = vmax.f32 %v8632_v56, 0.0  ;;  %v1593_v63 = vpop.f32.mrb[62].mxu1 }
 0x16e   : > { %v1770_v30 = vmax.f32 %v8625_v45, %v1658_v31  ;;  %v6163_v12 = vmax.f32 %v8626_v62, %v1764_v27  ;;  %v6166_v21 = vmax.f32 %v8628_v60, %v1763_v46  ;;  %v8639_v35 = vmax.f32 %v8638_v49, 0.0  ;;  %v1542_v27 = vpop.f32.mrb[63].mxu0  ;;  %v8648_v60 = vld [vmem:[#allocation21_spill] sm:$0xff]  ;;  %v8654_v49 = vld [vmem:[#allocation23_spill] sm:$0xff] }
 0x16f   : > { %8623 = vst [vmem:[#allocation41_spill] sm:$0xff] %v6156_v39  ;;  %v1772_v57 = vmax.f32 %v8631_v24, %v1660_v54  ;;  %v1771_v17 = vmax.f32 %v8633_v13, %v1659_v6  ;;  %v6173_v26 = vmax.f32 %v8634_v0, %v1765_v55  ;;  %v1537_v29 = vadd.f32 %v1536_v11, %v5625_v1  ;;  %v1595_v6 = vpop.f32.mrb[63].mxu1  ;;  %v8646_v55 = vld [vmem:[#allocation22_spill] sm:$0xff] }
 0x170   : > { %8627 = vst [vmem:[#allocation3_spill] sm:$0xff] %v6163_v12  ;;  %8629 = vst [vmem:[#allocation4_spill] sm:$0xff] %v6166_v21  ;;  %v6176_v50 = vmax.f32 %v8636_v18, %v1770_v30  ;;  %v1773_v43 = vmax.f32 %v8639_v35, %v1661_v51  ;;  %v1590_v10 = vadd.f32 %v1589_v38, %v5625_v1  ;;  %1822 = vrot.lane.b32.xlu0 %v6163_v12, %s5293_s16  ;;  %v8652_v0 = vld [vmem:[#allocation10_spill] sm:$0xff] }
 0x171   : > { %8635 = vst [vmem:[#allocation18_spill] sm:$0xff] %v6173_v26  ;;  %v6182_v42 = vmax.f32 %v8640_v33, %v1772_v57  ;;  %v6185_v41 = vmax.f32 %v8642_v53, %v1771_v17  ;;  %v1539_v25 = vadd.f32 %v1538_v40, %v5625_v1  ;;  %v1690_v22 = vmax.f32 %v1537_v29, 0.0  ;;  %v8650_v57 = vld [vmem:[#allocation24_spill] sm:$0xff]  ;;  %v8656_v29 = vld [vmem:[#allocation25_spill] sm:$0xff]  ;;  %v8658_v33 = vld [vmem:[#allocation11_spill] sm:$0xff] }
 0x172   : > { %8637 = vst [vmem:[#allocation20_spill] sm:$0xff] %v6176_v50  ;;  %v6192_v32 = vmax.f32 %v8644_v5, %v1773_v43  ;;  %v1592_v31 = vadd.f32 %v1591_v36, %v5625_v1  ;;  %v1541_v15 = vadd.f32 %v1540_v14, %v5636_v16  ;;  %v1692_v52 = vmax.f32 %v1590_v10, 0.0  ;;  %v8660_v10 = vld [vmem:[#allocation12_spill] sm:$0xff] }
 0x173   : > { %8641 = vst [vmem:[#allocation5_spill] sm:$0xff] %v6182_v42  ;;  %8643 = vst [vmem:[#allocation6_spill] sm:$0xff] %v6185_v41  ;;  %v1691_v46 = vmax.f32 %v1539_v25, 0.0  ;;  %v1594_v54 = vadd.f32 %v1593_v63, %v5636_v16  ;;  %1824 = vrot.lane.b32.xlu1 %v6182_v42, %s5293_s16  ;;  %v1543_v44 = vadd.f32 %v1542_v27, %v5636_v16  ;;  %v8647_v45 = vmax.f32 %v8646_v55, 0.0  ;;  %v8662_v25 = vld [vmem:[#allocation26_spill] sm:$0xff]  ;;  %v8666_v63 = vld [vmem:[#allocation13_spill] sm:$0xff] }
 0x174   : > { %8645 = vst [vmem:[#allocation19_spill] sm:$0xff] %v6192_v32  ;;  %v1693_v51 = vmax.f32 %v1592_v31, 0.0  ;;  %v1722_v62 = vmax.f32 %v1541_v15, 0.0  ;;  %v1596_v1 = vadd.f32 %v1595_v6, %v5636_v16  ;;  %v8649_v8 = vmax.f32 %v8648_v60, 0.0  ;;  %1877 = vrot.lane.b32.xlu0 %v6156_v39, %s5294_s17  ;;  %v8672_v55 = vld [vmem:[#allocation15_spill] sm:$0xff] }
 0x175   : > { %v1778_v30 = vmax.f32 %v8647_v45, %v1690_v22  ;;  %v8651_v56 = vmax.f32 %v8650_v57, 0.0  ;;  %v1724_v17 = vmax.f32 %v1594_v54, 0.0  ;;  %v1723_v11 = vmax.f32 %v1543_v44, 0.0  ;;  %v8664_v22 = vld [vmem:[#allocation27_spill] sm:$0xff]  ;;  %v8670_v54 = vld [vmem:[#allocation28_spill] sm:$0xff] }
 0x176   : > { %v1780_v24 = vmax.f32 %v8649_v8, %v1692_v52  ;;  %v8655_v35 = vmax.f32 %v8654_v49, 0.0  ;;  %v8657_v16 = vmax.f32 %v8656_v29, 0.0  ;;  %v1725_v40 = vmax.f32 %v1596_v1, 0.0  ;;  %v8668_v52 = vld [vmem:[#allocation14_spill] sm:$0xff] }
 0x177   : > { %v1779_v13 = vmax.f32 %v8651_v56, %v1691_v46  ;;  %v6210_v18 = vmax.f32 %v8652_v0, %v1778_v30  ;;  %v8663_v14 = vmax.f32 %v8662_v25, 0.0  ;;  %v8665_v31 = vmax.f32 %v8664_v22, 0.0  ;;  %1879 = vrot.lane.b32.xlu1 %v6176_v50, %s5294_s17  ;;  %v8674_v30 = vld [vmem:[#allocation16_spill] sm:$0xff] }
 0x178   : > { %v1781_v43 = vmax.f32 %v8655_v35, %v1693_v51  ;;  %v1786_v38 = vmax.f32 %v8657_v16, %v1722_v62  ;;  %v6217_v53 = vmax.f32 %v8658_v33, %v1780_v24  ;;  %v8671_v6 = vmax.f32 %v8670_v54, 0.0  ;;  %2042 = vrot.lane.b32.xlu0 %v6163_v12, %s5294_s17  ;;  %v8676_v62 = vld [vmem:[#allocation17_spill] sm:$0xff]  ;;  %v6344_v56 = vld [vmem:[%s8376_s5 + $0x3] ss:$8 sm:$0x3] }
 0x179   : > { %8653 = vst [vmem:[#allocation7_spill] sm:$0xff] %v6210_v18  ;;  %v6220_v36 = vmax.f32 %v8660_v10, %v1779_v13  ;;  %v1788_v5 = vmax.f32 %v8663_v14, %v1724_v17  ;;  %v1787_v15 = vmax.f32 %v8665_v31, %v1723_v11  ;;  %v1838_v60 = vlaneseq }
 0x17a   : > { %8659 = vst [vmem:[#allocation8_spill] sm:$0xff] %v6217_v53  ;;  %v6229_v27 = vmax.f32 %v8666_v63, %v1781_v43  ;;  %v6232_v46 = vmax.f32 %v8668_v52, %v1786_v38  ;;  %v1789_v44 = vmax.f32 %v8671_v6, %v1725_v40  ;;  %v3137_v40 = vld [vmem:[%s8374_s3 + $0x8] sm:$0xff] }
 0x17b   : > { %8661 = vst [vmem:[#allocation9_spill] sm:$0xff] %v6220_v36  ;;  %v6237_v45 = vmax.f32 %v8672_v55, %v1788_v5  ;;  %v6240_v51 = vmax.f32 %v8674_v30, %v1787_v15  ;;  %2044 = vrot.lane.b32.xlu1 %v6182_v42, %s5294_s17  ;;  %v6335_v8 = vand.u32 127, %v1838_v60  ;;  %v1852_v24 = vshrl.u32 %v1838_v60, 7  ;;  %3585 = vmatprep.mubr.f32.mxu0 %v3137_v40  ;;  %v1849_v15 = vld [vmem:[%s8376_s5] ss:$8 sm:$0x3] }
 0x17c   : > { %8667 = vst [vmem:[#allocation22_spill] sm:$0xff] %v6229_v27  ;;  %8669 = vst [vmem:[#allocation21_spill] sm:$0xff] %v6232_v46  ;;  %v6245_v1 = vmax.f32 %v8676_v62, %v1789_v44  ;;  %2178 = vrot.lane.b32.xlu0 %v6156_v39, %s5295_s18  ;;  %3811 = vmatprep.mubr.f32.mxu1 %v3137_v40  ;;  %v4755_v40 = vld [vmem:[%s8376_s5 + $0x1] ss:$8 sm:$0x3] }
 0x17d   : > { %8673 = vst [vmem:[#allocation24_spill] sm:$0xff] %v6237_v45  ;;  %8675 = vst [vmem:[#allocation10_spill] sm:$0xff] %v6240_v51  ;;  %v6350_v17 = vsub.s32 0, %v1852_v24  ;;  %vm1947_vm3 = vcmp.lt.s32.totalorder %v6335_v8, 1  ;;  %vm1840_vm4 = vcmp.lt.s32.totalorder %v6335_v8, 17  ;;  %v6426_v52 = vsub.s32 1, %v1852_v24 }
 0x17e   : > { %8677 = vst [vmem:[#allocation23_spill] sm:$0xff] %v6245_v1  ;;  %vm1893_vm5 = vcmp.lt.s32.totalorder %v6335_v8, 16  ;;  %vm2194_vm6 = vcmp.lt.s32.totalorder %v6335_v8, 15  ;;  %vm2276_vm7 = vcmp.lt.s32.totalorder %v6335_v8, 127  ;;  %vm2770_vm9 = vcmp.lt.s32.totalorder %v6335_v8, 113 }
 0x17f   : > { %2180 = vrot.lane.b32.xlu1 %v6176_v50, %s5295_s18  ;;  %v6355_v11 = vrot.slane %v6344_v56, %v6350_v17  ;;  %v6429_v54 = vrot.slane %v1849_v15, %v6350_v17  ;;  %v6434_v44 = vrot.slane %v1849_v15, %v6426_v52  ;;  %vm2824_vm10 = vcmp.lt.s32.totalorder %v6335_v8, 112 }
 0x180   : > { %1830 = vrot.lane.b32.xlu0 %v6173_v26, %s5293_s16  ;;  %vm3098_vm11 = vcmp.lt.s32.totalorder %v6335_v8, 111 }
 0x181   : > { %8678 = vst [vmem:[#allocation25_spill] sm:$0xff] %v6355_v11 }
 0x183   : > { %1832 = vrot.lane.b32.xlu1 %v6192_v32, %s5293_s16 }
 0x184   : > { %1885 = vrot.lane.b32.xlu0 %v6166_v21, %s5294_s17 }
 0x187   : > { %1887 = vrot.lane.b32.xlu1 %v6185_v41, %s5294_s17 }
 0x188   : > { %2050 = vrot.lane.b32.xlu0 %v6173_v26, %s5294_s17 }
 0x18b   : > { %2052 = vrot.lane.b32.xlu1 %v6192_v32, %s5294_s17 }
 0x18c   : > { %2186 = vrot.lane.b32.xlu0 %v6166_v21, %s5295_s18 }
 0x18f   : > { %2188 = vrot.lane.b32.xlu1 %v6185_v41, %s5295_s18 }
 0x190   : > { %1826 = vrot.lane.b32.xlu0 %v6217_v53, %s5293_s16 }
 0x193   : > { %1828 = vrot.lane.b32.xlu1 %v6237_v45, %s5293_s16 }
 0x194   : > { %1881 = vrot.lane.b32.xlu0 %v6210_v18, %s5294_s17 }
 0x197   : > { %1883 = vrot.lane.b32.xlu1 %v6232_v46, %s5294_s17 }
 0x198   : > { %2046 = vrot.lane.b32.xlu0 %v6217_v53, %s5294_s17 }
 0x19b   : > { %2048 = vrot.lane.b32.xlu1 %v6237_v45, %s5294_s17 }
 0x19c   : > { %2182 = vrot.lane.b32.xlu0 %v6210_v18, %s5295_s18 }
 0x19f   : > { %2184 = vrot.lane.b32.xlu1 %v6232_v46, %s5295_s18 }
 0x1a0   : > { %1834 = vrot.lane.b32.xlu0 %v6229_v27, %s5293_s16 }
 0x1a3   : > { %1836 = vrot.lane.b32.xlu1 %v6245_v1, %s5293_s16 }
 0x1a4   : > { %1889 = vrot.lane.b32.xlu0 %v6220_v36, %s5294_s17 }
 0x1a7   : > { %1891 = vrot.lane.b32.xlu1 %v6240_v51, %s5294_s17 }
 0x1a8   : > { %1935 = vrot.lane.b32.xlu0 %v6113_v61, %s5292_s15 }
 0x1ab   : > { %1937 = vrot.lane.b32.xlu1 %v6134_v9, %s5292_s15 }
 0x1ac   : > { %2054 = vrot.lane.b32.xlu0 %v6229_v27, %s5294_s17 }
 0x1af   : > { %2056 = vrot.lane.b32.xlu1 %v6245_v1, %s5294_s17 }
 0x1b0   : > { %2190 = vrot.lane.b32.xlu0 %v6220_v36, %s5295_s18 }
 0x1b3   : > { %1945 = vrot.lane.b32.xlu1 %v6142_v4, %s5292_s15 }
 0x1b4   : > { %1943 = vrot.lane.b32.xlu0 %v6125_v34, %s5292_s15 }
 0x1b7   : > { %2192 = vrot.lane.b32.xlu1 %v6240_v51, %s5295_s18 }
 0x1b8   : > { %2260 = vrot.lane.b32.xlu0 %v6052_v58, %s5296_s19 }
 0x1bb   : > { %2262 = vrot.lane.b32.xlu1 %v6072_v23, %s5296_s19 }
 0x1bc   : > { %2268 = vrot.lane.b32.xlu0 %v6062_v20, %s5296_s19 }
 0x1bf   : > { %2270 = vrot.lane.b32.xlu1 %v6081_v2, %s5296_s19 }
 0x1c0   : > { %2264 = vrot.lane.b32.xlu0 %v6106_v19, %s5296_s19 }
 0x1c3   : > { %2266 = vrot.lane.b32.xlu1 %v6128_v28, %s5296_s19 }
 0x1c4   : > { %2272 = vrot.lane.b32.xlu0 %v6116_v59, %s5296_s19 }
 0x1c7   : > { %2274 = vrot.lane.b32.xlu1 %v6137_v7, %s5296_s19 }
 0x1c8   : > { %2370 = vrot.lane.b32.xlu0 %v6163_v12, %s5292_s15 }
 0x1cb   : > { %2372 = vrot.lane.b32.xlu1 %v6182_v42, %s5292_s15 }
 0x1cc   : > { %2378 = vrot.lane.b32.xlu0 %v6173_v26, %s5292_s15 }
 0x1cd   : > { %v6337_v57 = vpop.permute.xlu0 %1931 }
 0x1cf   : > { %2380 = vrot.lane.b32.xlu1 %v6192_v32, %s5292_s15  ;;  %v4766_v32 = vld [vmem:[%s8376_s5 + $0x3] ss:$8 sm:$0x3] }
 0x1d0   : > { %2374 = vrot.lane.b32.xlu0 %v6217_v53, %s5292_s15 }
 0x1d1   : > { %v6346_v13 = vpop.permute.xlu1 %1933  ;;  %v6357_v0 = vpop.permute.xlu0 %1939 }
 0x1d2   : > { %v6365_v49 = vsel %vm1947_vm3, %v6357_v0, %v6337_v57 }
 0x1d3   : > { %2376 = vrot.lane.b32.xlu1 %v6237_v45, %s5292_s15  ;;  %8679 = vst [vmem:[#allocation11_spill] sm:$0xff] %v6365_v49  ;;  %v6379_v29 = vmul.f32 %v6355_v11, %v6365_v49  ;;  %v6593_v49 = vrot.slane %v4766_v32, %v6350_v17 }
 0x1d4   : > { %2382 = vrot.lane.b32.xlu0 %v6229_v27, %s5292_s15 }
 0x1d5   : > { %v6367_v35 = vpop.permute.xlu1 %1941  ;;  %8680 = vst [vmem:[#allocation12_spill] sm:$0xff] %v6379_v29 }
 0x1d6   : > { %v6375_v43 = vsel %vm1947_vm3, %v6367_v35, %v6346_v13 }
 0x1d7   : > { %2384 = vrot.lane.b32.xlu1 %v6245_v1, %s5292_s15  ;;  %v6383_v16 = vmul.f32 %v6355_v11, %v6375_v43  ;;  %v4770_v1 = vld [vmem:[%s8376_s5 + $0x4] ss:$8 sm:$0x3]  ;;  %v4762_v11 = vld [vmem:[%s8376_s5 + $0x1] ss:$8 sm:$0x3] }
 0x1d8   : > { %2646 = vrot.lane.b32.xlu0 %v6156_v39, %s5296_s19  ;;  %v6529_v12 = vrot.slane %v4770_v1, %v6350_v17 }
 0x1d9   : > { %8681 = vst [vmem:[#allocation26_spill] sm:$0xff] %v6383_v16 }
 0x1db   : > { %2648 = vrot.lane.b32.xlu1 %v6176_v50, %s5296_s19  ;;  %v4758_v50 = vld [vmem:[%s8376_s5 + $0x1] ss:$8 sm:$0x3] }
 0x1dc   : > { %2654 = vrot.lane.b32.xlu0 %v6166_v21, %s5296_s19  ;;  %v4759_v21 = vld [vmem:[%s8376_s5 + $0x1] ss:$8 sm:$0x3] }
 0x1df   : > { %2656 = vrot.lane.b32.xlu1 %v6185_v41, %s5296_s19 }
 0x1e0   : > { %2650 = vrot.lane.b32.xlu0 %v6210_v18, %s5296_s19 }
 0x1e2   : > { %v1823_v33 = vpop.permute.xlu0 %1822 }
 0x1e3   : > { %2652 = vrot.lane.b32.xlu1 %v6232_v46, %s5296_s19  ;;  %v2459_v46 = vrot.slane %v4770_v1, %v6426_v52 }
 0x1e4   : > { %2658 = vrot.lane.b32.xlu0 %v6220_v36, %s5296_s19  ;;  %v4786_v36 = vld [vmem:[%s8376_s5 + $0x4] ss:$8 sm:$0x3] }
 0x1e5   : > { %v1825_v10 = vpop.permute.xlu1 %1824 }
 0x1e6   : > { %v1878_v25 = vpop.permute.xlu0 %1877 }
 0x1e7   : > { %2660 = vrot.lane.b32.xlu1 %v6240_v51, %s5296_s19 }
 0x1e8   : > { %2754 = vrot.lane.b32.xlu0 %v6059_v37, %s5297_s26 }
 0x1e9   : > { %v1880_v14 = vpop.permute.xlu1 %1879 }
 0x1ea   : > { %v6406_v5 = vpop.permute.xlu0 %2042 }
 0x1eb   : > { %2756 = vrot.lane.b32.xlu1 %v6078_v47, %s5297_s26 }
 0x1ec   : > { %2762 = vrot.lane.b32.xlu0 %v6069_v3, %s5297_s26 }
 0x1ed   : > { %v6410_v22 = vpop.permute.xlu1 %2044 }
 0x1ee   : > { %v6414_v31 = vpop.permute.xlu0 %2178 }
 0x1ef   : > { %8682 = vst [vmem:[#allocation27_spill] sm:$0xff] %v6414_v31  ;;  %2764 = vrot.lane.b32.xlu1 %v6088_v48, %s5297_s26  ;;  %v6651_v31 = vmul.f32 %v2459_v46, %v6062_v20 }
 0x1f0   : > { %2808 = vrot.lane.b32.xlu0 %v6052_v58, %s5298_s29 }
 0x1f1   : > { %v6421_v63 = vpop.permute.xlu1 %2180  ;;  %8706 = vst [vmem:[#allocation59_spill] sm:$0xff] %v6651_v31 }
 0x1f2   : > { %8683 = vst [vmem:[#allocation13_spill] sm:$0xff] %v6421_v63  ;;  %v1831_v6 = vpop.permute.xlu0 %1830 }
 0x1f3   : > { %2810 = vrot.lane.b32.xlu1 %v6072_v23, %s5298_s29  ;;  %v1845_v55 = vsel %vm1840_vm4, %v1831_v6, %v1823_v33  ;;  %v1841_v30 = vsel %vm1840_vm4, %v1823_v33, %v1831_v6 }
 0x1f4   : > { %2816 = vrot.lane.b32.xlu0 %v6062_v20, %s5298_s29  ;;  %v1861_v15 = vmul.f32 %v6429_v54, %v1845_v55  ;;  %v1862_v29 = vmul.f32 %v6434_v44, %v1841_v30 }
 0x1f5   : > { %v1833_v62 = vpop.permute.xlu1 %1832 }
 0x1f6   : > { %v1842_v60 = vsel %vm1840_vm4, %v1825_v10, %v1833_v62  ;;  %v1846_v24 = vsel %vm1840_vm4, %v1833_v62, %v1825_v10  ;;  %v1886_v6 = vpop.permute.xlu0 %1885  ;;  %v6457_v10 = vrot.slane %v4755_v40, %v6350_v17  ;;  %v6460_v62 = vrot.slane %v4755_v40, %v6426_v52 }
 0x1f7   : > { %v1863_v38 = vmul.f32 %v6429_v54, %v1846_v24  ;;  %v1864_v33 = vmul.f32 %v6434_v44, %v1842_v60  ;;  %2818 = vrot.lane.b32.xlu1 %v6081_v2, %s5298_s29  ;;  %v6466_v60 = vsel %vm1893_vm5, %v1886_v6, %v1878_v25  ;;  %v6478_v40 = vsel %vm1893_vm5, %v1878_v25, %v1886_v6 }
 0x1f8   : > { %8684 = vst [vmem:[#allocation14_spill] sm:$0xff] %v6457_v10  ;;  %8685 = vst [vmem:[#allocation28_spill] sm:$0xff] %v6460_v62  ;;  %2758 = vrot.lane.b32.xlu0 %v6113_v61, %s5297_s26  ;;  %v1916_v25 = vmul.f32 %v6460_v62, %v6478_v40 }
 0x1f9   : > { %v4844_v16 = vpack.c.bf16 %v1863_v38, %v1861_v15  ;;  %v1888_v55 = vpop.permute.xlu1 %1887  ;;  %v4842_v30 = vpack.c.bf16 %v1864_v33, %v1862_v29 }
 0x1fa   : > { %v6470_v24 = vsel %vm1893_vm5, %v1880_v14, %v1888_v55  ;;  %v6474_v38 = vsel %vm1893_vm5, %v1888_v55, %v1880_v14  ;;  %v6482_v45 = vpop.permute.xlu0 %2050  ;;  %v1915_v14 = vmul.f32 %v6457_v10, %v6466_v60 }
 0x1fb   : > { %v1917_v15 = vmul.f32 %v6457_v10, %v6474_v38  ;;  %2760 = vrot.lane.b32.xlu1 %v6134_v9, %s5297_s26  ;;  %v1918_v53 = vmul.f32 %v6460_v62, %v6470_v24  ;;  %4843 = vmatprep.subr.bf16.mxu0 %v4842_v30 }
 0x1fc   : > { %4845 = vmatpush1.bf16.msra.mxu0 %v4844_v16  ;;  %2766 = vrot.lane.b32.xlu0 %v6125_v34, %s5297_s26  ;;  %v4767_v16 = vld [vmem:[%s8376_s5 + $0x4] ss:$8 sm:$0x3] }
 0x1fd   : > { %v6490_v29 = vpop.permute.xlu1 %2052  ;;  %v4916_v33 = vpack.c.bf16 %v1917_v15, %v1915_v14  ;;  %v4914_v55 = vpack.c.bf16 %v1918_v53, %v1916_v25  ;;  %v4771_v15 = vld [vmem:[%s8376_s5 + $0x4] ss:$8 sm:$0x3]  ;;  %v2347_v27 = vrot.slane %v4767_v16, %v6350_v17  ;;  %v2351_v42 = vrot.slane %v4767_v16, %v6426_v52 }
 0x1fe   : > { %v6496_v6 = vpop.permute.xlu0 %2186  ;;  %v4774_v53 = vld [vmem:[%s8376_s5 + $0x4] ss:$8 sm:$0x3]  ;;  %v6541_v18 = vrot.slane %v4771_v15, %v6350_v17  ;;  %v6544_v16 = vrot.slane %v4771_v15, %v6426_v52 }
 0x1ff   : > { %8686 = vst [vmem:[#allocation15_spill] sm:$0xff] %v6496_v6  ;;  %2768 = vrot.lane.b32.xlu1 %v6142_v4, %s5297_s26  ;;  %4915 = vmatprep.subr.bf16.mxu1 %v4914_v55  ;;  %v4779_v25 = vld [vmem:[%s8376_s5 + $0x4] ss:$8 sm:$0x3]  ;;  %v6547_v51 = vrot.slane %v4774_v53, %v6350_v17  ;;  %v6558_v1 = vrot.slane %v4774_v53, %v6426_v52 }
 0x200   : > { %2812 = vrot.lane.b32.xlu0 %v6106_v19, %s5298_s29  ;;  %4917 = vmatpush1.bf16.msra.mxu1 %v4916_v33  ;;  %v4782_v55 = vld [vmem:[%s8376_s5 + $0x4] ss:$8 sm:$0x3]  ;;  %v6561_v15 = vrot.slane %v4779_v25, %v6350_v17  ;;  %v6564_v39 = vrot.slane %v4779_v25, %v6426_v52  ;;  %v6577_v53 = vmul.f32 %v2351_v42, %v6081_v2 }
 0x201   : > { %v6500_v30 = vpop.permute.xlu1 %2188  ;;  %v4783_v33 = vld [vmem:[%s8376_s5 + $0x4] ss:$8 sm:$0x3]  ;;  %8688 = vst [vmem:[#allocation17_spill] sm:$0xff] %v6547_v51  ;;  %8689 = vst [vmem:[#allocation42_spill] sm:$0xff] %v6558_v1  ;;  %v6567_v41 = vrot.slane %v4782_v55, %v6350_v17  ;;  %v6645_v6 = vmul.f32 %v2351_v42, %v6137_v7  ;;  %v6679_v62 = vmul.f32 %v6544_v16, %v6088_v48 }
 0x202   : > { %8687 = vst [vmem:[#allocation16_spill] sm:$0xff] %v6500_v30  ;;  %v6516_v14 = vpop.permute.xlu0 %1826  ;;  %8690 = vst [vmem:[#allocation43_spill] sm:$0xff] %v6561_v15  ;;  %v6580_v15 = vrot.slane %v4782_v55, %v6426_v52  ;;  %v6583_v25 = vrot.slane %v4783_v33, %v6350_v17  ;;  %v6599_v55 = vrot.slane %v4786_v36, %v6350_v17 }
 0x203   : > { %2814 = vrot.lane.b32.xlu1 %v6128_v28, %s5298_s29  ;;  %8691 = vst [vmem:[#allocation44_spill] sm:$0xff] %v6564_v39  ;;  %8692 = vst [vmem:[#allocation45_spill] sm:$0xff] %v6567_v41  ;;  %v6586_v41 = vrot.slane %v4783_v33, %v6426_v52  ;;  %v6590_v39 = vrot.slane %v6344_v56, %v6426_v52  ;;  %v6605_v33 = vrot.slane %v4766_v32, %v6426_v52 }
 0x204   : > { %2820 = vrot.lane.b32.xlu0 %v6116_v59, %s5298_s29  ;;  %8693 = vst [vmem:[#allocation46_spill] sm:$0xff] %v6577_v53  ;;  %8694 = vst [vmem:[#allocation47_spill] sm:$0xff] %v6580_v15  ;;  %v6602_v15 = vrot.slane %v4786_v36, %v6426_v52  ;;  %v6611_v56 = vrot.slane %v4758_v50, %v6426_v52  ;;  %v6619_v30 = vrot.slane %v4759_v21, %v6350_v17 }
 0x205   : > { %v6537_v26 = vpop.permute.xlu1 %1828  ;;  %8695 = vst [vmem:[#allocation48_spill] sm:$0xff] %v6583_v25  ;;  %8696 = vst [vmem:[#allocation49_spill] sm:$0xff] %v6586_v41  ;;  %v6608_v25 = vrot.slane %v4758_v50, %v6350_v17  ;;  %v6622_v36 = vrot.slane %v4759_v21, %v6426_v52  ;;  %v6627_v32 = vmul.f32 %v2347_v27, %v6072_v23 }
 0x206   : > { %v6572_v51 = vpop.permute.xlu0 %1881  ;;  %8697 = vst [vmem:[#allocation50_spill] sm:$0xff] %v6590_v39  ;;  %8698 = vst [vmem:[#allocation51_spill] sm:$0xff] %v6599_v55  ;;  %v6616_v39 = vmul.f32 %v2351_v42, %v6062_v20  ;;  %v6630_v50 = vmul.f32 %v2459_v46, %v6081_v2  ;;  %v6633_v55 = vrot.slane %v4762_v11, %v6350_v17 }
 0x207   : > { %2822 = vrot.lane.b32.xlu1 %v6137_v7, %s5298_s29  ;;  %8699 = vst [vmem:[#allocation52_spill] sm:$0xff] %v6602_v15  ;;  %8701 = vst [vmem:[#allocation54_spill] sm:$0xff] %v6627_v32  ;;  %v6636_v15 = vrot.slane %v4762_v11, %v6426_v52  ;;  %v6648_v2 = vmul.f32 %v2347_v27, %v6052_v58  ;;  %v6655_v11 = vmul.f32 %v6529_v12, %v6072_v23 }
 0x208   : > { %8700 = vst [vmem:[#allocation53_spill] sm:$0xff] %v6616_v39  ;;  %2946 = vrot.lane.b32.xlu0 %v6059_v37, %s5298_s29  ;;  %8702 = vst [vmem:[#allocation55_spill] sm:$0xff] %v6630_v50  ;;  %v6664_v21 = vsel %vm1947_vm3, %v6346_v13, %v6367_v35  ;;  %v4763_v39 = vld [vmem:[%s8376_s5 + $0x2] ss:$8 sm:$0x3]  ;;  %v6672_v20 = vmul.f32 %v2351_v42, %v6116_v59  ;;  %v6675_v23 = vmul.f32 %v2459_v46, %v6137_v7 }
 0x209   : > { %v6613_v41 = vpop.permute.xlu1 %1883  ;;  %8704 = vst [vmem:[#allocation57_spill] sm:$0xff] %v6645_v6  ;;  %8705 = vst [vmem:[#allocation58_spill] sm:$0xff] %v6648_v2  ;;  %v6689_v42 = vmul.f32 %v6529_v12, %v6052_v58  ;;  %v6692_v7 = vmul.f32 %v2347_v27, %v6106_v19  ;;  %v6707_v13 = vmul.f32 %v2459_v46, %v6116_v59 }
 0x20a   : > { %v6638_v63 = vpop.permute.xlu0 %2046  ;;  %8707 = vst [vmem:[#allocation60_spill] sm:$0xff] %v6655_v11  ;;  %8709 = vst [vmem:[#allocation62_spill] sm:$0xff] %v6664_v21  ;;  %v6715_v31 = vmul.f32 %v6605_v33, %v6664_v21  ;;  %v6725_v46 = vrot.slane %v4763_v39, %v6426_v52  ;;  %v6735_v50 = vmul.f32 %v6529_v12, %v6106_v19 }
 0x20b   : > { %8703 = vst [vmem:[#allocation56_spill] sm:$0xff] %v6638_v63  ;;  %2948 = vrot.lane.b32.xlu1 %v6078_v47, %s5298_s29  ;;  %v6658_v63 = vmul.f32 %v2347_v27, %v6128_v28  ;;  %8711 = vst [vmem:[#allocation64_spill] sm:$0xff] %v6672_v20  ;;  %v6711_v27 = vmul.f32 %v6544_v16, %v6069_v3  ;;  %v6750_v21 = vmul.f32 %v6529_v12, %v6128_v28 }
 0x20c   : > { %8712 = vst [vmem:[#allocation65_spill] sm:$0xff] %v6675_v23  ;;  %8713 = vst [vmem:[#allocation66_spill] sm:$0xff] %v6679_v62  ;;  %2954 = vrot.lane.b32.xlu0 %v6069_v3, %s5298_s29  ;;  %v6754_v6 = vmul.f32 %v6541_v18, %v6059_v37  ;;  %v2062_v35 = vsel %vm1893_vm5, %v6482_v45, %v6406_v5  ;;  %v6768_v12 = vmul.f32 %v6558_v1, %v6069_v3 }
 0x20d   : > { %8708 = vst [vmem:[#allocation61_spill] sm:$0xff] %v6658_v63  ;;  %v6669_v53 = vpop.permute.xlu1 %2048  ;;  %8714 = vst [vmem:[#allocation67_spill] sm:$0xff] %v6689_v42  ;;  %v6776_v62 = vmul.f32 %v6593_v49, %v6375_v43  ;;  %v2058_v43 = vsel %vm1893_vm5, %v6406_v5, %v6482_v45  ;;  %v6801_v3 = vmul.f32 %v6619_v30, %v2062_v35 }
 0x20e   : > { %8710 = vst [vmem:[#allocation63_spill] sm:$0xff] %v6669_v53  ;;  %8715 = vst [vmem:[#allocation68_spill] sm:$0xff] %v6692_v7  ;;  %v6698_v53 = vsel %vm1947_vm3, %v6337_v57, %v6357_v0  ;;  %v6700_v10 = vpop.permute.xlu0 %2182  ;;  %v6718_v57 = vrot.slane %v4763_v39, %v6350_v17  ;;  %v6743_v39 = vmul.f32 %v6608_v25, %v6474_v38 }
 0x20f   : > { %8716 = vst [vmem:[#allocation69_spill] sm:$0xff] %v6698_v53  ;;  %2956 = vrot.lane.b32.xlu1 %v6088_v48, %s5298_s29  ;;  %8717 = vst [vmem:[#allocation70_spill] sm:$0xff] %v6707_v13  ;;  %v6739_v0 = vmul.f32 %v6605_v33, %v6698_v53  ;;  %v6764_v53 = vmul.f32 %v6541_v18, %v6078_v47  ;;  %v6780_v13 = vmul.f32 %v6608_v25, %v6466_v60 }
 0x210   : > { %8718 = vst [vmem:[#allocation71_spill] sm:$0xff] %v6711_v27  ;;  %2950 = vrot.lane.b32.xlu0 %v6113_v61, %s5298_s29  ;;  %8719 = vst [vmem:[#allocation72_spill] sm:$0xff] %v6754_v6  ;;  %v6772_v27 = vmul.f32 %v6558_v1, %v6088_v48  ;;  %v2027_v7 = vmul.f32 %v6611_v56, %v6478_v40  ;;  %v2029_v48 = vmul.f32 %v6611_v56, %v6470_v24  ;;  %v8729_v1 = vld [vmem:[#allocation16_spill] sm:$0xff] }
 0x211   : > { %v6727_v20 = vpop.permute.xlu1 %2184  ;;  %8720 = vst [vmem:[#allocation73_spill] sm:$0xff] %v6764_v53  ;;  %8721 = vst [vmem:[#allocation74_spill] sm:$0xff] %v6768_v12  ;;  %v2063_v45 = vsel %vm1893_vm5, %v6490_v29, %v6410_v22  ;;  %v8727_v12 = vld [vmem:[#allocation15_spill] sm:$0xff] }
 0x212   : > { %v1835_v38 = vpop.permute.xlu0 %1834  ;;  %8722 = vst [vmem:[#allocation75_spill] sm:$0xff] %v6772_v27  ;;  %v2080_v2 = vmul.f32 %v6619_v30, %v2063_v45  ;;  %v8725_v27 = vld [vmem:[#allocation33_spill] sm:$0xff] }
 0x213   : > { %2952 = vrot.lane.b32.xlu1 %v6134_v9, %s5298_s29  ;;  %v1847_v23 = vsel %vm1840_vm4, %v1835_v38, %v6516_v14  ;;  %v1843_v60 = vsel %vm1840_vm4, %v6516_v14, %v1835_v38 }
 0x214   : > { %2958 = vrot.lane.b32.xlu0 %v6125_v34, %s5298_s29  ;;  %v1865_v5 = vmul.f32 %v6429_v54, %v1847_v23 }
 0x215   : > { %v1837_v63 = vpop.permute.xlu1 %1836 }
 0x216   : > { %v1844_v24 = vsel %vm1840_vm4, %v6537_v26, %v1837_v63  ;;  %v1848_v40 = vsel %vm1840_vm4, %v1837_v63, %v6537_v26  ;;  %v1890_v42 = vpop.permute.xlu0 %1889  ;;  %v2079_v26 = vmul.f32 %v6622_v36, %v2058_v43  ;;  %v1866_v63 = vmul.f32 %v6434_v44, %v1843_v60 }
 0x217   : > { %v1867_v14 = vmul.f32 %v6429_v54, %v1848_v40  ;;  %v1868_v38 = vmul.f32 %v6434_v44, %v1844_v24  ;;  %2960 = vrot.lane.b32.xlu1 %v6142_v4, %s5298_s29  ;;  %v1896_v11 = vsel %vm1893_vm5, %v6572_v51, %v1890_v42  ;;  %v1900_v23 = vsel %vm1893_vm5, %v1890_v42, %v6572_v51  ;;  %s5299_s29 = smov 111   ;;  %v8723_v42 = vld [vmem:[#allocation14_spill] sm:$0xff] }
 0x218   : > { %v6829_v54 = vmul.f32 %v6633_v55, %v2062_v35  ;;  %v6832_v24 = vmul.f32 %v6636_v15, %v2058_v43  ;;  %v2059_v40 = vsel %vm1893_vm5, %v6410_v22, %v6490_v29  ;;  %3082 = vrot.lane.b32.xlu0 %v6052_v58, %s5299_s29  ;;  %v1919_v43 = vmul.f32 %v8723_v42, %v1900_v23  ;;  %v8724_v22 = vld [vmem:[#allocation28_spill] sm:$0xff]  ;;  %v8726_v58 = vld [vmem:[#allocation27_spill] sm:$0xff] }
 0x219   : > { %v4848_v44 = vpack.c.bf16 %v1867_v14, %v1865_v5  ;;  %v1892_v60 = vpop.permute.xlu1 %1891  ;;  %v4846_v35 = vpack.c.bf16 %v1868_v38, %v1866_v63  ;;  %v1920_v29 = vmul.f32 %v8724_v22, %v1896_v11  ;;  %v4850_v63 = vpack.c.bf16 %v2029_v48, %v2027_v7 }
 0x21a   : > { %v1897_v32 = vsel %vm1893_vm5, %v6613_v41, %v1892_v60  ;;  %v1901_v51 = vsel %vm1893_vm5, %v1892_v60, %v6613_v41  ;;  %v6851_v61 = vpop.permute.xlu0 %1935  ;;  %v2081_v41 = vmul.f32 %v6622_v36, %v2059_v40  ;;  %v6857_v60 = vmul.f32 %v6633_v55, %v2063_v45 }
 0x21b   : > { %v1921_v5 = vmul.f32 %v8723_v42, %v1901_v51  ;;  %v1922_v14 = vmul.f32 %v8724_v22, %v1897_v32  ;;  %3084 = vrot.lane.b32.xlu1 %v8725_v27, %s5299_s29  ;;  %v2033_v38 = vmul.f32 %v6611_v56, %v1897_v32  ;;  %4847 = vmatprep.subr.bf16.mxu0 %v4846_v35  ;;  %v8728_v22 = vld [vmem:[#allocation13_spill] sm:$0xff]  ;;  %v8730_v32 = vld [vmem:[#allocation31_spill] sm:$0xff] }
 0x21c   : > { %v2199_v42 = vsel %vm2194_vm6, %v8727_v12, %v8726_v58  ;;  %v2200_v37 = vsel %vm2194_vm6, %v8729_v1, %v8728_v22  ;;  %4849 = vmatpush1.bf16.msra.mxu0 %v4848_v44  ;;  %v2165_v45 = vmul.f32 %v6636_v15, %v2059_v40  ;;  %v2196_v48 = vsel %vm2194_vm6, %v8728_v22, %v8729_v1 }
 0x21d   : > { %v4920_v27 = vpack.c.bf16 %v1921_v5, %v1919_v43  ;;  %v1938_v53 = vpop.permute.xlu1 %1937  ;;  %v4918_v6 = vpack.c.bf16 %v1922_v14, %v1920_v29  ;;  %v2031_v7 = vmul.f32 %v6611_v56, %v1896_v11  ;;  %4851 = vmatprep.subr.bf16.mxu0 %v4850_v63  ;;  %3090 = vrot.lane.b32.xlu0 %v8730_v32, %s5299_s29  ;;  %v8731_v29 = vld [vmem:[#allocation34_spill] sm:$0xff] }
 0x21e   : > { %v4924_v35 = vpack.c.bf16 %v2080_v2, %v6801_v3  ;;  %v2195_v44 = vsel %vm2194_vm6, %v8726_v58, %v8727_v12  ;;  %v2032_v40 = vmul.f32 %v6608_v25, %v1901_v51  ;;  %v2055_v43 = vpop.permute.xlu0 %2054  ;;  %v6885_v1 = vmul.f32 %v6718_v57, %v2199_v42  ;;  %v8732_v12 = vld [vmem:[#allocation56_spill] sm:$0xff] }
 0x21f   : > { %4919 = vmatprep.subr.bf16.mxu1 %v4918_v6  ;;  %3092 = vrot.lane.b32.xlu1 %v8731_v29, %s5299_s29  ;;  %v6888_v56 = vmul.f32 %v6718_v57, %v2200_v37  ;;  %v4854_v3 = vpack.c.bf16 %v2033_v38, %v2031_v7  ;;  %v4922_v2 = vpack.c.bf16 %v2081_v41, %v2079_v26  ;;  %v8734_v26 = vld [vmem:[#allocation63_spill] sm:$0xff] }
 0x220   : > { %4921 = vmatpush1.bf16.msra.mxu1 %v4920_v27  ;;  %v2219_v11 = vmul.f32 %v6725_v46, %v2196_v48  ;;  %v2030_v58 = vmul.f32 %v6608_v25, %v1900_v23  ;;  %v2060_v6 = vsel %vm1893_vm5, %v8732_v12, %v2055_v43  ;;  %v2064_v51 = vsel %vm1893_vm5, %v2055_v43, %v8732_v12  ;;  %v8737_v12 = vld [vmem:[#allocation50_spill] sm:$0xff] }
 0x221   : > { %v8733_v5 = vpack.c.bf16 %v6743_v39, %v6780_v13  ;;  %v2057_v37 = vpop.permute.xlu1 %2056  ;;  %v2217_v27 = vmul.f32 %v6725_v46, %v2195_v44  ;;  %4923 = vmatprep.subr.bf16.mxu1 %v4922_v2  ;;  %3086 = vrot.lane.b32.xlu0 %v6106_v19, %s5299_s29  ;;  %v4858_v39 = vpack.c.bf16 %v2165_v45, %v6832_v24 }
 0x222   : > { %v2061_v14 = vsel %vm1893_vm5, %v8734_v26, %v2057_v37  ;;  %v2065_v25 = vsel %vm1893_vm5, %v2057_v37, %v8734_v26  ;;  %v4856_v23 = vpack.c.bf16 %v2032_v40, %v2030_v58  ;;  %v2191_v13 = vpop.permute.xlu0 %2190  ;;  %v2082_v63 = vmul.f32 %v6619_v30, %v2064_v51 }
 0x223   : > { %4853 = vmatpush1.bf16.msra.mxu0 %v8733_v5  ;;  %v2084_v41 = vmul.f32 %v6619_v30, %v2065_v25  ;;  %v2085_v38 = vmul.f32 %v6622_v36, %v2061_v14  ;;  %v2083_v42 = vmul.f32 %v6622_v36, %v2060_v6  ;;  %v2169_v22 = vmul.f32 %v6636_v15, %v2061_v14  ;;  %v3449_v5 = vld [vmem:[%s8375_s4 + $0x8] sm:$0xff] }
 0x224   : > { %4855 = vmatprep.subr.bf16.mxu0 %v4854_v3  ;;  %3088 = vrot.lane.b32.xlu1 %v6128_v28, %s5299_s29  ;;  %v4860_v48 = vpack.c.bf16 %v6857_v60, %v6829_v54  ;;  %v4932_v7 = vpack.c.bf16 %v6888_v56, %v6885_v1  ;;  %v2168_v44 = vmul.f32 %v6633_v55, %v2065_v25  ;;  %v8735_v3 = vld [vmem:[#allocation39_spill] sm:$0xff] }
 0x225   : > { %4925 = vmatpush1.bf16.msra.mxu1 %v4924_v35  ;;  %v1946_v24 = vpop.permute.xlu1 %1945  ;;  %v4930_v45 = vpack.c.bf16 %v2219_v11, %v2217_v27  ;;  %v2167_v30 = vmul.f32 %v6636_v15, %v2060_v6  ;;  %v4928_v36 = vpack.c.bf16 %v2084_v41, %v2082_v63  ;;  %v4926_v43 = vpack.c.bf16 %v2085_v38, %v2083_v42  ;;  %v8736_v11 = vld [vmem:[#allocation25_spill] sm:$0xff]  ;;  %v8738_v42 = vld [vmem:[#allocation11_spill] sm:$0xff] }
 0x226   : > { %v1955_v40 = vsel %vm1947_vm3, %v1946_v24, %v1938_v53  ;;  %v2166_v35 = vmul.f32 %v6633_v55, %v2064_v51  ;;  %v2197_v54 = vsel %vm2194_vm6, %v6700_v10, %v2191_v13  ;;  %v2201_v60 = vsel %vm2194_vm6, %v2191_v13, %v6700_v10  ;;  %3094 = vrot.lane.b32.xlu0 %v6116_v59, %s5299_s29  ;;  %v1944_v15 = vpop.permute.xlu0 %1943 }
 0x227   : > { %4857 = vmatpush1.bf16.msra.mxu0 %v4856_v23  ;;  %v1951_v1 = vsel %vm1947_vm3, %v1938_v53, %v1946_v24  ;;  %4927 = vmatprep.subr.bf16.mxu1 %v4926_v43  ;;  %v1950_v55 = vsel %vm1947_vm3, %v6851_v61, %v1944_v15  ;;  %v1954_v56 = vsel %vm1947_vm3, %v1944_v15, %v6851_v61  ;;  %v3448_v61 = vld [vmem:[%s8375_s4] sm:$0xff] }
 0x228   : > { %4859 = vmatprep.subr.bf16.mxu0 %v4858_v39  ;;  %3096 = vrot.lane.b32.xlu1 %v8735_v3, %s5299_s29  ;;  %v4862_v10 = vpack.c.bf16 %v2169_v22, %v2167_v30  ;;  %v4864_v2 = vpack.c.bf16 %v2168_v44, %v2166_v35  ;;  %v6946_v53 = vmul.f32 %v8736_v11, %v1955_v40  ;;  %v3451_v44 = vld [vmem:[%s8375_s4 + $0x18] sm:$0xff] }
 0x229   : > { %v6949_v58 = vmul.f32 %v8736_v11, %v1954_v56  ;;  %v6952_v6 = vmul.f32 %v8737_v12, %v1950_v55  ;;  %v2193_v51 = vpop.permute.xlu1 %2192  ;;  %v6961_v37 = vmul.f32 %v8737_v12, %v1951_v1  ;;  %4929 = vmatpush1.bf16.msra.mxu1 %v4928_v36  ;;  %v2221_v14 = vmul.f32 %v6725_v46, %v2197_v54 }
 0x22a   : > { %v2198_v27 = vsel %vm2194_vm6, %v6727_v20, %v2193_v51  ;;  %v2202_v26 = vsel %vm2194_vm6, %v2193_v51, %v6727_v20  ;;  %4931 = vmatprep.subr.bf16.mxu1 %v4930_v45  ;;  %v2261_v38 = vpop.permute.xlu0 %2260  ;;  %v2220_v13 = vmul.f32 %v6718_v57, %v2201_v60  ;;  %v2331_v39 = vmul.f32 %v6605_v33, %v1950_v55  ;;  %v4765_v20 = vld [vmem:[%s8376_s5 + $0x5] ss:$8 sm:$0x3] }
 0x22b   : > { %4861 = vmatpush1.bf16.msra.mxu0 %v4860_v48  ;;  %v2222_v23 = vmul.f32 %v6718_v57, %v2202_v26  ;;  %v2223_v41 = vmul.f32 %v6725_v46, %v2198_v27  ;;  %3458 = vperm.xlu0 %5277, %v3448_v61   ;;  %v2326_v22 = vmul.f32 %v6593_v49, %v8738_v42  ;;  %v3450_v57 = vld [vmem:[%s8375_s4 + $0x10] sm:$0xff]  ;;  %v8750_v42 = vld [vmem:[#allocation30_spill] sm:$0xff] }
 0x22c   : > { %4863 = vmatprep.subr.bf16.mxu0 %v4862_v10  ;;  %3463 = vperm.xlu1 %5278, %v3449_v5   ;;  %v6992_v24 = vmul.f32 %v6544_v16, %v6125_v34  ;;  %v2333_v45 = vmul.f32 %v6605_v33, %v1951_v1  ;;  %v2330_v30 = vmul.f32 %v6593_v49, %v1954_v56  ;;  %v8740_v56 = vld [vmem:[#allocation17_spill] sm:$0xff] }
 0x22d   : > { %v2263_v46 = vpop.permute.xlu1 %2262  ;;  %v4934_v48 = vpack.c.bf16 %v2223_v41, %v2221_v14  ;;  %v4936_v36 = vpack.c.bf16 %v2222_v23, %v2220_v13  ;;  %4933 = vmatpush1.bf16.msra.mxu1 %v4932_v7  ;;  %v8739_v43 = vpack.c.bf16 %v6715_v31, %v6739_v0  ;;  %v4868_v35 = vpack.c.bf16 %v6776_v62, %v2326_v22  ;;  %v3452_v0 = vld [vmem:[%s8375_s4 + $0x20] sm:$0xff]  ;;  %v8745_v14 = vld [vmem:[#allocation46_spill] sm:$0xff]  ;;  %v8746_v23 = vld [vmem:[#allocation53_spill] sm:$0xff] }
 0x22e   : > { %v2332_v54 = vmul.f32 %v6593_v49, %v1955_v40  ;;  %v7002_v60 = vrot.slane %v4765_v20, %v6350_v17  ;;  %v7005_v15 = vrot.slane %v4765_v20, %v6426_v52  ;;  %v2269_v33 = vpop.permute.xlu0 %2268  ;;  %v4870_v62 = vpack.c.bf16 %v2333_v45, %v2331_v39  ;;  %v3453_v40 = vld [vmem:[%s8375_s4 + $0x28] sm:$0xff]  ;;  %v8749_v39 = vld [vmem:[#allocation73_spill] sm:$0xff] }
 0x22f   : > { %4865 = vmatpush1.bf16.msra.mxu0 %v4864_v2  ;;  %4935 = vmatprep.subr.bf16.mxu1 %v4934_v48  ;;  %v7009_v7 = vsel %vm2276_vm7, %v2261_v38, %v2269_v33  ;;  %v7013_v31 = vsel %vm2276_vm7, %v2269_v33, %v2261_v38  ;;  %v7025_v55 = vmul.f32 %v6544_v16, %v6142_v4  ;;  %v8748_v13 = vld [vmem:[#allocation72_spill] sm:$0xff]  ;;  %v3454_v45 = vld [vmem:[%s8375_s4 + $0x30] sm:$0xff] }
 0x230   : > { %4867 = vmatprep.subr.bf16.mxu0 %v8739_v43  ;;  %3468 = vperm.xlu0 %5277, %v3450_v57   ;;  %v7029_v10 = vmul.f32 %v8740_v56, %v6078_v47  ;;  %v7033_v2 = vmul.f32 %v6541_v18, %v6134_v9  ;;  %v4872_v11 = vpack.c.bf16 %v2332_v54, %v2330_v30  ;;  %v3455_v30 = vld [vmem:[%s8375_s4 + $0x38] sm:$0xff]  ;;  %v8753_v43 = vld [vmem:[#allocation75_spill] sm:$0xff]  ;;  %v8754_v54 = vld [vmem:[#allocation36_spill] sm:$0xff] }
 0x231   : > { %3473 = vperm.xlu1 %5278, %v3451_v44   ;;  %v2271_v49 = vpop.permute.xlu1 %2270  ;;  %4937 = vmatpush1.bf16.msra.mxu1 %v4936_v36  ;;  %v7043_v16 = vmul.f32 %v7002_v60, %v7009_v7  ;;  %v7047_v5 = vmul.f32 %v7005_v15, %v7013_v31  ;;  %v8747_v41 = vpack.c.bf16 %v8745_v14, %v8746_v23  ;;  %v8752_v36 = vld [vmem:[#allocation74_spill] sm:$0xff]  ;;  %v8758_v14 = vld [vmem:[#allocation55_spill] sm:$0xff]  ;;  %v8776_v1 = vld [vmem:[#allocation65_spill] sm:$0xff] }
 0x232   : > { %v7037_v51 = vsel %vm2276_vm7, %v2263_v46, %v2271_v49  ;;  %v2282_v61 = vsel %vm2276_vm7, %v2271_v49, %v2263_v46  ;;  %v2265_v38 = vpop.permute.xlu0 %2264  ;;  %v4948_v20 = vpack.c.bf16 %v8749_v39, %v8748_v13  ;;  %v7063_v22 = vmul.f32 %v8740_v56, %v8750_v42  ;;  %v8751_v46 = vld [vmem:[#allocation42_spill] sm:$0xff]  ;;  %v4775_v49 = vld [vmem:[%s8376_s5 + $0x5] ss:$8 sm:$0x3] }
 0x233   : > { %4869 = vmatpush1.bf16.msra.mxu0 %v4868_v35  ;;  %8741 = vst [vmem:[#allocation14_spill] sm:$0xff] %v7043_v16  ;;  %8742 = vst [vmem:[#allocation28_spill] sm:$0xff] %v7047_v5  ;;  %v7051_v27 = vmul.f32 %v7002_v60, %v7037_v51  ;;  %v7054_v26 = vmul.f32 %v7005_v15, %v2282_v61  ;;  %4939 = vmatprep.subr.bf16.mxu1 %v8747_v41  ;;  %v8759_v23 = vld [vmem:[#allocation59_spill] sm:$0xff]  ;;  %v8777_v16 = vld [vmem:[#allocation70_spill] sm:$0xff] }
 0x234   : > { %4871 = vmatprep.subr.bf16.mxu0 %v4870_v62  ;;  %3478 = vperm.xlu0 %5277, %v3452_v0   ;;  %v7067_v57 = vmul.f32 %v8751_v46, %v6142_v4  ;;  %v4882_v35 = vpack.c.bf16 %v8753_v43, %v8752_v36  ;;  %v7081_v33 = vmul.f32 %v6541_v18, %v8754_v54  ;;  %v8755_v0 = vld [vmem:[#allocation54_spill] sm:$0xff]  ;;  %v8761_v36 = vld [vmem:[#allocation57_spill] sm:$0xff]  ;;  %v8762_v43 = vld [vmem:[#allocation64_spill] sm:$0xff] }
 0x235   : > { %8743 = vst [vmem:[#allocation27_spill] sm:$0xff] %v7051_v27  ;;  %8744 = vst [vmem:[#allocation15_spill] sm:$0xff] %v7054_v26  ;;  %3483 = vperm.xlu1 %5278, %v3453_v40   ;;  %v2267_v44 = vpop.permute.xlu1 %2266  ;;  %v8756_v40 = vld [vmem:[#allocation58_spill] sm:$0xff]  ;;  %v8760_v41 = vpack.c.bf16 %v8758_v14, %v8759_v23  ;;  %v4950_v13 = vpack.c.bf16 %v7025_v55, %v6992_v24  ;;  %v4884_v18 = vpack.c.bf16 %v7029_v10, %v7063_v22  ;;  %v8764_v55 = vld [vmem:[#allocation4_spill] sm:$0xff] }
 0x236   : > { %v7100_v39 = vmul.f32 %v8751_v46, %v6125_v34  ;;  %v8763_v48 = vpack.c.bf16 %v8761_v36, %v8762_v43  ;;  %v7113_v24 = vmul.f32 %v8740_v56, %v6134_v9  ;;  %v8765_v10 = vld [vmem:[#allocation44_spill] sm:$0xff]  ;;  %v8767_v14 = vld [vmem:[#allocation67_spill] sm:$0xff]  ;;  %v8778_v27 = vpack.c.bf16 %v8776_v1, %v8777_v16  ;;  %v8786_v9 = vld [vmem:[#allocation9_spill] sm:$0xff] }
 0x237   : > { %4873 = vmatpush1.bf16.msra.mxu0 %v4872_v11  ;;  %v8757_v11 = vpack.c.bf16 %v8755_v0, %v8756_v40  ;;  %v2273_v0 = vpop.permute.xlu0 %2272  ;;  %v4952_v40 = vpack.c.bf16 %v7033_v2, %v7081_v33  ;;  %v7117_v22 = vmul.f32 %v8765_v10, %v8764_v55  ;;  %v7128_v33 = vrot.slane %v4775_v49, %v6350_v17  ;;  %v8771_v43 = vld [vmem:[#allocation43_spill] sm:$0xff] }
 0x238   : > { %4875 = vmatprep.subr.bf16.mxu0 %v8760_v41  ;;  %3488 = vperm.xlu0 %5277, %v3454_v45   ;;  %v7121_v46 = vsel %vm2276_vm7, %v2265_v38, %v2273_v0  ;;  %v2283_v2 = vsel %vm2276_vm7, %v2273_v0, %v2265_v38  ;;  %v4768_v45 = vld [vmem:[%s8376_s5 + $0x3] ss:$8 sm:$0x3]  ;;  %v8770_v38 = vld [vmem:[#allocation41_spill] sm:$0xff]  ;;  %v7185_v34 = vmul.f32 %v8765_v10, %v8786_v9 }
 0x239   : > { %4941 = vmatpush1.bf16.msra.mxu1 %v8757_v11  ;;  %v7109_v11 = vmul.f32 %v8740_v56, %v8754_v54  ;;  %3493 = vperm.xlu1 %5278, %v3455_v30   ;;  %v8766_v56 = vld [vmem:[#allocation60_spill] sm:$0xff]  ;;  %v2275_v41 = vpop.permute.xlu1 %2274  ;;  %v8769_v30 = vld [vmem:[#allocation6_spill] sm:$0xff]  ;;  %v7142_v0 = vmul.f32 %v8771_v43, %v8770_v38  ;;  %v8784_v1 = vld [vmem:[#allocation71_spill] sm:$0xff]  ;;  %v7179_v26 = vrot.slane %v4768_v45, %v6350_v17 }
 0x23a   : > { %4943 = vmatprep.subr.bf16.mxu1 %v8763_v48  ;;  %v4886_v48 = vpack.c.bf16 %v7067_v57, %v7100_v39  ;;  %v8768_v23 = vpack.c.bf16 %v8766_v56, %v8767_v14  ;;  %v7138_v36 = vmul.f32 %v8765_v10, %v8769_v30  ;;  %v8772_v57 = vld [vmem:[#allocation20_spill] sm:$0xff]  ;;  %v2599_v56 = vrot.slane %v4775_v49, %v6426_v52  ;;  %v8773_v14 = vld [vmem:[#allocation61_spill] sm:$0xff] }
 0x23b   : > { %v7146_v39 = vmul.f32 %v8771_v43, %v8772_v57  ;;  %v2280_v25 = vsel %vm2276_vm7, %v2267_v44, %v2275_v41  ;;  %v2284_v63 = vsel %vm2276_vm7, %v2275_v41, %v2267_v44  ;;  %v4778_v5 = vld [vmem:[%s8376_s5 + $0x3] ss:$8 sm:$0x3]  ;;  %v7164_v49 = vmul.f32 %v7002_v60, %v7121_v46  ;;  %v8783_v41 = vld [vmem:[#allocation66_spill] sm:$0xff] }
 0x23c   : > { %4877 = vmatpush1.bf16.msra.mxu0 %v8768_v23  ;;  %v8774_v23 = vld [vmem:[#allocation68_spill] sm:$0xff]  ;;  %v7173_v44 = vmul.f32 %v7005_v15, %v2284_v63  ;;  %v8785_v16 = vpack.c.bf16 %v8783_v41, %v8784_v1  ;;  %v4888_v54 = vpack.c.bf16 %v7113_v24, %v7109_v11  ;;  %v7196_v1 = vrot.slane %v4778_v5, %v6350_v17 }
 0x23d   : > { %v8775_v62 = vpack.c.bf16 %v8773_v14, %v8774_v23  ;;  %4879 = vmatprep.subr.bf16.mxu0 %v8778_v27  ;;  %8779 = vst [vmem:[#allocation13_spill] sm:$0xff] %v7164_v49  ;;  %v7170_v14 = vmul.f32 %v7002_v60, %v2280_v25  ;;  %v2371_v27 = vpop.permute.xlu0 %2370  ;;  %v2605_v23 = vmul.f32 %v2599_v56, %v2282_v61  ;;  %v2373_v41 = vpop.permute.xlu1 %2372  ;;  %v8788_v60 = vld [vmem:[#allocation10_spill] sm:$0xff] }
 0x23e   : > { %8782 = vst [vmem:[#allocation34_spill] sm:$0xff] %v7173_v44  ;;  %v7193_v61 = vrot.slane %v4768_v45, %v6426_v52  ;;  %v2603_v24 = vmul.f32 %v2599_v56, %v7013_v31  ;;  %v2604_v45 = vmul.f32 %v7128_v33, %v7037_v51  ;;  %v2607_v49 = vmul.f32 %v2599_v56, %v2283_v2 }
 0x23f   : > { %4945 = vmatpush1.bf16.msra.mxu1 %v8775_v62  ;;  %v7167_v62 = vmul.f32 %v7005_v15, %v2283_v2  ;;  %8781 = vst [vmem:[#allocation31_spill] sm:$0xff] %v7170_v14  ;;  %v8787_v15 = vpack.c.bf16 %v6750_v21, %v6735_v50  ;;  %v7206_v50 = vmul.f32 %v8765_v10, %v8788_v60 }
 0x240   : > { %4947 = vmatprep.subr.bf16.mxu1 %v8785_v16  ;;  %v7202_v16 = vrot.slane %v4778_v5, %v6426_v52  ;;  %v2602_v21 = vmul.f32 %v7128_v33, %v7009_v7  ;;  %v2609_v5 = vmul.f32 %v2599_v56, %v2284_v63  ;;  %v4954_v7 = vpack.c.bf16 %v2605_v23, %v2603_v24 }
 0x241   : > { %8780 = vst [vmem:[#allocation16_spill] sm:$0xff] %v7167_v62  ;;  %4881 = vmatpush1.bf16.msra.mxu0 %v8787_v15  ;;  %v2379_v15 = vpop.permute.xlu0 %2378  ;;  %v2381_v14 = vpop.permute.xlu1 %2380  ;;  %v2608_v24 = vmul.f32 %v7128_v33, %v2280_v25  ;;  %v4964_v25 = vpack.c.bf16 %v7146_v39, %v7142_v0 }
 0x242   : > { %4883 = vmatprep.subr.bf16.mxu0 %v4882_v35  ;;  %v2386_v10 = vsel %vm1947_vm3, %v2371_v27, %v2379_v15  ;;  %v2390_v11 = vsel %vm1947_vm3, %v2379_v15, %v2371_v27  ;;  %v2387_v62 = vsel %vm1947_vm3, %v2373_v41, %v2381_v14  ;;  %v2391_v27 = vsel %vm1947_vm3, %v2381_v14, %v2373_v41 }
 0x243   : > { %4949 = vmatpush1.bf16.msra.mxu1 %v4948_v20  ;;  %v8789_v20 = vld [vmem:[#allocation7_spill] sm:$0xff]  ;;  %v7223_v51 = vmul.f32 %v7179_v26, %v2390_v11  ;;  %v2710_v31 = vmul.f32 %v7196_v1, %v2390_v11  ;;  %v2711_v63 = vmul.f32 %v7202_v16, %v2386_v10  ;;  %v7235_v2 = vmul.f32 %v7179_v26, %v2391_v27 }
 0x244   : > { %4951 = vmatprep.subr.bf16.mxu1 %v4950_v13  ;;  %v7216_v35 = vmul.f32 %v8771_v43, %v8789_v20  ;;  %v7226_v13 = vmul.f32 %v7193_v61, %v2386_v10  ;;  %v7238_v56 = vmul.f32 %v7193_v61, %v2387_v62  ;;  %v2712_v23 = vmul.f32 %v7196_v1, %v2391_v27  ;;  %v8794_v10 = vld [vmem:[#allocation21_spill] sm:$0xff] }
 0x245   : > { %8790 = vst [vmem:[#allocation56_spill] sm:$0xff] %v7223_v51  ;;  %4885 = vmatpush1.bf16.msra.mxu0 %v4884_v18  ;;  %8792 = vst [vmem:[#allocation39_spill] sm:$0xff] %v7235_v2  ;;  %v2713_v18 = vmul.f32 %v7202_v16, %v2387_v62  ;;  %v2375_v11 = vpop.permute.xlu0 %2374  ;;  %v4958_v15 = vpack.c.bf16 %v2609_v5, %v2607_v49  ;;  %v7245_v14 = vmul.f32 %v8771_v43, %v8794_v10  ;;  %v2377_v44 = vpop.permute.xlu1 %2376  ;;  %v8795_v49 = vld [vmem:[#allocation47_spill] sm:$0xff]  ;;  %v8796_v5 = vld [vmem:[#allocation18_spill] sm:$0xff] }
 0x246   : > { %8791 = vst [vmem:[#allocation63_spill] sm:$0xff] %v7226_v13  ;;  %4887 = vmatprep.subr.bf16.mxu0 %v4886_v48  ;;  %8793 = vst [vmem:[#allocation25_spill] sm:$0xff] %v7238_v56  ;;  %v4892_v48 = vpack.c.bf16 %v2712_v23, %v2710_v31  ;;  %v4966_v43 = vpack.c.bf16 %v7206_v50, %v7185_v34  ;;  %v2877_v31 = vmul.f32 %v8795_v49, %v8769_v30  ;;  %v8807_v51 = vld [vmem:[#allocation5_spill] sm:$0xff]  ;;  %v8808_v2 = vld [vmem:[#allocation22_spill] sm:$0xff] }
 0x247   : > { %4953 = vmatpush1.bf16.msra.mxu1 %v4952_v40  ;;  %v4956_v40 = vpack.c.bf16 %v2604_v45, %v2602_v21  ;;  %v4890_v4 = vpack.c.bf16 %v2713_v18, %v2711_v63  ;;  %v2606_v21 = vmul.f32 %v7128_v33, %v7121_v46  ;;  %v2875_v45 = vmul.f32 %v8795_v49, %v8764_v55  ;;  %v8798_v46 = vld [vmem:[#allocation19_spill] sm:$0xff]  ;;  %v8801_v18 = vld [vmem:[#allocation45_spill] sm:$0xff] }
 0x248   : > { %4955 = vmatprep.subr.bf16.mxu1 %v4954_v7  ;;  %v8797_v7 = vld [vmem:[#allocation49_spill] sm:$0xff] }
 0x249   : > { %4889 = vmatpush1.bf16.msra.mxu0 %v4888_v54  ;;  %v2383_v54 = vpop.permute.xlu0 %2382  ;;  %v7263_v63 = vmul.f32 %v8797_v7, %v8796_v5  ;;  %v7267_v33 = vmul.f32 %v8797_v7, %v8798_v46  ;;  %v4960_v0 = vpack.c.bf16 %v2608_v24, %v2606_v21  ;;  %v2385_v23 = vpop.permute.xlu1 %2384  ;;  %v2876_v24 = vmul.f32 %v8801_v18, %v8772_v57 }
 0x24a   : > { %4891 = vmatprep.subr.bf16.mxu0 %v4890_v4  ;;  %v2388_v34 = vsel %vm1947_vm3, %v2375_v11, %v2383_v54  ;;  %v2392_v39 = vsel %vm1947_vm3, %v2383_v54, %v2375_v11  ;;  %v4968_v4 = vpack.c.bf16 %v7245_v14, %v7216_v35  ;;  %v2389_v35 = vsel %vm1947_vm3, %v2377_v44, %v2385_v23 }
 0x24b   : > { %4957 = vmatpush1.bf16.msra.mxu1 %v4956_v40  ;;  %v7276_v50 = vmul.f32 %v7179_v26, %v2392_v39  ;;  %v7279_v27 = vmul.f32 %v7193_v61, %v2388_v34  ;;  %v2874_v40 = vmul.f32 %v8801_v18, %v8770_v38  ;;  %v2715_v11 = vmul.f32 %v7202_v16, %v2388_v34 }
 0x24c   : > { %4959 = vmatprep.subr.bf16.mxu1 %v4958_v15  ;;  %v2714_v15 = vmul.f32 %v7196_v1, %v2392_v39  ;;  %v2393_v14 = vsel %vm1947_vm3, %v2385_v23, %v2377_v44  ;;  %v7295_v21 = vmul.f32 %v7193_v61, %v2389_v35  ;;  %v2717_v41 = vmul.f32 %v7202_v16, %v2389_v35  ;;  %v4777_v39 = vld [vmem:[%s8376_s5 + $0x5] ss:$8 sm:$0x3] }
 0x24d   : > { %8799 = vst [vmem:[#allocation50_spill] sm:$0xff] %v7276_v50  ;;  %8800 = vst [vmem:[#allocation11_spill] sm:$0xff] %v7279_v27  ;;  %4893 = vmatpush1.bf16.msra.mxu0 %v4892_v48  ;;  %v7292_v48 = vmul.f32 %v7179_v26, %v2393_v14  ;;  %v2716_v54 = vmul.f32 %v7196_v1, %v2393_v14  ;;  %v8804_v34 = vpack.c.bf16 %v7138_v36, %v7117_v22  ;;  %v8805_v23 = vld [vmem:[#allocation3_spill] sm:$0xff]  ;;  %v8806_v26 = vld [vmem:[#allocation48_spill] sm:$0xff]  ;;  %v2649_v36 = vpop.permute.xlu1 %2648 }
 0x24e   : > { %8803 = vst [vmem:[#allocation46_spill] sm:$0xff] %v7295_v21  ;;  %v4898_v44 = vpack.c.bf16 %v2877_v31, %v2875_v45  ;;  %v2902_v62 = vmul.f32 %v8806_v26, %v8805_v23  ;;  %v2904_v61 = vmul.f32 %v8806_v26, %v8807_v51  ;;  %v2881_v1 = vmul.f32 %v8795_v49, %v8788_v60  ;;  %v8810_v22 = vld [vmem:[#allocation8_spill] sm:$0xff] }
 0x24f   : > { %4961 = vmatpush1.bf16.msra.mxu1 %v4960_v0  ;;  %8802 = vst [vmem:[#allocation17_spill] sm:$0xff] %v7292_v48  ;;  %v2647_v0 = vpop.permute.xlu0 %2646  ;;  %v4896_v16 = vpack.c.bf16 %v2716_v54, %v2714_v15  ;;  %v4894_v35 = vpack.c.bf16 %v2717_v41, %v2715_v11  ;;  %v4970_v45 = vpack.c.bf16 %v7267_v33, %v7263_v63  ;;  %v8809_v63 = vld [vmem:[#allocation23_spill] sm:$0xff]  ;;  %v8811_v14 = vld [vmem:[#allocation24_spill] sm:$0xff] }
 0x250   : > { %4963 = vmatprep.subr.bf16.mxu1 %v8804_v34  ;;  %v4900_v31 = vpack.c.bf16 %v2876_v24, %v2874_v40  ;;  %v2879_v34 = vmul.f32 %v8795_v49, %v8786_v9  ;;  %v2907_v13 = vmul.f32 %v8797_v7, %v8808_v2  ;;  %v7322_v15 = vrot.slane %v4777_v39, %v6350_v17 }
 0x251   : > { %v7325_v41 = vrot.slane %v4777_v39, %v6426_v52  ;;  %4895 = vmatprep.subr.bf16.mxu0 %v4894_v35  ;;  %v2909_v33 = vmul.f32 %v8797_v7, %v8809_v63  ;;  %v4972_v40 = vpack.c.bf16 %v2904_v61, %v2902_v62  ;;  %v2878_v24 = vmul.f32 %v8801_v18, %v8789_v20  ;;  %v2657_v54 = vpop.permute.xlu1 %2656 }
 0x252   : > { %4897 = vmatpush1.bf16.msra.mxu0 %v4896_v16  ;;  %v4902_v39 = vpack.c.bf16 %v2881_v1, %v2879_v34  ;;  %v2880_v35 = vmul.f32 %v8801_v18, %v8794_v10  ;;  %v2906_v7 = vmul.f32 %v8806_v26, %v8810_v22  ;;  %v2908_v50 = vmul.f32 %v8806_v26, %v8811_v14 }
 0x253   : > { %4965 = vmatpush1.bf16.msra.mxu1 %v4964_v25  ;;  %v4787_v25 = vld [vmem:[%s8376_s5 + $0x5] ss:$8 sm:$0x3]  ;;  %v2655_v11 = vpop.permute.xlu0 %2654  ;;  %4899 = vmatprep.subr.bf16.mxu0 %v4898_v44  ;;  %v2663_v62 = vsel %vm2276_vm7, %v2649_v36, %v2657_v54  ;;  %v4974_v34 = vpack.c.bf16 %v2909_v33, %v2907_v13 }
 0x254   : > { %4967 = vmatprep.subr.bf16.mxu1 %v4966_v43  ;;  %v2662_v49 = vsel %vm2276_vm7, %v2647_v0, %v2655_v11  ;;  %v2666_v43 = vsel %vm2276_vm7, %v2655_v11, %v2647_v0  ;;  %v3035_v48 = vrot.slane %v4787_v25, %v6426_v52  ;;  %v2667_v0 = vsel %vm2276_vm7, %v2657_v54, %v2649_v36  ;;  %v8812_v44 = vld [vmem:[#allocation52_spill] sm:$0xff]  ;;  %v8813_v54 = vld [vmem:[#allocation51_spill] sm:$0xff] }
 0x255   : > { %v3013_v61 = vmul.f32 %v8812_v44, %v8798_v46  ;;  %v7352_v18 = vmul.f32 %v7322_v15, %v2662_v49  ;;  %v7355_v1 = vmul.f32 %v7325_v41, %v2666_v43  ;;  %v7358_v26 = vmul.f32 %v7322_v15, %v2663_v62  ;;  %v7366_v36 = vld [vmem:[%s8376_s5 + $0x4] ss:$8 sm:$0x3]  ;;  %v2653_v10 = vpop.permute.xlu1 %2652 }
 0x256   : > { %4901 = vmatpush1.bf16.msra.mxu0 %v4900_v31  ;;  %v3011_v11 = vmul.f32 %v8812_v44, %v8796_v5  ;;  %v3012_v27 = vmul.f32 %v8813_v54, %v8807_v51  ;;  %v3017_v21 = vmul.f32 %v8812_v44, %v8809_v63  ;;  %v3031_v56 = vrot.slane %v4787_v25, %v6350_v17 }
 0x257   : > { %4969 = vmatpush1.bf16.msra.mxu1 %v4968_v4  ;;  %v7361_v4 = vmul.f32 %v7325_v41, %v2667_v0  ;;  %v2651_v16 = vpop.permute.xlu0 %2650  ;;  %4903 = vmatprep.subr.bf16.mxu0 %v4902_v39  ;;  %v4904_v31 = vpack.c.bf16 %v2880_v35, %v2878_v24  ;;  %v4976_v33 = vpack.c.bf16 %v2908_v50, %v2906_v7 }
 0x258   : > { %4971 = vmatprep.subr.bf16.mxu1 %v4970_v45  ;;  %v3041_v45 = vmul.f32 %v3035_v48, %v2667_v0  ;;  %v3010_v51 = vmul.f32 %v8813_v54, %v8805_v23  ;;  %v7383_v63 = vrot.slane %v7366_v36, %v6426_v52  ;;  %v3039_v25 = vmul.f32 %v3035_v48, %v2666_v43 }
 0x259   : > { %v4906_v5 = vpack.c.bf16 %v3013_v61, %v3011_v11  ;;  %v3015_v39 = vmul.f32 %v8812_v44, %v8808_v2  ;;  %v3014_v46 = vmul.f32 %v8813_v54, %v8810_v22  ;;  %v3038_v7 = vmul.f32 %v3031_v56, %v2662_v49  ;;  %v2661_v43 = vpop.permute.xlu1 %2660  ;;  %v7396_v44 = vld [vmem:[%s8374_s3] sm:$0xff] }
 0x25a   : > { %4905 = vmatpush1.bf16.msra.mxu0 %v4904_v31  ;;  %v4908_v35 = vpack.c.bf16 %v3012_v27, %v3010_v51  ;;  %8814 = vst [vmem:[#allocation53_spill] sm:$0xff] %v7396_v44  ;;  %v2665_v51 = vsel %vm2276_vm7, %v2653_v10, %v2661_v43 }
 0x25b   : > { %4973 = vmatpush1.bf16.msra.mxu1 %v4972_v40  ;;  %v2659_v0 = vpop.permute.xlu0 %2658  ;;  %v3040_v40 = vmul.f32 %v3031_v56, %v2663_v62  ;;  %4907 = vmatprep.subr.bf16.mxu0 %v4906_v5  ;;  %v4910_v61 = vpack.c.bf16 %v3017_v21, %v3015_v39  ;;  %v3016_v62 = vmul.f32 %v8813_v54, %v8811_v14  ;;  %v8817_v54 = vld [vmem:[#allocation62_spill] sm:$0xff] }
 0x25c   : > { %4975 = vmatprep.subr.bf16.mxu1 %v4974_v34  ;;  %v2664_v50 = vsel %vm2276_vm7, %v2651_v16, %v2659_v0  ;;  %v2668_v24 = vsel %vm2276_vm7, %v2659_v0, %v2651_v16  ;;  %v4978_v34 = vpack.c.bf16 %v3041_v45, %v3039_v25  ;;  %v2669_v5 = vsel %vm2276_vm7, %v2661_v43, %v2653_v10  ;;  %v7424_v10 = vld [vmem:[%s8374_s3 + $0x20] sm:$0xff] }
 0x25d   : > { %v7401_v11 = vmul.f32 %v7322_v15, %v2664_v50  ;;  %v3043_v13 = vmul.f32 %v3035_v48, %v2668_v24  ;;  %v7408_v27 = vmul.f32 %v7322_v15, %v2665_v51  ;;  %v7411_v49 = vmul.f32 %v7325_v41, %v2669_v5  ;;  %3586 = vmatmul.mubr.f32.vlgmr.msra.gmra.mrb[64].mxu0 %v7396_v44  ;;  %v7429_v15 = vpop.permute.xlu1 %2756 }
 0x25e   : > { %v3044_v21 = vmul.f32 %v3031_v56, %v2665_v51  ;;  %v3045_v16 = vmul.f32 %v3035_v48, %v2669_v5  ;;  %v1972_v45 = vmul.f32 %v8737_v12, %v8817_v54  ;;  %v4980_v31 = vpack.c.bf16 %v3040_v40, %v3038_v7  ;;  %8819 = vst [vmem:[#allocation42_spill] sm:$0xff] %v7424_v10  ;;  %v8821_v40 = vld [vmem:[#allocation69_spill] sm:$0xff]  ;;  %v7475_v5 = vld [vmem:[%s8374_s3 + $0x48] sm:$0xff] }
 0x25f   : > { %8815 = vst [vmem:[#allocation72_spill] sm:$0xff] %v7401_v11  ;;  %4977 = vmatpush1.bf16.msra.mxu1 %v4976_v33  ;;  %8816 = vst [vmem:[#allocation73_spill] sm:$0xff] %v7408_v27  ;;  %v7416_v33 = vmul.f32 %v7325_v41, %v2668_v24  ;;  %v3042_v25 = vmul.f32 %v3031_v56, %v2664_v50  ;;  %v7418_v0 = vpop.permute.xlu0 %2754  ;;  %4909 = vmatpush1.bf16.msra.mxu0 %v4908_v35  ;;  %v7434_v56 = vld [vmem:[%s8374_s3 + $0x18] sm:$0xff]  ;;  %v7465_v51 = vld [vmem:[%s8374_s3 + $0x50] sm:$0xff] }
 0x260   : > { %4979 = vmatprep.subr.bf16.mxu1 %v4978_v34  ;;  %8820 = vst [vmem:[#allocation74_spill] sm:$0xff] %v7434_v56  ;;  %v4982_v41 = vpack.c.bf16 %v3045_v16, %v3043_v13  ;;  %v2001_v39 = vmul.f32 %v7383_v63, %v8731_v29  ;;  %v1970_v50 = vmul.f32 %v8737_v12, %v8821_v40  ;;  %v7450_v12 = vld [vmem:[%s8374_s3 + $0x38] sm:$0xff]  ;;  %8824 = vst [vmem:[#allocation58_spill] sm:$0xff] %v7465_v51  ;;  %v7483_v16 = vld [vmem:[%s8374_s3 + $0x68] sm:$0xff] }
 0x261   : > { %8818 = vst [vmem:[#allocation30_spill] sm:$0xff] %v7416_v33  ;;  %v4984_v24 = vpack.c.bf16 %v3044_v21, %v3042_v25  ;;  %4911 = vmatprep.subr.bf16.mxu0 %v4910_v61  ;;  %3591 = vmatprep.mubr.f32.mxu0 %v7424_v10  ;;  %v4912_v7 = vpack.c.bf16 %v3016_v62, %v3014_v46  ;;  %8822 = vst [vmem:[#allocation75_spill] sm:$0xff] %v7450_v12  ;;  %v7453_v34 = vpop.permute.xlu1 %2764  ;;  %v7458_v46 = vld [vmem:[%s8374_s3 + $0x30] sm:$0xff]  ;;  %v7517_v40 = vld [vmem:[%s8374_s3 + $0x98] sm:$0xff] }
 0x262   : > { %3812 = vmatmul.mubr.f32.vlgmr.msra.gmra.mrb[64].mxu1 %v7396_v44  ;;  %v1999_v13 = vmul.f32 %v7383_v63, %v8730_v32  ;;  %3592 = vmatmul.mubr.f32.gmra.mrb[66].mxu0 %v7434_v56  ;;  %v4986_v43 = vpack.c.bf16 %v1972_v45, %v1970_v50  ;;  %8823 = vst [vmem:[#allocation54_spill] sm:$0xff] %v7458_v46  ;;  %8825 = vst [vmem:[#allocation55_spill] sm:$0xff] %v7475_v5  ;;  %v7492_v45 = vld [vmem:[%s8374_s3 + $0x60] sm:$0xff]  ;;  %v7525_v50 = vld [vmem:[%s8374_s3 + $0x90] sm:$0xff] }
 0x263   : > { %4981 = vmatpush1.bf16.msra.mxu1 %v4980_v31  ;;  %3817 = vmatprep.mubr.f32.mxu1 %v7424_v10  ;;  %v7460_v62 = vpop.permute.xlu0 %2762  ;;  %8826 = vst [vmem:[#allocation59_spill] sm:$0xff] %v7483_v16  ;;  %8827 = vst [vmem:[#allocation57_spill] sm:$0xff] %v7492_v45  ;;  %v7499_v31 = vld [vmem:[%s8374_s3 + $0x80] sm:$0xff]  ;;  %v8835_v35 = vld [vmem:[#allocation33_spill] sm:$0xff] }
 0x264   : > { %4983 = vmatprep.subr.bf16.mxu1 %v4982_v41  ;;  %4913 = vmatpush1.bf16.msra.mxu0 %v4912_v7  ;;  %v5058_v61 = vpack.c.bf16 %v2001_v39, %v1999_v13  ;;  %8828 = vst [vmem:[#allocation64_spill] sm:$0xff] %v7499_v31  ;;  %v7509_v41 = vld [vmem:[%s8374_s3 + $0x78] sm:$0xff]  ;;  %8830 = vst [vmem:[#allocation44_spill] sm:$0xff] %v7517_v40  ;;  %v7533_v7 = vld [vmem:[%s8374_s3 + $0xb0] sm:$0xff] }
 0x265   : > { %4987 = vmatprep.subr.bf16.mxu0 %v4986_v43  ;;  %3597 = vmatprep.mubr.f32.mxu0 %v7450_v12  ;;  %v7477_v21 = vpop.permute.xlu1 %2810  ;;  %8829 = vst [vmem:[#allocation4_spill] sm:$0xff] %v7509_v41  ;;  %8831 = vst [vmem:[#allocation60_spill] sm:$0xff] %v7525_v50  ;;  %v7543_v43 = vld [vmem:[%s8374_s3 + $0xa8] sm:$0xff]  ;;  %v8839_v10 = vld [vmem:[#allocation26_spill] sm:$0xff] }
 0x266   : > { %3818 = vmatmul.mubr.f32.gmra.mrb[66].mxu1 %v7434_v56  ;;  %3598 = vmatmul.mubr.f32.gmra.mrb[68].mxu0 %v7458_v46  ;;  %8832 = vst [vmem:[#allocation67_spill] sm:$0xff] %v7533_v7  ;;  %8834 = vst [vmem:[#allocation41_spill] sm:$0xff] %v7543_v43 }
 0x267   : > { %4985 = vmatpush1.bf16.msra.mxu1 %v4984_v24  ;;  %3823 = vmatprep.mubr.f32.mxu1 %v7450_v12  ;;  %v7485_v54 = vpop.permute.xlu0 %2808 }
 0x268   : > { %5059 = vmatprep.subr.bf16.mxu1 %v5058_v61  ;;  %3603 = vmatprep.mubr.f32.mxu0 %v7465_v51  ;;  %v1991_v61 = vrot.slane %v7366_v36, %v6350_v17  ;;  %v7563_v36 = vld [vmem:[%s8374_s3 + $0x10] sm:$0xff] }
 0x269   : > { %v7501_v25 = vpop.permute.xlu1 %2818  ;;  %8836 = vst [vmem:[#allocation43_spill] sm:$0xff] %v7563_v36 }
 0x26a   : > { %3824 = vmatmul.mubr.f32.gmra.mrb[68].mxu1 %v7458_v46  ;;  %3604 = vmatmul.mubr.f32.gmra.mrb[70].mxu0 %v7475_v5  ;;  %v2004_v56 = vmul.f32 %v1991_v61, %v6128_v28 }
 0x26b   : > { %3829 = vmatprep.mubr.f32.mxu1 %v7465_v51  ;;  %3609 = vmatprep.mubr.f32.mxu0 %v7483_v16  ;;  %v7511_v39 = vpop.permute.xlu0 %2816 }
 0x26d   : > { %v7527_v24 = vpop.permute.xlu1 %2760 }
 0x26e   : > { %3830 = vmatmul.mubr.f32.gmra.mrb[70].mxu1 %v7475_v5  ;;  %3610 = vmatmul.mubr.f32.gmra.mrb[72].mxu0 %v7492_v45 }
 0x26f   : > { %3835 = vmatprep.mubr.f32.mxu1 %v7483_v16  ;;  %3615 = vmatprep.mubr.f32.mxu0 %v7499_v31  ;;  %v7535_v13 = vpop.permute.xlu0 %2758  ;;  %v8838_v16 = vld [vmem:[#allocation29_spill] sm:$0xff] }
 0x270   : > { %8833 = vst [vmem:[#allocation6_spill] sm:$0xff] %v7535_v13  ;;  %v1998_v5 = vmul.f32 %v1991_v61, %v8838_v16 }
 0x271   : > { %v7548_v48 = vpop.permute.xlu1 %2768 }
 0x272   : > { %3836 = vmatmul.mubr.f32.gmra.mrb[72].mxu1 %v7492_v45  ;;  %3616 = vmatmul.mubr.f32.gmra.mrb[74].mxu0 %v7509_v41 }
 0x273   : > { %3841 = vmatprep.mubr.f32.mxu1 %v7499_v31  ;;  %3621 = vmatprep.mubr.f32.mxu0 %v7517_v40  ;;  %v8540_v31 = vmov 0.0   ;;  %v7567_v45 = vpop.permute.xlu0 %2766 }
 0x274   : > { %8837 = vst [vmem:[#allocation20_spill] sm:$0xff] %v7567_v45  ;;  %v8843_v45 = vld [vmem:[#allocation35_spill] sm:$0xff] }
 0x276   : > { %3842 = vmatmul.mubr.f32.gmra.mrb[74].mxu1 %v7509_v41  ;;  %3622 = vmatmul.mubr.f32.gmra.mrb[76].mxu0 %v7525_v50  ;;  %v4761_v41 = vld [vmem:[%s8376_s5 + $0x4] ss:$8 sm:$0x3] }
 0x277   : > { %3847 = vmatprep.mubr.f32.mxu1 %v7517_v40  ;;  %3627 = vmatprep.mubr.f32.mxu0 %v7533_v7  ;;  %v2000_v40 = vmul.f32 %v1991_v61, %v8835_v35  ;;  %v2131_v46 = vrot.slane %v4761_v41, %v6426_v52  ;;  %v7601_v33 = vpop.permute.xlu0 %2812 }
 0x279   : > { %v5060_v12 = vpack.c.bf16 %v2000_v40, %v1998_v5  ;;  %v2137_v13 = vmul.f32 %v2131_v46, %v8843_v45  ;;  %v7590_v5 = vpop.permute.xlu1 %2814  ;;  %v8844_v40 = vpack.c.bf16 %v6961_v37, %v6952_v6 }
 0x27a   : > { %3848 = vmatmul.mubr.f32.gmra.mrb[76].mxu1 %v7525_v50  ;;  %3628 = vmatmul.mubr.f32.gmra.mrb[78].mxu0 %v7543_v43  ;;  %v4760_v50 = vld [vmem:[%s8376_s5 + $0x4] ss:$8 sm:$0x3] }
 0x27b   : > { %3853 = vmatprep.mubr.f32.mxu1 %v7533_v7  ;;  %3698 = vmatprep.mubr.f32.mxu0 %v8540_v31  ;;  %v2005_v7 = vmul.f32 %v7383_v63, %v8735_v3  ;;  %v2103_v51 = vrot.slane %v4760_v50, %v6426_v52 }
 0x27d   : > { %v2109_v27 = vmul.f32 %v2103_v51, %v8731_v29  ;;  %v2107_v29 = vmul.f32 %v2103_v51, %v8730_v32  ;;  %v8847_v32 = vpack.c.bf16 %v6946_v53, %v6949_v58  ;;  %v8849_v53 = vld [vmem:[#allocation40_spill] sm:$0xff] }
 0x27e   : > { %3854 = vmatmul.mubr.f32.gmra.mrb[78].mxu1 %v7543_v43  ;;  %v2003_v43 = vmul.f32 %v7383_v63, %v6116_v59  ;;  %4790 = vmatmul.mubr.msk.f32.vlgmr.msra.gmra.mrb[64].mxu0 %vm3496_vm8, %v7563_v36  ;;  %v7586_v63 = vld [vmem:[%s8374_s3 + $0x28] sm:$0xff]  ;;  %v2141_v58 = vmul.f32 %v2131_v46, %v8849_v53 }
 0x27f   : > { %3924 = vmatprep.mubr.f32.mxu1 %v8540_v31  ;;  %v8840_v31 = vld [vmem:[#allocation12_spill] sm:$0xff]  ;;  %8842 = vst [vmem:[#allocation61_spill] sm:$0xff] %v7586_v63 }
 0x280   : > { %v8841_v44 = vpack.c.bf16 %v8839_v10, %v8840_v31  ;;  %v5062_v11 = vpack.c.bf16 %v2005_v7, %v2003_v43  ;;  %v2002_v10 = vmul.f32 %v1991_v61, %v6106_v19  ;;  %v2127_v31 = vrot.slane %v4761_v41, %v6350_v17  ;;  %v8846_v43 = vld [vmem:[#allocation32_spill] sm:$0xff] }
 0x281   : > { %v8845_v7 = vmov 0.0   ;;  %v4764_v61 = vld [vmem:[%s8376_s5 + $0x4] ss:$8 sm:$0x3] }
 0x282   : > { %4798 = vmatmul.mubr.msk.f32.vlgmr.msra.gmra.mrb[64].mxu1 %vm3496_vm8, %v7563_v36  ;;  %4989 = vmatpush1.bf16.msra.mxu0 %v8841_v44  ;;  %v2099_v44 = vrot.slane %v4760_v50, %v6350_v17  ;;  %v2135_v36 = vmul.f32 %v2131_v46, %v8846_v43  ;;  %v5064_v6 = vpack.c.bf16 %v2004_v56, %v2002_v10  ;;  %v7620_v56 = vld [vmem:[%s8374_s3 + $0x40] sm:$0xff]  ;;  %v8850_v10 = vld [vmem:[#allocation37_spill] sm:$0xff] }
 0x283   : > { %5061 = vmatpush1.bf16.msra.mxu1 %v5060_v12  ;;  %4991 = vmatprep.subr.bf16.mxu0 %v8844_v40  ;;  %v2136_v12 = vmul.f32 %v2127_v31, %v6078_v47  ;;  %v2113_v50 = vmul.f32 %v2103_v51, %v8735_v3  ;;  %8848 = vst [vmem:[#allocation68_spill] sm:$0xff] %v7620_v56 }
 0x284   : > { %5063 = vmatprep.subr.bf16.mxu1 %v5062_v11  ;;  %3704 = vmatprep.mubr.f32.mxu0 %v8845_v7  ;;  %v2108_v37 = vmul.f32 %v2099_v44, %v8835_v35  ;;  %v4994_v11 = vpack.c.bf16 %v2109_v27, %v2107_v29  ;;  %v5066_v41 = vpack.c.bf16 %v2137_v13, %v2135_v36  ;;  %v7626_v27 = vpop.permute.xlu1 %2822 }
 0x285   : > { %3930 = vmatprep.mubr.f32.mxu1 %v8845_v7  ;;  %4791 = vmatmul.mubr.msk.f32.gmra.mrb[66].mxu0 %vm3496_vm8, %v7586_v63  ;;  %v2106_v35 = vmul.f32 %v2099_v44, %v8838_v16  ;;  %v2134_v40 = vmul.f32 %v2127_v31, %v8750_v42  ;;  %v2111_v3 = vmul.f32 %v2103_v51, %v6116_v59  ;;  %v4769_v16 = vld [vmem:[%s8376_s5 + $0x4] ss:$8 sm:$0x3] }
 0x286   : > { %4799 = vmatmul.mubr.msk.f32.gmra.mrb[66].mxu1 %vm3496_vm8, %v7586_v63  ;;  %4993 = vmatpush1.bf16.msra.mxu0 %v8847_v32  ;;  %v2139_v29 = vmul.f32 %v2131_v46, %v8850_v10  ;;  %v2112_v51 = vmul.f32 %v2099_v44, %v6128_v28  ;;  %v8851_v32 = vld [vmem:[#allocation38_spill] sm:$0xff]  ;;  %v4772_v46 = vld [vmem:[%s8376_s5 + $0x4] ss:$8 sm:$0x3]  ;;  %v2237_v28 = vrot.slane %v4764_v61, %v6350_v17 }
 0x287   : > { %5065 = vmatpush1.bf16.msra.mxu1 %v5064_v6  ;;  %4995 = vmatprep.subr.bf16.mxu0 %v4994_v11  ;;  %v4996_v13 = vpack.c.bf16 %v2108_v37, %v2106_v35  ;;  %v5068_v36 = vpack.c.bf16 %v2136_v12, %v2134_v40  ;;  %v2241_v6 = vrot.slane %v4764_v61, %v6426_v52  ;;  %v7642_v37 = vpop.permute.xlu0 %2820  ;;  %v8853_v40 = vld [vmem:[#allocation36_spill] sm:$0xff] }
 0x288   : > { %5067 = vmatprep.subr.bf16.mxu1 %v5066_v41  ;;  %3710 = vmatprep.mubr.f32.mxu0 %v8845_v7  ;;  %v4998_v59 = vpack.c.bf16 %v2113_v50, %v2111_v3  ;;  %v2140_v11 = vmul.f32 %v2127_v31, %v8851_v32  ;;  %v5070_v12 = vpack.c.bf16 %v2141_v58, %v2139_v29  ;;  %v7649_v41 = vld [vmem:[%s8374_s3 + $0x58] sm:$0xff]  ;;  %v4773_v58 = vld [vmem:[%s8376_s5 + $0x4] ss:$8 sm:$0x3]  ;;  %v7672_v29 = vpop.permute.xlu1 %2948 }
 0x289   : > { %3936 = vmatprep.mubr.f32.mxu1 %v8845_v7  ;;  %4792 = vmatmul.mubr.msk.f32.gmra.mrb[68].mxu0 %vm3496_vm8, %v7620_v56  ;;  %8852 = vst [vmem:[#allocation65_spill] sm:$0xff] %v7649_v41  ;;  %v2247_v50 = vmul.f32 %v2241_v6, %v8843_v45  ;;  %v2110_v35 = vmul.f32 %v2099_v44, %v6106_v19 }
 0x28a   : > { %4800 = vmatmul.mubr.msk.f32.gmra.mrb[68].mxu1 %vm3496_vm8, %v7620_v56  ;;  %4997 = vmatpush1.bf16.msra.mxu0 %v4996_v13  ;;  %v2138_v3 = vmul.f32 %v2127_v31, %v8853_v40  ;;  %v2427_v63 = vrot.slane %v4769_v16, %v6350_v17  ;;  %v2245_v13 = vmul.f32 %v2241_v6, %v8846_v43 }
 0x28b   : > { %5069 = vmatpush1.bf16.msra.mxu1 %v5068_v36  ;;  %4999 = vmatprep.subr.bf16.mxu0 %v4998_v59  ;;  %v2431_v61 = vrot.slane %v4769_v16, %v6426_v52  ;;  %v7663_v45 = vrot.slane %v4772_v46, %v6350_v17  ;;  %v5000_v19 = vpack.c.bf16 %v2112_v51, %v2110_v35  ;;  %v4776_v36 = vld [vmem:[%s8376_s5 + $0x4] ss:$8 sm:$0x3] }
 0x28c   : > { %5071 = vmatprep.subr.bf16.mxu1 %v5070_v12  ;;  %3716 = vmatprep.mubr.f32.mxu0 %v8845_v7  ;;  %v5072_v44 = vpack.c.bf16 %v2140_v11, %v2138_v3  ;;  %v2246_v31 = vmul.f32 %v2237_v28, %v6078_v47  ;;  %v5002_v43 = vpack.c.bf16 %v2247_v50, %v2245_v13  ;;  %v7686_v47 = vld [vmem:[%s8374_s3 + $0x70] sm:$0xff]  ;;  %v8856_v35 = vld [vmem:[#allocation28_spill] sm:$0xff] }
 0x28d   : > { %3942 = vmatprep.mubr.f32.mxu1 %v8845_v7  ;;  %4793 = vmatmul.mubr.msk.f32.gmra.mrb[70].mxu0 %vm3496_vm8, %v7649_v41  ;;  %v2251_v16 = vmul.f32 %v2241_v6, %v8849_v53  ;;  %v7678_v59 = vrot.slane %v4772_v46, %v6426_v52  ;;  %v7681_v51 = vrot.slane %v4773_v58, %v6350_v17  ;;  %v7693_v53 = vpop.permute.xlu0 %2946  ;;  %v8855_v46 = vld [vmem:[#allocation15_spill] sm:$0xff] }
 0x28e   : > { %4801 = vmatmul.mubr.msk.f32.gmra.mrb[70].mxu1 %vm3496_vm8, %v7649_v41  ;;  %5001 = vmatpush1.bf16.msra.mxu0 %v5000_v19  ;;  %8854 = vst [vmem:[#allocation70_spill] sm:$0xff] %v7686_v47  ;;  %v2244_v11 = vmul.f32 %v2237_v28, %v8750_v42  ;;  %v2250_v12 = vmul.f32 %v2237_v28, %v8851_v32  ;;  %v8866_v41 = vld [vmem:[#allocation19_spill] sm:$0xff] }
 0x28f   : > { %5073 = vmatpush1.bf16.msra.mxu1 %v5072_v44  ;;  %v7691_v50 = vrot.slane %v4773_v58, %v6426_v52  ;;  %5003 = vmatprep.subr.bf16.mxu0 %v5002_v43  ;;  %v8857_v3 = vpack.c.bf16 %v8855_v46, %v8856_v35  ;;  %v2249_v13 = vmul.f32 %v2241_v6, %v8850_v10  ;;  %v8858_v43 = vld [vmem:[#allocation27_spill] sm:$0xff]  ;;  %v8859_v46 = vld [vmem:[#allocation14_spill] sm:$0xff] }
 0x290   : > { %v7700_v19 = vrot.slane %v4776_v36, %v6350_v17  ;;  %v7703_v44 = vrot.slane %v4776_v36, %v6426_v52  ;;  %3722 = vmatprep.mubr.f32.mxu0 %v8845_v7  ;;  %3948 = vmatprep.mubr.f32.mxu1 %v8845_v7  ;;  %v5004_v42 = vpack.c.bf16 %v2246_v31, %v2244_v11 }
 0x291   : > { %5075 = vmatprep.subr.bf16.mxu1 %v8857_v3  ;;  %v2248_v32 = vmul.f32 %v2237_v28, %v8853_v40  ;;  %v2437_v58 = vmul.f32 %v2431_v61, %v8769_v30  ;;  %4794 = vmatmul.mubr.msk.f32.gmra.mrb[72].mxu0 %vm3496_vm8, %v7686_v47  ;;  %v5006_v10 = vpack.c.bf16 %v2251_v16, %v2249_v13  ;;  %v7721_v28 = vld [vmem:[%s8374_s3 + $0x88] sm:$0xff]  ;;  %v7725_v16 = vpop.permute.xlu1 %2956  ;;  %v8862_v3 = vld [vmem:[#allocation34_spill] sm:$0xff]  ;;  %v7739_v56 = vpop.permute.xlu0 %2954 }
 0x292   : > { %4802 = vmatmul.mubr.msk.f32.gmra.mrb[72].mxu1 %vm3496_vm8, %v7686_v47  ;;  %v2435_v6 = vmul.f32 %v2431_v61, %v8764_v55  ;;  %v2436_v36 = vmul.f32 %v2427_v63, %v8772_v57  ;;  %5005 = vmatpush1.bf16.msra.mxu0 %v5004_v42  ;;  %v8860_v35 = vpack.c.bf16 %v8858_v43, %v8859_v46  ;;  %v8863_v13 = vld [vmem:[#allocation16_spill] sm:$0xff] }
 0x293   : > { %8861 = vst [vmem:[#allocation66_spill] sm:$0xff] %v7721_v28  ;;  %v5008_v40 = vpack.c.bf16 %v2250_v12, %v2248_v32  ;;  %v2434_v31 = vmul.f32 %v2427_v63, %v8770_v38  ;;  %v2441_v11 = vmul.f32 %v2431_v61, %v8788_v60  ;;  %5007 = vmatprep.subr.bf16.mxu0 %v5006_v10  ;;  %8867 = vst [vmem:[#allocation71_spill] sm:$0xff] %v7739_v56  ;;  %v8874_v56 = vld [vmem:[#allocation63_spill] sm:$0xff] }
 0x294   : > { %5077 = vmatpush1.bf16.msra.mxu1 %v8860_v35  ;;  %v8864_v42 = vpack.c.bf16 %v8862_v3, %v8863_v13  ;;  %v2439_v43 = vmul.f32 %v2431_v61, %v8786_v9  ;;  %v2438_v46 = vmul.f32 %v2427_v63, %v8789_v20  ;;  %v8865_v35 = vld [vmem:[#allocation21_spill] sm:$0xff]  ;;  %3728 = vmatprep.mubr.f32.mxu0 %v8845_v7  ;;  %v7757_v13 = vld [vmem:[%s8374_s3 + $0xa0] sm:$0xff] }
 0x295   : > { %v2440_v47 = vmul.f32 %v2427_v63, %v8865_v35  ;;  %3954 = vmatprep.mubr.f32.mxu1 %v8845_v7  ;;  %v5082_v12 = vpack.c.bf16 %v2437_v58, %v2435_v6  ;;  %v2521_v32 = vmul.f32 %v7678_v59, %v8769_v30  ;;  %v2549_v10 = vmul.f32 %v7691_v50, %v8866_v41  ;;  %v8868_v30 = vld [vmem:[#allocation31_spill] sm:$0xff]  ;;  %v8869_v6 = vld [vmem:[#allocation13_spill] sm:$0xff] }
 0x296   : > { %5079 = vmatprep.subr.bf16.mxu1 %v8864_v42  ;;  %4795 = vmatmul.mubr.msk.f32.gmra.mrb[74].mxu0 %vm3496_vm8, %v7721_v28  ;;  %v5084_v63 = vpack.c.bf16 %v2436_v36, %v2434_v31  ;;  %v2519_v61 = vmul.f32 %v7678_v59, %v8764_v55  ;;  %v7749_v58 = vmul.f32 %v7663_v45, %v8772_v57  ;;  %v8872_v31 = vld [vmem:[#allocation5_spill] sm:$0xff] }
 0x297   : > { %4803 = vmatmul.mubr.msk.f32.gmra.mrb[74].mxu1 %vm3496_vm8, %v7721_v28  ;;  %5009 = vmatpush1.bf16.msra.mxu0 %v5008_v40  ;;  %v8870_v3 = vpack.c.bf16 %v8868_v30, %v8869_v6  ;;  %v5086_v42 = vpack.c.bf16 %v2441_v11, %v2439_v43  ;;  %v8871_v28 = vld [vmem:[#allocation18_spill] sm:$0xff]  ;;  %v7763_v55 = vmul.f32 %v7681_v51, %v8872_v31  ;;  %v8873_v57 = vld [vmem:[#allocation25_spill] sm:$0xff] }
 0x298   : > { %v2547_v36 = vmul.f32 %v7691_v50, %v8871_v28  ;;  %v8875_v40 = vpack.c.bf16 %v8873_v57, %v8874_v56  ;;  %v5088_v30 = vpack.c.bf16 %v2440_v47, %v2438_v46  ;;  %v7770_v6 = vmul.f32 %v7663_v45, %v8770_v38  ;;  %3734 = vmatprep.mubr.f32.mxu0 %v8845_v7  ;;  %v8876_v46 = vld [vmem:[#allocation23_spill] sm:$0xff] }
 0x299   : > { %5081 = vmatpush1.bf16.msra.mxu1 %v8870_v3  ;;  %v7774_v11 = vmul.f32 %v7681_v51, %v8805_v23  ;;  %3960 = vmatprep.mubr.f32.mxu1 %v8845_v7  ;;  %v5018_v43 = vpack.c.bf16 %v2521_v32, %v2519_v61  ;;  %v7780_v56 = vmul.f32 %v7678_v59, %v8786_v9  ;;  %v8878_v9 = vld [vmem:[#allocation56_spill] sm:$0xff] }
 0x29a   : > { %5011 = vmatprep.subr.bf16.mxu0 %v8875_v40  ;;  %5083 = vmatprep.subr.bf16.mxu1 %v5082_v12  ;;  %v5090_v3 = vpack.c.bf16 %v2549_v10, %v2547_v36  ;;  %v7782_v12 = vpop.permute.xlu1 %2952  ;;  %v5020_v38 = vpack.c.bf16 %v7749_v58, %v7770_v6  ;;  %v2525_v47 = vmul.f32 %v7678_v59, %v8788_v60  ;;  %v8877_v10 = vld [vmem:[#allocation39_spill] sm:$0xff]  ;;  %v7800_v36 = vld [vmem:[%s8374_s3 + $0xb8] sm:$0xff]  ;;  %v7810_v59 = vpop.permute.xlu0 %2950 }
 0x29b   : > { %4796 = vmatmul.mubr.msk.f32.gmra.mrb[76].mxu0 %vm3496_vm8, %v7757_v13  ;;  %4804 = vmatmul.mubr.msk.f32.gmra.mrb[76].mxu1 %vm3496_vm8, %v7757_v13  ;;  %v2553_v32 = vmul.f32 %v7691_v50, %v8876_v46  ;;  %v8879_v61 = vpack.c.bf16 %v8877_v10, %v8878_v9  ;;  %v5092_v57 = vpack.c.bf16 %v7763_v55, %v7774_v11  ;;  %v8880_v40 = vld [vmem:[#allocation46_spill] sm:$0xff]  ;;  %v8881_v6 = vld [vmem:[#allocation11_spill] sm:$0xff]  ;;  %v8883_v11 = vld [vmem:[#allocation17_spill] sm:$0xff] }
 0x29c   : > { %v2551_v58 = vmul.f32 %v7691_v50, %v8808_v2  ;;  %v7808_v60 = vmul.f32 %v7663_v45, %v8789_v20  ;;  %v7817_v10 = vmul.f32 %v7663_v45, %v8865_v35  ;;  %v7821_v55 = vmul.f32 %v7681_v51, %v8810_v22  ;;  %3740 = vmatprep.mubr.f32.mxu0 %v8845_v7 }
 0x29d   : > { %5013 = vmatpush1.bf16.msra.mxu0 %v8879_v61  ;;  %5085 = vmatpush1.bf16.msra.mxu1 %v5084_v63  ;;  %v8882_v63 = vpack.c.bf16 %v8880_v40, %v8881_v6  ;;  %v7825_v50 = vmul.f32 %v7681_v51, %v8811_v14  ;;  %v7831_v20 = vmul.f32 %v7703_v44, %v8866_v41  ;;  %v4785_v40 = vld [vmem:[%s8376_s5 + $0x7] ss:$8 sm:$0x3] }
 0x29e   : > { %5087 = vmatprep.subr.bf16.mxu1 %v5086_v42  ;;  %3966 = vmatprep.mubr.f32.mxu1 %v8845_v7  ;;  %v7835_v45 = vmul.f32 %v7700_v19, %v8872_v31  ;;  %v7839_v35 = vmul.f32 %v7703_v44, %v8876_v46  ;;  %v5022_v51 = vpack.c.bf16 %v2525_v47, %v7780_v56  ;;  %v4780_v31 = vld [vmem:[%s8376_s5 + $0x6] ss:$8 sm:$0x3]  ;;  %v8884_v46 = vld [vmem:[#allocation50_spill] sm:$0xff]  ;;  %v7904_v6 = vpop.permute.xlu0 %2958 }
 0x29f   : > { %5015 = vmatprep.subr.bf16.mxu0 %v8882_v63  ;;  %4797 = vmatmul.mubr.msk.f32.gmra.mrb[78].mxu0 %vm3496_vm8, %v7800_v36  ;;  %v5094_v42 = vpack.c.bf16 %v2553_v32, %v2551_v58  ;;  %v7848_v41 = vmul.f32 %v7700_v19, %v8811_v14  ;;  %v8885_v9 = vpack.c.bf16 %v8883_v11, %v8884_v46  ;;  %v4781_v47 = vld [vmem:[%s8376_s5 + $0x7] ss:$8 sm:$0x3]  ;;  %v7869_v32 = vpop.permute.xlu1 %2960  ;;  %v4789_v11 = vld [vmem:[%s8376_s5 + $0x10] ss:$8 sm:$0x3] }
 0x2a0   : > { %4805 = vmatmul.mubr.msk.f32.gmra.mrb[78].mxu1 %vm3496_vm8, %v7800_v36  ;;  %v2631_v61 = vmul.f32 %v7703_v44, %v8871_v28  ;;  %v7860_v56 = vmul.f32 %v7700_v19, %v8805_v23  ;;  %v7864_v14 = vmul.f32 %v7703_v44, %v8808_v2  ;;  %v5096_v28 = vpack.c.bf16 %v7825_v50, %v7821_v55  ;;  %v4784_v2 = vld [vmem:[%s8376_s5 + $0x7] ss:$8 sm:$0x3] }
 0x2a1   : > { %5017 = vmatpush1.bf16.msra.mxu0 %v8885_v9  ;;  %5089 = vmatpush1.bf16.msra.mxu1 %v5088_v30  ;;  %v5024_v30 = vpack.c.bf16 %v7817_v10, %v7808_v60  ;;  %v7877_v23 = vmul.f32 %v7700_v19, %v8810_v22  ;;  %v5281_v58 = vld [vmem:[%s8374_s3 + $0x8] sm:$0xff]  ;;  %v7892_v22 = vrot.slane %v4780_v31, %v6350_v17 }
 0x2a2   : > { %5019 = vmatprep.subr.bf16.mxu0 %v5018_v43  ;;  %5091 = vmatprep.subr.bf16.mxu1 %v5090_v3  ;;  %v5026_v44 = vpack.c.bf16 %v7831_v20, %v2631_v61  ;;  %v5028_v43 = vpack.c.bf16 %v7835_v45, %v7860_v56  ;;  %v5030_v3 = vpack.c.bf16 %v7839_v35, %v7864_v14  ;;  %v4788_v20 = vld [vmem:[%s8376_s5 + $0x7] ss:$8 sm:$0x3]  ;;  %v7975_v14 = vpop.permute.xlu0 %3082 }
 0x2a3   : > { %4037 = vmatprep.mubr.f32.mxu0 %v5281_v58  ;;  %4263 = vmatprep.mubr.f32.mxu1 %v5281_v58  ;;  %v7895_v19 = vrot.slane %v4780_v31, %v6426_v52  ;;  %v2772_v60 = vsel %vm2770_vm9, %v7429_v15, %v7453_v34  ;;  %v5032_v63 = vpack.c.bf16 %v7848_v41, %v7877_v23  ;;  %v7960_v46 = vpop.permute.xlu1 %3084  ;;  %v8895_v23 = vld [vmem:[#allocation71_spill] sm:$0xff] }
 0x2a4   : > { %v2776_v10 = vsel %vm2770_vm9, %v7453_v34, %v7429_v15  ;;  %v7913_v55 = vrot.slane %v4781_v47, %v6350_v17  ;;  %v7916_v50 = vrot.slane %v4781_v47, %v6426_v52  ;;  %v2771_v45 = vsel %vm2770_vm9, %v7418_v0, %v7460_v62 }
 0x2a5   : > { %5021 = vmatpush1.bf16.msra.mxu0 %v5020_v38  ;;  %5093 = vmatpush1.bf16.msra.mxu1 %v5092_v57  ;;  %v7927_v15 = vrot.slane %v4784_v2, %v6350_v17  ;;  %v7930_v34 = vrot.slane %v4784_v2, %v6426_v52  ;;  %v2775_v38 = vsel %vm2770_vm9, %v7460_v62, %v7418_v0 }
 0x2a6   : > { %5023 = vmatprep.subr.bf16.mxu0 %v5022_v51  ;;  %5095 = vmatprep.subr.bf16.mxu1 %v5094_v42  ;;  %v7937_v57 = vmul.f32 %v7892_v22, %v2772_v60  ;;  %v7940_v35 = vrot.slane %v4785_v40, %v6350_v17  ;;  %v7943_v31 = vrot.slane %v4785_v40, %v6426_v52 }
 0x2a7   : > { %v2795_v51 = vmul.f32 %v7895_v19, %v2776_v10  ;;  %v2826_v0 = vsel %vm2824_vm10, %v7477_v21, %v7501_v25  ;;  %v2830_v62 = vsel %vm2824_vm10, %v7501_v25, %v7477_v21  ;;  %v7958_v42 = vrot.slane %v4788_v20, %v6350_v17 }
 0x2a8   : > { %v2792_v9 = vmul.f32 %v7892_v22, %v2771_v45  ;;  %v2825_v61 = vsel %vm2824_vm10, %v7485_v54, %v7511_v39  ;;  %v2829_v56 = vsel %vm2824_vm10, %v7511_v39, %v7485_v54  ;;  %v2793_v21 = vmul.f32 %v7895_v19, %v2775_v38  ;;  %v8016_v38 = vpop.permute.xlu1 %3092 }
 0x2a9   : > { %5025 = vmatpush1.bf16.msra.mxu0 %v5024_v30  ;;  %5097 = vmatpush1.bf16.msra.mxu1 %v5096_v28  ;;  %v7973_v25 = vrot.slane %v4788_v20, %v6426_v52  ;;  %v7978_v47 = vrot.slane %v4789_v11, %v6350_v17  ;;  %v8886_v2 = vpack.c.bf16 %v7361_v4, %v7355_v1 }
 0x2aa   : > { %5027 = vmatprep.subr.bf16.mxu0 %v5026_v44  ;;  %v5036_v58 = vpack.c.bf16 %v7937_v57, %v2792_v9  ;;  %v2849_v54 = vmul.f32 %v7916_v50, %v2830_v62  ;;  %v7986_v39 = vmul.f32 %v7927_v15, %v2826_v0  ;;  %v7989_v30 = vrot.slane %v4789_v11, %v6426_v52  ;;  %v8888_v57 = vld [vmem:[#allocation30_spill] sm:$0xff]  ;;  %v8891_v11 = vld [vmem:[#allocation20_spill] sm:$0xff]  ;;  %v8041_v9 = vpop.permute.xlu0 %3090 }
 0x2ab   : > { %5099 = vmatprep.subr.bf16.mxu1 %v8886_v2  ;;  %v2846_v28 = vmul.f32 %v7913_v55, %v2825_v61  ;;  %v2847_v17 = vmul.f32 %v7916_v50, %v2829_v56  ;;  %v7994_v44 = vmul.f32 %v7927_v15, %v2825_v61  ;;  %v5034_v60 = vpack.c.bf16 %v2795_v51, %v2793_v21  ;;  %v8892_v2 = vld [vmem:[#allocation73_spill] sm:$0xff] }
 0x2ac   : > { %v2848_v1 = vmul.f32 %v7913_v55, %v2826_v0  ;;  %v2778_v4 = vsel %vm2770_vm9, %v7548_v48, %v7527_v24  ;;  %v2832_v52 = vsel %vm2824_vm10, %v7626_v27, %v7590_v5  ;;  %v8887_v40 = vpack.c.bf16 %v7358_v26, %v7352_v18  ;;  %v8890_v26 = vld [vmem:[#allocation6_spill] sm:$0xff] }
 0x2ad   : > { %5029 = vmatpush1.bf16.msra.mxu0 %v5028_v43  ;;  %v8009_v10 = vmul.f32 %v7930_v34, %v2829_v56  ;;  %v2933_v20 = vmul.f32 %v7930_v34, %v2830_v62  ;;  %v2774_v45 = vsel %vm2770_vm9, %v7527_v24, %v7548_v48  ;;  %v8889_v43 = vpack.c.bf16 %v7411_v49, %v8888_v57 }
 0x2ae   : > { %5101 = vmatpush1.bf16.msra.mxu1 %v8887_v40  ;;  %5031 = vmatprep.subr.bf16.mxu0 %v5030_v3  ;;  %v5044_v18 = vpack.c.bf16 %v7986_v39, %v7994_v44  ;;  %v2777_v51 = vsel %vm2770_vm9, %v8891_v11, %v8890_v26  ;;  %v2831_v48 = vsel %vm2824_vm10, %v7642_v37, %v7601_v33 }
 0x2af   : > { %5103 = vmatprep.subr.bf16.mxu1 %v8889_v43  ;;  %v5106_v24 = vpack.c.bf16 %v2849_v54, %v2847_v17  ;;  %v2773_v49 = vsel %vm2770_vm9, %v8890_v26, %v8891_v11  ;;  %v2799_v3 = vmul.f32 %v7895_v19, %v2778_v4  ;;  %v2828_v0 = vsel %vm2824_vm10, %v7590_v5, %v7626_v27  ;;  %v8893_v54 = vld [vmem:[#allocation72_spill] sm:$0xff] }
 0x2b0   : > { %v2853_v62 = vmul.f32 %v7916_v50, %v2832_v52  ;;  %v5108_v61 = vpack.c.bf16 %v2848_v1, %v2846_v28  ;;  %v2798_v56 = vmul.f32 %v7892_v22, %v2774_v45  ;;  %v2967_v21 = vsel %vm2824_vm10, %v7725_v16, %v7672_v29 }
 0x2b1   : > { %5033 = vmatpush1.bf16.msra.mxu0 %v5032_v63  ;;  %v8894_v17 = vpack.c.bf16 %v8892_v2, %v8893_v54  ;;  %v2797_v5 = vmul.f32 %v7895_v19, %v2777_v51  ;;  %v2827_v27 = vsel %vm2824_vm10, %v7601_v33, %v7642_v37  ;;  %v2851_v28 = vmul.f32 %v7916_v50, %v2831_v48  ;;  %v3089_v50 = vpop.permute.xlu1 %3088 }
 0x2b2   : > { %5035 = vmatprep.subr.bf16.mxu0 %v5034_v60  ;;  %v2796_v1 = vmul.f32 %v7892_v22, %v2773_v49  ;;  %v2852_v41 = vmul.f32 %v7913_v55, %v2828_v0  ;;  %v2966_v63 = vsel %vm2824_vm10, %v8895_v23, %v7693_v53  ;;  %v5042_v19 = vpack.c.bf16 %v2933_v20, %v8009_v10  ;;  %v3087_v20 = vpop.permute.xlu0 %3086 }
 0x2b3   : > { %5105 = vmatpush1.bf16.msra.mxu1 %v8894_v17  ;;  %v2963_v33 = vsel %vm2824_vm10, %v7672_v29, %v7725_v16  ;;  %v2985_v37 = vmul.f32 %v7943_v31, %v2967_v21  ;;  %v5038_v60 = vpack.c.bf16 %v2799_v3, %v2797_v5  ;;  %v5110_v4 = vpack.c.bf16 %v2853_v62, %v2851_v28 }
 0x2b4   : > { %5107 = vmatprep.subr.bf16.mxu1 %v5106_v24  ;;  %v5040_v22 = vpack.c.bf16 %v2798_v56, %v2796_v1  ;;  %v2850_v40 = vmul.f32 %v7913_v55, %v2827_v27  ;;  %v2969_v45 = vsel %vm2824_vm10, %v7869_v32, %v7782_v12  ;;  %v2936_v10 = vmul.f32 %v7927_v15, %v2828_v0 }
 0x2b5   : > { %5037 = vmatpush1.bf16.msra.mxu0 %v5036_v58  ;;  %v2962_v29 = vsel %vm2824_vm10, %v7693_v53, %v8895_v23  ;;  %v2983_v16 = vmul.f32 %v7943_v31, %v2966_v63  ;;  %v2934_v55 = vmul.f32 %v7927_v15, %v2827_v27  ;;  %v2984_v58 = vmul.f32 %v7940_v35, %v2963_v33  ;;  %v3097_v3 = vpop.permute.xlu1 %3096 }
 0x2b6   : > { %5039 = vmatprep.subr.bf16.mxu0 %v5038_v60  ;;  %v5112_v57 = vpack.c.bf16 %v2852_v41, %v2850_v40  ;;  %v2968_v43 = vsel %vm2824_vm10, %v7904_v6, %v7810_v59  ;;  %v2937_v26 = vmul.f32 %v7930_v34, %v2832_v52  ;;  %v2965_v53 = vsel %vm2824_vm10, %v7782_v12, %v7869_v32  ;;  %v8896_v60 = vld [vmem:[#allocation53_spill] sm:$0xff] }
 0x2b7   : > { %5109 = vmatpush1.bf16.msra.mxu1 %v5108_v61  ;;  %v2989_v11 = vmul.f32 %v7943_v31, %v2969_v45  ;;  %v5114_v51 = vpack.c.bf16 %v2985_v37, %v2983_v16  ;;  %v2935_v15 = vmul.f32 %v7930_v34, %v2831_v48  ;;  %v2982_v24 = vmul.f32 %v7940_v35, %v2962_v29  ;;  %v8902_v16 = vld [vmem:[#allocation55_spill] sm:$0xff] }
 0x2b8   : > { %5111 = vmatprep.subr.bf16.mxu1 %v5110_v4  ;;  %v3104_v49 = vsel %vm3098_vm11, %v8016_v38, %v7960_v46  ;;  %v5048_v52 = vpack.c.bf16 %v2936_v10, %v2934_v55  ;;  %v2964_v12 = vsel %vm2824_vm10, %v7810_v59, %v7904_v6  ;;  %v2987_v32 = vmul.f32 %v7943_v31, %v2968_v43  ;;  %v3095_v31 = vpop.permute.xlu0 %3094  ;;  %v8898_v10 = vld [vmem:[#allocation74_spill] sm:$0xff]  ;;  %v8904_v55 = vld [vmem:[#allocation57_spill] sm:$0xff] }
 0x2b9   : > { %5041 = vmatpush1.bf16.msra.mxu0 %v5040_v22  ;;  %v3069_v34 = vmul.f32 %v7973_v25, %v2967_v21  ;;  %v5116_v48 = vpack.c.bf16 %v2984_v58, %v2982_v24  ;;  %v2988_v0 = vmul.f32 %v7940_v35, %v2965_v53  ;;  %v3103_v62 = vsel %vm3098_vm11, %v8041_v9, %v7975_v14  ;;  %v8906_v58 = vld [vmem:[#allocation4_spill] sm:$0xff] }
 0x2ba   : > { %5043 = vmatprep.subr.bf16.mxu0 %v5042_v19  ;;  %v3100_v59 = vsel %vm3098_vm11, %v7960_v46, %v8016_v38  ;;  %v3123_v6 = vmul.f32 %v7989_v30, %v3104_v49  ;;  %v5046_v61 = vpack.c.bf16 %v2937_v26, %v2935_v15  ;;  %v5118_v56 = vpack.c.bf16 %v2989_v11, %v2987_v32  ;;  %v8908_v26 = vld [vmem:[#allocation60_spill] sm:$0xff]  ;;  %v8910_v11 = vld [vmem:[#allocation41_spill] sm:$0xff] }
 0x2bb   : > { %5113 = vmatpush1.bf16.msra.mxu1 %v5112_v57  ;;  %v3067_v21 = vmul.f32 %v7973_v25, %v2966_v63  ;;  %v2986_v2 = vmul.f32 %v7940_v35, %v2964_v12  ;;  %v3106_v54 = vsel %vm3098_vm11, %v3097_v3, %v3089_v50  ;;  %v3068_v17 = vmul.f32 %v7958_v42, %v2963_v33  ;;  %v8905_v57 = vld [vmem:[#allocation64_spill] sm:$0xff]  ;;  %v8912_v15 = vld [vmem:[#allocation61_spill] sm:$0xff] }
 0x2bc   : > { %5115 = vmatprep.subr.bf16.mxu1 %v5114_v51  ;;  %v3099_v46 = vsel %vm3098_vm11, %v7975_v14, %v8041_v9  ;;  %v3121_v38 = vmul.f32 %v7989_v30, %v3103_v62  ;;  %v3122_v5 = vmul.f32 %v7978_v47, %v3100_v59  ;;  %v3105_v27 = vsel %vm3098_vm11, %v3095_v31, %v3087_v20  ;;  %v8911_v51 = vld [vmem:[#allocation43_spill] sm:$0xff]  ;;  %v8913_v24 = vld [vmem:[#allocation68_spill] sm:$0xff]  ;;  %v8914_v49 = vld [vmem:[#allocation65_spill] sm:$0xff]  ;;  %v8226_v32 = vpop.permute.xlu0 %3458 }
 0x2bd   : > { %5045 = vmatpush1.bf16.msra.mxu0 %v5044_v18  ;;  %v5120_v35 = vpack.c.bf16 %v2988_v0, %v2986_v2  ;;  %v5050_v39 = vpack.c.bf16 %v3069_v34, %v3067_v21  ;;  %v3073_v44 = vmul.f32 %v7973_v25, %v2969_v45  ;;  %v3102_v18 = vsel %vm3098_vm11, %v3089_v50, %v3097_v3  ;;  %v8897_v45 = vld [vmem:[#allocation42_spill] sm:$0xff] }
 0x2be   : > { %5047 = vmatprep.subr.bf16.mxu0 %v5046_v61  ;;  %v3127_v28 = vmul.f32 %v7989_v30, %v3106_v54  ;;  %v5122_v1 = vpack.c.bf16 %v3123_v6, %v3121_v38  ;;  %v3066_v14 = vmul.f32 %v7958_v42, %v2962_v29  ;;  %v3120_v9 = vmul.f32 %v7978_v47, %v3099_v46  ;;  %v8899_v29 = vld [vmem:[#allocation75_spill] sm:$0xff] }
 0x2bf   : > { %5117 = vmatpush1.bf16.msra.mxu1 %v5116_v48  ;;  %v3071_v41 = vmul.f32 %v7973_v25, %v2968_v43  ;;  %v3101_v23 = vsel %vm3098_vm11, %v3087_v20, %v3095_v31  ;;  %v3125_v63 = vmul.f32 %v7989_v30, %v3105_v27  ;;  %v3072_v33 = vmul.f32 %v7958_v42, %v2965_v53  ;;  %v8903_v20 = vld [vmem:[#allocation59_spill] sm:$0xff]  ;;  %v8907_v43 = vld [vmem:[#allocation44_spill] sm:$0xff]  ;;  %v8232_v31 = vpop.permute.xlu1 %3463 }
 0x2c0   : > { %5119 = vmatprep.subr.bf16.mxu1 %v5118_v56  ;;  %v5052_v19 = vpack.c.bf16 %v3068_v17, %v3066_v14  ;;  %v5124_v37 = vpack.c.bf16 %v3122_v5, %v3120_v9  ;;  %v3126_v50 = vmul.f32 %v7978_v47, %v3102_v18  ;;  %v3070_v25 = vmul.f32 %v7958_v42, %v2964_v12  ;;  %v8900_v42 = vld [vmem:[#allocation54_spill] sm:$0xff]  ;;  %v8909_v53 = vld [vmem:[#allocation67_spill] sm:$0xff] }
 0x2c1   : > { %5049 = vmatpush1.bf16.msra.mxu0 %v5048_v52  ;;  %v5054_v4 = vpack.c.bf16 %v3073_v44, %v3071_v41  ;;  %v5126_v22 = vpack.c.bf16 %v3127_v28, %v3125_v63  ;;  %v3124_v8 = vmul.f32 %v7978_v47, %v3101_v23  ;;  %v8901_v47 = vld [vmem:[#allocation58_spill] sm:$0xff] }
 0x2c2   : > { %5051 = vmatprep.subr.bf16.mxu0 %v5050_v39  ;;  %v5056_v30 = vpack.c.bf16 %v3072_v33, %v3070_v25  ;;  %v8915_v52 = vld [vmem:[#allocation70_spill] sm:$0xff] }
 0x2c3   : > { %5121 = vmatpush1.bf16.msra.mxu1 %v5120_v35  ;;  %v5128_v40 = vpack.c.bf16 %v3126_v50, %v3124_v8  ;;  %v8916_v12 = vld [vmem:[#allocation66_spill] sm:$0xff]  ;;  %v8252_v25 = vpop.permute.xlu1 %3473 }
 0x2c4   : > { %5123 = vmatprep.subr.bf16.mxu1 %v5122_v1  ;;  %4038 = vmatmul.mubr.f32.vlgmr.msra.gmra.mrb[80].mxu0 %v8896_v60  ;;  %v8242_v1 = vpop.permute.xlu0 %3468 }
 0x2c5   : > { %5053 = vmatpush1.bf16.msra.mxu0 %v5052_v19  ;;  %4043 = vmatprep.mubr.f32.mxu0 %v8897_v45 }
 0x2c6   : > { %4264 = vmatmul.mubr.f32.vlgmr.msra.gmra.mrb[80].mxu1 %v8896_v60  ;;  %5055 = vmatprep.subr.bf16.mxu0 %v5054_v4 }
 0x2c7   : > { %5125 = vmatpush1.bf16.msra.mxu1 %v5124_v37  ;;  %4269 = vmatprep.mubr.f32.mxu1 %v8897_v45 }
 0x2c8   : > { %5127 = vmatprep.subr.bf16.mxu1 %v5126_v22  ;;  %4044 = vmatmul.mubr.f32.gmra.mrb[82].mxu0 %v8898_v10 }
 0x2c9   : > { %5057 = vmatpush1.bf16.msra.mxu0 %v5056_v30  ;;  %4049 = vmatprep.mubr.f32.mxu0 %v8899_v29 }
 0x2ca   : > { %4270 = vmatmul.mubr.f32.gmra.mrb[82].mxu1 %v8898_v10 }
 0x2cb   : > { %5129 = vmatpush1.bf16.msra.mxu1 %v5128_v40  ;;  %4275 = vmatprep.mubr.f32.mxu1 %v8899_v29 }
 0x2cc   : > { %4050 = vmatmul.mubr.f32.gmra.mrb[84].mxu0 %v8900_v42 }
 0x2cd   : > { %4055 = vmatprep.mubr.f32.mxu0 %v8901_v47 }
 0x2ce   : > { %4276 = vmatmul.mubr.f32.gmra.mrb[84].mxu1 %v8900_v42 }
 0x2cf   : > { %4281 = vmatprep.mubr.f32.mxu1 %v8901_v47 }
 0x2d0   : > { %4056 = vmatmul.mubr.f32.gmra.mrb[86].mxu0 %v8902_v16 }
 0x2d1   : > { %4061 = vmatprep.mubr.f32.mxu0 %v8903_v20 }
 0x2d2   : > { %4282 = vmatmul.mubr.f32.gmra.mrb[86].mxu1 %v8902_v16 }
 0x2d3   : > { %4287 = vmatprep.mubr.f32.mxu1 %v8903_v20 }
 0x2d4   : > { %4062 = vmatmul.mubr.f32.gmra.mrb[88].mxu0 %v8904_v55 }
 0x2d5   : > { %4067 = vmatprep.mubr.f32.mxu0 %v8905_v57 }
 0x2d6   : > { %4288 = vmatmul.mubr.f32.gmra.mrb[88].mxu1 %v8904_v55 }
 0x2d7   : > { %4293 = vmatprep.mubr.f32.mxu1 %v8905_v57 }
 0x2d8   : > { %4068 = vmatmul.mubr.f32.gmra.mrb[90].mxu0 %v8906_v58 }
 0x2d9   : > { %4073 = vmatprep.mubr.f32.mxu0 %v8907_v43 }
 0x2da   : > { %4294 = vmatmul.mubr.f32.gmra.mrb[90].mxu1 %v8906_v58 }
 0x2db   : > { %4299 = vmatprep.mubr.f32.mxu1 %v8907_v43 }
 0x2dc   : > { %4074 = vmatmul.mubr.f32.gmra.mrb[92].mxu0 %v8908_v26 }
 0x2dd   : > { %4079 = vmatprep.mubr.f32.mxu0 %v8909_v53 }
 0x2de   : > { %4300 = vmatmul.mubr.f32.gmra.mrb[92].mxu1 %v8908_v26  ;;  %v8262_v26 = vpop.permute.xlu0 %3478 }
 0x2df   : > { %4305 = vmatprep.mubr.f32.mxu1 %v8909_v53 }
 0x2e0   : > { %4080 = vmatmul.mubr.f32.gmra.mrb[94].mxu0 %v8910_v11 }
 0x2e1   : > { %4150 = vmatprep.mubr.f32.mxu0 %v8845_v7 }
 0x2e2   : > { %4306 = vmatmul.mubr.f32.gmra.mrb[94].mxu1 %v8910_v11 }
 0x2e3   : > { %4376 = vmatprep.mubr.f32.mxu1 %v8845_v7 }
 0x2e4   : > { %4806 = vmatmul.mubr.msk.f32.vlgmr.msra.gmra.mrb[80].mxu0 %vm3496_vm8, %v8911_v51 }
 0x2e5   : > { %4156 = vmatprep.mubr.f32.mxu0 %v8845_v7 }
 0x2e6   : > { %4814 = vmatmul.mubr.msk.f32.vlgmr.msra.gmra.mrb[80].mxu1 %vm3496_vm8, %v8911_v51 }
 0x2e7   : > { %4382 = vmatprep.mubr.f32.mxu1 %v8845_v7 }
 0x2e8   : > { %4807 = vmatmul.mubr.msk.f32.gmra.mrb[82].mxu0 %vm3496_vm8, %v8912_v15 }
 0x2e9   : > { %4162 = vmatprep.mubr.f32.mxu0 %v8845_v7 }
 0x2ea   : > { %4815 = vmatmul.mubr.msk.f32.gmra.mrb[82].mxu1 %vm3496_vm8, %v8912_v15 }
 0x2eb   : > { %4388 = vmatprep.mubr.f32.mxu1 %v8845_v7 }
 0x2ec   : > { %4808 = vmatmul.mubr.msk.f32.gmra.mrb[84].mxu0 %vm3496_vm8, %v8913_v24 }
 0x2ed   : > { %4168 = vmatprep.mubr.f32.mxu0 %v8845_v7 }
 0x2ee   : > { %4816 = vmatmul.mubr.msk.f32.gmra.mrb[84].mxu1 %vm3496_vm8, %v8913_v24 }
 0x2ef   : > { %4394 = vmatprep.mubr.f32.mxu1 %v8845_v7 }
 0x2f0   : > { %4809 = vmatmul.mubr.msk.f32.gmra.mrb[86].mxu0 %vm3496_vm8, %v8914_v49 }
 0x2f1   : > { %4174 = vmatprep.mubr.f32.mxu0 %v8845_v7 }
 0x2f2   : > { %4817 = vmatmul.mubr.msk.f32.gmra.mrb[86].mxu1 %vm3496_vm8, %v8914_v49 }
 0x2f3   : > { %4400 = vmatprep.mubr.f32.mxu1 %v8845_v7 }
 0x2f4   : > { %4810 = vmatmul.mubr.msk.f32.gmra.mrb[88].mxu0 %vm3496_vm8, %v8915_v52 }
 0x2f5   : > { %4180 = vmatprep.mubr.f32.mxu0 %v8845_v7 }
 0x2f6   : > { %4818 = vmatmul.mubr.msk.f32.gmra.mrb[88].mxu1 %vm3496_vm8, %v8915_v52 }
 0x2f7   : > { %4406 = vmatprep.mubr.f32.mxu1 %v8845_v7 }
 0x2f8   : > { %4811 = vmatmul.mubr.msk.f32.gmra.mrb[90].mxu0 %vm3496_vm8, %v8916_v12 }
 0x2f9   : > { %4186 = vmatprep.mubr.f32.mxu0 %v8845_v7 }
 0x2fa   : > { %4819 = vmatmul.mubr.msk.f32.gmra.mrb[90].mxu1 %vm3496_vm8, %v8916_v12 }
 0x2fb   : > { %4412 = vmatprep.mubr.f32.mxu1 %v8845_v7 }
 0x2fc   : > { %4812 = vmatmul.mubr.msk.f32.gmra.mrb[92].mxu0 %vm3496_vm8, %v7757_v13 }
 0x2fd   : > { %4192 = vmatprep.mubr.f32.mxu0 %v8845_v7 }
 0x2fe   : > { %4820 = vmatmul.mubr.msk.f32.gmra.mrb[92].mxu1 %vm3496_vm8, %v7757_v13 }
 0x2ff   : > { %4418 = vmatprep.mubr.f32.mxu1 %v8845_v7 }
 0x300   : > { %4813 = vmatmul.mubr.msk.f32.gmra.mrb[94].mxu0 %vm3496_vm8, %v7800_v36 }
 0x302   : > { %4821 = vmatmul.mubr.msk.f32.gmra.mrb[94].mxu1 %vm3496_vm8, %v7800_v36 }
 0x351   : > { %v3700_v3 = vpop.f32.mrb[64].mxu0 }
 0x352   : > { %v5130_v34 = vadd.f32 %v3700_v3, %v8226_v32  ;;  %v3702_v0 = vpop.f32.mrb[65].mxu0 }
 0x353   : > { %v5131_v13 = vadd.f32 %v3702_v0, %v8226_v32 }
 0x354   : > { %v4425_v6 = vmax.f32 %v5130_v34, 0.0 }
 0x355   : > { %v3926_v48 = vpop.f32.mrb[64].mxu1  ;;  %v4426_v56 = vmax.f32 %v5131_v13, 0.0  ;;  %v8272_v13 = vpop.permute.xlu1 %3483 }
 0x356   : > { %v5146_v62 = vadd.f32 %v3926_v48, %v8226_v32  ;;  %v3928_v59 = vpop.f32.mrb[65].mxu1 }
 0x357   : > { %v5147_v7 = vadd.f32 %v3928_v59, %v8226_v32 }
 0x358   : > { %v4427_v61 = vmax.f32 %v5146_v62, 0.0  ;;  %v3706_v36 = vpop.f32.mrb[66].mxu0 }
 0x359   : > { %v4428_v21 = vmax.f32 %v5147_v7, 0.0  ;;  %v5132_v2 = vadd.f32 %v3706_v36, %v8232_v31  ;;  %v3932_v54 = vpop.f32.mrb[66].mxu1  ;;  %v3708_v17 = vpop.f32.mrb[67].mxu0 }
 0x35a   : > { %v8235_v46 = vmax.f32 %v4425_v6, %v4427_v61  ;;  %v5148_v38 = vadd.f32 %v3932_v54, %v8232_v31  ;;  %v5133_v35 = vadd.f32 %v3708_v17, %v8232_v31  ;;  %v3934_v5 = vpop.f32.mrb[67].mxu1 }
 0x35b   : > { %v8239_v27 = vmax.f32 %v4426_v56, %v4428_v21  ;;  %v4433_v39 = vmax.f32 %v5132_v2, 0.0  ;;  %v5149_v44 = vadd.f32 %v3934_v5, %v8232_v31 }
 0x35c   : > { %v4435_v18 = vmax.f32 %v5148_v38, 0.0  ;;  %v4434_v28 = vmax.f32 %v5133_v35, 0.0  ;;  %v3712_v9 = vpop.f32.mrb[68].mxu0 }
 0x35d   : > { %v4436_v14 = vmax.f32 %v5149_v44, 0.0  ;;  %v5134_v23 = vadd.f32 %v3712_v9, %v8242_v1  ;;  %v3938_v63 = vpop.f32.mrb[68].mxu1  ;;  %v3714_v19 = vpop.f32.mrb[69].mxu0 }
 0x35e   : > { %v8244_v41 = vmax.f32 %v4433_v39, %v4435_v18  ;;  %v5150_v37 = vadd.f32 %v3938_v63, %v8242_v1  ;;  %v5135_v50 = vadd.f32 %v3714_v19, %v8242_v1  ;;  %v3940_v60 = vpop.f32.mrb[69].mxu1  ;;  %v8282_v44 = vpop.permute.xlu0 %3488 }
 0x35f   : > { %v8247_v33 = vmax.f32 %v4434_v28, %v4436_v14  ;;  %v4441_v4 = vmax.f32 %v5134_v23, 0.0  ;;  %v5151_v22 = vadd.f32 %v3940_v60, %v8242_v1 }
 0x360   : > { %v4443_v8 = vmax.f32 %v5150_v37, 0.0  ;;  %v4442_v30 = vmax.f32 %v5135_v50, 0.0  ;;  %v3718_v40 = vpop.f32.mrb[70].mxu0 }
 0x361   : > { %v4444_v45 = vmax.f32 %v5151_v22, 0.0  ;;  %v5136_v10 = vadd.f32 %v3718_v40, %v8252_v25  ;;  %v3944_v29 = vpop.f32.mrb[70].mxu1  ;;  %v3720_v42 = vpop.f32.mrb[71].mxu0 }
 0x362   : > { %v8255_v47 = vmax.f32 %v4441_v4, %v4443_v8  ;;  %v5152_v16 = vadd.f32 %v3944_v29, %v8252_v25  ;;  %v5137_v20 = vadd.f32 %v3720_v42, %v8252_v25  ;;  %v3946_v55 = vpop.f32.mrb[71].mxu1  ;;  %v8292_v40 = vpop.permute.xlu1 %3493 }
 0x363   : > { %v8259_v57 = vmax.f32 %v4442_v30, %v4444_v45  ;;  %v4449_v58 = vmax.f32 %v5136_v10, 0.0  ;;  %v5153_v43 = vadd.f32 %v3946_v55, %v8252_v25 }
 0x364   : > { %v4451_v53 = vmax.f32 %v5152_v16, 0.0  ;;  %v4450_v11 = vmax.f32 %v5137_v20, 0.0  ;;  %v3724_v15 = vpop.f32.mrb[72].mxu0 }
 0x365   : > { %v4452_v51 = vmax.f32 %v5153_v43, 0.0  ;;  %v3950_v24 = vpop.f32.mrb[72].mxu1  ;;  %v5138_v52 = vadd.f32 %v3724_v15, %v8262_v26  ;;  %v3726_v3 = vpop.f32.mrb[73].mxu0 }
 0x366   : > { %v8264_v49 = vmax.f32 %v4449_v58, %v4451_v53  ;;  %v5154_v12 = vadd.f32 %v3950_v24, %v8262_v26  ;;  %v3952_v34 = vpop.f32.mrb[73].mxu1  ;;  %v5139_v0 = vadd.f32 %v3726_v3, %v8262_v26 }
 0x367   : > { %v8268_v48 = vmax.f32 %v4450_v11, %v4452_v51  ;;  %v5155_v62 = vadd.f32 %v3952_v34, %v8262_v26  ;;  %v4457_v59 = vmax.f32 %v5138_v52, 0.0 }
 0x368   : > { %v4459_v6 = vmax.f32 %v5154_v12, 0.0  ;;  %v4458_v7 = vmax.f32 %v5139_v0, 0.0 }
 0x369   : > { %v4460_v61 = vmax.f32 %v5155_v62, 0.0  ;;  %v3730_v56 = vpop.f32.mrb[74].mxu0 }
 0x36a   : > { %v3956_v36 = vpop.f32.mrb[74].mxu1  ;;  %v8274_v21 = vmax.f32 %v4457_v59, %v4459_v6  ;;  %v5140_v2 = vadd.f32 %v3730_v56, %v8272_v13  ;;  %v3732_v17 = vpop.f32.mrb[75].mxu0 }
 0x36b   : > { %v5156_v54 = vadd.f32 %v3956_v36, %v8272_v13  ;;  %v3958_v38 = vpop.f32.mrb[75].mxu1  ;;  %v8278_v35 = vmax.f32 %v4458_v7, %v4460_v61  ;;  %v5141_v5 = vadd.f32 %v3732_v17, %v8272_v13 }
 0x36c   : > { %v5157_v39 = vadd.f32 %v3958_v38, %v8272_v13  ;;  %v4465_v18 = vmax.f32 %v5140_v2, 0.0 }
 0x36d   : > { %v4467_v28 = vmax.f32 %v5156_v54, 0.0  ;;  %v4466_v14 = vmax.f32 %v5141_v5, 0.0 }
 0x36e   : > { %v4468_v9 = vmax.f32 %v5157_v39, 0.0  ;;  %v3736_v23 = vpop.f32.mrb[76].mxu0  ;;  %v3962_v63 = vpop.f32.mrb[76].mxu1 }
 0x36f   : > { %v8284_v19 = vmax.f32 %v4465_v18, %v4467_v28  ;;  %v5142_v37 = vadd.f32 %v3736_v23, %v8282_v44  ;;  %v5158_v50 = vadd.f32 %v3962_v63, %v8282_v44  ;;  %v3738_v60 = vpop.f32.mrb[77].mxu0  ;;  %v3964_v4 = vpop.f32.mrb[77].mxu1 }
 0x370   : > { %v8288_v22 = vmax.f32 %v4466_v14, %v4468_v9  ;;  %v5143_v8 = vadd.f32 %v3738_v60, %v8282_v44  ;;  %v5159_v30 = vadd.f32 %v3964_v4, %v8282_v44 }
 0x371   : > { %v4473_v45 = vmax.f32 %v5142_v37, 0.0  ;;  %v4475_v10 = vmax.f32 %v5158_v50, 0.0 }
 0x372   : > { %v4474_v29 = vmax.f32 %v5143_v8, 0.0  ;;  %v4476_v42 = vmax.f32 %v5159_v30, 0.0  ;;  %v3742_v16 = vpop.f32.mrb[78].mxu0 }
 0x373   : > { %v3968_v20 = vpop.f32.mrb[78].mxu1  ;;  %v8294_v55 = vmax.f32 %v4473_v45, %v4475_v10  ;;  %v5144_v58 = vadd.f32 %v3742_v16, %v8292_v40  ;;  %v3744_v53 = vpop.f32.mrb[79].mxu0 }
 0x374   : > { %v5160_v43 = vadd.f32 %v3968_v20, %v8292_v40  ;;  %v3970_v11 = vpop.f32.mrb[79].mxu1  ;;  %v8298_v51 = vmax.f32 %v4474_v29, %v4476_v42  ;;  %v5145_v15 = vadd.f32 %v3744_v53, %v8292_v40 }
 0x375   : > { %v5161_v24 = vadd.f32 %v3970_v11, %v8292_v40  ;;  %v4481_v52 = vmax.f32 %v5144_v58, 0.0 }
 0x376   : > { %v4483_v12 = vmax.f32 %v5160_v43, 0.0  ;;  %v4482_v3 = vmax.f32 %v5145_v15, 0.0 }
 0x377   : > { %v4484_v34 = vmax.f32 %v5161_v24, 0.0 }
 0x378   : > { %v8302_v0 = vmax.f32 %v4481_v52, %v4483_v12 }
 0x379   : > { %v8304_v62 = vmax.f32 %v4482_v3, %v4484_v34 }
 0x3b7   : > { %v4152_v59 = vpop.f32.mrb[80].mxu0 }
 0x3b8   : > { %v5162_v7 = vadd.f32 %v4152_v59, %v8226_v32  ;;  %v4154_v56 = vpop.f32.mrb[81].mxu0 }
 0x3b9   : > { %v4378_v6 = vpop.f32.mrb[80].mxu1  ;;  %v5163_v2 = vadd.f32 %v4154_v56, %v8226_v32 }
 0x3ba   : > { %v5178_v61 = vadd.f32 %v4378_v6, %v8226_v32  ;;  %v4380_v36 = vpop.f32.mrb[81].mxu1  ;;  %v4429_v17 = vmax.f32 %v5162_v7, 0.0 }
 0x3bb   : > { %v5179_v54 = vadd.f32 %v4380_v36, %v8226_v32  ;;  %v4430_v5 = vmax.f32 %v5163_v2, 0.0  ;;  %v4158_v18 = vpop.f32.mrb[82].mxu0 }
 0x3bc   : > { %v4431_v38 = vmax.f32 %v5178_v61, 0.0  ;;  %v5164_v9 = vadd.f32 %v4158_v18, %v8232_v31  ;;  %v4160_v63 = vpop.f32.mrb[83].mxu0 }
 0x3bd   : > { %v4432_v39 = vmax.f32 %v5179_v54, 0.0  ;;  %v4384_v28 = vpop.f32.mrb[82].mxu1  ;;  %v5165_v60 = vadd.f32 %v4160_v63, %v8232_v31 }
 0x3be   : > { %v4505_v14 = vmax.f32 %v4429_v17, %v4431_v38  ;;  %v5180_v23 = vadd.f32 %v4384_v28, %v8232_v31  ;;  %v4386_v37 = vpop.f32.mrb[83].mxu1  ;;  %v4437_v8 = vmax.f32 %v5164_v9, 0.0 }
 0x3bf   : > { %v4506_v50 = vmax.f32 %v4430_v5, %v4432_v39  ;;  %v5181_v4 = vadd.f32 %v4386_v37, %v8232_v31  ;;  %v4438_v10 = vmax.f32 %v5165_v60, 0.0  ;;  %v4164_v42 = vpop.f32.mrb[84].mxu0 }
 0x3c0   : > { %v4521_v32 = vmax.f32 %v8235_v46, %v4505_v14  ;;  %v4439_v30 = vmax.f32 %v5180_v23, 0.0  ;;  %v5166_v58 = vadd.f32 %v4164_v42, %v8242_v1  ;;  %v4166_v46 = vpop.f32.mrb[85].mxu0 }
 0x3c1   : > { %v4522_v45 = vmax.f32 %v8239_v27, %v4506_v50  ;;  %v4440_v29 = vmax.f32 %v5181_v4, 0.0  ;;  %v4390_v16 = vpop.f32.mrb[84].mxu1  ;;  %v5167_v27 = vadd.f32 %v4166_v46, %v8242_v1 }
 0x3c2   : > { %v4507_v20 = vmax.f32 %v4437_v8, %v4439_v30  ;;  %v5182_v31 = vadd.f32 %v4390_v16, %v8242_v1  ;;  %v4392_v43 = vpop.f32.mrb[85].mxu1  ;;  %v4445_v52 = vmax.f32 %v5166_v58, 0.0 }
 0x3c3   : > { %v4834_v53 = vpack.c.bf16 %v4522_v45, %v4521_v32  ;;  %v4508_v11 = vmax.f32 %v4438_v10, %v4440_v29  ;;  %v5183_v15 = vadd.f32 %v4392_v43, %v8242_v1  ;;  %v4446_v34 = vmax.f32 %v5167_v27, 0.0  ;;  %v4170_v6 = vpop.f32.mrb[86].mxu0 }
 0x3c4   : > { %v4523_v24 = vmax.f32 %v8244_v41, %v4507_v20  ;;  %v4447_v12 = vmax.f32 %v5182_v31, 0.0  ;;  %v5168_v56 = vadd.f32 %v4170_v6, %v8252_v25  ;;  %v4172_v2 = vpop.f32.mrb[87].mxu0 }
 0x3c5   : > { %4585 = vst [vmem:[%s8320_s11] sm:$0xff] %v4834_v53  ;;  %v4524_v3 = vmax.f32 %v8247_v33, %v4508_v11  ;;  %v4448_v59 = vmax.f32 %v5183_v15, 0.0  ;;  %v4396_v7 = vpop.f32.mrb[86].mxu1  ;;  %v5169_v41 = vadd.f32 %v4172_v2, %v8252_v25 }
 0x3c6   : > { %v4509_v61 = vmax.f32 %v4445_v52, %v4447_v12  ;;  %v5184_v36 = vadd.f32 %v4396_v7, %v8252_v25  ;;  %v4398_v54 = vpop.f32.mrb[87].mxu1  ;;  %v4453_v5 = vmax.f32 %v5168_v56, 0.0 }
 0x3c7   : > { %v4835_v1 = vpack.c.bf16 %v4524_v3, %v4523_v24  ;;  %v4510_v17 = vmax.f32 %v4446_v34, %v4448_v59  ;;  %v5185_v38 = vadd.f32 %v4398_v54, %v8252_v25  ;;  %v4454_v28 = vmax.f32 %v5169_v41, 0.0  ;;  %v4176_v9 = vpop.f32.mrb[88].mxu0 }
 0x3c8   : > { %v4525_v33 = vmax.f32 %v8255_v47, %v4509_v61  ;;  %v4455_v39 = vmax.f32 %v5184_v36, 0.0  ;;  %v5170_v37 = vadd.f32 %v4176_v9, %v8262_v26  ;;  %v4178_v60 = vpop.f32.mrb[89].mxu0 }
 0x3c9   : > { %4586 = vst [vmem:[%s8320_s11 + $0x8] sm:$0xff] %v4835_v1  ;;  %v4526_v18 = vmax.f32 %v8259_v57, %v4510_v17  ;;  %v4456_v14 = vmax.f32 %v5185_v38, 0.0  ;;  %v4402_v23 = vpop.f32.mrb[88].mxu1  ;;  %v5171_v47 = vadd.f32 %v4178_v60, %v8262_v26 }
 0x3ca   : > { %v4511_v63 = vmax.f32 %v4453_v5, %v4455_v39  ;;  %v5186_v50 = vadd.f32 %v4402_v23, %v8262_v26  ;;  %v4404_v4 = vpop.f32.mrb[89].mxu1  ;;  %v4461_v30 = vmax.f32 %v5170_v37, 0.0 }
 0x3cb   : > { %v4836_v25 = vpack.c.bf16 %v4526_v18, %v4525_v33  ;;  %v4512_v32 = vmax.f32 %v4454_v28, %v4456_v14  ;;  %v5187_v8 = vadd.f32 %v4404_v4, %v8262_v26  ;;  %v4462_v29 = vmax.f32 %v5171_v47, 0.0  ;;  %v4182_v16 = vpop.f32.mrb[90].mxu0 }
 0x3cc   : > { %v4527_v57 = vmax.f32 %v8264_v49, %v4511_v63  ;;  %v4463_v45 = vmax.f32 %v5186_v50, 0.0  ;;  %v5172_v31 = vadd.f32 %v4182_v16, %v8272_v13  ;;  %v4184_v43 = vpop.f32.mrb[91].mxu0 }
 0x3cd   : > { %4587 = vst [vmem:[%s8320_s11 + $0x10] sm:$0xff] %v4836_v25  ;;  %v4528_v10 = vmax.f32 %v8268_v48, %v4512_v32  ;;  %v4464_v42 = vmax.f32 %v5187_v8, 0.0  ;;  %v4408_v20 = vpop.f32.mrb[90].mxu1  ;;  %v5173_v49 = vadd.f32 %v4184_v43, %v8272_v13 }
 0x3ce   : > { %v4513_v58 = vmax.f32 %v4461_v30, %v4463_v45  ;;  %v5188_v46 = vadd.f32 %v4408_v20, %v8272_v13  ;;  %v4410_v53 = vpop.f32.mrb[91].mxu1  ;;  %v4469_v15 = vmax.f32 %v5172_v31, 0.0 }
 0x3cf   : > { %v4837_v26 = vpack.c.bf16 %v4528_v10, %v4527_v57  ;;  %v4514_v11 = vmax.f32 %v4462_v29, %v4464_v42  ;;  %v5189_v27 = vadd.f32 %v4410_v53, %v8272_v13  ;;  %v4470_v12 = vmax.f32 %v5173_v49, 0.0  ;;  %v4188_v34 = vpop.f32.mrb[92].mxu0 }
 0x3d0   : > { %v4529_v48 = vmax.f32 %v8274_v21, %v4513_v58  ;;  %v4471_v24 = vmax.f32 %v5188_v46, 0.0  ;;  %v5174_v7 = vadd.f32 %v4188_v34, %v8282_v44  ;;  %v4190_v56 = vpop.f32.mrb[93].mxu0 }
 0x3d1   : > { %4588 = vst [vmem:[%s8320_s11 + $0x18] sm:$0xff] %v4837_v26  ;;  %v4530_v52 = vmax.f32 %v8278_v35, %v4514_v11  ;;  %v4472_v3 = vmax.f32 %v5189_v27, 0.0  ;;  %v4414_v59 = vpop.f32.mrb[92].mxu1  ;;  %v5175_v21 = vadd.f32 %v4190_v56, %v8282_v44 }
 0x3d2   : > { %v4515_v6 = vmax.f32 %v4469_v15, %v4471_v24  ;;  %v5190_v61 = vadd.f32 %v4414_v59, %v8282_v44  ;;  %v4416_v36 = vpop.f32.mrb[93].mxu1  ;;  %v4477_v1 = vmax.f32 %v5174_v7, 0.0 }
 0x3d3   : > { %v4838_v13 = vpack.c.bf16 %v4530_v52, %v4529_v48  ;;  %v4516_v2 = vmax.f32 %v4470_v12, %v4472_v3  ;;  %v5191_v54 = vadd.f32 %v4416_v36, %v8282_v44  ;;  %v4478_v38 = vmax.f32 %v5175_v21, 0.0  ;;  %v4194_v5 = vpop.f32.mrb[94].mxu0 }
 0x3d4   : > { %v4531_v35 = vmax.f32 %v8284_v19, %v4515_v6  ;;  %v4479_v17 = vmax.f32 %v5190_v61, 0.0  ;;  %v5176_v28 = vadd.f32 %v4194_v5, %v8292_v40  ;;  %v4196_v9 = vpop.f32.mrb[95].mxu0 }
 0x3d5   : > { %4589 = vst [vmem:[%s8320_s11 + $0x20] sm:$0xff] %v4838_v13  ;;  %v4532_v41 = vmax.f32 %v8288_v22, %v4516_v2  ;;  %v4480_v33 = vmax.f32 %v5191_v54, 0.0  ;;  %v4420_v39 = vpop.f32.mrb[94].mxu1  ;;  %v5177_v63 = vadd.f32 %v4196_v9, %v8292_v40 }
 0x3d6   : > { %v4517_v18 = vmax.f32 %v4477_v1, %v4479_v17  ;;  %v5192_v14 = vadd.f32 %v4420_v39, %v8292_v40  ;;  %v4422_v23 = vpop.f32.mrb[95].mxu1  ;;  %v4485_v50 = vmax.f32 %v5176_v28, 0.0 }
 0x3d7   : > { %v4839_v44 = vpack.c.bf16 %v4532_v41, %v4531_v35  ;;  %v4518_v19 = vmax.f32 %v4478_v38, %v4480_v33  ;;  %v5193_v22 = vadd.f32 %v4422_v23, %v8292_v40  ;;  %v4486_v25 = vmax.f32 %v5177_v63, 0.0 }
 0x3d8   : > { %v4533_v37 = vmax.f32 %v8294_v55, %v4517_v18  ;;  %v4487_v60 = vmax.f32 %v5192_v14, 0.0 }
 0x3d9   : > { %4590 = vst [vmem:[%s8320_s11 + $0x28] sm:$0xff] %v4839_v44  ;;  %v4534_v4 = vmax.f32 %v8298_v51, %v4518_v19  ;;  %v4488_v32 = vmax.f32 %v5193_v22, 0.0 }
 0x3da   : > { %v4519_v47 = vmax.f32 %v4485_v50, %v4487_v60 }
 0x3db   : > { %v4840_v8 = vpack.c.bf16 %v4534_v4, %v4533_v37  ;;  %v4520_v57 = vmax.f32 %v4486_v25, %v4488_v32 }
 0x3dc   : > { %v4535_v30 = vmax.f32 %v8302_v0, %v4519_v47 }
 0x3dd   : > { %4591 = vst [vmem:[%s8320_s11 + $0x30] sm:$0xff] %v4840_v8  ;;  %v4536_v45 = vmax.f32 %v8304_v62, %v4520_v57 }
 0x3df   : > { %v4841_v10 = vpack.c.bf16 %v4536_v45, %v4535_v30 }
 0x3e1   : > { %4592 = vst [vmem:[%s8320_s11 + $0x38] sm:$0xff] %v4841_v10 }
 0x3e2 PF: > { %s16_s21 = sadd.s32 1, %s5288_s21  }
 0x3e3   : > { %p13_p4 = scmp.ge.s32.totalorder %s16_s21, 4  }
 0x3e5   :  { %15 = sbr.rel (!%p13_p4) target bundleno = 1 (0x1), region = 82 }

// kernel: anime_cnn_forward.3
= control target key start
LH: loop header
LB: loop body
LE: loop exit
PB: predicated region body
PF: predicated region fallthrough
CT: control target
= control target key end

     0   :  { %s15732_s18 = smov 0   ;;  %s17104_s0 = inlined_call_operand.vmem [shape: bf16[2,16384], index: 0, kind: input, shape index: {}]   ;;  %s17105_s1 = inlined_call_operand.vmem [shape: bf16[2,16384,64], index: 1, kind: input, shape index: {}]   ;;  %s17106_s2 = inlined_call_operand.vmem [shape: f32[2,1,64], index: 2, kind: input, shape index: {}]   ;;  %s17107_s3 = inlined_call_operand.vmem [shape: f32[2,64,128], index: 3, kind: input, shape index: {}]   ;;  %s17108_s4 = inlined_call_operand.vmem [shape: f32[2,1,128], index: 4, kind: input, shape index: {}]   ;;  %s17109_s5 = inlined_call_operand.vmem [shape: f32[2,2,128], index: 5, kind: output, shape index: {}]  }
   0x1 LB: > { %s12149_s19 = sadd.s32 4294967295, %s15696_s18   ;;  %p12153_p0 = scmp.ge.s32.totalorder %s15696_s18, 1  ;;  %s15696_s18 = sphi %s15732_s18, %s15_s18  }
   0x2   : > { %p213_p1 = scmp.lt.s32.totalorder %s15696_s18, 3 }
   0x4   : > { %p214_p2 = pnand %p12153_p0, %p213_p1 }
   0x5   : > { %p251_p3 = scmp.lt.s32.totalorder (!%p214_p2), %s12149_s19, 1  ;;  %v2363_v0 = vlaneseq (!%p214_p2)  ;;  %v15698_v1 = vmov (!%p214_p2), 1966171168   ;;  %v272_v5 = vld [vmem:[%s17104_s0] sm:$0xff] (!%p214_p2)  ;;  %vm15700_vm0 = vmmov (!%p214_p2), 0   ;;  %vm11991_vm1 = vcmask (!%p214_p2), 523264  }
   0x6   : > { %217 = sbr.rel (%p214_p2) target bundleno = 1478 (0x5c6), region = 40  ;;  %v2361_v2 = vunpack.c.l.s4 (!%p214_p2), %v15698_v1  ;;  %v2359_v30 = vcombine.high (!%p214_p2), %v272_v5, %v272_v5 }
   0x7   : > { %v2364_v3 = vshrl.u32 (!%p214_p2), %v2363_v0, 7 }
   0x8   : > { %v2362_v4 = vunpack.c.0.s8 (!%p214_p2), %v2361_v2 }
   0xa   : > { %v15751_v6 = vsub.s32 (!%p214_p2), %v2362_v4, %v2364_v3  ;;  %v15820_v4 = vld [vmem:[%s17104_s0 + $0x8] sm:$0xff] (!%p214_p2) }
   0xc   : > { %v15756_v9 = vrot.slane (!%p214_p2), %v272_v5, %v15751_v6  ;;  %v15783_v35 = vrot.slane (!%p214_p2), %v2359_v30, %v15751_v6 }
   0xd   : > { %s17111_s19 = smov (!%p251_p3, %s12149_s19), 1 }
   0xe   : > { %s13188_s20 = sshll.u32 %s17111_s19, 13  ;;  %v2374_v12 = vcombine.high %v15756_v9, %v15756_v9  ;;  %v2375_v40 = vcombine.high %v15783_v35, %v15783_v35  ;;  %v2382_v43 = vrot.slane %v15756_v9, %v15751_v6  ;;  %s258_s9 = scalar_lea.vmem %s17106_s2, %s17111_s19 }
   0xf   : > { %s15749_s25 = scalar_lea.vmem %s17105_s1, %s13188_s20  ;;  %s266_s17 = scalar_lea.vmem %s17108_s4, %s17111_s19 }
  0x10   : > { %v14650_v7 = vld [vmem:[%s15749_s25 + $0x40] sm:$0xff]   ;;  %v14654_v13 = vld [vmem:[%s15749_s25 + $0x48] sm:$0xff]   ;;  %v2396_v15 = vrot.slane %v2374_v12, %v15751_v6  ;;  %v14658_v19 = vld [vmem:[%s15749_s25 + $0x50] sm:$0xff]   ;;  %v2403_v46 = vrot.slane %v2375_v40, %v15751_v6  ;;  %v2404_v48 = vcombine.high %v2382_v43, %v2382_v43  ;;  %s12158_s20 = sshll.u32 %s17111_s19, 1 }
  0x11   : > { %v14651_v8 = vld [vmem:[%s15749_s25 + $0xc0] sm:$0xff]   ;;  %13190 = vmatprep.subr.bf16.mxu0 %v14650_v7  ;;  %v14655_v14 = vld [vmem:[%s15749_s25 + $0xc8] sm:$0xff]   ;;  %v14659_v20 = vld [vmem:[%s15749_s25 + $0xd0] sm:$0xff]   ;;  %s270_s23 = scalar_lea.vmem %s17109_s5, %s12158_s20 }
  0x12   : > { %v14652_v10 = vld [vmem:[%s15749_s25] sm:$0xff]   ;;  %13212 = vmatprep.subr.bf16.mxu1 %v14651_v8  ;;  %v14656_v16 = vld [vmem:[%s15749_s25 + $0x8] sm:$0xff]   ;;  %9447 = vmatprep.mubr.bf16.mxu0 %v2396_v15  ;;  %v2406_v18 = vcombine.high %v2396_v15, %v2396_v15  ;;  %v14660_v21 = vld [vmem:[%s15749_s25 + $0x10] sm:$0xff]   ;;  %v2407_v52 = vcombine.high %v2403_v46, %v2403_v46 }
  0x13   : > { %v14653_v11 = vld [vmem:[%s15749_s25 + $0x80] sm:$0xff]   ;;  %13191 = vmatpush3.bf16.msra.mxu0 %v14652_v10  ;;  %v14657_v17 = vld [vmem:[%s15749_s25 + $0x88] sm:$0xff]   ;;  %v14661_v22 = vld [vmem:[%s15749_s25 + $0x90] sm:$0xff]  }
  0x14   : > { %13213 = vmatpush3.bf16.msra.mxu1 %v14653_v11  ;;  %13192 = vmatprep.subr.bf16.mxu0 %v14654_v13  ;;  %v14662_v23 = vld [vmem:[%s15749_s25 + $0x58] sm:$0xff]   ;;  %v14666_v27 = vld [vmem:[%s15749_s25 + $0x60] sm:$0xff]   ;;  %v14670_v32 = vld [vmem:[%s15749_s25 + $0x68] sm:$0xff]   ;;  %v15829_v11 = vrot.slane %v15820_v4, %v15751_v6 }
  0x15   : > { %13214 = vmatprep.subr.bf16.mxu1 %v14655_v14  ;;  %9487 = vmatprep.mubr.bf16.mxu1 %v2406_v18  ;;  %v14663_v24 = vld [vmem:[%s15749_s25 + $0xd8] sm:$0xff]   ;;  %v14667_v28 = vld [vmem:[%s15749_s25 + $0xe0] sm:$0xff]   ;;  %v14671_v33 = vld [vmem:[%s15749_s25 + $0xe8] sm:$0xff]  }
  0x16   : > { %v14664_v25 = vld [vmem:[%s15749_s25 + $0x18] sm:$0xff]   ;;  %v14668_v29 = vld [vmem:[%s15749_s25 + $0x20] sm:$0xff]   ;;  %v14672_v34 = vld [vmem:[%s15749_s25 + $0x28] sm:$0xff]  }
  0x17   : > { %13193 = vmatpush3.bf16.msra.mxu0 %v14656_v16  ;;  %v14665_v26 = vld [vmem:[%s15749_s25 + $0x98] sm:$0xff]   ;;  %v14669_v31 = vld [vmem:[%s15749_s25 + $0xa0] sm:$0xff]   ;;  %v14673_v36 = vld [vmem:[%s15749_s25 + $0xa8] sm:$0xff]   ;;  %v2423_v16 = vcombine.high %v15829_v11, %v15829_v11 }
  0x18   : > { %13215 = vmatpush3.bf16.msra.mxu1 %v14657_v17  ;;  %13194 = vmatprep.subr.bf16.mxu0 %v14658_v19  ;;  %v14674_v37 = vld [vmem:[%s15749_s25 + $0x70] sm:$0xff]   ;;  %v14678_v42 = vld [vmem:[%s15749_s25 + $0x78] sm:$0xff]   ;;  %v14683_v49 = vld [vmem:[%s15749_s25 + $0x140] sm:$0xff]   ;;  %v2389_v19 = vrot.slane %v15783_v35, %v15751_v6 }
  0x19   : > { %13216 = vmatprep.subr.bf16.mxu1 %v14659_v20  ;;  %v14675_v38 = vld [vmem:[%s15749_s25 + $0xf0] sm:$0xff]   ;;  %v14679_v44 = vld [vmem:[%s15749_s25 + $0xf8] sm:$0xff]   ;;  %v14684_v50 = vld [vmem:[%s15749_s25 + $0x1c0] sm:$0xff]  }
  0x1a   : > { %v14676_v39 = vld [vmem:[%s15749_s25 + $0x30] sm:$0xff]   ;;  %v14680_v45 = vld [vmem:[%s15749_s25 + $0x38] sm:$0xff]   ;;  %v14685_v51 = vld [vmem:[%s15749_s25 + $0x100] sm:$0xff]  }
  0x1b   : > { %13195 = vmatpush3.bf16.msra.mxu0 %v14660_v21  ;;  %v14677_v41 = vld [vmem:[%s15749_s25 + $0xb0] sm:$0xff]   ;;  %v14681_v47 = vld [vmem:[%s15749_s25 + $0xb8] sm:$0xff]   ;;  %v14686_v53 = vld [vmem:[%s15749_s25 + $0x180] sm:$0xff]  }
  0x1c   : > { %13217 = vmatpush3.bf16.msra.mxu1 %v14661_v22  ;;  %13196 = vmatprep.subr.bf16.mxu0 %v14662_v23  ;;  %v14687_v54 = vld [vmem:[%s15749_s25 + $0x148] sm:$0xff]   ;;  %v14691_v58 = vld [vmem:[%s15749_s25 + $0x150] sm:$0xff]   ;;  %v14695_v62 = vld [vmem:[%s15749_s25 + $0x158] sm:$0xff]   ;;  %v2445_v22 = vrot.slane %v2423_v16, %v15751_v6 }
  0x1d   : > { %13218 = vmatprep.subr.bf16.mxu1 %v14663_v24  ;;  %v14688_v55 = vld [vmem:[%s15749_s25 + $0x1c8] sm:$0xff]   ;;  %v14692_v59 = vld [vmem:[%s15749_s25 + $0x1d0] sm:$0xff]   ;;  %v14696_v63 = vld [vmem:[%s15749_s25 + $0x1d8] sm:$0xff]   ;;  %v2405_v24 = vcombine.high %v2389_v19, %v2389_v19 }
  0x1e   : > { %v14689_v56 = vld [vmem:[%s15749_s25 + $0x108] sm:$0xff]   ;;  %v14693_v60 = vld [vmem:[%s15749_s25 + $0x110] sm:$0xff]   ;;  %v14697_v0 = vld [vmem:[%s15749_s25 + $0x118] sm:$0xff]  }
  0x1f   : > { %13197 = vmatpush3.bf16.msra.mxu0 %v14664_v25  ;;  %v14690_v57 = vld [vmem:[%s15749_s25 + $0x188] sm:$0xff]   ;;  %v14694_v61 = vld [vmem:[%s15749_s25 + $0x190] sm:$0xff]   ;;  %v14698_v1 = vld [vmem:[%s15749_s25 + $0x198] sm:$0xff]  }
  0x20   : > { %13219 = vmatpush3.bf16.msra.mxu1 %v14665_v26  ;;  %13198 = vmatprep.subr.bf16.mxu0 %v14666_v27  ;;  %v14699_v2 = vld [vmem:[%s15749_s25 + $0x160] sm:$0xff]   ;;  %v14703_v8 = vld [vmem:[%s15749_s25 + $0x168] sm:$0xff]   ;;  %v14707_v13 = vld [vmem:[%s15749_s25 + $0x170] sm:$0xff]  }
  0x21   : > { %13220 = vmatprep.subr.bf16.mxu1 %v14667_v28  ;;  %v14700_v3 = vld [vmem:[%s15749_s25 + $0x1e0] sm:$0xff]   ;;  %v14704_v9 = vld [vmem:[%s15749_s25 + $0x1e8] sm:$0xff]   ;;  %v14708_v14 = vld [vmem:[%s15749_s25 + $0x1f0] sm:$0xff]   ;;  %v2455_v28 = vcombine.high %v2445_v22, %v2445_v22 }
  0x22   : > { %v14701_v5 = vld [vmem:[%s15749_s25 + $0x120] sm:$0xff]   ;;  %v14705_v10 = vld [vmem:[%s15749_s25 + $0x128] sm:$0xff]   ;;  %v14709_v15 = vld [vmem:[%s15749_s25 + $0x130] sm:$0xff]  }
  0x23   : > { %13199 = vmatpush3.bf16.msra.mxu0 %v14668_v29  ;;  %v14702_v7 = vld [vmem:[%s15749_s25 + $0x1a0] sm:$0xff]   ;;  %v14706_v12 = vld [vmem:[%s15749_s25 + $0x1a8] sm:$0xff]   ;;  %v14710_v17 = vld [vmem:[%s15749_s25 + $0x1b0] sm:$0xff]  }
  0x24   : > { %13221 = vmatpush3.bf16.msra.mxu1 %v14669_v31  ;;  %13200 = vmatprep.subr.bf16.mxu0 %v14670_v32  ;;  %v14711_v18 = vld [vmem:[%s15749_s25 + $0x178] sm:$0xff]   ;;  %v14715_v25 = vld [vmem:[%s15749_s25 + $0x240] sm:$0xff]   ;;  %v14719_v30 = vld [vmem:[%s15749_s25 + $0x248] sm:$0xff]  }
  0x25   : > { %13222 = vmatprep.subr.bf16.mxu1 %v14671_v33  ;;  %v14712_v20 = vld [vmem:[%s15749_s25 + $0x1f8] sm:$0xff]   ;;  %v14716_v26 = vld [vmem:[%s15749_s25 + $0x2c0] sm:$0xff]   ;;  %v14720_v31 = vld [vmem:[%s15749_s25 + $0x2c8] sm:$0xff]  }
  0x26   : > { %v14713_v21 = vld [vmem:[%s15749_s25 + $0x138] sm:$0xff]   ;;  %v14717_v27 = vld [vmem:[%s15749_s25 + $0x200] sm:$0xff]   ;;  %v14721_v32 = vld [vmem:[%s15749_s25 + $0x208] sm:$0xff]  }
  0x27   : > { %13201 = vmatpush3.bf16.msra.mxu0 %v14672_v34  ;;  %v14714_v23 = vld [vmem:[%s15749_s25 + $0x1b8] sm:$0xff]   ;;  %v14718_v29 = vld [vmem:[%s15749_s25 + $0x280] sm:$0xff]   ;;  %v14722_v33 = vld [vmem:[%s15749_s25 + $0x288] sm:$0xff]  }
  0x28   : > { %13223 = vmatpush3.bf16.msra.mxu1 %v14673_v36  ;;  %13202 = vmatprep.subr.bf16.mxu0 %v14674_v37  ;;  %v14723_v34 = vld [vmem:[%s15749_s25 + $0x250] sm:$0xff]   ;;  %v14729_v40 = vld [vmem:[%s15749_s25 + $0x218] sm:$0xff]  }
  0x29   : > { %13224 = vmatprep.subr.bf16.mxu1 %v14675_v38  ;;  %v14724_v35 = vld [vmem:[%s15749_s25 + $0x2d0] sm:$0xff]   ;;  %v14727_v38 = vld [vmem:[%s15749_s25 + $0x258] sm:$0xff]  }
  0x2a   : > { %v14725_v36 = vld [vmem:[%s15749_s25 + $0x210] sm:$0xff]   ;;  %v14761_v16 = vld [vmem:[%s15749_s25 + $0x318] sm:$0xff]  }
  0x2b   : > { %13203 = vmatpush3.bf16.msra.mxu0 %v14676_v39  ;;  %v14726_v37 = vld [vmem:[%s15749_s25 + $0x290] sm:$0xff]   ;;  %v14728_v39 = vld [vmem:[%s15749_s25 + $0x2d8] sm:$0xff]  }
  0x2c   : > { %13225 = vmatpush3.bf16.msra.mxu1 %v14677_v41  ;;  %13204 = vmatprep.subr.bf16.mxu0 %v14678_v42  ;;  %v14730_v41 = vld [vmem:[%s15749_s25 + $0x298] sm:$0xff]   ;;  %v14731_v42 = vld [vmem:[%s15749_s25 + $0x260] sm:$0xff]  }
  0x2d   : > { %13226 = vmatprep.subr.bf16.mxu1 %v14679_v44  ;;  %v14733_v44 = vld [vmem:[%s15749_s25 + $0x220] sm:$0xff]  }
  0x2f   : > { %13205 = vmatpush3.bf16.msra.mxu0 %v14680_v45  ;;  %v2408_v45 = vcombine.high %v15820_v4, %v15820_v4  ;;  %v14750_v4 = vld [vmem:[%s15749_s25 + $0x380] sm:$0xff]  }
  0x30   : > { %13227 = vmatpush3.bf16.msra.mxu1 %v14681_v47  ;;  %13234 = vmatprep.subr.bf16.mxu0 %v14683_v49  ;;  %v14735_v47 = vld [vmem:[%s15749_s25 + $0x268] sm:$0xff]  }
  0x31   : > { %13256 = vmatprep.subr.bf16.mxu1 %v14684_v50  ;;  %v14737_v49 = vld [vmem:[%s15749_s25 + $0x228] sm:$0xff]   ;;  %v15871_v50 = vrot.slane %v2408_v45, %v15751_v6  ;;  %v14789_v45 = vld [vmem:[%s15749_s25 + $0x4d0] sm:$0xff]  }
  0x32   : > { %9448 = vmatmul.mubr.bf16.vlgmr.msra.gmra.mrb[0].mxu0 %v2382_v43  ;;  %v14732_v43 = vld [vmem:[%s15749_s25 + $0x2e0] sm:$0xff]  }
  0x33   : > { %9488 = vmatmul.mubr.bf16.vlgmr.msra.gmra.mrb[0].mxu1 %v2404_v48  ;;  %13235 = vmatpush3.bf16.msra.mxu0 %v14685_v51  ;;  %v14736_v48 = vld [vmem:[%s15749_s25 + $0x2e8] sm:$0xff]  }
  0x34   : > { %13257 = vmatpush3.bf16.msra.mxu1 %v14686_v53  ;;  %9527 = vmatprep.mubr.bf16.mxu0 %v2403_v46  ;;  %v14734_v46 = vld [vmem:[%s15749_s25 + $0x2a0] sm:$0xff]   ;;  %v14738_v51 = vld [vmem:[%s15749_s25 + $0x2a8] sm:$0xff]   ;;  %v14740_v53 = vld [vmem:[%s15749_s25 + $0x2f0] sm:$0xff]  }
  0x35   : > { %13236 = vmatprep.subr.bf16.mxu0 %v14687_v54  ;;  %9567 = vmatprep.mubr.bf16.mxu1 %v2407_v52  ;;  %v14739_v52 = vld [vmem:[%s15749_s25 + $0x270] sm:$0xff]  }
  0x36   : > { %13258 = vmatprep.subr.bf16.mxu1 %v14688_v55  ;;  %v14741_v54 = vld [vmem:[%s15749_s25 + $0x230] sm:$0xff]   ;;  %v2424_v55 = vcombine.high %v15871_v50, %v15871_v50 }
  0x37   : > { %13237 = vmatpush3.bf16.msra.mxu0 %v14689_v56  ;;  %v14742_v56 = vld [vmem:[%s15749_s25 + $0x2b0] sm:$0xff]  }
  0x38   : > { %13259 = vmatpush3.bf16.msra.mxu1 %v14690_v57  ;;  %13238 = vmatprep.subr.bf16.mxu0 %v14691_v58  ;;  %v14743_v57 = vld [vmem:[%s15749_s25 + $0x278] sm:$0xff]   ;;  %v2431_v58 = vrot.slane %v15829_v11, %v15751_v6  ;;  %v14756_v11 = vld [vmem:[%s15749_s25 + $0x3d0] sm:$0xff]  }
  0x39   : > { %13260 = vmatprep.subr.bf16.mxu1 %v14692_v59  ;;  %v14744_v59 = vld [vmem:[%s15749_s25 + $0x2f8] sm:$0xff]  }
  0x3b   : > { %13239 = vmatpush3.bf16.msra.mxu0 %v14693_v60  ;;  %v14745_v60 = vld [vmem:[%s15749_s25 + $0x238] sm:$0xff]  }
  0x3c   : > { %13261 = vmatpush3.bf16.msra.mxu1 %v14694_v61  ;;  %13240 = vmatprep.subr.bf16.mxu0 %v14695_v62  ;;  %v2452_v61 = vrot.slane %v2424_v55, %v15751_v6  ;;  %v14746_v62 = vld [vmem:[%s15749_s25 + $0x2b8] sm:$0xff]   ;;  %v14799_v55 = vld [vmem:[%s15749_s25 + $0x4a0] sm:$0xff]  }
  0x3d   : > { %13262 = vmatprep.subr.bf16.mxu1 %v14696_v63  ;;  %v2453_v63 = vcombine.high %v2431_v58, %v2431_v58 }
  0x3f   : > { %13241 = vmatpush3.bf16.msra.mxu0 %v14697_v0  ;;  %v14747_v0 = vld [vmem:[%s15749_s25 + $0x340] sm:$0xff]  }
  0x40   : > { %13263 = vmatpush3.bf16.msra.mxu1 %v14698_v1  ;;  %13242 = vmatprep.subr.bf16.mxu0 %v14699_v2  ;;  %v14748_v1 = vld [vmem:[%s15749_s25 + $0x3c0] sm:$0xff]  }
  0x41   : > { %13264 = vmatprep.subr.bf16.mxu1 %v14700_v3  ;;  %v14749_v2 = vld [vmem:[%s15749_s25 + $0x300] sm:$0xff]   ;;  %v2456_v3 = vcombine.high %v2452_v61, %v2452_v61 }
  0x43   : > { %13243 = vmatpush3.bf16.msra.mxu0 %v14701_v5  ;;  %v14751_v5 = vld [vmem:[%s15749_s25 + $0x348] sm:$0xff]  }
  0x44   : > { %13265 = vmatpush3.bf16.msra.mxu1 %v14702_v7  ;;  %13244 = vmatprep.subr.bf16.mxu0 %v14703_v8  ;;  %v14752_v7 = vld [vmem:[%s15749_s25 + $0x3c8] sm:$0xff]  }
  0x45   : > { %13266 = vmatprep.subr.bf16.mxu1 %v14704_v9  ;;  %v14753_v8 = vld [vmem:[%s15749_s25 + $0x308] sm:$0xff]  }
  0x46   : > { %v14754_v9 = vld [vmem:[%s15749_s25 + $0x388] sm:$0xff]  }
  0x47   : > { %13245 = vmatpush3.bf16.msra.mxu0 %v14705_v10  ;;  %v14755_v10 = vld [vmem:[%s15749_s25 + $0x350] sm:$0xff]  }
  0x48   : > { %13267 = vmatpush3.bf16.msra.mxu1 %v14706_v12  ;;  %13246 = vmatprep.subr.bf16.mxu0 %v14707_v13  ;;  %v14757_v12 = vld [vmem:[%s15749_s25 + $0x310] sm:$0xff]  }
  0x49   : > { %13268 = vmatprep.subr.bf16.mxu1 %v14708_v14  ;;  %v14758_v13 = vld [vmem:[%s15749_s25 + $0x390] sm:$0xff]   ;;  %v14759_v14 = vld [vmem:[%s15749_s25 + $0x358] sm:$0xff]  }
  0x4b   : > { %13247 = vmatpush3.bf16.msra.mxu0 %v14709_v15  ;;  %v14760_v15 = vld [vmem:[%s15749_s25 + $0x3d8] sm:$0xff]  }
  0x4c   : > { %13269 = vmatpush3.bf16.msra.mxu1 %v14710_v17  ;;  %13248 = vmatprep.subr.bf16.mxu0 %v14711_v18  ;;  %v14762_v17 = vld [vmem:[%s15749_s25 + $0x398] sm:$0xff]   ;;  %v14763_v18 = vld [vmem:[%s15749_s25 + $0x360] sm:$0xff]  }
  0x4d   : > { %13270 = vmatprep.subr.bf16.mxu1 %v14712_v20  ;;  %v14765_v20 = vld [vmem:[%s15749_s25 + $0x320] sm:$0xff]  }
  0x4f   : > { %13249 = vmatpush3.bf16.msra.mxu0 %v14713_v21  ;;  %v14766_v21 = vld [vmem:[%s15749_s25 + $0x3a0] sm:$0xff]  }
  0x50   : > { %13271 = vmatpush3.bf16.msra.mxu1 %v14714_v23  ;;  %13278 = vmatprep.subr.bf16.mxu0 %v14715_v25  ;;  %v14768_v23 = vld [vmem:[%s15749_s25 + $0x3e8] sm:$0xff]  }
  0x51   : > { %13300 = vmatprep.subr.bf16.mxu1 %v14716_v26  ;;  %v14770_v25 = vld [vmem:[%s15749_s25 + $0x3a8] sm:$0xff]   ;;  %v14771_v26 = vld [vmem:[%s15749_s25 + $0x370] sm:$0xff]  }
  0x52   : > { %9528 = vmatmul.mubr.bf16.vlgmr.msra.gmra.mrb[4].mxu0 %v2389_v19  ;;  %v14764_v19 = vld [vmem:[%s15749_s25 + $0x3e0] sm:$0xff]  }
  0x53   : > { %9568 = vmatmul.mubr.bf16.vlgmr.msra.gmra.mrb[4].mxu1 %v2405_v24  ;;  %13279 = vmatpush3.bf16.msra.mxu0 %v14717_v27  ;;  %v14769_v24 = vld [vmem:[%s15749_s25 + $0x328] sm:$0xff]   ;;  %v14772_v27 = vld [vmem:[%s15749_s25 + $0x3f0] sm:$0xff]  }
  0x54   : > { %13301 = vmatpush3.bf16.msra.mxu1 %v14718_v29  ;;  %9607 = vmatprep.mubr.bf16.mxu0 %v2445_v22  ;;  %v14767_v22 = vld [vmem:[%s15749_s25 + $0x368] sm:$0xff]   ;;  %v14774_v29 = vld [vmem:[%s15749_s25 + $0x3b0] sm:$0xff]  }
  0x55   : > { %13280 = vmatprep.subr.bf16.mxu0 %v14719_v30  ;;  %9647 = vmatprep.mubr.bf16.mxu1 %v2455_v28  ;;  %v14773_v28 = vld [vmem:[%s15749_s25 + $0x330] sm:$0xff]   ;;  %v14775_v30 = vld [vmem:[%s15749_s25 + $0x378] sm:$0xff]  }
  0x56   : > { %13302 = vmatprep.subr.bf16.mxu1 %v14720_v31  ;;  %v2438_v31 = vrot.slane %v15871_v50, %v15751_v6  ;;  %v14794_v50 = vld [vmem:[%s15749_s25 + $0x418] sm:$0xff]  }
  0x57   : > { %13281 = vmatpush3.bf16.msra.mxu0 %v14721_v32  ;;  %v14776_v32 = vld [vmem:[%s15749_s25 + $0x3f8] sm:$0xff]  }
  0x58   : > { %13303 = vmatpush3.bf16.msra.mxu1 %v14722_v33  ;;  %13282 = vmatprep.subr.bf16.mxu0 %v14723_v34  ;;  %v14777_v33 = vld [vmem:[%s15749_s25 + $0x338] sm:$0xff]  }
  0x59   : > { %13304 = vmatprep.subr.bf16.mxu1 %v14724_v35  ;;  %v14778_v34 = vld [vmem:[%s15749_s25 + $0x3b8] sm:$0xff]   ;;  %v2454_v35 = vcombine.high %v2438_v31, %v2438_v31 }
  0x5b   : > { %13283 = vmatpush3.bf16.msra.mxu0 %v14725_v36  ;;  %v14780_v36 = vld [vmem:[%s15749_s25 + $0x440] sm:$0xff]  }
  0x5c   : > { %13305 = vmatpush3.bf16.msra.mxu1 %v14726_v37  ;;  %13284 = vmatprep.subr.bf16.mxu0 %v14727_v38  ;;  %v14781_v37 = vld [vmem:[%s15749_s25 + $0x4c0] sm:$0xff]  }
  0x5d   : > { %13306 = vmatprep.subr.bf16.mxu1 %v14728_v39  ;;  %v14782_v38 = vld [vmem:[%s15749_s25 + $0x400] sm:$0xff]  }
  0x5e   : > { %v14783_v39 = vld [vmem:[%s15749_s25 + $0x480] sm:$0xff]  }
  0x5f   : > { %13285 = vmatpush3.bf16.msra.mxu0 %v14729_v40  ;;  %v14784_v40 = vld [vmem:[%s15749_s25 + $0x448] sm:$0xff]  }
  0x60   : > { %13307 = vmatpush3.bf16.msra.mxu1 %v14730_v41  ;;  %13286 = vmatprep.subr.bf16.mxu0 %v14731_v42  ;;  %v14785_v41 = vld [vmem:[%s15749_s25 + $0x4c8] sm:$0xff]  }
  0x61   : > { %13308 = vmatprep.subr.bf16.mxu1 %v14732_v43  ;;  %v14786_v42 = vld [vmem:[%s15749_s25 + $0x408] sm:$0xff]  }
  0x62   : > { %v14787_v43 = vld [vmem:[%s15749_s25 + $0x488] sm:$0xff]  }
  0x63   : > { %13287 = vmatpush3.bf16.msra.mxu0 %v14733_v44  ;;  %v14788_v44 = vld [vmem:[%s15749_s25 + $0x450] sm:$0xff]  }
  0x64   : > { %13309 = vmatpush3.bf16.msra.mxu1 %v14734_v46  ;;  %13288 = vmatprep.subr.bf16.mxu0 %v14735_v47  ;;  %v14790_v46 = vld [vmem:[%s15749_s25 + $0x410] sm:$0xff]  }
  0x65   : > { %13310 = vmatprep.subr.bf16.mxu1 %v14736_v48  ;;  %v14791_v47 = vld [vmem:[%s15749_s25 + $0x490] sm:$0xff]   ;;  %v14792_v48 = vld [vmem:[%s15749_s25 + $0x458] sm:$0xff]  }
  0x67   : > { %13289 = vmatpush3.bf16.msra.mxu0 %v14737_v49  ;;  %v14793_v49 = vld [vmem:[%s15749_s25 + $0x4d8] sm:$0xff]  }
  0x68   : > { %13311 = vmatpush3.bf16.msra.mxu1 %v14738_v51  ;;  %13290 = vmatprep.subr.bf16.mxu0 %v14739_v52  ;;  %v14795_v51 = vld [vmem:[%s15749_s25 + $0x498] sm:$0xff]   ;;  %v14796_v52 = vld [vmem:[%s15749_s25 + $0x460] sm:$0xff]  }
  0x69   : > { %13312 = vmatprep.subr.bf16.mxu1 %v14740_v53  ;;  %v14797_v53 = vld [vmem:[%s15749_s25 + $0x4e0] sm:$0xff]  }
  0x6b   : > { %13291 = vmatpush3.bf16.msra.mxu0 %v14741_v54  ;;  %v14798_v54 = vld [vmem:[%s15749_s25 + $0x420] sm:$0xff]  }
  0x6c   : > { %13313 = vmatpush3.bf16.msra.mxu1 %v14742_v56  ;;  %13292 = vmatprep.subr.bf16.mxu0 %v14743_v57  ;;  %v14800_v56 = vld [vmem:[%s15749_s25 + $0x468] sm:$0xff]  }
  0x6d   : > { %13314 = vmatprep.subr.bf16.mxu1 %v14744_v59  ;;  %v14801_v57 = vld [vmem:[%s15749_s25 + $0x4e8] sm:$0xff]  }
  0x6e   : > { %v14803_v59 = vld [vmem:[%s15749_s25 + $0x4a8] sm:$0xff]  }
  0x6f   : > { %13293 = vmatpush3.bf16.msra.mxu0 %v14745_v60  ;;  %v14804_v60 = vld [vmem:[%s15749_s25 + $0x470] sm:$0xff]  }
  0x70   : > { %13315 = vmatpush3.bf16.msra.mxu1 %v14746_v62  ;;  %13322 = vmatprep.subr.bf16.mxu0 %v14747_v0  ;;  %v14806_v62 = vld [vmem:[%s15749_s25 + $0x430] sm:$0xff]   ;;  %v14808_v0 = vld [vmem:[%s15749_s25 + $0x478] sm:$0xff]  }
  0x71   : > { %13344 = vmatprep.subr.bf16.mxu1 %v14748_v1  ;;  %v14809_v1 = vld [vmem:[%s15749_s25 + $0x4f8] sm:$0xff]  }
  0x72   : > { %9608 = vmatmul.mubr.bf16.vlgmr.msra.gmra.mrb[8].mxu0 %v2431_v58  ;;  %v14802_v58 = vld [vmem:[%s15749_s25 + $0x428] sm:$0xff]  }
  0x73   : > { %9648 = vmatmul.mubr.bf16.vlgmr.msra.gmra.mrb[8].mxu1 %v2453_v63  ;;  %13323 = vmatpush3.bf16.msra.mxu0 %v14749_v2  ;;  %v14807_v63 = vld [vmem:[%s15749_s25 + $0x4b0] sm:$0xff]   ;;  %v14810_v2 = vld [vmem:[%s15749_s25 + $0x438] sm:$0xff]  }
  0x74   : > { %13345 = vmatpush3.bf16.msra.mxu1 %v14750_v4  ;;  %9687 = vmatprep.mubr.bf16.mxu0 %v2452_v61  ;;  %v14805_v61 = vld [vmem:[%s15749_s25 + $0x4f0] sm:$0xff]  }
  0x75   : > { %13324 = vmatprep.subr.bf16.mxu0 %v14751_v5  ;;  %9727 = vmatprep.mubr.bf16.mxu1 %v2456_v3  ;;  %v14811_v3 = vld [vmem:[%s15749_s25 + $0x4b8] sm:$0xff]   ;;  %v274_v4 = vld [vmem:[%s17104_s0 + $0x10] sm:$0xff] }
  0x76   : > { %13346 = vmatprep.subr.bf16.mxu1 %v14752_v7  ;;  %v2464_v5 = vrot.slane %v274_v4, %v15751_v6  ;;  %v14812_v7 = vld [vmem:[%s15749_s25 + $0x540] sm:$0xff]  }
  0x77   : > { %13325 = vmatpush3.bf16.msra.mxu0 %v14753_v8  ;;  %v2457_v8 = vcombine.high %v274_v4, %v274_v4  ;;  %v14862_v4 = vld [vmem:[%s15749_s25 + $0x6e0] sm:$0xff]  }
  0x78   : > { %13347 = vmatpush3.bf16.msra.mxu1 %v14754_v9  ;;  %13326 = vmatprep.subr.bf16.mxu0 %v14755_v10  ;;  %v14813_v9 = vld [vmem:[%s15749_s25 + $0x5c0] sm:$0xff]   ;;  %v2472_v10 = vcombine.high %v2464_v5, %v2464_v5 }
  0x79   : > { %13348 = vmatprep.subr.bf16.mxu1 %v14756_v11  ;;  %v2480_v11 = vrot.slane %v2464_v5, %v15751_v6  ;;  %v14863_v5 = vld [vmem:[%s15749_s25 + $0x620] sm:$0xff]  }
  0x7b   : > { %13327 = vmatpush3.bf16.msra.mxu0 %v14757_v12  ;;  %v15961_v12 = vrot.slane %v2457_v8, %v15751_v6  ;;  %v14864_v8 = vld [vmem:[%s15749_s25 + $0x6a0] sm:$0xff]  }
  0x7c   : > { %13349 = vmatpush3.bf16.msra.mxu1 %v14758_v13  ;;  %13328 = vmatprep.subr.bf16.mxu0 %v14759_v14  ;;  %v2494_v13 = vrot.slane %v2472_v10, %v15751_v6  ;;  %v14814_v14 = vld [vmem:[%s15749_s25 + $0x500] sm:$0xff]   ;;  %v14867_v10 = vld [vmem:[%s15749_s25 + $0x628] sm:$0xff]  }
  0x7d   : > { %13350 = vmatprep.subr.bf16.mxu1 %v14760_v15  ;;  %v2473_v15 = vcombine.high %v15961_v12, %v15961_v12 }
  0x7f   : > { %13329 = vmatpush3.bf16.msra.mxu0 %v14761_v16  ;;  %v2502_v16 = vcombine.high %v2480_v11, %v2480_v11 }
  0x80   : > { %13351 = vmatpush3.bf16.msra.mxu1 %v14762_v17  ;;  %13330 = vmatprep.subr.bf16.mxu0 %v14763_v18  ;;  %v14816_v17 = vld [vmem:[%s15749_s25 + $0x548] sm:$0xff]   ;;  %v2504_v18 = vcombine.high %v2494_v13, %v2494_v13 }
  0x81   : > { %13352 = vmatprep.subr.bf16.mxu1 %v14764_v19  ;;  %v14815_v19 = vld [vmem:[%s15749_s25 + $0x580] sm:$0xff]  }
  0x83   : > { %13331 = vmatpush3.bf16.msra.mxu0 %v14765_v20  ;;  %v2501_v20 = vrot.slane %v2473_v15, %v15751_v6  ;;  %v14873_v15 = vld [vmem:[%s15749_s25 + $0x678] sm:$0xff]  }
  0x84   : > { %13353 = vmatpush3.bf16.msra.mxu1 %v14766_v21  ;;  %13332 = vmatprep.subr.bf16.mxu0 %v14767_v22  ;;  %v14817_v21 = vld [vmem:[%s15749_s25 + $0x5c8] sm:$0xff]  }
  0x85   : > { %13354 = vmatprep.subr.bf16.mxu1 %v14768_v23  ;;  %v14818_v22 = vld [vmem:[%s15749_s25 + $0x508] sm:$0xff]   ;;  %v2505_v23 = vcombine.high %v2501_v20, %v2501_v20 }
  0x87   : > { %13333 = vmatpush3.bf16.msra.mxu0 %v14769_v24  ;;  %v14820_v24 = vld [vmem:[%s15749_s25 + $0x550] sm:$0xff]  }
  0x88   : > { %13355 = vmatpush3.bf16.msra.mxu1 %v14770_v25  ;;  %13334 = vmatprep.subr.bf16.mxu0 %v14771_v26  ;;  %v14819_v25 = vld [vmem:[%s15749_s25 + $0x588] sm:$0xff]   ;;  %v14821_v26 = vld [vmem:[%s15749_s25 + $0x5d0] sm:$0xff]  }
  0x89   : > { %13356 = vmatprep.subr.bf16.mxu1 %v14772_v27  ;;  %v14822_v27 = vld [vmem:[%s15749_s25 + $0x510] sm:$0xff]  }
  0x8b   : > { %13335 = vmatpush3.bf16.msra.mxu0 %v14773_v28  ;;  %v14824_v28 = vld [vmem:[%s15749_s25 + $0x558] sm:$0xff]  }
  0x8c   : > { %13357 = vmatpush3.bf16.msra.mxu1 %v14774_v29  ;;  %13336 = vmatprep.subr.bf16.mxu0 %v14775_v30  ;;  %v14823_v29 = vld [vmem:[%s15749_s25 + $0x590] sm:$0xff]   ;;  %v14825_v30 = vld [vmem:[%s15749_s25 + $0x5d8] sm:$0xff]  }
  0x8d   : > { %13358 = vmatprep.subr.bf16.mxu1 %v14776_v32  ;;  %v14828_v32 = vld [vmem:[%s15749_s25 + $0x560] sm:$0xff]  }
  0x8f   : > { %13337 = vmatpush3.bf16.msra.mxu0 %v14777_v33  ;;  %v14827_v33 = vld [vmem:[%s15749_s25 + $0x598] sm:$0xff]  }
  0x90   : > { %13359 = vmatpush3.bf16.msra.mxu1 %v14778_v34  ;;  %13366 = vmatprep.subr.bf16.mxu0 %v14780_v36  ;;  %v14829_v34 = vld [vmem:[%s15749_s25 + $0x5e0] sm:$0xff]   ;;  %v14832_v36 = vld [vmem:[%s15749_s25 + $0x568] sm:$0xff]  }
  0x91   : > { %13388 = vmatprep.subr.bf16.mxu1 %v14781_v37  ;;  %v14831_v37 = vld [vmem:[%s15749_s25 + $0x5a0] sm:$0xff]  }
  0x92   : > { %9688 = vmatmul.mubr.bf16.vlgmr.msra.gmra.mrb[12].mxu0 %v2438_v31  ;;  %v14826_v31 = vld [vmem:[%s15749_s25 + $0x518] sm:$0xff]  }
  0x93   : > { %9728 = vmatmul.mubr.bf16.vlgmr.msra.gmra.mrb[12].mxu1 %v2454_v35  ;;  %13367 = vmatpush3.bf16.msra.mxu0 %v14782_v38  ;;  %v14830_v35 = vld [vmem:[%s15749_s25 + $0x520] sm:$0xff]   ;;  %v14833_v38 = vld [vmem:[%s15749_s25 + $0x5e8] sm:$0xff]  }
  0x94   : > { %13389 = vmatpush3.bf16.msra.mxu1 %v14783_v39  ;;  %13368 = vmatprep.subr.bf16.mxu0 %v14784_v40  ;;  %v14834_v39 = vld [vmem:[%s15749_s25 + $0x528] sm:$0xff]   ;;  %v14836_v40 = vld [vmem:[%s15749_s25 + $0x570] sm:$0xff]  }
  0x95   : > { %13390 = vmatprep.subr.bf16.mxu1 %v14785_v41  ;;  %9767 = vmatprep.mubr.bf16.mxu0 %v2494_v13  ;;  %v14835_v41 = vld [vmem:[%s15749_s25 + $0x5a8] sm:$0xff]   ;;  %v14870_v13 = vld [vmem:[%s15749_s25 + $0x6f0] sm:$0xff]  }
  0x96   : > { %9807 = vmatprep.mubr.bf16.mxu1 %v2504_v18  ;;  %v275_v18 = vld [vmem:[%s17104_s0 + $0x18] sm:$0xff] }
  0x97   : > { %13369 = vmatpush3.bf16.msra.mxu0 %v14786_v42  ;;  %v14837_v42 = vld [vmem:[%s15749_s25 + $0x5f0] sm:$0xff]  }
  0x98   : > { %13391 = vmatpush3.bf16.msra.mxu1 %v14787_v43  ;;  %13370 = vmatprep.subr.bf16.mxu0 %v14788_v44  ;;  %v14838_v43 = vld [vmem:[%s15749_s25 + $0x530] sm:$0xff]   ;;  %v14840_v44 = vld [vmem:[%s15749_s25 + $0x578] sm:$0xff]  }
  0x99   : > { %13392 = vmatprep.subr.bf16.mxu1 %v14789_v45  ;;  %v14839_v45 = vld [vmem:[%s15749_s25 + $0x5b0] sm:$0xff]  }
  0x9b   : > { %13371 = vmatpush3.bf16.msra.mxu0 %v14790_v46  ;;  %v14841_v46 = vld [vmem:[%s15749_s25 + $0x5f8] sm:$0xff]  }
  0x9c   : > { %13393 = vmatpush3.bf16.msra.mxu1 %v14791_v47  ;;  %13372 = vmatprep.subr.bf16.mxu0 %v14792_v48  ;;  %v14842_v47 = vld [vmem:[%s15749_s25 + $0x538] sm:$0xff]   ;;  %v2487_v48 = vrot.slane %v15961_v12, %v15751_v6  ;;  %v14868_v12 = vld [vmem:[%s15749_s25 + $0x6a8] sm:$0xff]  }
  0x9d   : > { %13394 = vmatprep.subr.bf16.mxu1 %v14793_v49  ;;  %v14845_v49 = vld [vmem:[%s15749_s25 + $0x640] sm:$0xff]  }
  0x9f   : > { %13373 = vmatpush3.bf16.msra.mxu0 %v14794_v50  ;;  %v14843_v50 = vld [vmem:[%s15749_s25 + $0x5b8] sm:$0xff]  }
  0xa0   : > { %13395 = vmatpush3.bf16.msra.mxu1 %v14795_v51  ;;  %13374 = vmatprep.subr.bf16.mxu0 %v14796_v52  ;;  %v14846_v51 = vld [vmem:[%s15749_s25 + $0x6c0] sm:$0xff]  }
  0xa1   : > { %13396 = vmatprep.subr.bf16.mxu1 %v14797_v53  ;;  %v14847_v52 = vld [vmem:[%s15749_s25 + $0x600] sm:$0xff]   ;;  %v2503_v53 = vcombine.high %v2487_v48, %v2487_v48 }
  0xa3   : > { %13375 = vmatpush3.bf16.msra.mxu0 %v14798_v54  ;;  %v14849_v54 = vld [vmem:[%s15749_s25 + $0x648] sm:$0xff]  }
  0xa4   : > { %13397 = vmatpush3.bf16.msra.mxu1 %v14799_v55  ;;  %13376 = vmatprep.subr.bf16.mxu0 %v14800_v56  ;;  %v14848_v55 = vld [vmem:[%s15749_s25 + $0x680] sm:$0xff]   ;;  %v14850_v56 = vld [vmem:[%s15749_s25 + $0x6c8] sm:$0xff]  }
  0xa5   : > { %13398 = vmatprep.subr.bf16.mxu1 %v14801_v57  ;;  %v14851_v57 = vld [vmem:[%s15749_s25 + $0x608] sm:$0xff]  }
  0xa7   : > { %13377 = vmatpush3.bf16.msra.mxu0 %v14802_v58  ;;  %v14853_v58 = vld [vmem:[%s15749_s25 + $0x650] sm:$0xff]  }
  0xa8   : > { %13399 = vmatpush3.bf16.msra.mxu1 %v14803_v59  ;;  %13378 = vmatprep.subr.bf16.mxu0 %v14804_v60  ;;  %v14852_v59 = vld [vmem:[%s15749_s25 + $0x688] sm:$0xff]   ;;  %v14854_v60 = vld [vmem:[%s15749_s25 + $0x6d0] sm:$0xff]  }
  0xa9   : > { %13400 = vmatprep.subr.bf16.mxu1 %v14805_v61  ;;  %v14855_v61 = vld [vmem:[%s15749_s25 + $0x610] sm:$0xff]  }
  0xab   : > { %13379 = vmatpush3.bf16.msra.mxu0 %v14806_v62  ;;  %v14857_v62 = vld [vmem:[%s15749_s25 + $0x658] sm:$0xff]  }
  0xac   : > { %13401 = vmatpush3.bf16.msra.mxu1 %v14807_v63  ;;  %13380 = vmatprep.subr.bf16.mxu0 %v14808_v0  ;;  %v14856_v63 = vld [vmem:[%s15749_s25 + $0x690] sm:$0xff]   ;;  %v14858_v0 = vld [vmem:[%s15749_s25 + $0x6d8] sm:$0xff]  }
  0xad   : > { %13402 = vmatprep.subr.bf16.mxu1 %v14809_v1  ;;  %v14859_v1 = vld [vmem:[%s15749_s25 + $0x618] sm:$0xff]  }
  0xaf   : > { %13381 = vmatpush3.bf16.msra.mxu0 %v14810_v2  ;;  %v14861_v2 = vld [vmem:[%s15749_s25 + $0x660] sm:$0xff]  }
  0xb0   : > { %13403 = vmatpush3.bf16.msra.mxu1 %v14811_v3  ;;  %13410 = vmatprep.subr.bf16.mxu0 %v14812_v7  ;;  %v14860_v3 = vld [vmem:[%s15749_s25 + $0x698] sm:$0xff]   ;;  %v14865_v7 = vld [vmem:[%s15749_s25 + $0x668] sm:$0xff]  }
  0xb1   : > { %13432 = vmatprep.subr.bf16.mxu1 %v14813_v9  ;;  %v14866_v9 = vld [vmem:[%s15749_s25 + $0x6e8] sm:$0xff]  }
  0xb2   : > { %9768 = vmatmul.mubr.bf16.vlgmr.msra.gmra.mrb[16].mxu0 %v2480_v11  ;;  %v14869_v11 = vld [vmem:[%s15749_s25 + $0x670] sm:$0xff]  }
  0xb3   : > { %13411 = vmatpush3.bf16.msra.mxu0 %v14814_v14  ;;  %9808 = vmatmul.mubr.bf16.vlgmr.msra.gmra.mrb[16].mxu1 %v2502_v16  ;;  %v14871_v14 = vld [vmem:[%s15749_s25 + $0x630] sm:$0xff]  }
  0xb4   : > { %13412 = vmatprep.subr.bf16.mxu0 %v14816_v17  ;;  %13433 = vmatpush3.bf16.msra.mxu1 %v14815_v19  ;;  %v14872_v16 = vld [vmem:[%s15749_s25 + $0x6b0] sm:$0xff]   ;;  %v14874_v17 = vld [vmem:[%s15749_s25 + $0x6f8] sm:$0xff]  }
  0xb5   : > { %9847 = vmatprep.mubr.bf16.mxu0 %v2501_v20  ;;  %13434 = vmatprep.subr.bf16.mxu1 %v14817_v21  ;;  %v14875_v19 = vld [vmem:[%s15749_s25 + $0x638] sm:$0xff]   ;;  %v2513_v20 = vrot.slane %v275_v18, %v15751_v6  ;;  %v2506_v21 = vcombine.high %v275_v18, %v275_v18  ;;  %v14913_v18 = vld [vmem:[%s15749_s25 + $0x880] sm:$0xff]  }
  0xb6   : > { %9887 = vmatprep.mubr.bf16.mxu1 %v2505_v23  ;;  %v14876_v23 = vld [vmem:[%s15749_s25 + $0x6b8] sm:$0xff]  }
  0xb7   : > { %13413 = vmatpush3.bf16.msra.mxu0 %v14818_v22  ;;  %v14877_v22 = vld [vmem:[%s15749_s25 + $0x740] sm:$0xff]  }
  0xb8   : > { %13414 = vmatprep.subr.bf16.mxu0 %v14820_v24  ;;  %13435 = vmatpush3.bf16.msra.mxu1 %v14819_v25  ;;  %v2521_v24 = vcombine.high %v2513_v20, %v2513_v20  ;;  %v2529_v25 = vrot.slane %v2513_v20, %v15751_v6  ;;  %v14914_v20 = vld [vmem:[%s15749_s25 + $0x848] sm:$0xff]  }
  0xb9   : > { %13436 = vmatprep.subr.bf16.mxu1 %v14821_v26  ;;  %v16038_v26 = vrot.slane %v2506_v21, %v15751_v6  ;;  %v14915_v21 = vld [vmem:[%s15749_s25 + $0x8c8] sm:$0xff]  }
  0xbb   : > { %13415 = vmatpush3.bf16.msra.mxu0 %v14822_v27  ;;  %v14878_v27 = vld [vmem:[%s15749_s25 + $0x7c0] sm:$0xff]  }
  0xbc   : > { %13416 = vmatprep.subr.bf16.mxu0 %v14824_v28  ;;  %13437 = vmatpush3.bf16.msra.mxu1 %v14823_v29  ;;  %v2543_v28 = vrot.slane %v2521_v24, %v15751_v6  ;;  %v14879_v29 = vld [vmem:[%s15749_s25 + $0x700] sm:$0xff]   ;;  %v14918_v24 = vld [vmem:[%s15749_s25 + $0x850] sm:$0xff]  }
  0xbd   : > { %13438 = vmatprep.subr.bf16.mxu1 %v14825_v30  ;;  %v2522_v30 = vcombine.high %v16038_v26, %v16038_v26 }
  0xbf   : > { %13417 = vmatpush3.bf16.msra.mxu0 %v14826_v31  ;;  %v2551_v31 = vcombine.high %v2529_v25, %v2529_v25 }
  0xc0   : > { %13418 = vmatprep.subr.bf16.mxu0 %v14828_v32  ;;  %13439 = vmatpush3.bf16.msra.mxu1 %v14827_v33  ;;  %v14881_v32 = vld [vmem:[%s15749_s25 + $0x748] sm:$0xff]   ;;  %v2553_v33 = vcombine.high %v2543_v28, %v2543_v28 }
  0xc1   : > { %13440 = vmatprep.subr.bf16.mxu1 %v14829_v34  ;;  %v14880_v34 = vld [vmem:[%s15749_s25 + $0x780] sm:$0xff]  }
  0xc3   : > { %13419 = vmatpush3.bf16.msra.mxu0 %v14830_v35  ;;  %v2550_v35 = vrot.slane %v2522_v30, %v15751_v6  ;;  %v14924_v30 = vld [vmem:[%s15749_s25 + $0x818] sm:$0xff]  }
  0xc4   : > { %13420 = vmatprep.subr.bf16.mxu0 %v14832_v36  ;;  %13441 = vmatpush3.bf16.msra.mxu1 %v14831_v37  ;;  %v14882_v36 = vld [vmem:[%s15749_s25 + $0x7c8] sm:$0xff]  }
  0xc5   : > { %13442 = vmatprep.subr.bf16.mxu1 %v14833_v38  ;;  %v14883_v37 = vld [vmem:[%s15749_s25 + $0x708] sm:$0xff]   ;;  %v2554_v38 = vcombine.high %v2550_v35, %v2550_v35 }
  0xc7   : > { %13421 = vmatpush3.bf16.msra.mxu0 %v14834_v39  ;;  %v14885_v39 = vld [vmem:[%s15749_s25 + $0x750] sm:$0xff]  }
  0xc8   : > { %13422 = vmatprep.subr.bf16.mxu0 %v14836_v40  ;;  %13443 = vmatpush3.bf16.msra.mxu1 %v14835_v41  ;;  %v14884_v40 = vld [vmem:[%s15749_s25 + $0x788] sm:$0xff]   ;;  %v14886_v41 = vld [vmem:[%s15749_s25 + $0x7d0] sm:$0xff]  }
  0xc9   : > { %13444 = vmatprep.subr.bf16.mxu1 %v14837_v42  ;;  %v14887_v42 = vld [vmem:[%s15749_s25 + $0x710] sm:$0xff]  }
  0xcb   : > { %13423 = vmatpush3.bf16.msra.mxu0 %v14838_v43  ;;  %v14889_v43 = vld [vmem:[%s15749_s25 + $0x758] sm:$0xff]  }
  0xcc   : > { %13424 = vmatprep.subr.bf16.mxu0 %v14840_v44  ;;  %13445 = vmatpush3.bf16.msra.mxu1 %v14839_v45  ;;  %v14888_v44 = vld [vmem:[%s15749_s25 + $0x790] sm:$0xff]   ;;  %v14890_v45 = vld [vmem:[%s15749_s25 + $0x7d8] sm:$0xff]  }
  0xcd   : > { %13446 = vmatprep.subr.bf16.mxu1 %v14841_v46  ;;  %v14891_v46 = vld [vmem:[%s15749_s25 + $0x718] sm:$0xff]  }
  0xcf   : > { %13425 = vmatpush3.bf16.msra.mxu0 %v14842_v47  ;;  %v14893_v47 = vld [vmem:[%s15749_s25 + $0x760] sm:$0xff]  }
  0xd0   : > { %13454 = vmatprep.subr.bf16.mxu0 %v14845_v49  ;;  %13447 = vmatpush3.bf16.msra.mxu1 %v14843_v50  ;;  %v14894_v49 = vld [vmem:[%s15749_s25 + $0x7e0] sm:$0xff]  }
  0xd1   : > { %13476 = vmatprep.subr.bf16.mxu1 %v14846_v51  ;;  %v14895_v50 = vld [vmem:[%s15749_s25 + $0x720] sm:$0xff]  }
  0xd2   : > { %9848 = vmatmul.mubr.bf16.vlgmr.msra.gmra.mrb[20].mxu0 %v2487_v48  ;;  %v14892_v48 = vld [vmem:[%s15749_s25 + $0x798] sm:$0xff]   ;;  %v14896_v51 = vld [vmem:[%s15749_s25 + $0x7a0] sm:$0xff]  }
  0xd3   : > { %13455 = vmatpush3.bf16.msra.mxu0 %v14847_v52  ;;  %9888 = vmatmul.mubr.bf16.vlgmr.msra.gmra.mrb[20].mxu1 %v2503_v53  ;;  %v12159_v52 = vld [vmem:[%s258_s9] ss:$0 sm:$0xff] }
  0xd4   : > { %13456 = vmatprep.subr.bf16.mxu0 %v14849_v54  ;;  %13477 = vmatpush3.bf16.msra.mxu1 %v14848_v55  ;;  %v14897_v54 = vld [vmem:[%s15749_s25 + $0x768] sm:$0xff]  }
  0xd5   : > { %13478 = vmatprep.subr.bf16.mxu1 %v14850_v56  ;;  %9927 = vmatprep.mubr.bf16.mxu0 %v2543_v28  ;;  %v14922_v28 = vld [vmem:[%s15749_s25 + $0x858] sm:$0xff]  }
  0xd6   : > { %9967 = vmatprep.mubr.bf16.mxu1 %v2553_v33  ;;  %v14927_v33 = vld [vmem:[%s15749_s25 + $0x8e0] sm:$0xff]  }
  0xd7   : > { %13457 = vmatpush3.bf16.msra.mxu0 %v14851_v57 }
  0xd8   : > { %13458 = vmatprep.subr.bf16.mxu0 %v14853_v58  ;;  %13479 = vmatpush3.bf16.msra.mxu1 %v14852_v59  ;;  %v14898_v59 = vld [vmem:[%s15749_s25 + $0x7e8] sm:$0xff]  }
  0xd9   : > { %13480 = vmatprep.subr.bf16.mxu1 %v14854_v60 }
  0xdb   : > { %13459 = vmatpush3.bf16.msra.mxu0 %v14855_v61  ;;  %v14899_v61 = vld [vmem:[%s15749_s25 + $0x728] sm:$0xff]  }
  0xdc   : > { %13460 = vmatprep.subr.bf16.mxu0 %v14857_v62  ;;  %13481 = vmatpush3.bf16.msra.mxu1 %v14856_v63 }
  0xdd   : > { %13482 = vmatprep.subr.bf16.mxu1 %v14858_v0  ;;  %v14900_v0 = vld [vmem:[%s15749_s25 + $0x7a8] sm:$0xff]  }
  0xdf   : > { %13461 = vmatpush3.bf16.msra.mxu0 %v14859_v1 }
  0xe0   : > { %13462 = vmatprep.subr.bf16.mxu0 %v14861_v2  ;;  %13483 = vmatpush3.bf16.msra.mxu1 %v14860_v3 }
  0xe1   : > { %13484 = vmatprep.subr.bf16.mxu1 %v14862_v4  ;;  %v14901_v4 = vld [vmem:[%s15749_s25 + $0x770] sm:$0xff]  }
  0xe3   : > { %13463 = vmatpush3.bf16.msra.mxu0 %v14863_v5  ;;  %v14902_v5 = vld [vmem:[%s15749_s25 + $0x7f0] sm:$0xff]  }
  0xe4   : > { %13464 = vmatprep.subr.bf16.mxu0 %v14865_v7  ;;  %13485 = vmatpush3.bf16.msra.mxu1 %v14864_v8  ;;  %v14903_v8 = vld [vmem:[%s15749_s25 + $0x730] sm:$0xff]  }
  0xe5   : > { %13486 = vmatprep.subr.bf16.mxu1 %v14866_v9  ;;  %v14904_v9 = vld [vmem:[%s15749_s25 + $0x7b0] sm:$0xff]  }
  0xe7   : > { %13465 = vmatpush3.bf16.msra.mxu0 %v14867_v10  ;;  %v14905_v10 = vld [vmem:[%s15749_s25 + $0x778] sm:$0xff]  }
  0xe8   : > { %13466 = vmatprep.subr.bf16.mxu0 %v14869_v11  ;;  %13487 = vmatpush3.bf16.msra.mxu1 %v14868_v12  ;;  %v14906_v11 = vld [vmem:[%s15749_s25 + $0x7f8] sm:$0xff]  }
  0xe9   : > { %13488 = vmatprep.subr.bf16.mxu1 %v14870_v13  ;;  %v14907_v12 = vld [vmem:[%s15749_s25 + $0x738] sm:$0xff]  }
  0xea   : > { %v14908_v13 = vld [vmem:[%s15749_s25 + $0x7b8] sm:$0xff]  }
  0xeb   : > { %13467 = vmatpush3.bf16.msra.mxu0 %v14871_v14  ;;  %v2536_v14 = vrot.slane %v16038_v26, %v15751_v6  ;;  %v14920_v26 = vld [vmem:[%s15749_s25 + $0x810] sm:$0xff]  }
  0xec   : > { %13468 = vmatprep.subr.bf16.mxu0 %v14873_v15  ;;  %13489 = vmatpush3.bf16.msra.mxu1 %v14872_v16  ;;  %v14910_v15 = vld [vmem:[%s15749_s25 + $0x840] sm:$0xff]  }
  0xed   : > { %13490 = vmatprep.subr.bf16.mxu1 %v14874_v17  ;;  %v14911_v16 = vld [vmem:[%s15749_s25 + $0x8c0] sm:$0xff]  }
  0xee   : > { %v14912_v17 = vld [vmem:[%s15749_s25 + $0x800] sm:$0xff]  }
  0xef   : > { %13469 = vmatpush3.bf16.msra.mxu0 %v14875_v19  ;;  %v2552_v19 = vcombine.high %v2536_v14, %v2536_v14 }
  0xf0   : > { %13498 = vmatprep.subr.bf16.mxu0 %v14877_v22  ;;  %13491 = vmatpush3.bf16.msra.mxu1 %v14876_v23  ;;  %v14916_v22 = vld [vmem:[%s15749_s25 + $0x808] sm:$0xff]  }
  0xf1   : > { %13520 = vmatprep.subr.bf16.mxu1 %v14878_v27  ;;  %v14917_v23 = vld [vmem:[%s15749_s25 + $0x888] sm:$0xff]   ;;  %v14921_v27 = vld [vmem:[%s15749_s25 + $0x890] sm:$0xff]  }
  0xf2   : > { %9928 = vmatmul.mubr.bf16.vlgmr.msra.gmra.mrb[24].mxu0 %v2529_v25  ;;  %v14919_v25 = vld [vmem:[%s15749_s25 + $0x8d0] sm:$0xff]  }
  0xf3   : > { %13499 = vmatpush3.bf16.msra.mxu0 %v14879_v29  ;;  %9968 = vmatmul.mubr.bf16.vlgmr.msra.gmra.mrb[24].mxu1 %v2551_v31  ;;  %v14923_v29 = vld [vmem:[%s15749_s25 + $0x8d8] sm:$0xff]  }
  0xf4   : > { %13500 = vmatprep.subr.bf16.mxu0 %v14881_v32  ;;  %13521 = vmatpush3.bf16.msra.mxu1 %v14880_v34  ;;  %v14925_v31 = vld [vmem:[%s15749_s25 + $0x898] sm:$0xff]   ;;  %v14926_v32 = vld [vmem:[%s15749_s25 + $0x860] sm:$0xff]  }
  0xf5   : > { %10007 = vmatprep.mubr.bf16.mxu0 %v2550_v35  ;;  %13522 = vmatprep.subr.bf16.mxu1 %v14882_v36  ;;  %v14928_v34 = vld [vmem:[%s15749_s25 + $0x820] sm:$0xff]  }
  0xf6   : > { %10047 = vmatprep.mubr.bf16.mxu1 %v2554_v38  ;;  %v14929_v35 = vld [vmem:[%s15749_s25 + $0x8a0] sm:$0xff]  }
  0xf7   : > { %13501 = vmatpush3.bf16.msra.mxu0 %v14883_v37  ;;  %v14930_v37 = vld [vmem:[%s15749_s25 + $0x868] sm:$0xff]  }
  0xf8   : > { %13502 = vmatprep.subr.bf16.mxu0 %v14885_v39  ;;  %13523 = vmatpush3.bf16.msra.mxu1 %v14884_v40  ;;  %v14931_v40 = vld [vmem:[%s15749_s25 + $0x8e8] sm:$0xff]  }
  0xf9   : > { %13524 = vmatprep.subr.bf16.mxu1 %v14886_v41  ;;  %v14932_v41 = vld [vmem:[%s15749_s25 + $0x828] sm:$0xff]  }
  0xfb   : > { %13503 = vmatpush3.bf16.msra.mxu0 %v14887_v42 }
  0xfc   : > { %13504 = vmatprep.subr.bf16.mxu0 %v14889_v43  ;;  %13525 = vmatpush3.bf16.msra.mxu1 %v14888_v44 }
  0xfd   : > { %13526 = vmatprep.subr.bf16.mxu1 %v14890_v45 }
  0xff   : > { %13505 = vmatpush3.bf16.msra.mxu0 %v14891_v46 }
 0x100   : > { %13506 = vmatprep.subr.bf16.mxu0 %v14893_v47  ;;  %13527 = vmatpush3.bf16.msra.mxu1 %v14892_v48  ;;  %v14933_v47 = vld [vmem:[%s15749_s25 + $0x8a8] sm:$0xff]  }
 0x101   : > { %13528 = vmatprep.subr.bf16.mxu1 %v14894_v49 }
 0x103   : > { %13507 = vmatpush3.bf16.msra.mxu0 %v14895_v50 }
 0x104   : > { %13508 = vmatprep.subr.bf16.mxu0 %v14897_v54  ;;  %13529 = vmatpush3.bf16.msra.mxu1 %v14896_v51  ;;  %v14934_v51 = vld [vmem:[%s15749_s25 + $0x870] sm:$0xff]  }
 0x105   : > { %v13206_v53 = vpop.f32.mrb[0].mxu0  ;;  %13530 = vmatprep.subr.bf16.mxu1 %v14898_v59  ;;  %v14936_v54 = vld [vmem:[%s15749_s25 + $0x830] sm:$0xff]   ;;  %v14941_v59 = vld [vmem:[%s15749_s25 + $0x8b8] sm:$0xff]  }
 0x106   : > { %v13228_v55 = vpop.f32.mrb[0].mxu1  ;;  %v13207_v56 = vpop.f32.mrb[1].mxu0 }
 0x107   : > { %v13208_v57 = vadd.f32 %v13207_v56, %v13206_v53  ;;  %v13229_v58 = vpop.f32.mrb[1].mxu1  ;;  %v13209_v60 = vpop.f32.mrb[2].mxu0  ;;  %13509 = vmatpush3.bf16.msra.mxu0 %v14899_v61  ;;  %v14935_v53 = vld [vmem:[%s15749_s25 + $0x8f0] sm:$0xff]   ;;  %v14938_v56 = vld [vmem:[%s15749_s25 + $0x878] sm:$0xff]  }
 0x108   : > { %v13230_v62 = vadd.f32 %v13229_v58, %v13228_v55  ;;  %v13231_v63 = vpop.f32.mrb[2].mxu1  ;;  %v13210_v1 = vpop.f32.mrb[3].mxu0  ;;  %13510 = vmatprep.subr.bf16.mxu0 %v14901_v4  ;;  %13531 = vmatpush3.bf16.msra.mxu1 %v14900_v0  ;;  %v14937_v55 = vld [vmem:[%s15749_s25 + $0x8b0] sm:$0xff]   ;;  %v14940_v58 = vld [vmem:[%s15749_s25 + $0x838] sm:$0xff]   ;;  %v276_v60 = vld [vmem:[%s17104_s0 + $0x20] sm:$0xff] }
 0x109   : > { %v9450_v2 = vadd.f32 %v13208_v57, %v12159_v52  ;;  %v13232_v3 = vpop.f32.mrb[3].mxu1  ;;  %13532 = vmatprep.subr.bf16.mxu1 %v14902_v5  ;;  %v14939_v57 = vld [vmem:[%s15749_s25 + $0x8f8] sm:$0xff]   ;;  %v2562_v61 = vrot.slane %v276_v60, %v15751_v6  ;;  %v2555_v63 = vcombine.high %v276_v60, %v276_v60  ;;  %v14943_v0 = vld [vmem:[%s15749_s25 + $0x9c0] sm:$0xff]   ;;  %v14980_v60 = vld [vmem:[%s15749_s25 + $0xac8] sm:$0xff]  }
 0x10a   : > { %v14944_v4 = vld [vmem:[%s15749_s25 + $0x900] sm:$0xff]  }
 0x10b   : > { %v16073_v7 = vadd.f32 %v13230_v62, %v9450_v2  ;;  %13511 = vmatpush3.bf16.msra.mxu0 %v14903_v8  ;;  %v14942_v62 = vld [vmem:[%s15749_s25 + $0x940] sm:$0xff]   ;;  %v2570_v1 = vcombine.high %v2562_v61, %v2562_v61  ;;  %v2578_v2 = vrot.slane %v2562_v61, %v15751_v6  ;;  %v16126_v3 = vrot.slane %v2555_v63, %v15751_v6  ;;  %v14981_v61 = vld [vmem:[%s15749_s25 + $0xa08] sm:$0xff]   ;;  %v14983_v63 = vld [vmem:[%s15749_s25 + $0xa50] sm:$0xff]  }
 0x10c   : > { %13512 = vmatprep.subr.bf16.mxu0 %v14905_v10  ;;  %13533 = vmatpush3.bf16.msra.mxu1 %v14904_v9  ;;  %v14946_v10 = vld [vmem:[%s15749_s25 + $0x948] sm:$0xff]  }
 0x10d   : > { %13534 = vmatprep.subr.bf16.mxu1 %v14906_v11  ;;  %v2592_v5 = vrot.slane %v2570_v1, %v15751_v6  ;;  %v2571_v8 = vcombine.high %v16126_v3, %v16126_v3  ;;  %v2600_v9 = vcombine.high %v2578_v2, %v2578_v2  ;;  %v14985_v1 = vld [vmem:[%s15749_s25 + $0xa10] sm:$0xff]  }
 0x10f   : > { %13513 = vmatpush3.bf16.msra.mxu0 %v14907_v12  ;;  %v2602_v11 = vcombine.high %v2592_v5, %v2592_v5  ;;  %v14947_v12 = vld [vmem:[%s15749_s25 + $0x9c8] sm:$0xff]  }
 0x110   : > { %13542 = vmatprep.subr.bf16.mxu0 %v14910_v15  ;;  %13535 = vmatpush3.bf16.msra.mxu1 %v14908_v13  ;;  %v2599_v13 = vrot.slane %v2571_v8, %v15751_v6  ;;  %v14949_v15 = vld [vmem:[%s15749_s25 + $0x988] sm:$0xff]   ;;  %v14991_v8 = vld [vmem:[%s15749_s25 + $0xa60] sm:$0xff]  }
 0x111   : > { %13564 = vmatprep.subr.bf16.mxu1 %v14911_v16 }
 0x112   : > { %10008 = vmatmul.mubr.bf16.vlgmr.msra.gmra.mrb[28].mxu0 %v2536_v14  ;;  %v14948_v14 = vld [vmem:[%s15749_s25 + $0x908] sm:$0xff]   ;;  %v2603_v16 = vcombine.high %v2599_v13, %v2599_v13 }
 0x113   : > { %13543 = vmatpush3.bf16.msra.mxu0 %v14912_v17  ;;  %10048 = vmatmul.mubr.bf16.vlgmr.msra.gmra.mrb[28].mxu1 %v2552_v19  ;;  %v14950_v17 = vld [vmem:[%s15749_s25 + $0x950] sm:$0xff]  }
 0x114   : > { %13544 = vmatprep.subr.bf16.mxu0 %v14914_v20  ;;  %13565 = vmatpush3.bf16.msra.mxu1 %v14913_v18  ;;  %v14951_v18 = vld [vmem:[%s15749_s25 + $0x9d0] sm:$0xff]  }
 0x115   : > { %13566 = vmatprep.subr.bf16.mxu1 %v14915_v21  ;;  %10087 = vmatprep.mubr.bf16.mxu0 %v2592_v5  ;;  %v14952_v19 = vld [vmem:[%s15749_s25 + $0x910] sm:$0xff]   ;;  %v14954_v21 = vld [vmem:[%s15749_s25 + $0x958] sm:$0xff]  }
 0x116   : > { %10127 = vmatprep.mubr.bf16.mxu1 %v2602_v11  ;;  %v14953_v20 = vld [vmem:[%s15749_s25 + $0x990] sm:$0xff]   ;;  %v14989_v5 = vld [vmem:[%s15749_s25 + $0xa18] sm:$0xff]  }
 0x117   : > { %13545 = vmatpush3.bf16.msra.mxu0 %v14916_v22  ;;  %v14955_v22 = vld [vmem:[%s15749_s25 + $0x9d8] sm:$0xff]  }
 0x118   : > { %13546 = vmatprep.subr.bf16.mxu0 %v14918_v24  ;;  %13567 = vmatpush3.bf16.msra.mxu1 %v14917_v23  ;;  %v14956_v23 = vld [vmem:[%s15749_s25 + $0x918] sm:$0xff]  }
 0x119   : > { %13568 = vmatprep.subr.bf16.mxu1 %v14919_v25  ;;  %v14957_v24 = vld [vmem:[%s15749_s25 + $0x998] sm:$0xff]   ;;  %v14958_v25 = vld [vmem:[%s15749_s25 + $0x960] sm:$0xff]  }
 0x11b   : > { %13547 = vmatpush3.bf16.msra.mxu0 %v14920_v26  ;;  %v14959_v26 = vld [vmem:[%s15749_s25 + $0x9e0] sm:$0xff]  }
 0x11c   : > { %13548 = vmatprep.subr.bf16.mxu0 %v14922_v28  ;;  %13569 = vmatpush3.bf16.msra.mxu1 %v14921_v27  ;;  %v14960_v27 = vld [vmem:[%s15749_s25 + $0x920] sm:$0xff]  }
 0x11d   : > { %13570 = vmatprep.subr.bf16.mxu1 %v14923_v29  ;;  %v14961_v29 = vld [vmem:[%s15749_s25 + $0x9a0] sm:$0xff]  }
 0x11f   : > { %13549 = vmatpush3.bf16.msra.mxu0 %v14924_v30 }
 0x120   : > { %13550 = vmatprep.subr.bf16.mxu0 %v14926_v32  ;;  %13571 = vmatpush3.bf16.msra.mxu1 %v14925_v31  ;;  %v14962_v32 = vld [vmem:[%s15749_s25 + $0x968] sm:$0xff]  }
 0x121   : > { %13572 = vmatprep.subr.bf16.mxu1 %v14927_v33 }
 0x123   : > { %13551 = vmatpush3.bf16.msra.mxu0 %v14928_v34 }
 0x124   : > { %13552 = vmatprep.subr.bf16.mxu0 %v14930_v37  ;;  %13573 = vmatpush3.bf16.msra.mxu1 %v14929_v35  ;;  %v14963_v37 = vld [vmem:[%s15749_s25 + $0x9e8] sm:$0xff]  }
 0x125   : > { %v13250_v36 = vpop.f32.mrb[4].mxu0  ;;  %13574 = vmatprep.subr.bf16.mxu1 %v14931_v40  ;;  %v14964_v40 = vld [vmem:[%s15749_s25 + $0x928] sm:$0xff]  }
 0x126   : > { %v13272_v38 = vpop.f32.mrb[4].mxu1  ;;  %v13251_v39 = vpop.f32.mrb[5].mxu0 }
 0x127   : > { %v13252_v42 = vadd.f32 %v13251_v39, %v13250_v36  ;;  %v13273_v43 = vpop.f32.mrb[5].mxu1  ;;  %v13253_v44 = vpop.f32.mrb[6].mxu0  ;;  %13553 = vmatpush3.bf16.msra.mxu0 %v14932_v41 }
 0x128   : > { %v13274_v45 = vadd.f32 %v13273_v43, %v13272_v38  ;;  %v13275_v46 = vpop.f32.mrb[6].mxu1  ;;  %v13254_v49 = vpop.f32.mrb[7].mxu0  ;;  %13554 = vmatprep.subr.bf16.mxu0 %v14934_v51  ;;  %13575 = vmatpush3.bf16.msra.mxu1 %v14933_v47  ;;  %v14968_v47 = vld [vmem:[%s15749_s25 + $0x930] sm:$0xff]   ;;  %v14972_v51 = vld [vmem:[%s15749_s25 + $0x938] sm:$0xff]  }
 0x129   : > { %v9530_v48 = vadd.f32 %v13252_v42, %v16073_v7  ;;  %v13276_v50 = vpop.f32.mrb[7].mxu1  ;;  %13576 = vmatprep.subr.bf16.mxu1 %v14935_v53  ;;  %v14945_v7 = vld [vmem:[%s15749_s25 + $0x980] sm:$0xff]   ;;  %v14965_v42 = vld [vmem:[%s15749_s25 + $0x9a8] sm:$0xff]   ;;  %v14967_v46 = vld [vmem:[%s15749_s25 + $0x9f0] sm:$0xff]   ;;  %v2585_v53 = vrot.slane %v16126_v3, %v15751_v6 }
 0x12a   : > { %v14970_v49 = vld [vmem:[%s15749_s25 + $0x978] sm:$0xff]  }
 0x12b   : > { %v16109_v52 = vadd.f32 %v13274_v45, %v9530_v48  ;;  %13555 = vmatpush3.bf16.msra.mxu0 %v14936_v54  ;;  %v14966_v45 = vld [vmem:[%s15749_s25 + $0x970] sm:$0xff]   ;;  %v14971_v50 = vld [vmem:[%s15749_s25 + $0x9f8] sm:$0xff]   ;;  %v14975_v54 = vld [vmem:[%s15749_s25 + $0xa40] sm:$0xff]  }
 0x12c   : > { %13556 = vmatprep.subr.bf16.mxu0 %v14938_v56  ;;  %13577 = vmatpush3.bf16.msra.mxu1 %v14937_v55  ;;  %v14969_v48 = vld [vmem:[%s15749_s25 + $0x9b0] sm:$0xff]   ;;  %v14976_v55 = vld [vmem:[%s15749_s25 + $0xac0] sm:$0xff]   ;;  %v14987_v3 = vld [vmem:[%s15749_s25 + $0xa58] sm:$0xff]  }
 0x12d   : > { %13578 = vmatprep.subr.bf16.mxu1 %v14939_v57  ;;  %v14977_v56 = vld [vmem:[%s15749_s25 + $0xa00] sm:$0xff]  }
 0x12e   : > { %v14978_v57 = vld [vmem:[%s15749_s25 + $0xa80] sm:$0xff]  }
 0x12f   : > { %13557 = vmatpush3.bf16.msra.mxu0 %v14940_v58  ;;  %v2601_v58 = vcombine.high %v2585_v53, %v2585_v53 }
 0x130   : > { %13586 = vmatprep.subr.bf16.mxu0 %v14942_v62  ;;  %13579 = vmatpush3.bf16.msra.mxu1 %v14941_v59  ;;  %v14979_v59 = vld [vmem:[%s15749_s25 + $0xa48] sm:$0xff]  }
 0x131   : > { %13608 = vmatprep.subr.bf16.mxu1 %v14943_v0  ;;  %v14982_v62 = vld [vmem:[%s15749_s25 + $0xa88] sm:$0xff]   ;;  %v14984_v0 = vld [vmem:[%s15749_s25 + $0xad0] sm:$0xff]  }
 0x132   : > { %10088 = vmatmul.mubr.bf16.vlgmr.msra.gmra.mrb[32].mxu0 %v2578_v2  ;;  %v14986_v2 = vld [vmem:[%s15749_s25 + $0xa90] sm:$0xff]  }
 0x133   : > { %13587 = vmatpush3.bf16.msra.mxu0 %v14944_v4  ;;  %10128 = vmatmul.mubr.bf16.vlgmr.msra.gmra.mrb[32].mxu1 %v2600_v9  ;;  %v14988_v4 = vld [vmem:[%s15749_s25 + $0xad8] sm:$0xff]   ;;  %v14992_v9 = vld [vmem:[%s15749_s25 + $0xae0] sm:$0xff]  }
 0x134   : > { %13588 = vmatprep.subr.bf16.mxu0 %v14946_v10  ;;  %13609 = vmatpush3.bf16.msra.mxu1 %v14945_v7  ;;  %v14990_v7 = vld [vmem:[%s15749_s25 + $0xa98] sm:$0xff]   ;;  %v14993_v10 = vld [vmem:[%s15749_s25 + $0xa20] sm:$0xff]  }
 0x135   : > { %10167 = vmatprep.mubr.bf16.mxu0 %v2599_v13  ;;  %13610 = vmatprep.subr.bf16.mxu1 %v14947_v12 }
 0x136   : > { %10207 = vmatprep.mubr.bf16.mxu1 %v2603_v16  ;;  %v14995_v16 = vld [vmem:[%s15749_s25 + $0xa68] sm:$0xff]  }
 0x137   : > { %13589 = vmatpush3.bf16.msra.mxu0 %v14948_v14 }
 0x138   : > { %13590 = vmatprep.subr.bf16.mxu0 %v14950_v17  ;;  %13611 = vmatpush3.bf16.msra.mxu1 %v14949_v15  ;;  %v14994_v17 = vld [vmem:[%s15749_s25 + $0xaa0] sm:$0xff]  }
 0x139   : > { %13612 = vmatprep.subr.bf16.mxu1 %v14951_v18 }
 0x13b   : > { %13591 = vmatpush3.bf16.msra.mxu0 %v14952_v19  ;;  %v14996_v19 = vld [vmem:[%s15749_s25 + $0xae8] sm:$0xff]  }
 0x13c   : > { %13592 = vmatprep.subr.bf16.mxu0 %v14954_v21  ;;  %13613 = vmatpush3.bf16.msra.mxu1 %v14953_v20 }
 0x13d   : > { %13614 = vmatprep.subr.bf16.mxu1 %v14955_v22 }
 0x13f   : > { %13593 = vmatpush3.bf16.msra.mxu0 %v14956_v23  ;;  %v14997_v23 = vld [vmem:[%s15749_s25 + $0xa28] sm:$0xff]  }
 0x140   : > { %13594 = vmatprep.subr.bf16.mxu0 %v14958_v25  ;;  %13615 = vmatpush3.bf16.msra.mxu1 %v14957_v24 }
 0x141   : > { %13616 = vmatprep.subr.bf16.mxu1 %v14959_v26  ;;  %v14999_v26 = vld [vmem:[%s15749_s25 + $0xa70] sm:$0xff]  }
 0x143   : > { %13595 = vmatpush3.bf16.msra.mxu0 %v14960_v27 }
 0x144   : > { %13596 = vmatprep.subr.bf16.mxu0 %v14962_v32  ;;  %13617 = vmatpush3.bf16.msra.mxu1 %v14961_v29  ;;  %v15000_v29 = vld [vmem:[%s15749_s25 + $0xaf0] sm:$0xff]  }
 0x145   : > { %v13294_v28 = vpop.f32.mrb[8].mxu0  ;;  %13618 = vmatprep.subr.bf16.mxu1 %v14963_v37  ;;  %v15002_v32 = vld [vmem:[%s15749_s25 + $0xab0] sm:$0xff]   ;;  %v15007_v37 = vld [vmem:[%s15749_s25 + $0xb40] sm:$0xff]  }
 0x146   : > { %v13316_v30 = vpop.f32.mrb[8].mxu1  ;;  %v13295_v31 = vpop.f32.mrb[9].mxu0 }
 0x147   : > { %v13296_v33 = vadd.f32 %v13295_v31, %v13294_v28  ;;  %v13317_v34 = vpop.f32.mrb[9].mxu1  ;;  %v13297_v35 = vpop.f32.mrb[10].mxu0  ;;  %13597 = vmatpush3.bf16.msra.mxu0 %v14964_v40  ;;  %v14998_v28 = vld [vmem:[%s15749_s25 + $0xaa8] sm:$0xff]   ;;  %v15003_v31 = vld [vmem:[%s15749_s25 + $0xa78] sm:$0xff]  }
 0x148   : > { %v13318_v36 = vadd.f32 %v13317_v34, %v13316_v30  ;;  %v13319_v38 = vpop.f32.mrb[10].mxu1  ;;  %v13298_v41 = vpop.f32.mrb[11].mxu0  ;;  %13598 = vmatprep.subr.bf16.mxu0 %v14966_v45  ;;  %13619 = vmatpush3.bf16.msra.mxu1 %v14965_v42  ;;  %v15001_v30 = vld [vmem:[%s15749_s25 + $0xa30] sm:$0xff]   ;;  %v15005_v34 = vld [vmem:[%s15749_s25 + $0xa38] sm:$0xff]   ;;  %v277_v35 = vld [vmem:[%s17104_s0 + $0x28] sm:$0xff] }
 0x149   : > { %v9610_v39 = vadd.f32 %v13296_v33, %v16109_v52  ;;  %v13320_v43 = vpop.f32.mrb[11].mxu1  ;;  %13620 = vmatprep.subr.bf16.mxu1 %v14967_v46  ;;  %v14973_v52 = vld [vmem:[%s15749_s25 + $0x9b8] sm:$0xff]   ;;  %v2604_v38 = vcombine.high %v277_v35, %v277_v35  ;;  %v15008_v42 = vld [vmem:[%s15749_s25 + $0xbc0] sm:$0xff]  }
 0x14a   : > { %v15004_v33 = vld [vmem:[%s15749_s25 + $0xaf8] sm:$0xff]   ;;  %v15010_v46 = vld [vmem:[%s15749_s25 + $0xb80] sm:$0xff]  }
 0x14b   : > { %v16155_v44 = vadd.f32 %v13318_v36, %v9610_v39  ;;  %13599 = vmatpush3.bf16.msra.mxu0 %v14968_v47  ;;  %v2611_v36 = vrot.slane %v277_v35, %v15751_v6  ;;  %v15006_v39 = vld [vmem:[%s15749_s25 + $0xab8] sm:$0xff]   ;;  %v16210_v43 = vrot.slane %v2604_v38, %v15751_v6  ;;  %v15044_v35 = vld [vmem:[%s15749_s25 + $0xc48] sm:$0xff]  }
 0x14c   : > { %13600 = vmatprep.subr.bf16.mxu0 %v14970_v49  ;;  %13621 = vmatpush3.bf16.msra.mxu1 %v14969_v48  ;;  %v15011_v49 = vld [vmem:[%s15749_s25 + $0xb48] sm:$0xff]  }
 0x14d   : > { %13622 = vmatprep.subr.bf16.mxu1 %v14971_v50  ;;  %v2619_v40 = vcombine.high %v2611_v36, %v2611_v36  ;;  %v2627_v41 = vrot.slane %v2611_v36, %v15751_v6  ;;  %v2620_v47 = vcombine.high %v16210_v43, %v16210_v43  ;;  %v15045_v36 = vld [vmem:[%s15749_s25 + $0xcc8] sm:$0xff]  }
 0x14e   : > { %v15047_v38 = vld [vmem:[%s15749_s25 + $0xc88] sm:$0xff]  }
 0x14f   : > { %13601 = vmatpush3.bf16.msra.mxu0 %v14972_v51  ;;  %v2641_v45 = vrot.slane %v2619_v40, %v15751_v6  ;;  %v2649_v48 = vcombine.high %v2627_v41, %v2627_v41  ;;  %v15012_v51 = vld [vmem:[%s15749_s25 + $0xbc8] sm:$0xff]   ;;  %v15049_v40 = vld [vmem:[%s15749_s25 + $0xcd0] sm:$0xff]  }
 0x150   : > { %13630 = vmatprep.subr.bf16.mxu0 %v14975_v54  ;;  %13623 = vmatpush3.bf16.msra.mxu1 %v14973_v52  ;;  %v2648_v52 = vrot.slane %v2620_v47, %v15751_v6  ;;  %v15014_v54 = vld [vmem:[%s15749_s25 + $0xb88] sm:$0xff]   ;;  %v15056_v47 = vld [vmem:[%s15749_s25 + $0xc60] sm:$0xff]  }
 0x151   : > { %13652 = vmatprep.subr.bf16.mxu1 %v14976_v55  ;;  %v2651_v50 = vcombine.high %v2641_v45, %v2641_v45 }
 0x152   : > { %10168 = vmatmul.mubr.bf16.vlgmr.msra.gmra.mrb[36].mxu0 %v2585_v53  ;;  %v15013_v53 = vld [vmem:[%s15749_s25 + $0xb08] sm:$0xff]   ;;  %v2652_v55 = vcombine.high %v2648_v52, %v2648_v52 }
 0x153   : > { %13631 = vmatpush3.bf16.msra.mxu0 %v14977_v56  ;;  %10208 = vmatmul.mubr.bf16.vlgmr.msra.gmra.mrb[36].mxu1 %v2601_v58  ;;  %v15015_v56 = vld [vmem:[%s15749_s25 + $0xb50] sm:$0xff]  }
 0x154   : > { %13632 = vmatprep.subr.bf16.mxu0 %v14979_v59  ;;  %13653 = vmatpush3.bf16.msra.mxu1 %v14978_v57  ;;  %v15016_v57 = vld [vmem:[%s15749_s25 + $0xbd0] sm:$0xff]  }
 0x155   : > { %13654 = vmatprep.subr.bf16.mxu1 %v14980_v60  ;;  %10247 = vmatprep.mubr.bf16.mxu0 %v2641_v45  ;;  %v15017_v58 = vld [vmem:[%s15749_s25 + $0xb10] sm:$0xff]   ;;  %v15019_v60 = vld [vmem:[%s15749_s25 + $0xb58] sm:$0xff]  }
 0x156   : > { %10287 = vmatprep.mubr.bf16.mxu1 %v2651_v50  ;;  %v15018_v59 = vld [vmem:[%s15749_s25 + $0xb90] sm:$0xff]   ;;  %v15054_v45 = vld [vmem:[%s15749_s25 + $0xc18] sm:$0xff]   ;;  %v15059_v50 = vld [vmem:[%s15749_s25 + $0xca0] sm:$0xff]  }
 0x157   : > { %13633 = vmatpush3.bf16.msra.mxu0 %v14981_v61  ;;  %v15020_v61 = vld [vmem:[%s15749_s25 + $0xbd8] sm:$0xff]  }
 0x158   : > { %13634 = vmatprep.subr.bf16.mxu0 %v14983_v63  ;;  %13655 = vmatpush3.bf16.msra.mxu1 %v14982_v62  ;;  %v15021_v62 = vld [vmem:[%s15749_s25 + $0xb18] sm:$0xff]  }
 0x159   : > { %13656 = vmatprep.subr.bf16.mxu1 %v14984_v0  ;;  %v15022_v63 = vld [vmem:[%s15749_s25 + $0xb98] sm:$0xff]   ;;  %v15023_v0 = vld [vmem:[%s15749_s25 + $0xb60] sm:$0xff]  }
 0x15b   : > { %13635 = vmatpush3.bf16.msra.mxu0 %v14985_v1  ;;  %v15024_v1 = vld [vmem:[%s15749_s25 + $0xbe0] sm:$0xff]  }
 0x15c   : > { %13636 = vmatprep.subr.bf16.mxu0 %v14987_v3  ;;  %13657 = vmatpush3.bf16.msra.mxu1 %v14986_v2  ;;  %v15025_v2 = vld [vmem:[%s15749_s25 + $0xb20] sm:$0xff]  }
 0x15d   : > { %13658 = vmatprep.subr.bf16.mxu1 %v14988_v4  ;;  %v15026_v3 = vld [vmem:[%s15749_s25 + $0xba0] sm:$0xff]   ;;  %v15027_v4 = vld [vmem:[%s15749_s25 + $0xb68] sm:$0xff]  }
 0x15f   : > { %13637 = vmatpush3.bf16.msra.mxu0 %v14989_v5  ;;  %v15028_v5 = vld [vmem:[%s15749_s25 + $0xbe8] sm:$0xff]  }
 0x160   : > { %13638 = vmatprep.subr.bf16.mxu0 %v14991_v8  ;;  %13659 = vmatpush3.bf16.msra.mxu1 %v14990_v7  ;;  %v15029_v8 = vld [vmem:[%s15749_s25 + $0xb28] sm:$0xff]  }
 0x161   : > { %13660 = vmatprep.subr.bf16.mxu1 %v14992_v9 }
 0x163   : > { %13639 = vmatpush3.bf16.msra.mxu0 %v14993_v10  ;;  %v15030_v10 = vld [vmem:[%s15749_s25 + $0xba8] sm:$0xff]  }
 0x164   : > { %13640 = vmatprep.subr.bf16.mxu0 %v14995_v16  ;;  %13661 = vmatpush3.bf16.msra.mxu1 %v14994_v17 }
 0x165   : > { %v13338_v11 = vpop.f32.mrb[12].mxu0  ;;  %13662 = vmatprep.subr.bf16.mxu1 %v14996_v19 }
 0x166   : > { %v13360_v12 = vpop.f32.mrb[12].mxu1  ;;  %v13339_v13 = vpop.f32.mrb[13].mxu0 }
 0x167   : > { %v13340_v14 = vadd.f32 %v13339_v13, %v13338_v11  ;;  %v13361_v15 = vpop.f32.mrb[13].mxu1  ;;  %v13341_v20 = vpop.f32.mrb[14].mxu0  ;;  %13641 = vmatpush3.bf16.msra.mxu0 %v14997_v23  ;;  %v15034_v23 = vld [vmem:[%s15749_s25 + $0xbb0] sm:$0xff]  }
 0x168   : > { %v13362_v18 = vadd.f32 %v13361_v15, %v13360_v12  ;;  %v13363_v21 = vpop.f32.mrb[14].mxu1  ;;  %v13342_v24 = vpop.f32.mrb[15].mxu0  ;;  %13642 = vmatprep.subr.bf16.mxu0 %v14999_v26  ;;  %13663 = vmatpush3.bf16.msra.mxu1 %v14998_v28  ;;  %v15032_v15 = vld [vmem:[%s15749_s25 + $0xbf0] sm:$0xff]   ;;  %v15036_v26 = vld [vmem:[%s15749_s25 + $0xbf8] sm:$0xff]  }
 0x169   : > { %v9690_v22 = vadd.f32 %v13340_v14, %v16155_v44  ;;  %v13364_v25 = vpop.f32.mrb[15].mxu1  ;;  %13664 = vmatprep.subr.bf16.mxu1 %v15000_v29  ;;  %v15009_v44 = vld [vmem:[%s15749_s25 + $0xb00] sm:$0xff]   ;;  %v15031_v14 = vld [vmem:[%s15749_s25 + $0xb70] sm:$0xff]   ;;  %v15038_v28 = vld [vmem:[%s15749_s25 + $0xbb8] sm:$0xff]   ;;  %v2634_v29 = vrot.slane %v16210_v43, %v15751_v6 }
 0x16a   : > { %v15033_v21 = vld [vmem:[%s15749_s25 + $0xb30] sm:$0xff]   ;;  %v15035_v25 = vld [vmem:[%s15749_s25 + $0xb78] sm:$0xff]  }
 0x16b   : > { %v16192_v27 = vadd.f32 %v13362_v18, %v9690_v22  ;;  %13643 = vmatpush3.bf16.msra.mxu0 %v15001_v30  ;;  %v15040_v30 = vld [vmem:[%s15749_s25 + $0xc40] sm:$0xff]   ;;  %v15052_v43 = vld [vmem:[%s15749_s25 + $0xc58] sm:$0xff]  }
 0x16c   : > { %13644 = vmatprep.subr.bf16.mxu0 %v15003_v31  ;;  %13665 = vmatpush3.bf16.msra.mxu1 %v15002_v32  ;;  %v15041_v31 = vld [vmem:[%s15749_s25 + $0xcc0] sm:$0xff]  }
 0x16d   : > { %13666 = vmatprep.subr.bf16.mxu1 %v15004_v33  ;;  %v15042_v32 = vld [vmem:[%s15749_s25 + $0xc00] sm:$0xff]  }
 0x16e   : > { %v15043_v33 = vld [vmem:[%s15749_s25 + $0xc80] sm:$0xff]  }
 0x16f   : > { %13645 = vmatpush3.bf16.msra.mxu0 %v15005_v34  ;;  %v2650_v34 = vcombine.high %v2634_v29, %v2634_v29 }
 0x170   : > { %13674 = vmatprep.subr.bf16.mxu0 %v15007_v37  ;;  %13667 = vmatpush3.bf16.msra.mxu1 %v15006_v39  ;;  %v15046_v37 = vld [vmem:[%s15749_s25 + $0xc08] sm:$0xff]   ;;  %v15048_v39 = vld [vmem:[%s15749_s25 + $0xc50] sm:$0xff]  }
 0x171   : > { %13696 = vmatprep.subr.bf16.mxu1 %v15008_v42  ;;  %v15051_v42 = vld [vmem:[%s15749_s25 + $0xc90] sm:$0xff]  }
 0x172   : > { %10248 = vmatmul.mubr.bf16.vlgmr.msra.gmra.mrb[40].mxu0 %v2627_v41  ;;  %v15050_v41 = vld [vmem:[%s15749_s25 + $0xc10] sm:$0xff]  }
 0x173   : > { %13675 = vmatpush3.bf16.msra.mxu0 %v15009_v44  ;;  %10288 = vmatmul.mubr.bf16.vlgmr.msra.gmra.mrb[40].mxu1 %v2649_v48  ;;  %v15053_v44 = vld [vmem:[%s15749_s25 + $0xcd8] sm:$0xff]   ;;  %v15057_v48 = vld [vmem:[%s15749_s25 + $0xce0] sm:$0xff]  }
 0x174   : > { %13676 = vmatprep.subr.bf16.mxu0 %v15011_v49  ;;  %13697 = vmatpush3.bf16.msra.mxu1 %v15010_v46  ;;  %v15055_v46 = vld [vmem:[%s15749_s25 + $0xc98] sm:$0xff]   ;;  %v15058_v49 = vld [vmem:[%s15749_s25 + $0xc20] sm:$0xff]  }
 0x175   : > { %10327 = vmatprep.mubr.bf16.mxu0 %v2648_v52  ;;  %13698 = vmatprep.subr.bf16.mxu1 %v15012_v51  ;;  %v15060_v51 = vld [vmem:[%s15749_s25 + $0xc68] sm:$0xff]  }
 0x176   : > { %10367 = vmatprep.mubr.bf16.mxu1 %v2652_v55  ;;  %v15061_v52 = vld [vmem:[%s15749_s25 + $0xce8] sm:$0xff]  }
 0x177   : > { %13677 = vmatpush3.bf16.msra.mxu0 %v15013_v53 }
 0x178   : > { %13678 = vmatprep.subr.bf16.mxu0 %v15015_v56  ;;  %13699 = vmatpush3.bf16.msra.mxu1 %v15014_v54  ;;  %v15062_v54 = vld [vmem:[%s15749_s25 + $0xc28] sm:$0xff]   ;;  %v15064_v56 = vld [vmem:[%s15749_s25 + $0xc70] sm:$0xff]  }
 0x179   : > { %13700 = vmatprep.subr.bf16.mxu1 %v15016_v57 }
 0x17b   : > { %13679 = vmatpush3.bf16.msra.mxu0 %v15017_v58 }
 0x17c   : > { %13680 = vmatprep.subr.bf16.mxu0 %v15019_v60  ;;  %13701 = vmatpush3.bf16.msra.mxu1 %v15018_v59 }
 0x17d   : > { %13702 = vmatprep.subr.bf16.mxu1 %v15020_v61  ;;  %v15063_v61 = vld [vmem:[%s15749_s25 + $0xca8] sm:$0xff]  }
 0x17f   : > { %13681 = vmatpush3.bf16.msra.mxu0 %v15021_v62 }
 0x180   : > { %13682 = vmatprep.subr.bf16.mxu0 %v15023_v0  ;;  %13703 = vmatpush3.bf16.msra.mxu1 %v15022_v63  ;;  %v15065_v63 = vld [vmem:[%s15749_s25 + $0xcf0] sm:$0xff]  }
 0x181   : > { %13704 = vmatprep.subr.bf16.mxu1 %v15024_v1 }
 0x183   : > { %13683 = vmatpush3.bf16.msra.mxu0 %v15025_v2 }
 0x184   : > { %13684 = vmatprep.subr.bf16.mxu0 %v15027_v4  ;;  %13705 = vmatpush3.bf16.msra.mxu1 %v15026_v3  ;;  %v15066_v3 = vld [vmem:[%s15749_s25 + $0xc30] sm:$0xff]  }
 0x185   : > { %v13382_v7 = vpop.f32.mrb[16].mxu0  ;;  %13706 = vmatprep.subr.bf16.mxu1 %v15028_v5  ;;  %v15068_v5 = vld [vmem:[%s15749_s25 + $0xc78] sm:$0xff]  }
 0x186   : > { %v13383_v9 = vpop.f32.mrb[17].mxu0  ;;  %v13404_v11 = vpop.f32.mrb[16].mxu1 }
 0x187   : > { %v13384_v12 = vadd.f32 %v13383_v9, %v13382_v7  ;;  %v13385_v13 = vpop.f32.mrb[18].mxu0  ;;  %v13405_v16 = vpop.f32.mrb[17].mxu1  ;;  %13685 = vmatpush3.bf16.msra.mxu0 %v15029_v8  ;;  %v15067_v8 = vld [vmem:[%s15749_s25 + $0xcb0] sm:$0xff]   ;;  %v15069_v9 = vld [vmem:[%s15749_s25 + $0xcf8] sm:$0xff]  }
 0x188   : > { %v13386_v17 = vpop.f32.mrb[19].mxu0  ;;  %v13406_v19 = vadd.f32 %v13405_v16, %v13404_v11  ;;  %v13407_v20 = vpop.f32.mrb[18].mxu1  ;;  %13686 = vmatprep.subr.bf16.mxu0 %v15031_v14  ;;  %13707 = vmatpush3.bf16.msra.mxu1 %v15030_v10  ;;  %v15070_v10 = vld [vmem:[%s15749_s25 + $0xc38] sm:$0xff]   ;;  %v278_v11 = vld [vmem:[%s17104_s0 + $0x30] sm:$0xff]  ;;  %v15072_v13 = vld [vmem:[%s15749_s25 + $0xd40] sm:$0xff]  }
 0x189   : > { %v9770_v18 = vadd.f32 %v13384_v12, %v16192_v27  ;;  %v13408_v22 = vpop.f32.mrb[19].mxu1  ;;  %13708 = vmatprep.subr.bf16.mxu1 %v15032_v15  ;;  %v15037_v27 = vld [vmem:[%s15749_s25 + $0xb38] sm:$0xff]   ;;  %v2660_v12 = vrot.slane %v278_v11, %v15751_v6  ;;  %v2653_v14 = vcombine.high %v278_v11, %v278_v11  ;;  %v15074_v20 = vld [vmem:[%s15749_s25 + $0xd00] sm:$0xff]   ;;  %v15109_v11 = vld [vmem:[%s15749_s25 + $0xe48] sm:$0xff]  }
 0x18a   : > { %v15071_v15 = vld [vmem:[%s15749_s25 + $0xcb8] sm:$0xff]   ;;  %v15075_v22 = vld [vmem:[%s15749_s25 + $0xd80] sm:$0xff]  }
 0x18b   : > { %v16243_v24 = vadd.f32 %v13406_v19, %v9770_v18  ;;  %13687 = vmatpush3.bf16.msra.mxu0 %v15033_v21  ;;  %v2668_v16 = vcombine.high %v2660_v12, %v2660_v12  ;;  %v2676_v17 = vrot.slane %v2660_v12, %v15751_v6  ;;  %v15073_v18 = vld [vmem:[%s15749_s25 + $0xdc0] sm:$0xff]   ;;  %v16294_v19 = vrot.slane %v2653_v14, %v15751_v6  ;;  %v15110_v12 = vld [vmem:[%s15749_s25 + $0xec8] sm:$0xff]  }
 0x18c   : > { %13688 = vmatprep.subr.bf16.mxu0 %v15035_v25  ;;  %13709 = vmatpush3.bf16.msra.mxu1 %v15034_v23  ;;  %v15076_v25 = vld [vmem:[%s15749_s25 + $0xd48] sm:$0xff]  }
 0x18d   : > { %13710 = vmatprep.subr.bf16.mxu1 %v15036_v26  ;;  %v2690_v21 = vrot.slane %v2668_v16, %v15751_v6  ;;  %v2669_v23 = vcombine.high %v16294_v19, %v16294_v19  ;;  %v15112_v14 = vld [vmem:[%s15749_s25 + $0xe88] sm:$0xff]   ;;  %v15114_v16 = vld [vmem:[%s15749_s25 + $0xed0] sm:$0xff]  }
 0x18f   : > { %13689 = vmatpush3.bf16.msra.mxu0 %v15037_v27  ;;  %v2700_v26 = vcombine.high %v2690_v21, %v2690_v21  ;;  %v15077_v27 = vld [vmem:[%s15749_s25 + $0xdc8] sm:$0xff]  }
 0x190   : > { %13718 = vmatprep.subr.bf16.mxu0 %v15040_v30  ;;  %13711 = vmatpush3.bf16.msra.mxu1 %v15038_v28  ;;  %v2697_v28 = vrot.slane %v2669_v23, %v15751_v6  ;;  %v15079_v30 = vld [vmem:[%s15749_s25 + $0xd88] sm:$0xff]   ;;  %v15121_v23 = vld [vmem:[%s15749_s25 + $0xe60] sm:$0xff]  }
 0x191   : > { %13740 = vmatprep.subr.bf16.mxu1 %v15041_v31 }
 0x192   : > { %10328 = vmatmul.mubr.bf16.vlgmr.msra.gmra.mrb[44].mxu0 %v2634_v29  ;;  %v15078_v29 = vld [vmem:[%s15749_s25 + $0xd08] sm:$0xff]   ;;  %v2701_v31 = vcombine.high %v2697_v28, %v2697_v28 }
 0x193   : > { %13719 = vmatpush3.bf16.msra.mxu0 %v15042_v32  ;;  %10368 = vmatmul.mubr.bf16.vlgmr.msra.gmra.mrb[44].mxu1 %v2650_v34  ;;  %v15080_v32 = vld [vmem:[%s15749_s25 + $0xd50] sm:$0xff]  }
 0x194   : > { %13720 = vmatprep.subr.bf16.mxu0 %v15044_v35  ;;  %13741 = vmatpush3.bf16.msra.mxu1 %v15043_v33  ;;  %v15081_v33 = vld [vmem:[%s15749_s25 + $0xdd0] sm:$0xff]  }
 0x195   : > { %13742 = vmatprep.subr.bf16.mxu1 %v15045_v36  ;;  %10407 = vmatprep.mubr.bf16.mxu0 %v2690_v21  ;;  %v15082_v34 = vld [vmem:[%s15749_s25 + $0xd10] sm:$0xff]   ;;  %v15084_v36 = vld [vmem:[%s15749_s25 + $0xd58] sm:$0xff]  }
 0x196   : > { %10447 = vmatprep.mubr.bf16.mxu1 %v2700_v26  ;;  %v15083_v35 = vld [vmem:[%s15749_s25 + $0xd90] sm:$0xff]   ;;  %v15119_v21 = vld [vmem:[%s15749_s25 + $0xe18] sm:$0xff]   ;;  %v15124_v26 = vld [vmem:[%s15749_s25 + $0xea0] sm:$0xff]  }
 0x197   : > { %13721 = vmatpush3.bf16.msra.mxu0 %v15046_v37  ;;  %v15085_v37 = vld [vmem:[%s15749_s25 + $0xdd8] sm:$0xff]  }
 0x198   : > { %13722 = vmatprep.subr.bf16.mxu0 %v15048_v39  ;;  %13743 = vmatpush3.bf16.msra.mxu1 %v15047_v38  ;;  %v15086_v38 = vld [vmem:[%s15749_s25 + $0xd18] sm:$0xff]  }
 0x199   : > { %13744 = vmatprep.subr.bf16.mxu1 %v15049_v40  ;;  %v15087_v39 = vld [vmem:[%s15749_s25 + $0xd98] sm:$0xff]   ;;  %v15088_v40 = vld [vmem:[%s15749_s25 + $0xd60] sm:$0xff]  }
 0x19b   : > { %13723 = vmatpush3.bf16.msra.mxu0 %v15050_v41  ;;  %v15089_v41 = vld [vmem:[%s15749_s25 + $0xde0] sm:$0xff]  }
 0x19c   : > { %13724 = vmatprep.subr.bf16.mxu0 %v15052_v43  ;;  %13745 = vmatpush3.bf16.msra.mxu1 %v15051_v42  ;;  %v15090_v42 = vld [vmem:[%s15749_s25 + $0xd20] sm:$0xff]  }
 0x19d   : > { %13746 = vmatprep.subr.bf16.mxu1 %v15053_v44  ;;  %v15091_v43 = vld [vmem:[%s15749_s25 + $0xda0] sm:$0xff]   ;;  %v15092_v44 = vld [vmem:[%s15749_s25 + $0xd68] sm:$0xff]  }
 0x19f   : > { %13725 = vmatpush3.bf16.msra.mxu0 %v15054_v45 }
 0x1a0   : > { %13726 = vmatprep.subr.bf16.mxu0 %v15056_v47  ;;  %13747 = vmatpush3.bf16.msra.mxu1 %v15055_v46  ;;  %v15093_v46 = vld [vmem:[%s15749_s25 + $0xde8] sm:$0xff]  }
 0x1a1   : > { %13748 = vmatprep.subr.bf16.mxu1 %v15057_v48  ;;  %v15094_v48 = vld [vmem:[%s15749_s25 + $0xd28] sm:$0xff]  }
 0x1a3   : > { %13727 = vmatpush3.bf16.msra.mxu0 %v15058_v49 }
 0x1a4   : > { %13728 = vmatprep.subr.bf16.mxu0 %v15060_v51  ;;  %13749 = vmatpush3.bf16.msra.mxu1 %v15059_v50 }
 0x1a5   : > { %v13426_v53 = vpop.f32.mrb[20].mxu0  ;;  %13750 = vmatprep.subr.bf16.mxu1 %v15061_v52  ;;  %v15095_v52 = vld [vmem:[%s15749_s25 + $0xda8] sm:$0xff]  }
 0x1a6   : > { %v13427_v55 = vpop.f32.mrb[21].mxu0  ;;  %v13448_v57 = vpop.f32.mrb[20].mxu1 }
 0x1a7   : > { %v13428_v58 = vadd.f32 %v13427_v55, %v13426_v53  ;;  %v13429_v59 = vpop.f32.mrb[22].mxu0  ;;  %v13449_v60 = vpop.f32.mrb[21].mxu1  ;;  %13729 = vmatpush3.bf16.msra.mxu0 %v15062_v54  ;;  %v15096_v53 = vld [vmem:[%s15749_s25 + $0xd70] sm:$0xff]  }
 0x1a8   : > { %v13430_v62 = vpop.f32.mrb[23].mxu0  ;;  %v13450_v1 = vadd.f32 %v13449_v60, %v13448_v57  ;;  %v13451_v2 = vpop.f32.mrb[22].mxu1  ;;  %13730 = vmatprep.subr.bf16.mxu0 %v15064_v56  ;;  %13751 = vmatpush3.bf16.msra.mxu1 %v15063_v61  ;;  %v15097_v59 = vld [vmem:[%s15749_s25 + $0xdf0] sm:$0xff]  }
 0x1a9   : > { %v9850_v0 = vadd.f32 %v13428_v58, %v16243_v24  ;;  %v13452_v4 = vpop.f32.mrb[23].mxu1  ;;  %13752 = vmatprep.subr.bf16.mxu1 %v15065_v63  ;;  %v2698_v24 = vcombine.high %v2676_v17, %v2676_v17  ;;  %v15098_v61 = vld [vmem:[%s15749_s25 + $0xd30] sm:$0xff]   ;;  %v15102_v2 = vld [vmem:[%s15749_s25 + $0xd38] sm:$0xff]  }
 0x1aa   : > { %v15099_v63 = vld [vmem:[%s15749_s25 + $0xdb0] sm:$0xff]   ;;  %v2683_v4 = vrot.slane %v16294_v19, %v15751_v6  ;;  %v15117_v19 = vld [vmem:[%s15749_s25 + $0xe58] sm:$0xff]  }
 0x1ab   : > { %v16280_v7 = vadd.f32 %v13450_v1, %v9850_v0  ;;  %13731 = vmatpush3.bf16.msra.mxu0 %v15066_v3  ;;  %v15100_v0 = vld [vmem:[%s15749_s25 + $0xd78] sm:$0xff]  }
 0x1ac   : > { %13732 = vmatprep.subr.bf16.mxu0 %v15068_v5  ;;  %13753 = vmatpush3.bf16.msra.mxu1 %v15067_v8  ;;  %v15101_v1 = vld [vmem:[%s15749_s25 + $0xdf8] sm:$0xff]   ;;  %v15105_v5 = vld [vmem:[%s15749_s25 + $0xe40] sm:$0xff]  }
 0x1ad   : > { %13754 = vmatprep.subr.bf16.mxu1 %v15069_v9  ;;  %v15103_v3 = vld [vmem:[%s15749_s25 + $0xdb8] sm:$0xff]   ;;  %v15107_v8 = vld [vmem:[%s15749_s25 + $0xe00] sm:$0xff]  }
 0x1ae   : > { %v15108_v9 = vld [vmem:[%s15749_s25 + $0xe80] sm:$0xff]  }
 0x1af   : > { %13733 = vmatpush3.bf16.msra.mxu0 %v15070_v10  ;;  %v2699_v10 = vcombine.high %v2683_v4, %v2683_v4 }
 0x1b0   : > { %13762 = vmatprep.subr.bf16.mxu0 %v15072_v13  ;;  %13755 = vmatpush3.bf16.msra.mxu1 %v15071_v15  ;;  %v15111_v13 = vld [vmem:[%s15749_s25 + $0xe08] sm:$0xff]   ;;  %v15113_v15 = vld [vmem:[%s15749_s25 + $0xe50] sm:$0xff]  }
 0x1b1   : > { %13784 = vmatprep.subr.bf16.mxu1 %v15073_v18  ;;  %v15116_v18 = vld [vmem:[%s15749_s25 + $0xe90] sm:$0xff]  }
 0x1b2   : > { %10408 = vmatmul.mubr.bf16.vlgmr.msra.gmra.mrb[48].mxu0 %v2676_v17  ;;  %v15115_v17 = vld [vmem:[%s15749_s25 + $0xe10] sm:$0xff]  }
 0x1b3   : > { %13763 = vmatpush3.bf16.msra.mxu0 %v15074_v20  ;;  %10448 = vmatmul.mubr.bf16.vlgmr.msra.gmra.mrb[48].mxu1 %v2698_v24  ;;  %v15118_v20 = vld [vmem:[%s15749_s25 + $0xed8] sm:$0xff]   ;;  %v15122_v24 = vld [vmem:[%s15749_s25 + $0xee0] sm:$0xff]  }
 0x1b4   : > { %13764 = vmatprep.subr.bf16.mxu0 %v15076_v25  ;;  %13785 = vmatpush3.bf16.msra.mxu1 %v15075_v22  ;;  %v15120_v22 = vld [vmem:[%s15749_s25 + $0xe98] sm:$0xff]   ;;  %v15123_v25 = vld [vmem:[%s15749_s25 + $0xe20] sm:$0xff]  }
 0x1b5   : > { %10487 = vmatprep.mubr.bf16.mxu0 %v2697_v28  ;;  %13786 = vmatprep.subr.bf16.mxu1 %v15077_v27  ;;  %v15125_v27 = vld [vmem:[%s15749_s25 + $0xe68] sm:$0xff]  }
 0x1b6   : > { %10527 = vmatprep.mubr.bf16.mxu1 %v2701_v31  ;;  %v15127_v31 = vld [vmem:[%s15749_s25 + $0xe28] sm:$0xff]  }
 0x1b7   : > { %13765 = vmatpush3.bf16.msra.mxu0 %v15078_v29  ;;  %v15126_v29 = vld [vmem:[%s15749_s25 + $0xee8] sm:$0xff]  }
 0x1b8   : > { %13766 = vmatprep.subr.bf16.mxu0 %v15080_v32  ;;  %13787 = vmatpush3.bf16.msra.mxu1 %v15079_v30 }
 0x1b9   : > { %13788 = vmatprep.subr.bf16.mxu1 %v15081_v33 }
 0x1bb   : > { %13767 = vmatpush3.bf16.msra.mxu0 %v15082_v34 }
 0x1bc   : > { %13768 = vmatprep.subr.bf16.mxu0 %v15084_v36  ;;  %13789 = vmatpush3.bf16.msra.mxu1 %v15083_v35  ;;  %v15128_v36 = vld [vmem:[%s15749_s25 + $0xea8] sm:$0xff]  }
 0x1bd   : > { %13790 = vmatprep.subr.bf16.mxu1 %v15085_v37 }
 0x1bf   : > { %13769 = vmatpush3.bf16.msra.mxu0 %v15086_v38  ;;  %v15129_v38 = vld [vmem:[%s15749_s25 + $0xe70] sm:$0xff]  }
 0x1c0   : > { %13770 = vmatprep.subr.bf16.mxu0 %v15088_v40  ;;  %13791 = vmatpush3.bf16.msra.mxu1 %v15087_v39 }
 0x1c1   : > { %13792 = vmatprep.subr.bf16.mxu1 %v15089_v41 }
 0x1c3   : > { %13771 = vmatpush3.bf16.msra.mxu0 %v15090_v42  ;;  %v15130_v42 = vld [vmem:[%s15749_s25 + $0xef0] sm:$0xff]  }
 0x1c4   : > { %13772 = vmatprep.subr.bf16.mxu0 %v15092_v44  ;;  %13793 = vmatpush3.bf16.msra.mxu1 %v15091_v43  ;;  %v15131_v44 = vld [vmem:[%s15749_s25 + $0xe30] sm:$0xff]  }
 0x1c5   : > { %v13470_v45 = vpop.f32.mrb[24].mxu0  ;;  %13794 = vmatprep.subr.bf16.mxu1 %v15093_v46  ;;  %v15133_v46 = vld [vmem:[%s15749_s25 + $0xe78] sm:$0xff]  }
 0x1c6   : > { %v13471_v47 = vpop.f32.mrb[25].mxu0  ;;  %v13492_v49 = vpop.f32.mrb[24].mxu1 }
 0x1c7   : > { %v13472_v50 = vadd.f32 %v13471_v47, %v13470_v45  ;;  %v13473_v51 = vpop.f32.mrb[26].mxu0  ;;  %v13493_v54 = vpop.f32.mrb[25].mxu1  ;;  %13773 = vmatpush3.bf16.msra.mxu0 %v15094_v48  ;;  %v15132_v47 = vld [vmem:[%s15749_s25 + $0xeb0] sm:$0xff]   ;;  %v15134_v48 = vld [vmem:[%s15749_s25 + $0xef8] sm:$0xff]  }
 0x1c8   : > { %v13474_v55 = vpop.f32.mrb[27].mxu0  ;;  %v13494_v57 = vadd.f32 %v13493_v54, %v13492_v49  ;;  %v13495_v58 = vpop.f32.mrb[26].mxu1  ;;  %13774 = vmatprep.subr.bf16.mxu0 %v15096_v53  ;;  %13795 = vmatpush3.bf16.msra.mxu1 %v15095_v52  ;;  %v15135_v49 = vld [vmem:[%s15749_s25 + $0xe38] sm:$0xff]   ;;  %v15137_v52 = vld [vmem:[%s15749_s25 + $0xf40] sm:$0xff]  }
 0x1c9   : > { %v9930_v56 = vadd.f32 %v13472_v50, %v16280_v7  ;;  %v13496_v60 = vpop.f32.mrb[27].mxu1  ;;  %13796 = vmatprep.subr.bf16.mxu1 %v15097_v59  ;;  %v15106_v7 = vld [vmem:[%s15749_s25 + $0xec0] sm:$0xff]   ;;  %v279_v50 = vld [vmem:[%s17104_s0 + $0x38] sm:$0xff] }
 0x1ca   : > { %v2709_v51 = vrot.slane %v279_v50, %v15751_v6  ;;  %v2702_v53 = vcombine.high %v279_v50, %v279_v50  ;;  %v15136_v54 = vld [vmem:[%s15749_s25 + $0xeb8] sm:$0xff]   ;;  %v15139_v59 = vld [vmem:[%s15749_s25 + $0xf00] sm:$0xff]   ;;  %v15174_v50 = vld [vmem:[%s15749_s25 + $0x1048] sm:$0xff]  }
 0x1cb   : > { %v16326_v62 = vadd.f32 %v13494_v57, %v9930_v56  ;;  %13775 = vmatpush3.bf16.msra.mxu0 %v15098_v61  ;;  %v15138_v57 = vld [vmem:[%s15749_s25 + $0xfc0] sm:$0xff]  }
 0x1cc   : > { %13776 = vmatprep.subr.bf16.mxu0 %v15100_v0  ;;  %13797 = vmatpush3.bf16.msra.mxu1 %v15099_v63  ;;  %v2717_v55 = vcombine.high %v2709_v51, %v2709_v51  ;;  %v2725_v56 = vrot.slane %v2709_v51, %v15751_v6  ;;  %v16378_v58 = vrot.slane %v2702_v53, %v15751_v6  ;;  %v15140_v61 = vld [vmem:[%s15749_s25 + $0xf80] sm:$0xff]   ;;  %v15141_v0 = vld [vmem:[%s15749_s25 + $0xf48] sm:$0xff]  }
 0x1cd   : > { %13798 = vmatprep.subr.bf16.mxu1 %v15101_v1  ;;  %v15175_v51 = vld [vmem:[%s15749_s25 + $0x10c8] sm:$0xff]  }
 0x1ce   : > { %v2739_v60 = vrot.slane %v2717_v55, %v15751_v6  ;;  %v2747_v63 = vcombine.high %v2725_v56, %v2725_v56  ;;  %v15177_v53 = vld [vmem:[%s15749_s25 + $0x1088] sm:$0xff]   ;;  %v15179_v55 = vld [vmem:[%s15749_s25 + $0x10d0] sm:$0xff]  }
 0x1cf   : > { %13777 = vmatpush3.bf16.msra.mxu0 %v15102_v2  ;;  %v15142_v2 = vld [vmem:[%s15749_s25 + $0xfc8] sm:$0xff]  }
 0x1d0   : > { %13806 = vmatprep.subr.bf16.mxu0 %v15105_v5  ;;  %13799 = vmatpush3.bf16.msra.mxu1 %v15103_v3  ;;  %v2749_v1 = vcombine.high %v2739_v60, %v2739_v60  ;;  %v15144_v5 = vld [vmem:[%s15749_s25 + $0xf88] sm:$0xff]  }
 0x1d1   : > { %13828 = vmatprep.subr.bf16.mxu1 %v15106_v7 }
 0x1d2   : > { %10488 = vmatmul.mubr.bf16.vlgmr.msra.gmra.mrb[52].mxu0 %v2683_v4  ;;  %v15143_v4 = vld [vmem:[%s15749_s25 + $0xf08] sm:$0xff]  }
 0x1d3   : > { %13807 = vmatpush3.bf16.msra.mxu0 %v15107_v8  ;;  %10528 = vmatmul.mubr.bf16.vlgmr.msra.gmra.mrb[52].mxu1 %v2699_v10  ;;  %v15145_v8 = vld [vmem:[%s15749_s25 + $0xf50] sm:$0xff]  }
 0x1d4   : > { %13808 = vmatprep.subr.bf16.mxu0 %v15109_v11  ;;  %13829 = vmatpush3.bf16.msra.mxu1 %v15108_v9  ;;  %v15146_v9 = vld [vmem:[%s15749_s25 + $0xfd0] sm:$0xff]  }
 0x1d5   : > { %13830 = vmatprep.subr.bf16.mxu1 %v15110_v12  ;;  %10567 = vmatprep.mubr.bf16.mxu0 %v2739_v60  ;;  %v15147_v10 = vld [vmem:[%s15749_s25 + $0xf10] sm:$0xff]   ;;  %v15149_v12 = vld [vmem:[%s15749_s25 + $0xf58] sm:$0xff]  }
 0x1d6   : > { %10607 = vmatprep.mubr.bf16.mxu1 %v2749_v1  ;;  %v15148_v11 = vld [vmem:[%s15749_s25 + $0xf90] sm:$0xff]   ;;  %v15184_v60 = vld [vmem:[%s15749_s25 + $0x1018] sm:$0xff]   ;;  %v15189_v1 = vld [vmem:[%s15749_s25 + $0x10a0] sm:$0xff]  }
 0x1d7   : > { %13809 = vmatpush3.bf16.msra.mxu0 %v15111_v13  ;;  %v15150_v13 = vld [vmem:[%s15749_s25 + $0xfd8] sm:$0xff]  }
 0x1d8   : > { %13810 = vmatprep.subr.bf16.mxu0 %v15113_v15  ;;  %13831 = vmatpush3.bf16.msra.mxu1 %v15112_v14  ;;  %v15151_v14 = vld [vmem:[%s15749_s25 + $0xf18] sm:$0xff]  }
 0x1d9   : > { %13832 = vmatprep.subr.bf16.mxu1 %v15114_v16  ;;  %v15152_v15 = vld [vmem:[%s15749_s25 + $0xf98] sm:$0xff]   ;;  %v15153_v16 = vld [vmem:[%s15749_s25 + $0xf60] sm:$0xff]  }
 0x1db   : > { %13811 = vmatpush3.bf16.msra.mxu0 %v15115_v17  ;;  %v15154_v17 = vld [vmem:[%s15749_s25 + $0xfe0] sm:$0xff]  }
 0x1dc   : > { %13812 = vmatprep.subr.bf16.mxu0 %v15117_v19  ;;  %13833 = vmatpush3.bf16.msra.mxu1 %v15116_v18  ;;  %v15155_v18 = vld [vmem:[%s15749_s25 + $0xf20] sm:$0xff]  }
 0x1dd   : > { %13834 = vmatprep.subr.bf16.mxu1 %v15118_v20  ;;  %v15156_v19 = vld [vmem:[%s15749_s25 + $0xfa0] sm:$0xff]   ;;  %v15157_v20 = vld [vmem:[%s15749_s25 + $0xf68] sm:$0xff]  }
 0x1df   : > { %13813 = vmatpush3.bf16.msra.mxu0 %v15119_v21  ;;  %v15158_v21 = vld [vmem:[%s15749_s25 + $0xfe8] sm:$0xff]  }
 0x1e0   : > { %13814 = vmatprep.subr.bf16.mxu0 %v15121_v23  ;;  %13835 = vmatpush3.bf16.msra.mxu1 %v15120_v22  ;;  %v15159_v23 = vld [vmem:[%s15749_s25 + $0xf28] sm:$0xff]  }
 0x1e1   : > { %13836 = vmatprep.subr.bf16.mxu1 %v15122_v24 }
 0x1e3   : > { %13815 = vmatpush3.bf16.msra.mxu0 %v15123_v25  ;;  %v15160_v25 = vld [vmem:[%s15749_s25 + $0xfa8] sm:$0xff]  }
 0x1e4   : > { %13816 = vmatprep.subr.bf16.mxu0 %v15125_v27  ;;  %13837 = vmatpush3.bf16.msra.mxu1 %v15124_v26 }
 0x1e5   : > { %v13514_v28 = vpop.f32.mrb[28].mxu0  ;;  %13838 = vmatprep.subr.bf16.mxu1 %v15126_v29  ;;  %v15161_v29 = vld [vmem:[%s15749_s25 + $0xf70] sm:$0xff]  }
 0x1e6   : > { %v13515_v30 = vpop.f32.mrb[29].mxu0  ;;  %v13536_v32 = vpop.f32.mrb[28].mxu1 }
 0x1e7   : > { %v13516_v33 = vadd.f32 %v13515_v30, %v13514_v28  ;;  %v13517_v34 = vpop.f32.mrb[30].mxu0  ;;  %v13537_v35 = vpop.f32.mrb[29].mxu1  ;;  %13817 = vmatpush3.bf16.msra.mxu0 %v15127_v31  ;;  %v15162_v30 = vld [vmem:[%s15749_s25 + $0xff0] sm:$0xff]  }
 0x1e8   : > { %v13518_v37 = vpop.f32.mrb[31].mxu0  ;;  %v13538_v40 = vadd.f32 %v13537_v35, %v13536_v32  ;;  %v13539_v41 = vpop.f32.mrb[30].mxu1  ;;  %13818 = vmatprep.subr.bf16.mxu0 %v15129_v38  ;;  %13839 = vmatpush3.bf16.msra.mxu1 %v15128_v36  ;;  %v15163_v36 = vld [vmem:[%s15749_s25 + $0xf30] sm:$0xff]  }
 0x1e9   : > { %v10010_v39 = vadd.f32 %v13516_v33, %v16326_v62  ;;  %v13540_v43 = vpop.f32.mrb[31].mxu1  ;;  %13840 = vmatprep.subr.bf16.mxu1 %v15130_v42  ;;  %v2718_v62 = vcombine.high %v16378_v58, %v16378_v58  ;;  %v15164_v38 = vld [vmem:[%s15749_s25 + $0xfb0] sm:$0xff]   ;;  %v15166_v41 = vld [vmem:[%s15749_s25 + $0xff8] sm:$0xff]  }
 0x1ea   : > { %v15167_v42 = vld [vmem:[%s15749_s25 + $0xf38] sm:$0xff]  }
 0x1eb   : > { %v16363_v45 = vadd.f32 %v13538_v40, %v10010_v39  ;;  %13819 = vmatpush3.bf16.msra.mxu0 %v15131_v44  ;;  %v2746_v3 = vrot.slane %v2718_v62, %v15751_v6  ;;  %v15165_v40 = vld [vmem:[%s15749_s25 + $0xf78] sm:$0xff]   ;;  %v2732_v44 = vrot.slane %v16378_v58, %v15751_v6  ;;  %v15186_v62 = vld [vmem:[%s15749_s25 + $0x1060] sm:$0xff]  }
 0x1ec   : > { %13820 = vmatprep.subr.bf16.mxu0 %v15133_v46  ;;  %13841 = vmatpush3.bf16.msra.mxu1 %v15132_v47  ;;  %v15168_v43 = vld [vmem:[%s15749_s25 + $0xfb8] sm:$0xff]   ;;  %v15171_v46 = vld [vmem:[%s15749_s25 + $0x10c0] sm:$0xff]  }
 0x1ed   : > { %13842 = vmatprep.subr.bf16.mxu1 %v15134_v48  ;;  %v2750_v7 = vcombine.high %v2746_v3, %v2746_v3  ;;  %v15172_v47 = vld [vmem:[%s15749_s25 + $0x1000] sm:$0xff]   ;;  %v15182_v58 = vld [vmem:[%s15749_s25 + $0x1058] sm:$0xff]  }
 0x1ee   : > { %v15173_v48 = vld [vmem:[%s15749_s25 + $0x1080] sm:$0xff]  }
 0x1ef   : > { %13821 = vmatpush3.bf16.msra.mxu0 %v15135_v49  ;;  %v2748_v49 = vcombine.high %v2732_v44, %v2732_v44 }
 0x1f0   : > { %13850 = vmatprep.subr.bf16.mxu0 %v15137_v52  ;;  %13843 = vmatpush3.bf16.msra.mxu1 %v15136_v54  ;;  %v15176_v52 = vld [vmem:[%s15749_s25 + $0x1008] sm:$0xff]   ;;  %v15178_v54 = vld [vmem:[%s15749_s25 + $0x1050] sm:$0xff]  }
 0x1f1   : > { %13872 = vmatprep.subr.bf16.mxu1 %v15138_v57  ;;  %v15181_v57 = vld [vmem:[%s15749_s25 + $0x1090] sm:$0xff]  }
 0x1f2   : > { %10568 = vmatmul.mubr.bf16.vlgmr.msra.gmra.mrb[56].mxu0 %v2725_v56  ;;  %v15180_v56 = vld [vmem:[%s15749_s25 + $0x1010] sm:$0xff]  }
 0x1f3   : > { %13851 = vmatpush3.bf16.msra.mxu0 %v15139_v59  ;;  %10608 = vmatmul.mubr.bf16.vlgmr.msra.gmra.mrb[56].mxu1 %v2747_v63  ;;  %v15183_v59 = vld [vmem:[%s15749_s25 + $0x10d8] sm:$0xff]   ;;  %v15187_v63 = vld [vmem:[%s15749_s25 + $0x10e0] sm:$0xff]  }
 0x1f4   : > { %13852 = vmatprep.subr.bf16.mxu0 %v15141_v0  ;;  %13873 = vmatpush3.bf16.msra.mxu1 %v15140_v61  ;;  %v15185_v61 = vld [vmem:[%s15749_s25 + $0x1098] sm:$0xff]   ;;  %v15188_v0 = vld [vmem:[%s15749_s25 + $0x1020] sm:$0xff]  }
 0x1f5   : > { %10647 = vmatprep.mubr.bf16.mxu0 %v2746_v3  ;;  %13874 = vmatprep.subr.bf16.mxu1 %v15142_v2  ;;  %v15190_v2 = vld [vmem:[%s15749_s25 + $0x1068] sm:$0xff]  }
 0x1f6   : > { %10687 = vmatprep.mubr.bf16.mxu1 %v2750_v7  ;;  %v15191_v3 = vld [vmem:[%s15749_s25 + $0x10e8] sm:$0xff]  }
 0x1f7   : > { %13853 = vmatpush3.bf16.msra.mxu0 %v15143_v4 }
 0x1f8   : > { %13854 = vmatprep.subr.bf16.mxu0 %v15145_v8  ;;  %13875 = vmatpush3.bf16.msra.mxu1 %v15144_v5  ;;  %v15192_v5 = vld [vmem:[%s15749_s25 + $0x1028] sm:$0xff]   ;;  %v15194_v8 = vld [vmem:[%s15749_s25 + $0x1070] sm:$0xff]  }
 0x1f9   : > { %13876 = vmatprep.subr.bf16.mxu1 %v15146_v9 }
 0x1fb   : > { %13855 = vmatpush3.bf16.msra.mxu0 %v15147_v10 }
 0x1fc   : > { %13856 = vmatprep.subr.bf16.mxu0 %v15149_v12  ;;  %13877 = vmatpush3.bf16.msra.mxu1 %v15148_v11 }
 0x1fd   : > { %13878 = vmatprep.subr.bf16.mxu1 %v15150_v13  ;;  %v15193_v13 = vld [vmem:[%s15749_s25 + $0x10a8] sm:$0xff]  }
 0x1ff   : > { %13857 = vmatpush3.bf16.msra.mxu0 %v15151_v14 }
 0x200   : > { %13858 = vmatprep.subr.bf16.mxu0 %v15153_v16  ;;  %13879 = vmatpush3.bf16.msra.mxu1 %v15152_v15  ;;  %v15195_v15 = vld [vmem:[%s15749_s25 + $0x10f0] sm:$0xff]  }
 0x201   : > { %13880 = vmatprep.subr.bf16.mxu1 %v15154_v17 }
 0x203   : > { %13859 = vmatpush3.bf16.msra.mxu0 %v15155_v18 }
 0x204   : > { %13860 = vmatprep.subr.bf16.mxu0 %v15157_v20  ;;  %13881 = vmatpush3.bf16.msra.mxu1 %v15156_v19  ;;  %v15196_v19 = vld [vmem:[%s15749_s25 + $0x1030] sm:$0xff]  }
 0x205   : > { %v13558_v22 = vpop.f32.mrb[32].mxu0  ;;  %13882 = vmatprep.subr.bf16.mxu1 %v15158_v21  ;;  %v15198_v21 = vld [vmem:[%s15749_s25 + $0x1078] sm:$0xff]  }
 0x206   : > { %v13559_v24 = vpop.f32.mrb[33].mxu0  ;;  %v13580_v26 = vpop.f32.mrb[32].mxu1 }
 0x207   : > { %v13560_v27 = vadd.f32 %v13559_v24, %v13558_v22  ;;  %v13561_v28 = vpop.f32.mrb[34].mxu0  ;;  %v13581_v31 = vpop.f32.mrb[33].mxu1  ;;  %13861 = vmatpush3.bf16.msra.mxu0 %v15159_v23  ;;  %v15197_v23 = vld [vmem:[%s15749_s25 + $0x10b0] sm:$0xff]   ;;  %v15199_v24 = vld [vmem:[%s15749_s25 + $0x10f8] sm:$0xff]  }
 0x208   : > { %v13562_v32 = vpop.f32.mrb[35].mxu0  ;;  %v13582_v34 = vadd.f32 %v13581_v31, %v13580_v26  ;;  %v13583_v35 = vpop.f32.mrb[34].mxu1  ;;  %13862 = vmatprep.subr.bf16.mxu0 %v15161_v29  ;;  %13883 = vmatpush3.bf16.msra.mxu1 %v15160_v25  ;;  %v15200_v25 = vld [vmem:[%s15749_s25 + $0x1038] sm:$0xff]   ;;  %v280_v26 = vld [vmem:[%s17104_s0 + $0x40] sm:$0xff] }
 0x209   : > { %v10090_v33 = vadd.f32 %v13560_v27, %v16363_v45  ;;  %v13584_v37 = vpop.f32.mrb[35].mxu1  ;;  %13884 = vmatprep.subr.bf16.mxu1 %v15162_v30  ;;  %v15170_v45 = vld [vmem:[%s15749_s25 + $0x1040] sm:$0xff]   ;;  %v2758_v27 = vrot.slane %v280_v26, %v15751_v6  ;;  %v2751_v29 = vcombine.high %v280_v26, %v280_v26  ;;  %v15201_v30 = vld [vmem:[%s15749_s25 + $0x10b8] sm:$0xff]   ;;  %v15239_v26 = vld [vmem:[%s15749_s25 + $0x1248] sm:$0xff]  }
 0x20a   : > { %v15202_v28 = vld [vmem:[%s15749_s25 + $0x1140] sm:$0xff]  }
 0x20b   : > { %v16411_v39 = vadd.f32 %v13582_v34, %v10090_v33  ;;  %13863 = vmatpush3.bf16.msra.mxu0 %v15163_v36  ;;  %v2766_v31 = vcombine.high %v2758_v27, %v2758_v27  ;;  %v2774_v32 = vrot.slane %v2758_v27, %v15751_v6  ;;  %v15203_v33 = vld [vmem:[%s15749_s25 + $0x11c0] sm:$0xff]   ;;  %v16462_v34 = vrot.slane %v2751_v29, %v15751_v6  ;;  %v15240_v27 = vld [vmem:[%s15749_s25 + $0x12c8] sm:$0xff]  }
 0x20c   : > { %13864 = vmatprep.subr.bf16.mxu0 %v15165_v40  ;;  %13885 = vmatpush3.bf16.msra.mxu1 %v15164_v38  ;;  %v15204_v35 = vld [vmem:[%s15749_s25 + $0x1100] sm:$0xff]   ;;  %v15206_v40 = vld [vmem:[%s15749_s25 + $0x1148] sm:$0xff]  }
 0x20d   : > { %13886 = vmatprep.subr.bf16.mxu1 %v15166_v41  ;;  %v2788_v36 = vrot.slane %v2766_v31, %v15751_v6  ;;  %v15205_v37 = vld [vmem:[%s15749_s25 + $0x1180] sm:$0xff]   ;;  %v2767_v38 = vcombine.high %v16462_v34, %v16462_v34  ;;  %v15242_v29 = vld [vmem:[%s15749_s25 + $0x1288] sm:$0xff]   ;;  %v15244_v31 = vld [vmem:[%s15749_s25 + $0x12d0] sm:$0xff]  }
 0x20f   : > { %13865 = vmatpush3.bf16.msra.mxu0 %v15167_v42  ;;  %v2798_v41 = vcombine.high %v2788_v36, %v2788_v36  ;;  %v15207_v42 = vld [vmem:[%s15749_s25 + $0x11c8] sm:$0xff]  }
 0x210   : > { %13894 = vmatprep.subr.bf16.mxu0 %v15170_v45  ;;  %13887 = vmatpush3.bf16.msra.mxu1 %v15168_v43  ;;  %v2795_v43 = vrot.slane %v2767_v38, %v15751_v6  ;;  %v15209_v45 = vld [vmem:[%s15749_s25 + $0x1188] sm:$0xff]   ;;  %v15251_v38 = vld [vmem:[%s15749_s25 + $0x1260] sm:$0xff]  }
 0x211   : > { %13916 = vmatprep.subr.bf16.mxu1 %v15171_v46 }
 0x212   : > { %10648 = vmatmul.mubr.bf16.vlgmr.msra.gmra.mrb[60].mxu0 %v2732_v44  ;;  %v15208_v44 = vld [vmem:[%s15749_s25 + $0x1108] sm:$0xff]   ;;  %v2799_v46 = vcombine.high %v2795_v43, %v2795_v43 }
 0x213   : > { %13895 = vmatpush3.bf16.msra.mxu0 %v15172_v47  ;;  %10688 = vmatmul.mubr.bf16.vlgmr.msra.gmra.mrb[60].mxu1 %v2748_v49  ;;  %v15210_v47 = vld [vmem:[%s15749_s25 + $0x1150] sm:$0xff]  }
 0x214   : > { %13896 = vmatprep.subr.bf16.mxu0 %v15174_v50  ;;  %13917 = vmatpush3.bf16.msra.mxu1 %v15173_v48  ;;  %v15211_v48 = vld [vmem:[%s15749_s25 + $0x11d0] sm:$0xff]  }
 0x215   : > { %13918 = vmatprep.subr.bf16.mxu1 %v15175_v51  ;;  %10727 = vmatprep.mubr.bf16.mxu0 %v2788_v36  ;;  %v15212_v49 = vld [vmem:[%s15749_s25 + $0x1110] sm:$0xff]   ;;  %v15214_v51 = vld [vmem:[%s15749_s25 + $0x1158] sm:$0xff]  }
 0x216   : > { %10767 = vmatprep.mubr.bf16.mxu1 %v2798_v41  ;;  %v15213_v50 = vld [vmem:[%s15749_s25 + $0x1190] sm:$0xff]   ;;  %v15249_v36 = vld [vmem:[%s15749_s25 + $0x1218] sm:$0xff]   ;;  %v15254_v41 = vld [vmem:[%s15749_s25 + $0x12a0] sm:$0xff]  }
 0x217   : > { %13897 = vmatpush3.bf16.msra.mxu0 %v15176_v52  ;;  %v15215_v52 = vld [vmem:[%s15749_s25 + $0x11d8] sm:$0xff]  }
 0x218   : > { %13898 = vmatprep.subr.bf16.mxu0 %v15178_v54  ;;  %13919 = vmatpush3.bf16.msra.mxu1 %v15177_v53  ;;  %v15216_v53 = vld [vmem:[%s15749_s25 + $0x1118] sm:$0xff]  }
 0x219   : > { %13920 = vmatprep.subr.bf16.mxu1 %v15179_v55  ;;  %v15217_v54 = vld [vmem:[%s15749_s25 + $0x1198] sm:$0xff]   ;;  %v15218_v55 = vld [vmem:[%s15749_s25 + $0x1160] sm:$0xff]  }
 0x21b   : > { %13899 = vmatpush3.bf16.msra.mxu0 %v15180_v56  ;;  %v15219_v56 = vld [vmem:[%s15749_s25 + $0x11e0] sm:$0xff]  }
 0x21c   : > { %13900 = vmatprep.subr.bf16.mxu0 %v15182_v58  ;;  %13921 = vmatpush3.bf16.msra.mxu1 %v15181_v57  ;;  %v15220_v57 = vld [vmem:[%s15749_s25 + $0x1120] sm:$0xff]  }
 0x21d   : > { %13922 = vmatprep.subr.bf16.mxu1 %v15183_v59  ;;  %v15221_v58 = vld [vmem:[%s15749_s25 + $0x11a0] sm:$0xff]   ;;  %v15222_v59 = vld [vmem:[%s15749_s25 + $0x1168] sm:$0xff]  }
 0x21f   : > { %13901 = vmatpush3.bf16.msra.mxu0 %v15184_v60  ;;  %v15223_v60 = vld [vmem:[%s15749_s25 + $0x11e8] sm:$0xff]  }
 0x220   : > { %13902 = vmatprep.subr.bf16.mxu0 %v15186_v62  ;;  %13923 = vmatpush3.bf16.msra.mxu1 %v15185_v61  ;;  %v15224_v62 = vld [vmem:[%s15749_s25 + $0x1128] sm:$0xff]  }
 0x221   : > { %13924 = vmatprep.subr.bf16.mxu1 %v15187_v63 }
 0x223   : > { %13903 = vmatpush3.bf16.msra.mxu0 %v15188_v0  ;;  %v15225_v0 = vld [vmem:[%s15749_s25 + $0x11a8] sm:$0xff]  }
 0x224   : > { %13904 = vmatprep.subr.bf16.mxu0 %v15190_v2  ;;  %13925 = vmatpush3.bf16.msra.mxu1 %v15189_v1 }
 0x225   : > { %v13602_v4 = vpop.f32.mrb[36].mxu0  ;;  %13926 = vmatprep.subr.bf16.mxu1 %v15191_v3 }
 0x226   : > { %v13603_v7 = vpop.f32.mrb[37].mxu0  ;;  %v13624_v9 = vpop.f32.mrb[36].mxu1 }
 0x227   : > { %v13604_v10 = vadd.f32 %v13603_v7, %v13602_v4  ;;  %v13605_v11 = vpop.f32.mrb[38].mxu0  ;;  %v13625_v12 = vpop.f32.mrb[37].mxu1  ;;  %13905 = vmatpush3.bf16.msra.mxu0 %v15192_v5  ;;  %v15226_v4 = vld [vmem:[%s15749_s25 + $0x1170] sm:$0xff]  }
 0x228   : > { %v13606_v14 = vpop.f32.mrb[39].mxu0  ;;  %v13626_v17 = vadd.f32 %v13625_v12, %v13624_v9  ;;  %v13627_v18 = vpop.f32.mrb[38].mxu1  ;;  %13906 = vmatprep.subr.bf16.mxu0 %v15194_v8  ;;  %13927 = vmatpush3.bf16.msra.mxu1 %v15193_v13  ;;  %v15227_v5 = vld [vmem:[%s15749_s25 + $0x11f0] sm:$0xff]  }
 0x229   : > { %v10170_v16 = vadd.f32 %v13604_v10, %v16411_v39  ;;  %v13628_v20 = vpop.f32.mrb[39].mxu1  ;;  %13928 = vmatprep.subr.bf16.mxu1 %v15195_v15  ;;  %v2796_v39 = vcombine.high %v2774_v32, %v2774_v32  ;;  %v15228_v12 = vld [vmem:[%s15749_s25 + $0x1130] sm:$0xff]   ;;  %v15232_v18 = vld [vmem:[%s15749_s25 + $0x1138] sm:$0xff]  }
 0x22a   : > { %v15229_v14 = vld [vmem:[%s15749_s25 + $0x11b0] sm:$0xff]   ;;  %v2781_v20 = vrot.slane %v16462_v34, %v15751_v6  ;;  %v15247_v34 = vld [vmem:[%s15749_s25 + $0x1258] sm:$0xff]  }
 0x22b   : > { %v16448_v22 = vadd.f32 %v13626_v17, %v10170_v16  ;;  %13907 = vmatpush3.bf16.msra.mxu0 %v15196_v19  ;;  %v15230_v16 = vld [vmem:[%s15749_s25 + $0x1178] sm:$0xff]  }
 0x22c   : > { %13908 = vmatprep.subr.bf16.mxu0 %v15198_v21  ;;  %13929 = vmatpush3.bf16.msra.mxu1 %v15197_v23  ;;  %v15231_v17 = vld [vmem:[%s15749_s25 + $0x11f8] sm:$0xff]   ;;  %v15235_v21 = vld [vmem:[%s15749_s25 + $0x1240] sm:$0xff]  }
 0x22d   : > { %13930 = vmatprep.subr.bf16.mxu1 %v15199_v24  ;;  %v15233_v19 = vld [vmem:[%s15749_s25 + $0x11b8] sm:$0xff]   ;;  %v15237_v23 = vld [vmem:[%s15749_s25 + $0x1200] sm:$0xff]  }
 0x22e   : > { %v15238_v24 = vld [vmem:[%s15749_s25 + $0x1280] sm:$0xff]  }
 0x22f   : > { %13909 = vmatpush3.bf16.msra.mxu0 %v15200_v25  ;;  %v2797_v25 = vcombine.high %v2781_v20, %v2781_v20 }
 0x230   : > { %13938 = vmatprep.subr.bf16.mxu0 %v15202_v28  ;;  %13931 = vmatpush3.bf16.msra.mxu1 %v15201_v30  ;;  %v15241_v28 = vld [vmem:[%s15749_s25 + $0x1208] sm:$0xff]   ;;  %v15243_v30 = vld [vmem:[%s15749_s25 + $0x1250] sm:$0xff]  }
 0x231   : > { %13960 = vmatprep.subr.bf16.mxu1 %v15203_v33  ;;  %v15246_v33 = vld [vmem:[%s15749_s25 + $0x1290] sm:$0xff]  }
 0x232   : > { %10728 = vmatmul.mubr.bf16.vlgmr.msra.gmra.mrb[64].mxu0 %v2774_v32  ;;  %v15245_v32 = vld [vmem:[%s15749_s25 + $0x1210] sm:$0xff]  }
 0x233   : > { %13939 = vmatpush3.bf16.msra.mxu0 %v15204_v35  ;;  %10768 = vmatmul.mubr.bf16.vlgmr.msra.gmra.mrb[64].mxu1 %v2796_v39  ;;  %v15248_v35 = vld [vmem:[%s15749_s25 + $0x12d8] sm:$0xff]   ;;  %v15252_v39 = vld [vmem:[%s15749_s25 + $0x12e0] sm:$0xff]  }
 0x234   : > { %13940 = vmatprep.subr.bf16.mxu0 %v15206_v40  ;;  %13961 = vmatpush3.bf16.msra.mxu1 %v15205_v37  ;;  %v15250_v37 = vld [vmem:[%s15749_s25 + $0x1298] sm:$0xff]   ;;  %v15253_v40 = vld [vmem:[%s15749_s25 + $0x1220] sm:$0xff]  }
 0x235   : > { %10807 = vmatprep.mubr.bf16.mxu0 %v2795_v43  ;;  %13962 = vmatprep.subr.bf16.mxu1 %v15207_v42  ;;  %v15255_v42 = vld [vmem:[%s15749_s25 + $0x1268] sm:$0xff]  }
 0x236   : > { %10847 = vmatprep.mubr.bf16.mxu1 %v2799_v46  ;;  %v15256_v43 = vld [vmem:[%s15749_s25 + $0x12e8] sm:$0xff]  }
 0x237   : > { %13941 = vmatpush3.bf16.msra.mxu0 %v15208_v44 }
 0x238   : > { %13942 = vmatprep.subr.bf16.mxu0 %v15210_v47  ;;  %13963 = vmatpush3.bf16.msra.mxu1 %v15209_v45  ;;  %v15257_v45 = vld [vmem:[%s15749_s25 + $0x1228] sm:$0xff]   ;;  %v15259_v47 = vld [vmem:[%s15749_s25 + $0x1270] sm:$0xff]  }
 0x239   : > { %13964 = vmatprep.subr.bf16.mxu1 %v15211_v48 }
 0x23b   : > { %13943 = vmatpush3.bf16.msra.mxu0 %v15212_v49 }
 0x23c   : > { %13944 = vmatprep.subr.bf16.mxu0 %v15214_v51  ;;  %13965 = vmatpush3.bf16.msra.mxu1 %v15213_v50 }
 0x23d   : > { %13966 = vmatprep.subr.bf16.mxu1 %v15215_v52  ;;  %v15258_v52 = vld [vmem:[%s15749_s25 + $0x12a8] sm:$0xff]  }
 0x23f   : > { %13945 = vmatpush3.bf16.msra.mxu0 %v15216_v53 }
 0x240   : > { %13946 = vmatprep.subr.bf16.mxu0 %v15218_v55  ;;  %13967 = vmatpush3.bf16.msra.mxu1 %v15217_v54  ;;  %v15260_v54 = vld [vmem:[%s15749_s25 + $0x12f0] sm:$0xff]  }
 0x241   : > { %13968 = vmatprep.subr.bf16.mxu1 %v15219_v56 }
 0x243   : > { %13947 = vmatpush3.bf16.msra.mxu0 %v15220_v57 }
 0x244   : > { %13948 = vmatprep.subr.bf16.mxu0 %v15222_v59  ;;  %13969 = vmatpush3.bf16.msra.mxu1 %v15221_v58  ;;  %v15261_v58 = vld [vmem:[%s15749_s25 + $0x1230] sm:$0xff]  }
 0x245   : > { %v13646_v61 = vpop.f32.mrb[40].mxu0  ;;  %13970 = vmatprep.subr.bf16.mxu1 %v15223_v60  ;;  %v15263_v60 = vld [vmem:[%s15749_s25 + $0x1278] sm:$0xff]  }
 0x246   : > { %v13647_v63 = vpop.f32.mrb[41].mxu0  ;;  %v13668_v1 = vpop.f32.mrb[40].mxu1 }
 0x247   : > { %v13648_v2 = vadd.f32 %v13647_v63, %v13646_v61  ;;  %v13649_v3 = vpop.f32.mrb[42].mxu0  ;;  %v13669_v7 = vpop.f32.mrb[41].mxu1  ;;  %13949 = vmatpush3.bf16.msra.mxu0 %v15224_v62  ;;  %v15262_v62 = vld [vmem:[%s15749_s25 + $0x12b0] sm:$0xff]   ;;  %v15264_v63 = vld [vmem:[%s15749_s25 + $0x12f8] sm:$0xff]  }
 0x248   : > { %v13650_v8 = vpop.f32.mrb[43].mxu0  ;;  %v13670_v10 = vadd.f32 %v13669_v7, %v13668_v1  ;;  %v13671_v11 = vpop.f32.mrb[42].mxu1  ;;  %13950 = vmatprep.subr.bf16.mxu0 %v15226_v4  ;;  %13971 = vmatpush3.bf16.msra.mxu1 %v15225_v0  ;;  %v15265_v0 = vld [vmem:[%s15749_s25 + $0x1238] sm:$0xff]   ;;  %v281_v1 = vld [vmem:[%s17104_s0 + $0x48] sm:$0xff]  ;;  %v15267_v3 = vld [vmem:[%s15749_s25 + $0x1340] sm:$0xff]  }
 0x249   : > { %v10250_v9 = vadd.f32 %v13648_v2, %v16448_v22  ;;  %v13672_v13 = vpop.f32.mrb[43].mxu1  ;;  %13972 = vmatprep.subr.bf16.mxu1 %v15227_v5  ;;  %v15236_v22 = vld [vmem:[%s15749_s25 + $0x12c0] sm:$0xff]   ;;  %v2807_v2 = vrot.slane %v281_v1, %v15751_v6  ;;  %v2800_v4 = vcombine.high %v281_v1, %v281_v1  ;;  %v15266_v5 = vld [vmem:[%s15749_s25 + $0x12b8] sm:$0xff]   ;;  %v15304_v1 = vld [vmem:[%s15749_s25 + $0x1448] sm:$0xff]  }
 0x24a   : > { %v15269_v11 = vld [vmem:[%s15749_s25 + $0x1300] sm:$0xff]  }
 0x24b   : > { %v16495_v15 = vadd.f32 %v13670_v10, %v10250_v9  ;;  %13951 = vmatpush3.bf16.msra.mxu0 %v15228_v12  ;;  %v2815_v7 = vcombine.high %v2807_v2, %v2807_v2  ;;  %v2823_v8 = vrot.slane %v2807_v2, %v15751_v6  ;;  %v15268_v9 = vld [vmem:[%s15749_s25 + $0x13c0] sm:$0xff]   ;;  %v16546_v10 = vrot.slane %v2800_v4, %v15751_v6  ;;  %v15305_v2 = vld [vmem:[%s15749_s25 + $0x14c8] sm:$0xff]  }
 0x24c   : > { %13952 = vmatprep.subr.bf16.mxu0 %v15230_v16  ;;  %13973 = vmatpush3.bf16.msra.mxu1 %v15229_v14  ;;  %v15270_v13 = vld [vmem:[%s15749_s25 + $0x1380] sm:$0xff]   ;;  %v15271_v16 = vld [vmem:[%s15749_s25 + $0x1348] sm:$0xff]  }
 0x24d   : > { %13974 = vmatprep.subr.bf16.mxu1 %v15231_v17  ;;  %v2837_v12 = vrot.slane %v2815_v7, %v15751_v6  ;;  %v2816_v14 = vcombine.high %v16546_v10, %v16546_v10  ;;  %v15307_v4 = vld [vmem:[%s15749_s25 + $0x1488] sm:$0xff]   ;;  %v15309_v7 = vld [vmem:[%s15749_s25 + $0x14d0] sm:$0xff]  }
 0x24f   : > { %13953 = vmatpush3.bf16.msra.mxu0 %v15232_v18  ;;  %v2847_v17 = vcombine.high %v2837_v12, %v2837_v12  ;;  %v15272_v18 = vld [vmem:[%s15749_s25 + $0x13c8] sm:$0xff]  }
 0x250   : > { %13982 = vmatprep.subr.bf16.mxu0 %v15235_v21  ;;  %13975 = vmatpush3.bf16.msra.mxu1 %v15233_v19  ;;  %v2844_v19 = vrot.slane %v2816_v14, %v15751_v6  ;;  %v15274_v21 = vld [vmem:[%s15749_s25 + $0x1388] sm:$0xff]   ;;  %v15316_v14 = vld [vmem:[%s15749_s25 + $0x1460] sm:$0xff]  }
 0x251   : > { %14004 = vmatprep.subr.bf16.mxu1 %v15236_v22 }
 0x252   : > { %10808 = vmatmul.mubr.bf16.vlgmr.msra.gmra.mrb[68].mxu0 %v2781_v20  ;;  %v15273_v20 = vld [vmem:[%s15749_s25 + $0x1308] sm:$0xff]   ;;  %v2848_v22 = vcombine.high %v2844_v19, %v2844_v19 }
 0x253   : > { %13983 = vmatpush3.bf16.msra.mxu0 %v15237_v23  ;;  %10848 = vmatmul.mubr.bf16.vlgmr.msra.gmra.mrb[68].mxu1 %v2797_v25  ;;  %v15275_v23 = vld [vmem:[%s15749_s25 + $0x1350] sm:$0xff]  }
 0x254   : > { %13984 = vmatprep.subr.bf16.mxu0 %v15239_v26  ;;  %14005 = vmatpush3.bf16.msra.mxu1 %v15238_v24  ;;  %v15276_v24 = vld [vmem:[%s15749_s25 + $0x13d0] sm:$0xff]  }
 0x255   : > { %14006 = vmatprep.subr.bf16.mxu1 %v15240_v27  ;;  %10887 = vmatprep.mubr.bf16.mxu0 %v2837_v12  ;;  %v15277_v25 = vld [vmem:[%s15749_s25 + $0x1310] sm:$0xff]   ;;  %v15279_v27 = vld [vmem:[%s15749_s25 + $0x1358] sm:$0xff]  }
 0x256   : > { %10927 = vmatprep.mubr.bf16.mxu1 %v2847_v17  ;;  %v15278_v26 = vld [vmem:[%s15749_s25 + $0x1390] sm:$0xff]   ;;  %v15314_v12 = vld [vmem:[%s15749_s25 + $0x1418] sm:$0xff]   ;;  %v15319_v17 = vld [vmem:[%s15749_s25 + $0x14a0] sm:$0xff]  }
 0x257   : > { %13985 = vmatpush3.bf16.msra.mxu0 %v15241_v28  ;;  %v15280_v28 = vld [vmem:[%s15749_s25 + $0x13d8] sm:$0xff]  }
 0x258   : > { %13986 = vmatprep.subr.bf16.mxu0 %v15243_v30  ;;  %14007 = vmatpush3.bf16.msra.mxu1 %v15242_v29  ;;  %v15281_v29 = vld [vmem:[%s15749_s25 + $0x1318] sm:$0xff]  }
 0x259   : > { %14008 = vmatprep.subr.bf16.mxu1 %v15244_v31  ;;  %v15282_v30 = vld [vmem:[%s15749_s25 + $0x1398] sm:$0xff]   ;;  %v15283_v31 = vld [vmem:[%s15749_s25 + $0x1360] sm:$0xff]  }
 0x25b   : > { %13987 = vmatpush3.bf16.msra.mxu0 %v15245_v32  ;;  %v15284_v32 = vld [vmem:[%s15749_s25 + $0x13e0] sm:$0xff]  }
 0x25c   : > { %13988 = vmatprep.subr.bf16.mxu0 %v15247_v34  ;;  %14009 = vmatpush3.bf16.msra.mxu1 %v15246_v33  ;;  %v15285_v33 = vld [vmem:[%s15749_s25 + $0x1320] sm:$0xff]  }
 0x25d   : > { %14010 = vmatprep.subr.bf16.mxu1 %v15248_v35  ;;  %v15286_v34 = vld [vmem:[%s15749_s25 + $0x13a0] sm:$0xff]   ;;  %v15287_v35 = vld [vmem:[%s15749_s25 + $0x1368] sm:$0xff]  }
 0x25f   : > { %13989 = vmatpush3.bf16.msra.mxu0 %v15249_v36  ;;  %v15288_v36 = vld [vmem:[%s15749_s25 + $0x13e8] sm:$0xff]  }
 0x260   : > { %13990 = vmatprep.subr.bf16.mxu0 %v15251_v38  ;;  %14011 = vmatpush3.bf16.msra.mxu1 %v15250_v37  ;;  %v15289_v38 = vld [vmem:[%s15749_s25 + $0x1328] sm:$0xff]  }
 0x261   : > { %14012 = vmatprep.subr.bf16.mxu1 %v15252_v39 }
 0x263   : > { %13991 = vmatpush3.bf16.msra.mxu0 %v15253_v40  ;;  %v15290_v40 = vld [vmem:[%s15749_s25 + $0x13a8] sm:$0xff]  }
 0x264   : > { %13992 = vmatprep.subr.bf16.mxu0 %v15255_v42  ;;  %14013 = vmatpush3.bf16.msra.mxu1 %v15254_v41 }
 0x265   : > { %v13690_v44 = vpop.f32.mrb[44].mxu0  ;;  %14014 = vmatprep.subr.bf16.mxu1 %v15256_v43 }
 0x266   : > { %v13691_v46 = vpop.f32.mrb[45].mxu0  ;;  %v13712_v48 = vpop.f32.mrb[44].mxu1 }
 0x267   : > { %v13692_v49 = vadd.f32 %v13691_v46, %v13690_v44  ;;  %v13693_v50 = vpop.f32.mrb[46].mxu0  ;;  %v13713_v51 = vpop.f32.mrb[45].mxu1  ;;  %13993 = vmatpush3.bf16.msra.mxu0 %v15257_v45  ;;  %v15291_v44 = vld [vmem:[%s15749_s25 + $0x1370] sm:$0xff]  }
 0x268   : > { %v13694_v53 = vpop.f32.mrb[47].mxu0  ;;  %v13714_v56 = vadd.f32 %v13713_v51, %v13712_v48  ;;  %v13715_v57 = vpop.f32.mrb[46].mxu1  ;;  %13994 = vmatprep.subr.bf16.mxu0 %v15259_v47  ;;  %14015 = vmatpush3.bf16.msra.mxu1 %v15258_v52  ;;  %v15292_v45 = vld [vmem:[%s15749_s25 + $0x13f0] sm:$0xff]  }
 0x269   : > { %v10330_v55 = vadd.f32 %v13692_v49, %v16495_v15  ;;  %v13716_v59 = vpop.f32.mrb[47].mxu1  ;;  %14016 = vmatprep.subr.bf16.mxu1 %v15260_v54  ;;  %v2845_v15 = vcombine.high %v2823_v8, %v2823_v8  ;;  %v15293_v51 = vld [vmem:[%s15749_s25 + $0x1330] sm:$0xff]   ;;  %v15297_v57 = vld [vmem:[%s15749_s25 + $0x1338] sm:$0xff]  }
 0x26a   : > { %v15294_v53 = vld [vmem:[%s15749_s25 + $0x13b0] sm:$0xff]   ;;  %v2830_v59 = vrot.slane %v16546_v10, %v15751_v6  ;;  %v15312_v10 = vld [vmem:[%s15749_s25 + $0x1458] sm:$0xff]  }
 0x26b   : > { %v16532_v61 = vadd.f32 %v13714_v56, %v10330_v55  ;;  %13995 = vmatpush3.bf16.msra.mxu0 %v15261_v58  ;;  %v15295_v55 = vld [vmem:[%s15749_s25 + $0x1378] sm:$0xff]  }
 0x26c   : > { %13996 = vmatprep.subr.bf16.mxu0 %v15263_v60  ;;  %14017 = vmatpush3.bf16.msra.mxu1 %v15262_v62  ;;  %v15296_v56 = vld [vmem:[%s15749_s25 + $0x13f8] sm:$0xff]   ;;  %v15300_v60 = vld [vmem:[%s15749_s25 + $0x1440] sm:$0xff]  }
 0x26d   : > { %14018 = vmatprep.subr.bf16.mxu1 %v15264_v63  ;;  %v15298_v58 = vld [vmem:[%s15749_s25 + $0x13b8] sm:$0xff]   ;;  %v15302_v62 = vld [vmem:[%s15749_s25 + $0x1400] sm:$0xff]  }
 0x26e   : > { %v15303_v63 = vld [vmem:[%s15749_s25 + $0x1480] sm:$0xff]  }
 0x26f   : > { %13997 = vmatpush3.bf16.msra.mxu0 %v15265_v0  ;;  %v2846_v0 = vcombine.high %v2830_v59, %v2830_v59 }
 0x270   : > { %14026 = vmatprep.subr.bf16.mxu0 %v15267_v3  ;;  %14019 = vmatpush3.bf16.msra.mxu1 %v15266_v5  ;;  %v15306_v3 = vld [vmem:[%s15749_s25 + $0x1408] sm:$0xff]   ;;  %v15308_v5 = vld [vmem:[%s15749_s25 + $0x1450] sm:$0xff]  }
 0x271   : > { %14048 = vmatprep.subr.bf16.mxu1 %v15268_v9  ;;  %v15311_v9 = vld [vmem:[%s15749_s25 + $0x1490] sm:$0xff]  }
 0x272   : > { %10888 = vmatmul.mubr.bf16.vlgmr.msra.gmra.mrb[72].mxu0 %v2823_v8  ;;  %v15310_v8 = vld [vmem:[%s15749_s25 + $0x1410] sm:$0xff]  }
 0x273   : > { %14027 = vmatpush3.bf16.msra.mxu0 %v15269_v11  ;;  %10928 = vmatmul.mubr.bf16.vlgmr.msra.gmra.mrb[72].mxu1 %v2845_v15  ;;  %v15313_v11 = vld [vmem:[%s15749_s25 + $0x14d8] sm:$0xff]   ;;  %v15317_v15 = vld [vmem:[%s15749_s25 + $0x14e0] sm:$0xff]  }
 0x274   : > { %14028 = vmatprep.subr.bf16.mxu0 %v15271_v16  ;;  %14049 = vmatpush3.bf16.msra.mxu1 %v15270_v13  ;;  %v15315_v13 = vld [vmem:[%s15749_s25 + $0x1498] sm:$0xff]   ;;  %v15318_v16 = vld [vmem:[%s15749_s25 + $0x1420] sm:$0xff]  }
 0x275   : > { %10967 = vmatprep.mubr.bf16.mxu0 %v2844_v19  ;;  %14050 = vmatprep.subr.bf16.mxu1 %v15272_v18  ;;  %v15320_v18 = vld [vmem:[%s15749_s25 + $0x1468] sm:$0xff]  }
 0x276   : > { %11007 = vmatprep.mubr.bf16.mxu1 %v2848_v22  ;;  %v15321_v19 = vld [vmem:[%s15749_s25 + $0x14e8] sm:$0xff]  }
 0x277   : > { %14029 = vmatpush3.bf16.msra.mxu0 %v15273_v20 }
 0x278   : > { %14030 = vmatprep.subr.bf16.mxu0 %v15275_v23  ;;  %14051 = vmatpush3.bf16.msra.mxu1 %v15274_v21  ;;  %v15322_v21 = vld [vmem:[%s15749_s25 + $0x1428] sm:$0xff]   ;;  %v15324_v23 = vld [vmem:[%s15749_s25 + $0x1470] sm:$0xff]  }
 0x279   : > { %14052 = vmatprep.subr.bf16.mxu1 %v15276_v24 }
 0x27b   : > { %14031 = vmatpush3.bf16.msra.mxu0 %v15277_v25 }
 0x27c   : > { %14032 = vmatprep.subr.bf16.mxu0 %v15279_v27  ;;  %14053 = vmatpush3.bf16.msra.mxu1 %v15278_v26 }
 0x27d   : > { %14054 = vmatprep.subr.bf16.mxu1 %v15280_v28  ;;  %v15323_v28 = vld [vmem:[%s15749_s25 + $0x14a8] sm:$0xff]  }
 0x27f   : > { %14033 = vmatpush3.bf16.msra.mxu0 %v15281_v29 }
 0x280   : > { %14034 = vmatprep.subr.bf16.mxu0 %v15283_v31  ;;  %14055 = vmatpush3.bf16.msra.mxu1 %v15282_v30  ;;  %v15325_v30 = vld [vmem:[%s15749_s25 + $0x14f0] sm:$0xff]  }
 0x281   : > { %14056 = vmatprep.subr.bf16.mxu1 %v15284_v32 }
 0x283   : > { %14035 = vmatpush3.bf16.msra.mxu0 %v15285_v33 }
 0x284   : > { %14036 = vmatprep.subr.bf16.mxu0 %v15287_v35  ;;  %14057 = vmatpush3.bf16.msra.mxu1 %v15286_v34  ;;  %v15326_v34 = vld [vmem:[%s15749_s25 + $0x1430] sm:$0xff]  }
 0x285   : > { %v13734_v37 = vpop.f32.mrb[48].mxu0  ;;  %14058 = vmatprep.subr.bf16.mxu1 %v15288_v36  ;;  %v15328_v36 = vld [vmem:[%s15749_s25 + $0x1478] sm:$0xff]  }
 0x286   : > { %v13735_v39 = vpop.f32.mrb[49].mxu0  ;;  %v13756_v41 = vpop.f32.mrb[48].mxu1 }
 0x287   : > { %v13736_v42 = vadd.f32 %v13735_v39, %v13734_v37  ;;  %v13737_v43 = vpop.f32.mrb[50].mxu0  ;;  %v13757_v46 = vpop.f32.mrb[49].mxu1  ;;  %14037 = vmatpush3.bf16.msra.mxu0 %v15289_v38  ;;  %v15327_v38 = vld [vmem:[%s15749_s25 + $0x14b0] sm:$0xff]   ;;  %v15329_v39 = vld [vmem:[%s15749_s25 + $0x14f8] sm:$0xff]  }
 0x288   : > { %v13738_v47 = vpop.f32.mrb[51].mxu0  ;;  %v13758_v49 = vadd.f32 %v13757_v46, %v13756_v41  ;;  %v13759_v50 = vpop.f32.mrb[50].mxu1  ;;  %14038 = vmatprep.subr.bf16.mxu0 %v15291_v44  ;;  %14059 = vmatpush3.bf16.msra.mxu1 %v15290_v40  ;;  %v15330_v40 = vld [vmem:[%s15749_s25 + $0x1438] sm:$0xff]   ;;  %v282_v41 = vld [vmem:[%s17104_s0 + $0x50] sm:$0xff]  ;;  %v15332_v43 = vld [vmem:[%s15749_s25 + $0x1540] sm:$0xff]  }
 0x289   : > { %v10410_v48 = vadd.f32 %v13736_v42, %v16532_v61  ;;  %v13760_v52 = vpop.f32.mrb[51].mxu1  ;;  %14060 = vmatprep.subr.bf16.mxu1 %v15292_v45  ;;  %v15301_v61 = vld [vmem:[%s15749_s25 + $0x14c0] sm:$0xff]   ;;  %v2856_v42 = vrot.slane %v282_v41, %v15751_v6  ;;  %v2849_v44 = vcombine.high %v282_v41, %v282_v41  ;;  %v15331_v45 = vld [vmem:[%s15749_s25 + $0x14b8] sm:$0xff]   ;;  %v15369_v41 = vld [vmem:[%s15749_s25 + $0x1648] sm:$0xff]  }
 0x28a   : > { %v15334_v50 = vld [vmem:[%s15749_s25 + $0x1500] sm:$0xff]  }
 0x28b   : > { %v16579_v54 = vadd.f32 %v13758_v49, %v10410_v48  ;;  %14039 = vmatpush3.bf16.msra.mxu0 %v15293_v51  ;;  %v2864_v46 = vcombine.high %v2856_v42, %v2856_v42  ;;  %v2872_v47 = vrot.slane %v2856_v42, %v15751_v6  ;;  %v15333_v48 = vld [vmem:[%s15749_s25 + $0x15c0] sm:$0xff]   ;;  %v16630_v49 = vrot.slane %v2849_v44, %v15751_v6  ;;  %v15370_v42 = vld [vmem:[%s15749_s25 + $0x16c8] sm:$0xff]  }
 0x28c   : > { %14040 = vmatprep.subr.bf16.mxu0 %v15295_v55  ;;  %14061 = vmatpush3.bf16.msra.mxu1 %v15294_v53  ;;  %v15335_v52 = vld [vmem:[%s15749_s25 + $0x1580] sm:$0xff]   ;;  %v15336_v55 = vld [vmem:[%s15749_s25 + $0x1548] sm:$0xff]  }
 0x28d   : > { %14062 = vmatprep.subr.bf16.mxu1 %v15296_v56  ;;  %v2886_v51 = vrot.slane %v2864_v46, %v15751_v6  ;;  %v2865_v53 = vcombine.high %v16630_v49, %v16630_v49  ;;  %v15372_v44 = vld [vmem:[%s15749_s25 + $0x1688] sm:$0xff]   ;;  %v15374_v46 = vld [vmem:[%s15749_s25 + $0x16d0] sm:$0xff]  }
 0x28f   : > { %14041 = vmatpush3.bf16.msra.mxu0 %v15297_v57  ;;  %v2896_v56 = vcombine.high %v2886_v51, %v2886_v51  ;;  %v15337_v57 = vld [vmem:[%s15749_s25 + $0x15c8] sm:$0xff]  }
 0x290   : > { %14070 = vmatprep.subr.bf16.mxu0 %v15300_v60  ;;  %14063 = vmatpush3.bf16.msra.mxu1 %v15298_v58  ;;  %v2893_v58 = vrot.slane %v2865_v53, %v15751_v6  ;;  %v15339_v60 = vld [vmem:[%s15749_s25 + $0x1588] sm:$0xff]   ;;  %v15381_v53 = vld [vmem:[%s15749_s25 + $0x1660] sm:$0xff]  }
 0x291   : > { %14092 = vmatprep.subr.bf16.mxu1 %v15301_v61 }
 0x292   : > { %10968 = vmatmul.mubr.bf16.vlgmr.msra.gmra.mrb[76].mxu0 %v2830_v59  ;;  %v15338_v59 = vld [vmem:[%s15749_s25 + $0x1508] sm:$0xff]   ;;  %v2897_v61 = vcombine.high %v2893_v58, %v2893_v58 }
 0x293   : > { %14071 = vmatpush3.bf16.msra.mxu0 %v15302_v62  ;;  %11008 = vmatmul.mubr.bf16.vlgmr.msra.gmra.mrb[76].mxu1 %v2846_v0  ;;  %v15340_v62 = vld [vmem:[%s15749_s25 + $0x1550] sm:$0xff]  }
 0x294   : > { %14072 = vmatprep.subr.bf16.mxu0 %v15304_v1  ;;  %14093 = vmatpush3.bf16.msra.mxu1 %v15303_v63  ;;  %v15341_v63 = vld [vmem:[%s15749_s25 + $0x15d0] sm:$0xff]  }
 0x295   : > { %14094 = vmatprep.subr.bf16.mxu1 %v15305_v2  ;;  %11047 = vmatprep.mubr.bf16.mxu0 %v2886_v51  ;;  %v15342_v0 = vld [vmem:[%s15749_s25 + $0x1510] sm:$0xff]   ;;  %v15344_v2 = vld [vmem:[%s15749_s25 + $0x1558] sm:$0xff]  }
 0x296   : > { %11087 = vmatprep.mubr.bf16.mxu1 %v2896_v56  ;;  %v15343_v1 = vld [vmem:[%s15749_s25 + $0x1590] sm:$0xff]   ;;  %v15379_v51 = vld [vmem:[%s15749_s25 + $0x1618] sm:$0xff]   ;;  %v15384_v56 = vld [vmem:[%s15749_s25 + $0x16a0] sm:$0xff]  }
 0x297   : > { %14073 = vmatpush3.bf16.msra.mxu0 %v15306_v3  ;;  %v15345_v3 = vld [vmem:[%s15749_s25 + $0x15d8] sm:$0xff]  }
 0x298   : > { %14074 = vmatprep.subr.bf16.mxu0 %v15308_v5  ;;  %14095 = vmatpush3.bf16.msra.mxu1 %v15307_v4  ;;  %v15346_v4 = vld [vmem:[%s15749_s25 + $0x1518] sm:$0xff]  }
 0x299   : > { %14096 = vmatprep.subr.bf16.mxu1 %v15309_v7  ;;  %v15347_v5 = vld [vmem:[%s15749_s25 + $0x1598] sm:$0xff]   ;;  %v15348_v7 = vld [vmem:[%s15749_s25 + $0x1560] sm:$0xff]  }
 0x29b   : > { %14075 = vmatpush3.bf16.msra.mxu0 %v15310_v8  ;;  %v15349_v8 = vld [vmem:[%s15749_s25 + $0x15e0] sm:$0xff]  }
 0x29c   : > { %14076 = vmatprep.subr.bf16.mxu0 %v15312_v10  ;;  %14097 = vmatpush3.bf16.msra.mxu1 %v15311_v9  ;;  %v15350_v9 = vld [vmem:[%s15749_s25 + $0x1520] sm:$0xff]  }
 0x29d   : > { %14098 = vmatprep.subr.bf16.mxu1 %v15313_v11  ;;  %v15351_v10 = vld [vmem:[%s15749_s25 + $0x15a0] sm:$0xff]   ;;  %v15352_v11 = vld [vmem:[%s15749_s25 + $0x1568] sm:$0xff]  }
 0x29f   : > { %14077 = vmatpush3.bf16.msra.mxu0 %v15314_v12  ;;  %v15353_v12 = vld [vmem:[%s15749_s25 + $0x15e8] sm:$0xff]  }
 0x2a0   : > { %14078 = vmatprep.subr.bf16.mxu0 %v15316_v14  ;;  %14099 = vmatpush3.bf16.msra.mxu1 %v15315_v13  ;;  %v15354_v14 = vld [vmem:[%s15749_s25 + $0x1528] sm:$0xff]  }
 0x2a1   : > { %14100 = vmatprep.subr.bf16.mxu1 %v15317_v15 }
 0x2a3   : > { %14079 = vmatpush3.bf16.msra.mxu0 %v15318_v16  ;;  %v15355_v16 = vld [vmem:[%s15749_s25 + $0x15a8] sm:$0xff]  }
 0x2a4   : > { %14080 = vmatprep.subr.bf16.mxu0 %v15320_v18  ;;  %14101 = vmatpush3.bf16.msra.mxu1 %v15319_v17 }
 0x2a5   : > { %v13778_v20 = vpop.f32.mrb[52].mxu0  ;;  %14102 = vmatprep.subr.bf16.mxu1 %v15321_v19 }
 0x2a6   : > { %v13779_v22 = vpop.f32.mrb[53].mxu0  ;;  %v13800_v24 = vpop.f32.mrb[52].mxu1 }
 0x2a7   : > { %v13780_v25 = vadd.f32 %v13779_v22, %v13778_v20  ;;  %v13781_v26 = vpop.f32.mrb[54].mxu0  ;;  %v13801_v27 = vpop.f32.mrb[53].mxu1  ;;  %14081 = vmatpush3.bf16.msra.mxu0 %v15322_v21  ;;  %v15356_v20 = vld [vmem:[%s15749_s25 + $0x1570] sm:$0xff]  }
 0x2a8   : > { %v13782_v29 = vpop.f32.mrb[55].mxu0  ;;  %v13802_v32 = vadd.f32 %v13801_v27, %v13800_v24  ;;  %v13803_v33 = vpop.f32.mrb[54].mxu1  ;;  %14082 = vmatprep.subr.bf16.mxu0 %v15324_v23  ;;  %14103 = vmatpush3.bf16.msra.mxu1 %v15323_v28  ;;  %v15357_v21 = vld [vmem:[%s15749_s25 + $0x15f0] sm:$0xff]  }
 0x2a9   : > { %v10490_v31 = vadd.f32 %v13780_v25, %v16579_v54  ;;  %v13804_v35 = vpop.f32.mrb[55].mxu1  ;;  %14104 = vmatprep.subr.bf16.mxu1 %v15325_v30  ;;  %v2894_v54 = vcombine.high %v2872_v47, %v2872_v47  ;;  %v15358_v27 = vld [vmem:[%s15749_s25 + $0x1530] sm:$0xff]   ;;  %v15362_v33 = vld [vmem:[%s15749_s25 + $0x1538] sm:$0xff]  }
 0x2aa   : > { %v15359_v29 = vld [vmem:[%s15749_s25 + $0x15b0] sm:$0xff]   ;;  %v2879_v35 = vrot.slane %v16630_v49, %v15751_v6  ;;  %v15377_v49 = vld [vmem:[%s15749_s25 + $0x1658] sm:$0xff]  }
 0x2ab   : > { %v16616_v37 = vadd.f32 %v13802_v32, %v10490_v31  ;;  %14083 = vmatpush3.bf16.msra.mxu0 %v15326_v34  ;;  %v15360_v31 = vld [vmem:[%s15749_s25 + $0x1578] sm:$0xff]  }
 0x2ac   : > { %14084 = vmatprep.subr.bf16.mxu0 %v15328_v36  ;;  %14105 = vmatpush3.bf16.msra.mxu1 %v15327_v38  ;;  %v15361_v32 = vld [vmem:[%s15749_s25 + $0x15f8] sm:$0xff]   ;;  %v15365_v36 = vld [vmem:[%s15749_s25 + $0x1640] sm:$0xff]  }
 0x2ad   : > { %14106 = vmatprep.subr.bf16.mxu1 %v15329_v39  ;;  %v15363_v34 = vld [vmem:[%s15749_s25 + $0x15b8] sm:$0xff]   ;;  %v15367_v38 = vld [vmem:[%s15749_s25 + $0x1600] sm:$0xff]  }
 0x2ae   : > { %v15368_v39 = vld [vmem:[%s15749_s25 + $0x1680] sm:$0xff]  }
 0x2af   : > { %14085 = vmatpush3.bf16.msra.mxu0 %v15330_v40  ;;  %v2895_v40 = vcombine.high %v2879_v35, %v2879_v35 }
 0x2b0   : > { %14114 = vmatprep.subr.bf16.mxu0 %v15332_v43  ;;  %14107 = vmatpush3.bf16.msra.mxu1 %v15331_v45  ;;  %v15371_v43 = vld [vmem:[%s15749_s25 + $0x1608] sm:$0xff]   ;;  %v15373_v45 = vld [vmem:[%s15749_s25 + $0x1650] sm:$0xff]  }
 0x2b1   : > { %14136 = vmatprep.subr.bf16.mxu1 %v15333_v48  ;;  %v15376_v48 = vld [vmem:[%s15749_s25 + $0x1690] sm:$0xff]  }
 0x2b2   : > { %11048 = vmatmul.mubr.bf16.vlgmr.msra.gmra.mrb[80].mxu0 %v2872_v47  ;;  %v15375_v47 = vld [vmem:[%s15749_s25 + $0x1610] sm:$0xff]  }
 0x2b3   : > { %14115 = vmatpush3.bf16.msra.mxu0 %v15334_v50  ;;  %11088 = vmatmul.mubr.bf16.vlgmr.msra.gmra.mrb[80].mxu1 %v2894_v54  ;;  %v15378_v50 = vld [vmem:[%s15749_s25 + $0x16d8] sm:$0xff]   ;;  %v15382_v54 = vld [vmem:[%s15749_s25 + $0x16e0] sm:$0xff]  }
 0x2b4   : > { %14116 = vmatprep.subr.bf16.mxu0 %v15336_v55  ;;  %14137 = vmatpush3.bf16.msra.mxu1 %v15335_v52  ;;  %v15380_v52 = vld [vmem:[%s15749_s25 + $0x1698] sm:$0xff]   ;;  %v15383_v55 = vld [vmem:[%s15749_s25 + $0x1620] sm:$0xff]  }
 0x2b5   : > { %11127 = vmatprep.mubr.bf16.mxu0 %v2893_v58  ;;  %14138 = vmatprep.subr.bf16.mxu1 %v15337_v57  ;;  %v15385_v57 = vld [vmem:[%s15749_s25 + $0x1668] sm:$0xff]  }
 0x2b6   : > { %11167 = vmatprep.mubr.bf16.mxu1 %v2897_v61  ;;  %v15386_v58 = vld [vmem:[%s15749_s25 + $0x16e8] sm:$0xff]  }
 0x2b7   : > { %14117 = vmatpush3.bf16.msra.mxu0 %v15338_v59 }
 0x2b8   : > { %14118 = vmatprep.subr.bf16.mxu0 %v15340_v62  ;;  %14139 = vmatpush3.bf16.msra.mxu1 %v15339_v60  ;;  %v15387_v60 = vld [vmem:[%s15749_s25 + $0x1628] sm:$0xff]   ;;  %v15389_v62 = vld [vmem:[%s15749_s25 + $0x1670] sm:$0xff]  }
 0x2b9   : > { %14140 = vmatprep.subr.bf16.mxu1 %v15341_v63 }
 0x2bb   : > { %14119 = vmatpush3.bf16.msra.mxu0 %v15342_v0 }
 0x2bc   : > { %14120 = vmatprep.subr.bf16.mxu0 %v15344_v2  ;;  %14141 = vmatpush3.bf16.msra.mxu1 %v15343_v1 }
 0x2bd   : > { %14142 = vmatprep.subr.bf16.mxu1 %v15345_v3  ;;  %v15388_v3 = vld [vmem:[%s15749_s25 + $0x16a8] sm:$0xff]  }
 0x2bf   : > { %14121 = vmatpush3.bf16.msra.mxu0 %v15346_v4 }
 0x2c0   : > { %14122 = vmatprep.subr.bf16.mxu0 %v15348_v7  ;;  %14143 = vmatpush3.bf16.msra.mxu1 %v15347_v5  ;;  %v15390_v5 = vld [vmem:[%s15749_s25 + $0x16f0] sm:$0xff]  }
 0x2c1   : > { %14144 = vmatprep.subr.bf16.mxu1 %v15349_v8 }
 0x2c3   : > { %14123 = vmatpush3.bf16.msra.mxu0 %v15350_v9 }
 0x2c4   : > { %14124 = vmatprep.subr.bf16.mxu0 %v15352_v11  ;;  %14145 = vmatpush3.bf16.msra.mxu1 %v15351_v10  ;;  %v15391_v10 = vld [vmem:[%s15749_s25 + $0x1630] sm:$0xff]  }
 0x2c5   : > { %v13822_v13 = vpop.f32.mrb[56].mxu0  ;;  %14146 = vmatprep.subr.bf16.mxu1 %v15353_v12  ;;  %v15393_v12 = vld [vmem:[%s15749_s25 + $0x1678] sm:$0xff]  }
 0x2c6   : > { %v13823_v15 = vpop.f32.mrb[57].mxu0  ;;  %v13844_v17 = vpop.f32.mrb[56].mxu1 }
 0x2c7   : > { %v13824_v18 = vadd.f32 %v13823_v15, %v13822_v13  ;;  %v13825_v19 = vpop.f32.mrb[58].mxu0  ;;  %v13845_v22 = vpop.f32.mrb[57].mxu1  ;;  %14125 = vmatpush3.bf16.msra.mxu0 %v15354_v14  ;;  %v15392_v14 = vld [vmem:[%s15749_s25 + $0x16b0] sm:$0xff]   ;;  %v15394_v15 = vld [vmem:[%s15749_s25 + $0x16f8] sm:$0xff]  }
 0x2c8   : > { %v13826_v23 = vpop.f32.mrb[59].mxu0  ;;  %v13846_v25 = vadd.f32 %v13845_v22, %v13844_v17  ;;  %v13847_v26 = vpop.f32.mrb[58].mxu1  ;;  %14126 = vmatprep.subr.bf16.mxu0 %v15356_v20  ;;  %14147 = vmatpush3.bf16.msra.mxu1 %v15355_v16  ;;  %v15395_v16 = vld [vmem:[%s15749_s25 + $0x1638] sm:$0xff]   ;;  %v15397_v19 = vld [vmem:[%s15749_s25 + $0x1740] sm:$0xff]  }
 0x2c9   : > { %v10570_v24 = vadd.f32 %v13824_v18, %v16616_v37  ;;  %v13848_v28 = vpop.f32.mrb[59].mxu1  ;;  %14148 = vmatprep.subr.bf16.mxu1 %v15357_v21  ;;  %v15366_v37 = vld [vmem:[%s15749_s25 + $0x16c0] sm:$0xff]   ;;  %v283_v17 = vld [vmem:[%s17104_s0 + $0x58] sm:$0xff] }
 0x2ca   : > { %v2905_v18 = vrot.slane %v283_v17, %v15751_v6  ;;  %v2898_v20 = vcombine.high %v283_v17, %v283_v17  ;;  %v15396_v21 = vld [vmem:[%s15749_s25 + $0x16b8] sm:$0xff]   ;;  %v15399_v26 = vld [vmem:[%s15749_s25 + $0x1700] sm:$0xff]   ;;  %v15434_v17 = vld [vmem:[%s15749_s25 + $0x1848] sm:$0xff]  }
 0x2cb   : > { %v16663_v30 = vadd.f32 %v13846_v25, %v10570_v24  ;;  %14127 = vmatpush3.bf16.msra.mxu0 %v15358_v27  ;;  %v15398_v24 = vld [vmem:[%s15749_s25 + $0x17c0] sm:$0xff]  }
 0x2cc   : > { %14128 = vmatprep.subr.bf16.mxu0 %v15360_v31  ;;  %14149 = vmatpush3.bf16.msra.mxu1 %v15359_v29  ;;  %v2913_v22 = vcombine.high %v2905_v18, %v2905_v18  ;;  %v2921_v23 = vrot.slane %v2905_v18, %v15751_v6  ;;  %v16714_v25 = vrot.slane %v2898_v20, %v15751_v6  ;;  %v15400_v28 = vld [vmem:[%s15749_s25 + $0x1780] sm:$0xff]   ;;  %v15401_v31 = vld [vmem:[%s15749_s25 + $0x1748] sm:$0xff]  }
 0x2cd   : > { %14150 = vmatprep.subr.bf16.mxu1 %v15361_v32  ;;  %v15435_v18 = vld [vmem:[%s15749_s25 + $0x18c8] sm:$0xff]  }
 0x2ce   : > { %v2935_v27 = vrot.slane %v2913_v22, %v15751_v6  ;;  %v2914_v29 = vcombine.high %v16714_v25, %v16714_v25  ;;  %v15437_v20 = vld [vmem:[%s15749_s25 + $0x1888] sm:$0xff]   ;;  %v15439_v22 = vld [vmem:[%s15749_s25 + $0x18d0] sm:$0xff]  }
 0x2cf   : > { %14129 = vmatpush3.bf16.msra.mxu0 %v15362_v33  ;;  %v15402_v33 = vld [vmem:[%s15749_s25 + $0x17c8] sm:$0xff]  }
 0x2d0   : > { %14158 = vmatprep.subr.bf16.mxu0 %v15365_v36  ;;  %14151 = vmatpush3.bf16.msra.mxu1 %v15363_v34  ;;  %v2945_v32 = vcombine.high %v2935_v27, %v2935_v27  ;;  %v2942_v34 = vrot.slane %v2914_v29, %v15751_v6  ;;  %v15404_v36 = vld [vmem:[%s15749_s25 + $0x1788] sm:$0xff]   ;;  %v15446_v29 = vld [vmem:[%s15749_s25 + $0x1860] sm:$0xff]  }
 0x2d1   : > { %14180 = vmatprep.subr.bf16.mxu1 %v15366_v37 }
 0x2d2   : > { %11128 = vmatmul.mubr.bf16.vlgmr.msra.gmra.mrb[84].mxu0 %v2879_v35  ;;  %v15403_v35 = vld [vmem:[%s15749_s25 + $0x1708] sm:$0xff]   ;;  %v2946_v37 = vcombine.high %v2942_v34, %v2942_v34 }
 0x2d3   : > { %14159 = vmatpush3.bf16.msra.mxu0 %v15367_v38  ;;  %11168 = vmatmul.mubr.bf16.vlgmr.msra.gmra.mrb[84].mxu1 %v2895_v40  ;;  %v15405_v38 = vld [vmem:[%s15749_s25 + $0x1750] sm:$0xff]  }
 0x2d4   : > { %14160 = vmatprep.subr.bf16.mxu0 %v15369_v41  ;;  %14181 = vmatpush3.bf16.msra.mxu1 %v15368_v39  ;;  %v15406_v39 = vld [vmem:[%s15749_s25 + $0x17d0] sm:$0xff]  }
 0x2d5   : > { %14182 = vmatprep.subr.bf16.mxu1 %v15370_v42  ;;  %11207 = vmatprep.mubr.bf16.mxu0 %v2935_v27  ;;  %v15407_v40 = vld [vmem:[%s15749_s25 + $0x1710] sm:$0xff]   ;;  %v15409_v42 = vld [vmem:[%s15749_s25 + $0x1758] sm:$0xff]  }
 0x2d6   : > { %11247 = vmatprep.mubr.bf16.mxu1 %v2945_v32  ;;  %v15408_v41 = vld [vmem:[%s15749_s25 + $0x1790] sm:$0xff]   ;;  %v15444_v27 = vld [vmem:[%s15749_s25 + $0x1818] sm:$0xff]   ;;  %v15449_v32 = vld [vmem:[%s15749_s25 + $0x18a0] sm:$0xff]  }
 0x2d7   : > { %14161 = vmatpush3.bf16.msra.mxu0 %v15371_v43  ;;  %v15410_v43 = vld [vmem:[%s15749_s25 + $0x17d8] sm:$0xff]  }
 0x2d8   : > { %14162 = vmatprep.subr.bf16.mxu0 %v15373_v45  ;;  %14183 = vmatpush3.bf16.msra.mxu1 %v15372_v44  ;;  %v15411_v44 = vld [vmem:[%s15749_s25 + $0x1718] sm:$0xff]  }
 0x2d9   : > { %14184 = vmatprep.subr.bf16.mxu1 %v15374_v46  ;;  %v15412_v45 = vld [vmem:[%s15749_s25 + $0x1798] sm:$0xff]   ;;  %v15413_v46 = vld [vmem:[%s15749_s25 + $0x1760] sm:$0xff]  }
 0x2db   : > { %14163 = vmatpush3.bf16.msra.mxu0 %v15375_v47  ;;  %v15414_v47 = vld [vmem:[%s15749_s25 + $0x17e0] sm:$0xff]  }
 0x2dc   : > { %14164 = vmatprep.subr.bf16.mxu0 %v15377_v49  ;;  %14185 = vmatpush3.bf16.msra.mxu1 %v15376_v48  ;;  %v15415_v48 = vld [vmem:[%s15749_s25 + $0x1720] sm:$0xff]  }
 0x2dd   : > { %14186 = vmatprep.subr.bf16.mxu1 %v15378_v50  ;;  %v15416_v49 = vld [vmem:[%s15749_s25 + $0x17a0] sm:$0xff]   ;;  %v15417_v50 = vld [vmem:[%s15749_s25 + $0x1768] sm:$0xff]  }
 0x2df   : > { %14165 = vmatpush3.bf16.msra.mxu0 %v15379_v51  ;;  %v15418_v51 = vld [vmem:[%s15749_s25 + $0x17e8] sm:$0xff]  }
 0x2e0   : > { %14166 = vmatprep.subr.bf16.mxu0 %v15381_v53  ;;  %14187 = vmatpush3.bf16.msra.mxu1 %v15380_v52  ;;  %v15419_v53 = vld [vmem:[%s15749_s25 + $0x1728] sm:$0xff]  }
 0x2e1   : > { %14188 = vmatprep.subr.bf16.mxu1 %v15382_v54 }
 0x2e3   : > { %14167 = vmatpush3.bf16.msra.mxu0 %v15383_v55  ;;  %v15420_v55 = vld [vmem:[%s15749_s25 + $0x17a8] sm:$0xff]  }
 0x2e4   : > { %14168 = vmatprep.subr.bf16.mxu0 %v15385_v57  ;;  %14189 = vmatpush3.bf16.msra.mxu1 %v15384_v56 }
 0x2e5   : > { %v13866_v59 = vpop.f32.mrb[60].mxu0  ;;  %14190 = vmatprep.subr.bf16.mxu1 %v15386_v58 }
 0x2e6   : > { %v13867_v61 = vpop.f32.mrb[61].mxu0  ;;  %v13888_v63 = vpop.f32.mrb[60].mxu1 }
 0x2e7   : > { %v13868_v0 = vadd.f32 %v13867_v61, %v13866_v59  ;;  %v13869_v1 = vpop.f32.mrb[62].mxu0  ;;  %v13889_v2 = vpop.f32.mrb[61].mxu1  ;;  %14169 = vmatpush3.bf16.msra.mxu0 %v15387_v60  ;;  %v15421_v59 = vld [vmem:[%s15749_s25 + $0x1770] sm:$0xff]  }
 0x2e8   : > { %v13870_v4 = vpop.f32.mrb[63].mxu0  ;;  %v13890_v8 = vadd.f32 %v13889_v2, %v13888_v63  ;;  %v13891_v9 = vpop.f32.mrb[62].mxu1  ;;  %14170 = vmatprep.subr.bf16.mxu0 %v15389_v62  ;;  %14191 = vmatpush3.bf16.msra.mxu1 %v15388_v3  ;;  %v15422_v60 = vld [vmem:[%s15749_s25 + $0x17f0] sm:$0xff]  }
 0x2e9   : > { %v10650_v7 = vadd.f32 %v13868_v0, %v16663_v30  ;;  %v13892_v11 = vpop.f32.mrb[63].mxu1  ;;  %14192 = vmatprep.subr.bf16.mxu1 %v15390_v5  ;;  %v2943_v30 = vcombine.high %v2921_v23, %v2921_v23  ;;  %v15423_v2 = vld [vmem:[%s15749_s25 + $0x1730] sm:$0xff]   ;;  %v15427_v9 = vld [vmem:[%s15749_s25 + $0x1738] sm:$0xff]  }
 0x2ea   : > { %v15424_v4 = vld [vmem:[%s15749_s25 + $0x17b0] sm:$0xff]   ;;  %v2928_v11 = vrot.slane %v16714_v25, %v15751_v6  ;;  %v15442_v25 = vld [vmem:[%s15749_s25 + $0x1858] sm:$0xff]  }
 0x2eb   : > { %v16700_v13 = vadd.f32 %v13890_v8, %v10650_v7  ;;  %14171 = vmatpush3.bf16.msra.mxu0 %v15391_v10  ;;  %v15425_v7 = vld [vmem:[%s15749_s25 + $0x1778] sm:$0xff]  }
 0x2ec   : > { %14172 = vmatprep.subr.bf16.mxu0 %v15393_v12  ;;  %14193 = vmatpush3.bf16.msra.mxu1 %v15392_v14  ;;  %v15426_v8 = vld [vmem:[%s15749_s25 + $0x17f8] sm:$0xff]   ;;  %v15430_v12 = vld [vmem:[%s15749_s25 + $0x1840] sm:$0xff]  }
 0x2ed   : > { %14194 = vmatprep.subr.bf16.mxu1 %v15394_v15  ;;  %v15428_v10 = vld [vmem:[%s15749_s25 + $0x17b8] sm:$0xff]   ;;  %v15432_v14 = vld [vmem:[%s15749_s25 + $0x1800] sm:$0xff]  }
 0x2ee   : > { %v15433_v15 = vld [vmem:[%s15749_s25 + $0x1880] sm:$0xff]  }
 0x2ef   : > { %14173 = vmatpush3.bf16.msra.mxu0 %v15395_v16  ;;  %v2944_v16 = vcombine.high %v2928_v11, %v2928_v11 }
 0x2f0   : > { %14202 = vmatprep.subr.bf16.mxu0 %v15397_v19  ;;  %14195 = vmatpush3.bf16.msra.mxu1 %v15396_v21  ;;  %v15436_v19 = vld [vmem:[%s15749_s25 + $0x1808] sm:$0xff]   ;;  %v15438_v21 = vld [vmem:[%s15749_s25 + $0x1850] sm:$0xff]  }
 0x2f1   : > { %14224 = vmatprep.subr.bf16.mxu1 %v15398_v24  ;;  %v15441_v24 = vld [vmem:[%s15749_s25 + $0x1890] sm:$0xff]  }
 0x2f2   : > { %11208 = vmatmul.mubr.bf16.vlgmr.msra.gmra.mrb[88].mxu0 %v2921_v23  ;;  %v15440_v23 = vld [vmem:[%s15749_s25 + $0x1810] sm:$0xff]  }
 0x2f3   : > { %14203 = vmatpush3.bf16.msra.mxu0 %v15399_v26  ;;  %11248 = vmatmul.mubr.bf16.vlgmr.msra.gmra.mrb[88].mxu1 %v2943_v30  ;;  %v15443_v26 = vld [vmem:[%s15749_s25 + $0x18d8] sm:$0xff]   ;;  %v15447_v30 = vld [vmem:[%s15749_s25 + $0x18e0] sm:$0xff]  }
 0x2f4   : > { %14204 = vmatprep.subr.bf16.mxu0 %v15401_v31  ;;  %14225 = vmatpush3.bf16.msra.mxu1 %v15400_v28  ;;  %v15445_v28 = vld [vmem:[%s15749_s25 + $0x1898] sm:$0xff]   ;;  %v15448_v31 = vld [vmem:[%s15749_s25 + $0x1820] sm:$0xff]  }
 0x2f5   : > { %11287 = vmatprep.mubr.bf16.mxu0 %v2942_v34  ;;  %14226 = vmatprep.subr.bf16.mxu1 %v15402_v33  ;;  %v15450_v33 = vld [vmem:[%s15749_s25 + $0x1868] sm:$0xff]  }
 0x2f6   : > { %11327 = vmatprep.mubr.bf16.mxu1 %v2946_v37  ;;  %v15451_v34 = vld [vmem:[%s15749_s25 + $0x18e8] sm:$0xff]  }
 0x2f7   : > { %14205 = vmatpush3.bf16.msra.mxu0 %v15403_v35 }
 0x2f8   : > { %14206 = vmatprep.subr.bf16.mxu0 %v15405_v38  ;;  %14227 = vmatpush3.bf16.msra.mxu1 %v15404_v36  ;;  %v15452_v36 = vld [vmem:[%s15749_s25 + $0x1828] sm:$0xff]   ;;  %v15454_v38 = vld [vmem:[%s15749_s25 + $0x1870] sm:$0xff]  }
 0x2f9   : > { %14228 = vmatprep.subr.bf16.mxu1 %v15406_v39 }
 0x2fb   : > { %14207 = vmatpush3.bf16.msra.mxu0 %v15407_v40 }
 0x2fc   : > { %14208 = vmatprep.subr.bf16.mxu0 %v15409_v42  ;;  %14229 = vmatpush3.bf16.msra.mxu1 %v15408_v41 }
 0x2fd   : > { %14230 = vmatprep.subr.bf16.mxu1 %v15410_v43  ;;  %v15453_v43 = vld [vmem:[%s15749_s25 + $0x18a8] sm:$0xff]  }
 0x2ff   : > { %14209 = vmatpush3.bf16.msra.mxu0 %v15411_v44 }
 0x300   : > { %14210 = vmatprep.subr.bf16.mxu0 %v15413_v46  ;;  %14231 = vmatpush3.bf16.msra.mxu1 %v15412_v45  ;;  %v15455_v45 = vld [vmem:[%s15749_s25 + $0x18f0] sm:$0xff]  }
 0x301   : > { %14232 = vmatprep.subr.bf16.mxu1 %v15414_v47 }
 0x303   : > { %14211 = vmatpush3.bf16.msra.mxu0 %v15415_v48 }
 0x304   : > { %14212 = vmatprep.subr.bf16.mxu0 %v15417_v50  ;;  %14233 = vmatpush3.bf16.msra.mxu1 %v15416_v49  ;;  %v15456_v49 = vld [vmem:[%s15749_s25 + $0x1830] sm:$0xff]  }
 0x305   : > { %v13910_v52 = vpop.f32.mrb[64].mxu0  ;;  %14234 = vmatprep.subr.bf16.mxu1 %v15418_v51  ;;  %v15458_v51 = vld [vmem:[%s15749_s25 + $0x1878] sm:$0xff]  }
 0x306   : > { %v13911_v54 = vpop.f32.mrb[65].mxu0  ;;  %v13932_v56 = vpop.f32.mrb[64].mxu1 }
 0x307   : > { %v13912_v57 = vadd.f32 %v13911_v54, %v13910_v52  ;;  %v13913_v58 = vpop.f32.mrb[66].mxu0  ;;  %v13933_v61 = vpop.f32.mrb[65].mxu1  ;;  %14213 = vmatpush3.bf16.msra.mxu0 %v15419_v53  ;;  %v15457_v53 = vld [vmem:[%s15749_s25 + $0x18b0] sm:$0xff]   ;;  %v15459_v54 = vld [vmem:[%s15749_s25 + $0x18f8] sm:$0xff]  }
 0x308   : > { %v13914_v62 = vpop.f32.mrb[67].mxu0  ;;  %v13934_v0 = vadd.f32 %v13933_v61, %v13932_v56  ;;  %v13935_v1 = vpop.f32.mrb[66].mxu1  ;;  %14214 = vmatprep.subr.bf16.mxu0 %v15421_v59  ;;  %14235 = vmatpush3.bf16.msra.mxu1 %v15420_v55  ;;  %v15460_v55 = vld [vmem:[%s15749_s25 + $0x1838] sm:$0xff]   ;;  %v284_v56 = vld [vmem:[%s17104_s0 + $0x60] sm:$0xff] }
 0x309   : > { %v10730_v63 = vadd.f32 %v13912_v57, %v16700_v13  ;;  %v13936_v3 = vpop.f32.mrb[67].mxu1  ;;  %14236 = vmatprep.subr.bf16.mxu1 %v15422_v60  ;;  %v15431_v13 = vld [vmem:[%s15749_s25 + $0x18c0] sm:$0xff]   ;;  %v2954_v57 = vrot.slane %v284_v56, %v15751_v6  ;;  %v2947_v59 = vcombine.high %v284_v56, %v284_v56  ;;  %v15461_v60 = vld [vmem:[%s15749_s25 + $0x18b8] sm:$0xff]   ;;  %v15499_v56 = vld [vmem:[%s15749_s25 + $0x1a48] sm:$0xff]  }
 0x30a   : > { %v15462_v58 = vld [vmem:[%s15749_s25 + $0x1940] sm:$0xff]  }
 0x30b   : > { %v16747_v5 = vadd.f32 %v13934_v0, %v10730_v63  ;;  %14215 = vmatpush3.bf16.msra.mxu0 %v15423_v2  ;;  %v2962_v61 = vcombine.high %v2954_v57, %v2954_v57  ;;  %v2970_v62 = vrot.slane %v2954_v57, %v15751_v6  ;;  %v15463_v63 = vld [vmem:[%s15749_s25 + $0x19c0] sm:$0xff]   ;;  %v16798_v0 = vrot.slane %v2947_v59, %v15751_v6  ;;  %v15500_v57 = vld [vmem:[%s15749_s25 + $0x1ac8] sm:$0xff]  }
 0x30c   : > { %14216 = vmatprep.subr.bf16.mxu0 %v15425_v7  ;;  %14237 = vmatpush3.bf16.msra.mxu1 %v15424_v4  ;;  %v15464_v1 = vld [vmem:[%s15749_s25 + $0x1900] sm:$0xff]   ;;  %v15466_v7 = vld [vmem:[%s15749_s25 + $0x1948] sm:$0xff]  }
 0x30d   : > { %14238 = vmatprep.subr.bf16.mxu1 %v15426_v8  ;;  %v2984_v2 = vrot.slane %v2962_v61, %v15751_v6  ;;  %v15465_v3 = vld [vmem:[%s15749_s25 + $0x1980] sm:$0xff]   ;;  %v2963_v4 = vcombine.high %v16798_v0, %v16798_v0  ;;  %v15502_v59 = vld [vmem:[%s15749_s25 + $0x1a88] sm:$0xff]   ;;  %v15504_v61 = vld [vmem:[%s15749_s25 + $0x1ad0] sm:$0xff]  }
 0x30f   : > { %14217 = vmatpush3.bf16.msra.mxu0 %v15427_v9  ;;  %v2994_v8 = vcombine.high %v2984_v2, %v2984_v2  ;;  %v15467_v9 = vld [vmem:[%s15749_s25 + $0x19c8] sm:$0xff]  }
 0x310   : > { %14246 = vmatprep.subr.bf16.mxu0 %v15430_v12  ;;  %14239 = vmatpush3.bf16.msra.mxu1 %v15428_v10  ;;  %v2991_v10 = vrot.slane %v2963_v4, %v15751_v6  ;;  %v15469_v12 = vld [vmem:[%s15749_s25 + $0x1988] sm:$0xff]   ;;  %v15511_v4 = vld [vmem:[%s15749_s25 + $0x1a60] sm:$0xff]  }
 0x311   : > { %14268 = vmatprep.subr.bf16.mxu1 %v15431_v13 }
 0x312   : > { %11288 = vmatmul.mubr.bf16.vlgmr.msra.gmra.mrb[92].mxu0 %v2928_v11  ;;  %v15468_v11 = vld [vmem:[%s15749_s25 + $0x1908] sm:$0xff]   ;;  %v2995_v13 = vcombine.high %v2991_v10, %v2991_v10 }
 0x313   : > { %14247 = vmatpush3.bf16.msra.mxu0 %v15432_v14  ;;  %11328 = vmatmul.mubr.bf16.vlgmr.msra.gmra.mrb[92].mxu1 %v2944_v16  ;;  %v15470_v14 = vld [vmem:[%s15749_s25 + $0x1950] sm:$0xff]  }
 0x314   : > { %14248 = vmatprep.subr.bf16.mxu0 %v15434_v17  ;;  %14269 = vmatpush3.bf16.msra.mxu1 %v15433_v15  ;;  %v15471_v15 = vld [vmem:[%s15749_s25 + $0x19d0] sm:$0xff]  }
 0x315   : > { %14270 = vmatprep.subr.bf16.mxu1 %v15435_v18  ;;  %11367 = vmatprep.mubr.bf16.mxu0 %v2984_v2  ;;  %v15472_v16 = vld [vmem:[%s15749_s25 + $0x1910] sm:$0xff]   ;;  %v15474_v18 = vld [vmem:[%s15749_s25 + $0x1958] sm:$0xff]  }
 0x316   : > { %11407 = vmatprep.mubr.bf16.mxu1 %v2994_v8  ;;  %v15473_v17 = vld [vmem:[%s15749_s25 + $0x1990] sm:$0xff]   ;;  %v15509_v2 = vld [vmem:[%s15749_s25 + $0x1a18] sm:$0xff]   ;;  %v15514_v8 = vld [vmem:[%s15749_s25 + $0x1aa0] sm:$0xff]  }
 0x317   : > { %14249 = vmatpush3.bf16.msra.mxu0 %v15436_v19  ;;  %v15475_v19 = vld [vmem:[%s15749_s25 + $0x19d8] sm:$0xff]  }
 0x318   : > { %14250 = vmatprep.subr.bf16.mxu0 %v15438_v21  ;;  %14271 = vmatpush3.bf16.msra.mxu1 %v15437_v20  ;;  %v15476_v20 = vld [vmem:[%s15749_s25 + $0x1918] sm:$0xff]  }
 0x319   : > { %14272 = vmatprep.subr.bf16.mxu1 %v15439_v22  ;;  %v15477_v21 = vld [vmem:[%s15749_s25 + $0x1998] sm:$0xff]   ;;  %v15478_v22 = vld [vmem:[%s15749_s25 + $0x1960] sm:$0xff]  }
 0x31b   : > { %14251 = vmatpush3.bf16.msra.mxu0 %v15440_v23  ;;  %v15479_v23 = vld [vmem:[%s15749_s25 + $0x19e0] sm:$0xff]  }
 0x31c   : > { %14252 = vmatprep.subr.bf16.mxu0 %v15442_v25  ;;  %14273 = vmatpush3.bf16.msra.mxu1 %v15441_v24  ;;  %v15480_v24 = vld [vmem:[%s15749_s25 + $0x1920] sm:$0xff]  }
 0x31d   : > { %14274 = vmatprep.subr.bf16.mxu1 %v15443_v26  ;;  %v15481_v25 = vld [vmem:[%s15749_s25 + $0x19a0] sm:$0xff]   ;;  %v15482_v26 = vld [vmem:[%s15749_s25 + $0x1968] sm:$0xff]  }
 0x31f   : > { %14253 = vmatpush3.bf16.msra.mxu0 %v15444_v27  ;;  %v15483_v27 = vld [vmem:[%s15749_s25 + $0x19e8] sm:$0xff]  }
 0x320   : > { %14254 = vmatprep.subr.bf16.mxu0 %v15446_v29  ;;  %14275 = vmatpush3.bf16.msra.mxu1 %v15445_v28  ;;  %v15484_v29 = vld [vmem:[%s15749_s25 + $0x1928] sm:$0xff]  }
 0x321   : > { %14276 = vmatprep.subr.bf16.mxu1 %v15447_v30 }
 0x323   : > { %14255 = vmatpush3.bf16.msra.mxu0 %v15448_v31  ;;  %v15485_v31 = vld [vmem:[%s15749_s25 + $0x19a8] sm:$0xff]  }
 0x324   : > { %14256 = vmatprep.subr.bf16.mxu0 %v15450_v33  ;;  %14277 = vmatpush3.bf16.msra.mxu1 %v15449_v32 }
 0x325   : > { %v13954_v35 = vpop.f32.mrb[68].mxu0  ;;  %14278 = vmatprep.subr.bf16.mxu1 %v15451_v34 }
 0x326   : > { %v13955_v37 = vpop.f32.mrb[69].mxu0  ;;  %v13976_v39 = vpop.f32.mrb[68].mxu1 }
 0x327   : > { %v13956_v40 = vadd.f32 %v13955_v37, %v13954_v35  ;;  %v13957_v41 = vpop.f32.mrb[70].mxu0  ;;  %v13977_v42 = vpop.f32.mrb[69].mxu1  ;;  %14257 = vmatpush3.bf16.msra.mxu0 %v15452_v36  ;;  %v15486_v35 = vld [vmem:[%s15749_s25 + $0x1970] sm:$0xff]  }
 0x328   : > { %v13958_v44 = vpop.f32.mrb[71].mxu0  ;;  %v13978_v47 = vadd.f32 %v13977_v42, %v13976_v39  ;;  %v13979_v48 = vpop.f32.mrb[70].mxu1  ;;  %14258 = vmatprep.subr.bf16.mxu0 %v15454_v38  ;;  %14279 = vmatpush3.bf16.msra.mxu1 %v15453_v43  ;;  %v15487_v36 = vld [vmem:[%s15749_s25 + $0x19f0] sm:$0xff]  }
 0x329   : > { %v10810_v46 = vadd.f32 %v13956_v40, %v16747_v5  ;;  %v13980_v50 = vpop.f32.mrb[71].mxu1  ;;  %14280 = vmatprep.subr.bf16.mxu1 %v15455_v45  ;;  %v2992_v5 = vcombine.high %v2970_v62, %v2970_v62  ;;  %v15488_v42 = vld [vmem:[%s15749_s25 + $0x1930] sm:$0xff]   ;;  %v15492_v48 = vld [vmem:[%s15749_s25 + $0x1938] sm:$0xff]  }
 0x32a   : > { %v15489_v44 = vld [vmem:[%s15749_s25 + $0x19b0] sm:$0xff]   ;;  %v2977_v50 = vrot.slane %v16798_v0, %v15751_v6  ;;  %v15507_v0 = vld [vmem:[%s15749_s25 + $0x1a58] sm:$0xff]  }
 0x32b   : > { %v16784_v52 = vadd.f32 %v13978_v47, %v10810_v46  ;;  %14259 = vmatpush3.bf16.msra.mxu0 %v15456_v49  ;;  %v15490_v46 = vld [vmem:[%s15749_s25 + $0x1978] sm:$0xff]  }
 0x32c   : > { %14260 = vmatprep.subr.bf16.mxu0 %v15458_v51  ;;  %14281 = vmatpush3.bf16.msra.mxu1 %v15457_v53  ;;  %v15491_v47 = vld [vmem:[%s15749_s25 + $0x19f8] sm:$0xff]   ;;  %v15495_v51 = vld [vmem:[%s15749_s25 + $0x1a40] sm:$0xff]  }
 0x32d   : > { %14282 = vmatprep.subr.bf16.mxu1 %v15459_v54  ;;  %v15493_v49 = vld [vmem:[%s15749_s25 + $0x19b8] sm:$0xff]   ;;  %v15497_v53 = vld [vmem:[%s15749_s25 + $0x1a00] sm:$0xff]  }
 0x32e   : > { %v15498_v54 = vld [vmem:[%s15749_s25 + $0x1a80] sm:$0xff]  }
 0x32f   : > { %14261 = vmatpush3.bf16.msra.mxu0 %v15460_v55  ;;  %v2993_v55 = vcombine.high %v2977_v50, %v2977_v50 }
 0x330   : > { %14290 = vmatprep.subr.bf16.mxu0 %v15462_v58  ;;  %14283 = vmatpush3.bf16.msra.mxu1 %v15461_v60  ;;  %v15501_v58 = vld [vmem:[%s15749_s25 + $0x1a08] sm:$0xff]   ;;  %v15503_v60 = vld [vmem:[%s15749_s25 + $0x1a50] sm:$0xff]  }
 0x331   : > { %14312 = vmatprep.subr.bf16.mxu1 %v15463_v63  ;;  %v15506_v63 = vld [vmem:[%s15749_s25 + $0x1a90] sm:$0xff]  }
 0x332   : > { %11368 = vmatmul.mubr.bf16.vlgmr.msra.gmra.mrb[96].mxu0 %v2970_v62  ;;  %v15505_v62 = vld [vmem:[%s15749_s25 + $0x1a10] sm:$0xff]  }
 0x333   : > { %14291 = vmatpush3.bf16.msra.mxu0 %v15464_v1  ;;  %11408 = vmatmul.mubr.bf16.vlgmr.msra.gmra.mrb[96].mxu1 %v2992_v5  ;;  %v15508_v1 = vld [vmem:[%s15749_s25 + $0x1ad8] sm:$0xff]   ;;  %v15512_v5 = vld [vmem:[%s15749_s25 + $0x1ae0] sm:$0xff]  }
 0x334   : > { %14292 = vmatprep.subr.bf16.mxu0 %v15466_v7  ;;  %14313 = vmatpush3.bf16.msra.mxu1 %v15465_v3  ;;  %v15510_v3 = vld [vmem:[%s15749_s25 + $0x1a98] sm:$0xff]   ;;  %v15513_v7 = vld [vmem:[%s15749_s25 + $0x1a20] sm:$0xff]  }
 0x335   : > { %11447 = vmatprep.mubr.bf16.mxu0 %v2991_v10  ;;  %14314 = vmatprep.subr.bf16.mxu1 %v15467_v9  ;;  %v15515_v9 = vld [vmem:[%s15749_s25 + $0x1a68] sm:$0xff]  }
 0x336   : > { %11487 = vmatprep.mubr.bf16.mxu1 %v2995_v13  ;;  %v15516_v10 = vld [vmem:[%s15749_s25 + $0x1ae8] sm:$0xff]  }
 0x337   : > { %14293 = vmatpush3.bf16.msra.mxu0 %v15468_v11 }
 0x338   : > { %14294 = vmatprep.subr.bf16.mxu0 %v15470_v14  ;;  %14315 = vmatpush3.bf16.msra.mxu1 %v15469_v12  ;;  %v15517_v12 = vld [vmem:[%s15749_s25 + $0x1a28] sm:$0xff]   ;;  %v15519_v14 = vld [vmem:[%s15749_s25 + $0x1a70] sm:$0xff]  }
 0x339   : > { %14316 = vmatprep.subr.bf16.mxu1 %v15471_v15 }
 0x33b   : > { %14295 = vmatpush3.bf16.msra.mxu0 %v15472_v16 }
 0x33c   : > { %14296 = vmatprep.subr.bf16.mxu0 %v15474_v18  ;;  %14317 = vmatpush3.bf16.msra.mxu1 %v15473_v17 }
 0x33d   : > { %14318 = vmatprep.subr.bf16.mxu1 %v15475_v19  ;;  %v15518_v19 = vld [vmem:[%s15749_s25 + $0x1aa8] sm:$0xff]  }
 0x33f   : > { %14297 = vmatpush3.bf16.msra.mxu0 %v15476_v20 }
 0x340   : > { %14298 = vmatprep.subr.bf16.mxu0 %v15478_v22  ;;  %14319 = vmatpush3.bf16.msra.mxu1 %v15477_v21  ;;  %v15520_v21 = vld [vmem:[%s15749_s25 + $0x1af0] sm:$0xff]  }
 0x341   : > { %14320 = vmatprep.subr.bf16.mxu1 %v15479_v23 }
 0x343   : > { %14299 = vmatpush3.bf16.msra.mxu0 %v15480_v24 }
 0x344   : > { %14300 = vmatprep.subr.bf16.mxu0 %v15482_v26  ;;  %14321 = vmatpush3.bf16.msra.mxu1 %v15481_v25  ;;  %v15521_v25 = vld [vmem:[%s15749_s25 + $0x1a30] sm:$0xff]  }
 0x345   : > { %v13998_v28 = vpop.f32.mrb[72].mxu0  ;;  %14322 = vmatprep.subr.bf16.mxu1 %v15483_v27  ;;  %v15523_v27 = vld [vmem:[%s15749_s25 + $0x1a78] sm:$0xff]  }
 0x346   : > { %v13999_v30 = vpop.f32.mrb[73].mxu0  ;;  %v14020_v32 = vpop.f32.mrb[72].mxu1 }
 0x347   : > { %v14000_v33 = vadd.f32 %v13999_v30, %v13998_v28  ;;  %v14001_v34 = vpop.f32.mrb[74].mxu0  ;;  %v14021_v37 = vpop.f32.mrb[73].mxu1  ;;  %14301 = vmatpush3.bf16.msra.mxu0 %v15484_v29  ;;  %v15522_v29 = vld [vmem:[%s15749_s25 + $0x1ab0] sm:$0xff]   ;;  %v15524_v30 = vld [vmem:[%s15749_s25 + $0x1af8] sm:$0xff]  }
 0x348   : > { %v14002_v38 = vpop.f32.mrb[75].mxu0  ;;  %v14022_v40 = vadd.f32 %v14021_v37, %v14020_v32  ;;  %v14023_v41 = vpop.f32.mrb[74].mxu1  ;;  %14302 = vmatprep.subr.bf16.mxu0 %v15486_v35  ;;  %14323 = vmatpush3.bf16.msra.mxu1 %v15485_v31  ;;  %v15525_v31 = vld [vmem:[%s15749_s25 + $0x1a38] sm:$0xff]   ;;  %v285_v32 = vld [vmem:[%s17104_s0 + $0x68] sm:$0xff]  ;;  %v15527_v34 = vld [vmem:[%s15749_s25 + $0x1b40] sm:$0xff]  }
 0x349   : > { %v10890_v39 = vadd.f32 %v14000_v33, %v16784_v52  ;;  %v14024_v43 = vpop.f32.mrb[75].mxu1  ;;  %14324 = vmatprep.subr.bf16.mxu1 %v15487_v36  ;;  %v15496_v52 = vld [vmem:[%s15749_s25 + $0x1ac0] sm:$0xff]   ;;  %v3003_v33 = vrot.slane %v285_v32, %v15751_v6  ;;  %v2996_v35 = vcombine.high %v285_v32, %v285_v32  ;;  %v15526_v36 = vld [vmem:[%s15749_s25 + $0x1ab8] sm:$0xff]   ;;  %v15564_v32 = vld [vmem:[%s15749_s25 + $0x1c48] sm:$0xff]  }
 0x34a   : > { %v15529_v41 = vld [vmem:[%s15749_s25 + $0x1b00] sm:$0xff]  }
 0x34b   : > { %v16831_v45 = vadd.f32 %v14022_v40, %v10890_v39  ;;  %14303 = vmatpush3.bf16.msra.mxu0 %v15488_v42  ;;  %v3011_v37 = vcombine.high %v3003_v33, %v3003_v33  ;;  %v3019_v38 = vrot.slane %v3003_v33, %v15751_v6  ;;  %v15528_v39 = vld [vmem:[%s15749_s25 + $0x1bc0] sm:$0xff]   ;;  %v16882_v40 = vrot.slane %v2996_v35, %v15751_v6  ;;  %v15565_v33 = vld [vmem:[%s15749_s25 + $0x1cc8] sm:$0xff]  }
 0x34c   : > { %14304 = vmatprep.subr.bf16.mxu0 %v15490_v46  ;;  %14325 = vmatpush3.bf16.msra.mxu1 %v15489_v44  ;;  %v15530_v43 = vld [vmem:[%s15749_s25 + $0x1b80] sm:$0xff]   ;;  %v15531_v46 = vld [vmem:[%s15749_s25 + $0x1b48] sm:$0xff]  }
 0x34d   : > { %14326 = vmatprep.subr.bf16.mxu1 %v15491_v47  ;;  %v3033_v42 = vrot.slane %v3011_v37, %v15751_v6  ;;  %v3012_v44 = vcombine.high %v16882_v40, %v16882_v40  ;;  %v15567_v35 = vld [vmem:[%s15749_s25 + $0x1c88] sm:$0xff]   ;;  %v15569_v37 = vld [vmem:[%s15749_s25 + $0x1cd0] sm:$0xff]  }
 0x34f   : > { %14305 = vmatpush3.bf16.msra.mxu0 %v15492_v48  ;;  %v3043_v47 = vcombine.high %v3033_v42, %v3033_v42  ;;  %v15532_v48 = vld [vmem:[%s15749_s25 + $0x1bc8] sm:$0xff]  }
 0x350   : > { %14334 = vmatprep.subr.bf16.mxu0 %v15495_v51  ;;  %14327 = vmatpush3.bf16.msra.mxu1 %v15493_v49  ;;  %v3040_v49 = vrot.slane %v3012_v44, %v15751_v6  ;;  %v15534_v51 = vld [vmem:[%s15749_s25 + $0x1b88] sm:$0xff]   ;;  %v15576_v44 = vld [vmem:[%s15749_s25 + $0x1c60] sm:$0xff]  }
 0x351   : > { %14356 = vmatprep.subr.bf16.mxu1 %v15496_v52 }
 0x352   : > { %11448 = vmatmul.mubr.bf16.vlgmr.msra.gmra.mrb[100].mxu0 %v2977_v50  ;;  %v15533_v50 = vld [vmem:[%s15749_s25 + $0x1b08] sm:$0xff]   ;;  %v3044_v52 = vcombine.high %v3040_v49, %v3040_v49 }
 0x353   : > { %14335 = vmatpush3.bf16.msra.mxu0 %v15497_v53  ;;  %11488 = vmatmul.mubr.bf16.vlgmr.msra.gmra.mrb[100].mxu1 %v2993_v55  ;;  %v15535_v53 = vld [vmem:[%s15749_s25 + $0x1b50] sm:$0xff]  }
 0x354   : > { %14336 = vmatprep.subr.bf16.mxu0 %v15499_v56  ;;  %14357 = vmatpush3.bf16.msra.mxu1 %v15498_v54  ;;  %v15536_v54 = vld [vmem:[%s15749_s25 + $0x1bd0] sm:$0xff]  }
 0x355   : > { %14358 = vmatprep.subr.bf16.mxu1 %v15500_v57  ;;  %11527 = vmatprep.mubr.bf16.mxu0 %v3033_v42  ;;  %v15537_v55 = vld [vmem:[%s15749_s25 + $0x1b10] sm:$0xff]   ;;  %v15539_v57 = vld [vmem:[%s15749_s25 + $0x1b58] sm:$0xff]  }
 0x356   : > { %11567 = vmatprep.mubr.bf16.mxu1 %v3043_v47  ;;  %v15538_v56 = vld [vmem:[%s15749_s25 + $0x1b90] sm:$0xff]   ;;  %v15574_v42 = vld [vmem:[%s15749_s25 + $0x1c18] sm:$0xff]   ;;  %v15579_v47 = vld [vmem:[%s15749_s25 + $0x1ca0] sm:$0xff]  }
 0x357   : > { %14337 = vmatpush3.bf16.msra.mxu0 %v15501_v58  ;;  %v15540_v58 = vld [vmem:[%s15749_s25 + $0x1bd8] sm:$0xff]  }
 0x358   : > { %14338 = vmatprep.subr.bf16.mxu0 %v15503_v60  ;;  %14359 = vmatpush3.bf16.msra.mxu1 %v15502_v59  ;;  %v15541_v59 = vld [vmem:[%s15749_s25 + $0x1b18] sm:$0xff]  }
 0x359   : > { %14360 = vmatprep.subr.bf16.mxu1 %v15504_v61  ;;  %v15542_v60 = vld [vmem:[%s15749_s25 + $0x1b98] sm:$0xff]   ;;  %v15543_v61 = vld [vmem:[%s15749_s25 + $0x1b60] sm:$0xff]  }
 0x35b   : > { %14339 = vmatpush3.bf16.msra.mxu0 %v15505_v62  ;;  %v15544_v62 = vld [vmem:[%s15749_s25 + $0x1be0] sm:$0xff]  }
 0x35c   : > { %14340 = vmatprep.subr.bf16.mxu0 %v15507_v0  ;;  %14361 = vmatpush3.bf16.msra.mxu1 %v15506_v63  ;;  %v15545_v63 = vld [vmem:[%s15749_s25 + $0x1b20] sm:$0xff]  }
 0x35d   : > { %14362 = vmatprep.subr.bf16.mxu1 %v15508_v1  ;;  %v15546_v0 = vld [vmem:[%s15749_s25 + $0x1ba0] sm:$0xff]   ;;  %v15547_v1 = vld [vmem:[%s15749_s25 + $0x1b68] sm:$0xff]  }
 0x35f   : > { %14341 = vmatpush3.bf16.msra.mxu0 %v15509_v2  ;;  %v15548_v2 = vld [vmem:[%s15749_s25 + $0x1be8] sm:$0xff]  }
 0x360   : > { %14342 = vmatprep.subr.bf16.mxu0 %v15511_v4  ;;  %14363 = vmatpush3.bf16.msra.mxu1 %v15510_v3  ;;  %v15549_v4 = vld [vmem:[%s15749_s25 + $0x1b28] sm:$0xff]  }
 0x361   : > { %14364 = vmatprep.subr.bf16.mxu1 %v15512_v5 }
 0x363   : > { %14343 = vmatpush3.bf16.msra.mxu0 %v15513_v7  ;;  %v15550_v7 = vld [vmem:[%s15749_s25 + $0x1ba8] sm:$0xff]  }
 0x364   : > { %14344 = vmatprep.subr.bf16.mxu0 %v15515_v9  ;;  %14365 = vmatpush3.bf16.msra.mxu1 %v15514_v8 }
 0x365   : > { %v14042_v11 = vpop.f32.mrb[76].mxu0  ;;  %14366 = vmatprep.subr.bf16.mxu1 %v15516_v10 }
 0x366   : > { %v14043_v13 = vpop.f32.mrb[77].mxu0  ;;  %v14064_v15 = vpop.f32.mrb[76].mxu1 }
 0x367   : > { %v14044_v16 = vadd.f32 %v14043_v13, %v14042_v11  ;;  %v14045_v17 = vpop.f32.mrb[78].mxu0  ;;  %v14065_v18 = vpop.f32.mrb[77].mxu1  ;;  %14345 = vmatpush3.bf16.msra.mxu0 %v15517_v12  ;;  %v15551_v11 = vld [vmem:[%s15749_s25 + $0x1b70] sm:$0xff]  }
 0x368   : > { %v14046_v20 = vpop.f32.mrb[79].mxu0  ;;  %v14066_v23 = vadd.f32 %v14065_v18, %v14064_v15  ;;  %v14067_v24 = vpop.f32.mrb[78].mxu1  ;;  %14346 = vmatprep.subr.bf16.mxu0 %v15519_v14  ;;  %14367 = vmatpush3.bf16.msra.mxu1 %v15518_v19  ;;  %v15552_v12 = vld [vmem:[%s15749_s25 + $0x1bf0] sm:$0xff]  }
 0x369   : > { %v10970_v22 = vadd.f32 %v14044_v16, %v16831_v45  ;;  %v14068_v26 = vpop.f32.mrb[79].mxu1  ;;  %14368 = vmatprep.subr.bf16.mxu1 %v15520_v21  ;;  %v3041_v45 = vcombine.high %v3019_v38, %v3019_v38  ;;  %v15553_v18 = vld [vmem:[%s15749_s25 + $0x1b30] sm:$0xff]   ;;  %v15557_v24 = vld [vmem:[%s15749_s25 + $0x1b38] sm:$0xff]  }
 0x36a   : > { %v15554_v20 = vld [vmem:[%s15749_s25 + $0x1bb0] sm:$0xff]   ;;  %v3026_v26 = vrot.slane %v16882_v40, %v15751_v6  ;;  %v15572_v40 = vld [vmem:[%s15749_s25 + $0x1c58] sm:$0xff]  }
 0x36b   : > { %v16868_v28 = vadd.f32 %v14066_v23, %v10970_v22  ;;  %14347 = vmatpush3.bf16.msra.mxu0 %v15521_v25  ;;  %v15555_v22 = vld [vmem:[%s15749_s25 + $0x1b78] sm:$0xff]  }
 0x36c   : > { %14348 = vmatprep.subr.bf16.mxu0 %v15523_v27  ;;  %14369 = vmatpush3.bf16.msra.mxu1 %v15522_v29  ;;  %v15556_v23 = vld [vmem:[%s15749_s25 + $0x1bf8] sm:$0xff]   ;;  %v15560_v27 = vld [vmem:[%s15749_s25 + $0x1c40] sm:$0xff]  }
 0x36d   : > { %14370 = vmatprep.subr.bf16.mxu1 %v15524_v30  ;;  %v15558_v25 = vld [vmem:[%s15749_s25 + $0x1bb8] sm:$0xff]   ;;  %v15562_v29 = vld [vmem:[%s15749_s25 + $0x1c00] sm:$0xff]  }
 0x36e   : > { %v15563_v30 = vld [vmem:[%s15749_s25 + $0x1c80] sm:$0xff]  }
 0x36f   : > { %14349 = vmatpush3.bf16.msra.mxu0 %v15525_v31  ;;  %v3042_v31 = vcombine.high %v3026_v26, %v3026_v26 }
 0x370   : > { %14378 = vmatprep.subr.bf16.mxu0 %v15527_v34  ;;  %14371 = vmatpush3.bf16.msra.mxu1 %v15526_v36  ;;  %v15566_v34 = vld [vmem:[%s15749_s25 + $0x1c08] sm:$0xff]   ;;  %v15568_v36 = vld [vmem:[%s15749_s25 + $0x1c50] sm:$0xff]  }
 0x371   : > { %14400 = vmatprep.subr.bf16.mxu1 %v15528_v39  ;;  %v15571_v39 = vld [vmem:[%s15749_s25 + $0x1c90] sm:$0xff]  }
 0x372   : > { %11528 = vmatmul.mubr.bf16.vlgmr.msra.gmra.mrb[104].mxu0 %v3019_v38  ;;  %v15570_v38 = vld [vmem:[%s15749_s25 + $0x1c10] sm:$0xff]  }
 0x373   : > { %14379 = vmatpush3.bf16.msra.mxu0 %v15529_v41  ;;  %11568 = vmatmul.mubr.bf16.vlgmr.msra.gmra.mrb[104].mxu1 %v3041_v45  ;;  %v15573_v41 = vld [vmem:[%s15749_s25 + $0x1cd8] sm:$0xff]   ;;  %v15577_v45 = vld [vmem:[%s15749_s25 + $0x1ce0] sm:$0xff]  }
 0x374   : > { %14380 = vmatprep.subr.bf16.mxu0 %v15531_v46  ;;  %14401 = vmatpush3.bf16.msra.mxu1 %v15530_v43  ;;  %v15575_v43 = vld [vmem:[%s15749_s25 + $0x1c98] sm:$0xff]   ;;  %v15578_v46 = vld [vmem:[%s15749_s25 + $0x1c20] sm:$0xff]  }
 0x375   : > { %11607 = vmatprep.mubr.bf16.mxu0 %v3040_v49  ;;  %14402 = vmatprep.subr.bf16.mxu1 %v15532_v48  ;;  %v15580_v48 = vld [vmem:[%s15749_s25 + $0x1c68] sm:$0xff]  }
 0x376   : > { %11647 = vmatprep.mubr.bf16.mxu1 %v3044_v52  ;;  %v15581_v49 = vld [vmem:[%s15749_s25 + $0x1ce8] sm:$0xff]  }
 0x377   : > { %14381 = vmatpush3.bf16.msra.mxu0 %v15533_v50 }
 0x378   : > { %14382 = vmatprep.subr.bf16.mxu0 %v15535_v53  ;;  %14403 = vmatpush3.bf16.msra.mxu1 %v15534_v51  ;;  %v15582_v51 = vld [vmem:[%s15749_s25 + $0x1c28] sm:$0xff]   ;;  %v15584_v53 = vld [vmem:[%s15749_s25 + $0x1c70] sm:$0xff]  }
 0x379   : > { %14404 = vmatprep.subr.bf16.mxu1 %v15536_v54 }
 0x37b   : > { %14383 = vmatpush3.bf16.msra.mxu0 %v15537_v55 }
 0x37c   : > { %14384 = vmatprep.subr.bf16.mxu0 %v15539_v57  ;;  %14405 = vmatpush3.bf16.msra.mxu1 %v15538_v56 }
 0x37d   : > { %14406 = vmatprep.subr.bf16.mxu1 %v15540_v58  ;;  %v15583_v58 = vld [vmem:[%s15749_s25 + $0x1ca8] sm:$0xff]  }
 0x37f   : > { %14385 = vmatpush3.bf16.msra.mxu0 %v15541_v59 }
 0x380   : > { %14386 = vmatprep.subr.bf16.mxu0 %v15543_v61  ;;  %14407 = vmatpush3.bf16.msra.mxu1 %v15542_v60  ;;  %v15585_v60 = vld [vmem:[%s15749_s25 + $0x1cf0] sm:$0xff]  }
 0x381   : > { %14408 = vmatprep.subr.bf16.mxu1 %v15544_v62 }
 0x383   : > { %14387 = vmatpush3.bf16.msra.mxu0 %v15545_v63 }
 0x384   : > { %14388 = vmatprep.subr.bf16.mxu0 %v15547_v1  ;;  %14409 = vmatpush3.bf16.msra.mxu1 %v15546_v0  ;;  %v15586_v0 = vld [vmem:[%s15749_s25 + $0x1c30] sm:$0xff]  }
 0x385   : > { %v14086_v3 = vpop.f32.mrb[80].mxu0  ;;  %14410 = vmatprep.subr.bf16.mxu1 %v15548_v2  ;;  %v15588_v2 = vld [vmem:[%s15749_s25 + $0x1c78] sm:$0xff]  }
 0x386   : > { %v14087_v5 = vpop.f32.mrb[81].mxu0  ;;  %v14108_v8 = vpop.f32.mrb[80].mxu1 }
 0x387   : > { %v14088_v9 = vadd.f32 %v14087_v5, %v14086_v3  ;;  %v14089_v10 = vpop.f32.mrb[82].mxu0  ;;  %v14109_v13 = vpop.f32.mrb[81].mxu1  ;;  %14389 = vmatpush3.bf16.msra.mxu0 %v15549_v4  ;;  %v15587_v4 = vld [vmem:[%s15749_s25 + $0x1cb0] sm:$0xff]   ;;  %v15589_v5 = vld [vmem:[%s15749_s25 + $0x1cf8] sm:$0xff]  }
 0x388   : > { %v14090_v14 = vpop.f32.mrb[83].mxu0  ;;  %v14110_v16 = vadd.f32 %v14109_v13, %v14108_v8  ;;  %v14111_v17 = vpop.f32.mrb[82].mxu1  ;;  %14390 = vmatprep.subr.bf16.mxu0 %v15551_v11  ;;  %14411 = vmatpush3.bf16.msra.mxu1 %v15550_v7  ;;  %v15590_v7 = vld [vmem:[%s15749_s25 + $0x1c38] sm:$0xff]   ;;  %v286_v8 = vld [vmem:[%s17104_s0 + $0x70] sm:$0xff]  ;;  %v15592_v10 = vld [vmem:[%s15749_s25 + $0x1d40] sm:$0xff]  }
 0x389   : > { %v11050_v15 = vadd.f32 %v14088_v9, %v16868_v28  ;;  %v14112_v19 = vpop.f32.mrb[83].mxu1  ;;  %14412 = vmatprep.subr.bf16.mxu1 %v15552_v12  ;;  %v15561_v28 = vld [vmem:[%s15749_s25 + $0x1cc0] sm:$0xff]   ;;  %v3052_v9 = vrot.slane %v286_v8, %v15751_v6  ;;  %v3045_v11 = vcombine.high %v286_v8, %v286_v8  ;;  %v15591_v12 = vld [vmem:[%s15749_s25 + $0x1cb8] sm:$0xff]   ;;  %v15629_v8 = vld [vmem:[%s15749_s25 + $0x1e48] sm:$0xff]  }
 0x38a   : > { %v15594_v17 = vld [vmem:[%s15749_s25 + $0x1d00] sm:$0xff]  }
 0x38b   : > { %v16915_v21 = vadd.f32 %v14110_v16, %v11050_v15  ;;  %14391 = vmatpush3.bf16.msra.mxu0 %v15553_v18  ;;  %v3060_v13 = vcombine.high %v3052_v9, %v3052_v9  ;;  %v3068_v14 = vrot.slane %v3052_v9, %v15751_v6  ;;  %v15593_v15 = vld [vmem:[%s15749_s25 + $0x1dc0] sm:$0xff]   ;;  %v16966_v16 = vrot.slane %v3045_v11, %v15751_v6  ;;  %v15630_v9 = vld [vmem:[%s15749_s25 + $0x1ec8] sm:$0xff]  }
 0x38c   : > { %14392 = vmatprep.subr.bf16.mxu0 %v15555_v22  ;;  %14413 = vmatpush3.bf16.msra.mxu1 %v15554_v20  ;;  %v15595_v19 = vld [vmem:[%s15749_s25 + $0x1d80] sm:$0xff]   ;;  %v15596_v22 = vld [vmem:[%s15749_s25 + $0x1d48] sm:$0xff]  }
 0x38d   : > { %14414 = vmatprep.subr.bf16.mxu1 %v15556_v23  ;;  %v3082_v18 = vrot.slane %v3060_v13, %v15751_v6  ;;  %v3061_v20 = vcombine.high %v16966_v16, %v16966_v16  ;;  %v15632_v11 = vld [vmem:[%s15749_s25 + $0x1e88] sm:$0xff]   ;;  %v15634_v13 = vld [vmem:[%s15749_s25 + $0x1ed0] sm:$0xff]  }
 0x38f   : > { %14393 = vmatpush3.bf16.msra.mxu0 %v15557_v24  ;;  %v3092_v23 = vcombine.high %v3082_v18, %v3082_v18  ;;  %v15597_v24 = vld [vmem:[%s15749_s25 + $0x1dc8] sm:$0xff]  }
 0x390   : > { %14422 = vmatprep.subr.bf16.mxu0 %v15560_v27  ;;  %14415 = vmatpush3.bf16.msra.mxu1 %v15558_v25  ;;  %v3089_v25 = vrot.slane %v3061_v20, %v15751_v6  ;;  %v15599_v27 = vld [vmem:[%s15749_s25 + $0x1d88] sm:$0xff]   ;;  %v15641_v20 = vld [vmem:[%s15749_s25 + $0x1e60] sm:$0xff]  }
 0x391   : > { %14444 = vmatprep.subr.bf16.mxu1 %v15561_v28 }
 0x392   : > { %11608 = vmatmul.mubr.bf16.vlgmr.msra.gmra.mrb[108].mxu0 %v3026_v26  ;;  %v15598_v26 = vld [vmem:[%s15749_s25 + $0x1d08] sm:$0xff]   ;;  %v3093_v28 = vcombine.high %v3089_v25, %v3089_v25 }
 0x393   : > { %14423 = vmatpush3.bf16.msra.mxu0 %v15562_v29  ;;  %11648 = vmatmul.mubr.bf16.vlgmr.msra.gmra.mrb[108].mxu1 %v3042_v31  ;;  %v15600_v29 = vld [vmem:[%s15749_s25 + $0x1d50] sm:$0xff]  }
 0x394   : > { %14424 = vmatprep.subr.bf16.mxu0 %v15564_v32  ;;  %14445 = vmatpush3.bf16.msra.mxu1 %v15563_v30  ;;  %v15601_v30 = vld [vmem:[%s15749_s25 + $0x1dd0] sm:$0xff]  }
 0x395   : > { %14446 = vmatprep.subr.bf16.mxu1 %v15565_v33  ;;  %11687 = vmatprep.mubr.bf16.mxu0 %v3082_v18  ;;  %v15602_v31 = vld [vmem:[%s15749_s25 + $0x1d10] sm:$0xff]   ;;  %v15604_v33 = vld [vmem:[%s15749_s25 + $0x1d58] sm:$0xff]  }
 0x396   : > { %11727 = vmatprep.mubr.bf16.mxu1 %v3092_v23  ;;  %v15603_v32 = vld [vmem:[%s15749_s25 + $0x1d90] sm:$0xff]   ;;  %v15639_v18 = vld [vmem:[%s15749_s25 + $0x1e18] sm:$0xff]   ;;  %v15644_v23 = vld [vmem:[%s15749_s25 + $0x1ea0] sm:$0xff]  }
 0x397   : > { %14425 = vmatpush3.bf16.msra.mxu0 %v15566_v34  ;;  %v15605_v34 = vld [vmem:[%s15749_s25 + $0x1dd8] sm:$0xff]  }
 0x398   : > { %14426 = vmatprep.subr.bf16.mxu0 %v15568_v36  ;;  %14447 = vmatpush3.bf16.msra.mxu1 %v15567_v35  ;;  %v15606_v35 = vld [vmem:[%s15749_s25 + $0x1d18] sm:$0xff]  }
 0x399   : > { %14448 = vmatprep.subr.bf16.mxu1 %v15569_v37  ;;  %v15607_v36 = vld [vmem:[%s15749_s25 + $0x1d98] sm:$0xff]   ;;  %v15608_v37 = vld [vmem:[%s15749_s25 + $0x1d60] sm:$0xff]  }
 0x39b   : > { %14427 = vmatpush3.bf16.msra.mxu0 %v15570_v38  ;;  %v15609_v38 = vld [vmem:[%s15749_s25 + $0x1de0] sm:$0xff]  }
 0x39c   : > { %14428 = vmatprep.subr.bf16.mxu0 %v15572_v40  ;;  %14449 = vmatpush3.bf16.msra.mxu1 %v15571_v39  ;;  %v15610_v39 = vld [vmem:[%s15749_s25 + $0x1d20] sm:$0xff]  }
 0x39d   : > { %14450 = vmatprep.subr.bf16.mxu1 %v15573_v41  ;;  %v15611_v40 = vld [vmem:[%s15749_s25 + $0x1da0] sm:$0xff]   ;;  %v15612_v41 = vld [vmem:[%s15749_s25 + $0x1d68] sm:$0xff]  }
 0x39f   : > { %14429 = vmatpush3.bf16.msra.mxu0 %v15574_v42  ;;  %v15613_v42 = vld [vmem:[%s15749_s25 + $0x1de8] sm:$0xff]  }
 0x3a0   : > { %14430 = vmatprep.subr.bf16.mxu0 %v15576_v44  ;;  %14451 = vmatpush3.bf16.msra.mxu1 %v15575_v43  ;;  %v15614_v44 = vld [vmem:[%s15749_s25 + $0x1d28] sm:$0xff]  }
 0x3a1   : > { %14452 = vmatprep.subr.bf16.mxu1 %v15577_v45 }
 0x3a3   : > { %14431 = vmatpush3.bf16.msra.mxu0 %v15578_v46  ;;  %v15615_v46 = vld [vmem:[%s15749_s25 + $0x1da8] sm:$0xff]  }
 0x3a4   : > { %14432 = vmatprep.subr.bf16.mxu0 %v15580_v48  ;;  %14453 = vmatpush3.bf16.msra.mxu1 %v15579_v47 }
 0x3a5   : > { %v14130_v50 = vpop.f32.mrb[84].mxu0  ;;  %14454 = vmatprep.subr.bf16.mxu1 %v15581_v49 }
 0x3a6   : > { %v14131_v52 = vpop.f32.mrb[85].mxu0  ;;  %v14152_v54 = vpop.f32.mrb[84].mxu1 }
 0x3a7   : > { %v14132_v55 = vadd.f32 %v14131_v52, %v14130_v50  ;;  %v14133_v56 = vpop.f32.mrb[86].mxu0  ;;  %v14153_v57 = vpop.f32.mrb[85].mxu1  ;;  %14433 = vmatpush3.bf16.msra.mxu0 %v15582_v51  ;;  %v15616_v50 = vld [vmem:[%s15749_s25 + $0x1d70] sm:$0xff]  }
 0x3a8   : > { %v14134_v59 = vpop.f32.mrb[87].mxu0  ;;  %v14154_v62 = vadd.f32 %v14153_v57, %v14152_v54  ;;  %v14155_v63 = vpop.f32.mrb[86].mxu1  ;;  %14434 = vmatprep.subr.bf16.mxu0 %v15584_v53  ;;  %14455 = vmatpush3.bf16.msra.mxu1 %v15583_v58  ;;  %v15617_v51 = vld [vmem:[%s15749_s25 + $0x1df0] sm:$0xff]  }
 0x3a9   : > { %v11130_v61 = vadd.f32 %v14132_v55, %v16915_v21  ;;  %v14156_v1 = vpop.f32.mrb[87].mxu1  ;;  %14456 = vmatprep.subr.bf16.mxu1 %v15585_v60  ;;  %v3090_v21 = vcombine.high %v3068_v14, %v3068_v14  ;;  %v15618_v57 = vld [vmem:[%s15749_s25 + $0x1d30] sm:$0xff]   ;;  %v15622_v63 = vld [vmem:[%s15749_s25 + $0x1d38] sm:$0xff]  }
 0x3aa   : > { %v15619_v59 = vld [vmem:[%s15749_s25 + $0x1db0] sm:$0xff]   ;;  %v3075_v1 = vrot.slane %v16966_v16, %v15751_v6  ;;  %v15637_v16 = vld [vmem:[%s15749_s25 + $0x1e58] sm:$0xff]  }
 0x3ab   : > { %v16952_v3 = vadd.f32 %v14154_v62, %v11130_v61  ;;  %14435 = vmatpush3.bf16.msra.mxu0 %v15586_v0  ;;  %v15620_v61 = vld [vmem:[%s15749_s25 + $0x1d78] sm:$0xff]  }
 0x3ac   : > { %14436 = vmatprep.subr.bf16.mxu0 %v15588_v2  ;;  %14457 = vmatpush3.bf16.msra.mxu1 %v15587_v4  ;;  %v15621_v62 = vld [vmem:[%s15749_s25 + $0x1df8] sm:$0xff]   ;;  %v15625_v2 = vld [vmem:[%s15749_s25 + $0x1e40] sm:$0xff]  }
 0x3ad   : > { %14458 = vmatprep.subr.bf16.mxu1 %v15589_v5  ;;  %v15623_v0 = vld [vmem:[%s15749_s25 + $0x1db8] sm:$0xff]   ;;  %v15627_v4 = vld [vmem:[%s15749_s25 + $0x1e00] sm:$0xff]  }
 0x3ae   : > { %v15628_v5 = vld [vmem:[%s15749_s25 + $0x1e80] sm:$0xff]  }
 0x3af   : > { %14437 = vmatpush3.bf16.msra.mxu0 %v15590_v7  ;;  %v3091_v7 = vcombine.high %v3075_v1, %v3075_v1 }
 0x3b0   : > { %14466 = vmatprep.subr.bf16.mxu0 %v15592_v10  ;;  %14459 = vmatpush3.bf16.msra.mxu1 %v15591_v12  ;;  %v15631_v10 = vld [vmem:[%s15749_s25 + $0x1e08] sm:$0xff]   ;;  %v15633_v12 = vld [vmem:[%s15749_s25 + $0x1e50] sm:$0xff]  }
 0x3b1   : > { %14488 = vmatprep.subr.bf16.mxu1 %v15593_v15  ;;  %v15636_v15 = vld [vmem:[%s15749_s25 + $0x1e90] sm:$0xff]  }
 0x3b2   : > { %11688 = vmatmul.mubr.bf16.vlgmr.msra.gmra.mrb[112].mxu0 %v3068_v14  ;;  %v15635_v14 = vld [vmem:[%s15749_s25 + $0x1e10] sm:$0xff]  }
 0x3b3   : > { %14467 = vmatpush3.bf16.msra.mxu0 %v15594_v17  ;;  %11728 = vmatmul.mubr.bf16.vlgmr.msra.gmra.mrb[112].mxu1 %v3090_v21  ;;  %v15638_v17 = vld [vmem:[%s15749_s25 + $0x1ed8] sm:$0xff]   ;;  %v15642_v21 = vld [vmem:[%s15749_s25 + $0x1ee0] sm:$0xff]  }
 0x3b4   : > { %14468 = vmatprep.subr.bf16.mxu0 %v15596_v22  ;;  %14489 = vmatpush3.bf16.msra.mxu1 %v15595_v19  ;;  %v15640_v19 = vld [vmem:[%s15749_s25 + $0x1e98] sm:$0xff]   ;;  %v15643_v22 = vld [vmem:[%s15749_s25 + $0x1e20] sm:$0xff]  }
 0x3b5   : > { %11767 = vmatprep.mubr.bf16.mxu0 %v3089_v25  ;;  %14490 = vmatprep.subr.bf16.mxu1 %v15597_v24  ;;  %v15645_v24 = vld [vmem:[%s15749_s25 + $0x1e68] sm:$0xff]  }
 0x3b6   : > { %11807 = vmatprep.mubr.bf16.mxu1 %v3093_v28  ;;  %v15646_v25 = vld [vmem:[%s15749_s25 + $0x1ee8] sm:$0xff]  }
 0x3b7   : > { %14469 = vmatpush3.bf16.msra.mxu0 %v15598_v26 }
 0x3b8   : > { %14470 = vmatprep.subr.bf16.mxu0 %v15600_v29  ;;  %14491 = vmatpush3.bf16.msra.mxu1 %v15599_v27  ;;  %v15647_v27 = vld [vmem:[%s15749_s25 + $0x1e28] sm:$0xff]   ;;  %v15649_v29 = vld [vmem:[%s15749_s25 + $0x1e70] sm:$0xff]  }
 0x3b9   : > { %14492 = vmatprep.subr.bf16.mxu1 %v15601_v30 }
 0x3bb   : > { %14471 = vmatpush3.bf16.msra.mxu0 %v15602_v31 }
 0x3bc   : > { %14472 = vmatprep.subr.bf16.mxu0 %v15604_v33  ;;  %14493 = vmatpush3.bf16.msra.mxu1 %v15603_v32 }
 0x3bd   : > { %14494 = vmatprep.subr.bf16.mxu1 %v15605_v34  ;;  %v15648_v34 = vld [vmem:[%s15749_s25 + $0x1ea8] sm:$0xff]  }
 0x3bf   : > { %14473 = vmatpush3.bf16.msra.mxu0 %v15606_v35 }
 0x3c0   : > { %14474 = vmatprep.subr.bf16.mxu0 %v15608_v37  ;;  %14495 = vmatpush3.bf16.msra.mxu1 %v15607_v36  ;;  %v15650_v36 = vld [vmem:[%s15749_s25 + $0x1ef0] sm:$0xff]  }
 0x3c1   : > { %14496 = vmatprep.subr.bf16.mxu1 %v15609_v38 }
 0x3c3   : > { %14475 = vmatpush3.bf16.msra.mxu0 %v15610_v39 }
 0x3c4   : > { %14476 = vmatprep.subr.bf16.mxu0 %v15612_v41  ;;  %14497 = vmatpush3.bf16.msra.mxu1 %v15611_v40  ;;  %v15651_v40 = vld [vmem:[%s15749_s25 + $0x1e30] sm:$0xff]  }
 0x3c5   : > { %v14174_v43 = vpop.f32.mrb[88].mxu0  ;;  %14498 = vmatprep.subr.bf16.mxu1 %v15613_v42  ;;  %v15653_v42 = vld [vmem:[%s15749_s25 + $0x1e78] sm:$0xff]  }
 0x3c6   : > { %v14175_v45 = vpop.f32.mrb[89].mxu0  ;;  %v14196_v47 = vpop.f32.mrb[88].mxu1 }
 0x3c7   : > { %v14176_v48 = vadd.f32 %v14175_v45, %v14174_v43  ;;  %v14177_v49 = vpop.f32.mrb[90].mxu0  ;;  %v14197_v52 = vpop.f32.mrb[89].mxu1  ;;  %14477 = vmatpush3.bf16.msra.mxu0 %v15614_v44  ;;  %v15652_v44 = vld [vmem:[%s15749_s25 + $0x1eb0] sm:$0xff]   ;;  %v15654_v45 = vld [vmem:[%s15749_s25 + $0x1ef8] sm:$0xff]  }
 0x3c8   : > { %v14178_v53 = vpop.f32.mrb[91].mxu0  ;;  %v14198_v55 = vadd.f32 %v14197_v52, %v14196_v47  ;;  %v14199_v56 = vpop.f32.mrb[90].mxu1  ;;  %14478 = vmatprep.subr.bf16.mxu0 %v15616_v50  ;;  %14499 = vmatpush3.bf16.msra.mxu1 %v15615_v46  ;;  %v15655_v46 = vld [vmem:[%s15749_s25 + $0x1e38] sm:$0xff]   ;;  %v15657_v49 = vld [vmem:[%s15749_s25 + $0x1f40] sm:$0xff]  }
 0x3c9   : > { %v11210_v54 = vadd.f32 %v14176_v48, %v16952_v3  ;;  %v14200_v58 = vpop.f32.mrb[91].mxu1  ;;  %14500 = vmatprep.subr.bf16.mxu1 %v15617_v51  ;;  %v15626_v3 = vld [vmem:[%s15749_s25 + $0x1ec0] sm:$0xff]   ;;  %v287_v47 = vld [vmem:[%s17104_s0 + $0x78] sm:$0xff] }
 0x3ca   : > { %v3101_v48 = vrot.slane %v287_v47, %v15751_v6  ;;  %v3094_v50 = vcombine.high %v287_v47, %v287_v47  ;;  %v15656_v51 = vld [vmem:[%s15749_s25 + $0x1eb8] sm:$0xff]  }
 0x3cb   : > { %v16999_v60 = vadd.f32 %v14198_v55, %v11210_v54  ;;  %14479 = vmatpush3.bf16.msra.mxu0 %v15618_v57  ;;  %v15658_v54 = vld [vmem:[%s15749_s25 + $0x1fc0] sm:$0xff]  }
 0x3cc   : > { %14480 = vmatprep.subr.bf16.mxu0 %v15620_v61  ;;  %14501 = vmatpush3.bf16.msra.mxu1 %v15619_v59  ;;  %v3109_v52 = vcombine.high %v3101_v48, %v3101_v48  ;;  %v3117_v53 = vrot.slane %v3101_v48, %v15751_v6  ;;  %v17050_v55 = vrot.slane %v3094_v50, %v15751_v6  ;;  %v15659_v57 = vld [vmem:[%s15749_s25 + $0x1f00] sm:$0xff]  }
 0x3cd   : > { %14502 = vmatprep.subr.bf16.mxu1 %v15621_v62  ;;  %v15660_v62 = vld [vmem:[%s15749_s25 + $0x1f80] sm:$0xff]  }
 0x3ce   : > { %v3131_v56 = vrot.slane %v3109_v52, %v15751_v6  ;;  %v3110_v58 = vcombine.high %v17050_v55, %v17050_v55  ;;  %v3139_v59 = vcombine.high %v3117_v53, %v3117_v53 }
 0x3cf   : > { %14481 = vmatpush3.bf16.msra.mxu0 %v15622_v63 }
 0x3d0   : > { %14510 = vmatprep.subr.bf16.mxu0 %v15625_v2  ;;  %14503 = vmatpush3.bf16.msra.mxu1 %v15623_v0  ;;  %v3141_v61 = vcombine.high %v3131_v56, %v3131_v56  ;;  %v3138_v63 = vrot.slane %v3110_v58, %v15751_v6  ;;  %v15662_v0 = vld [vmem:[%s15749_s25 + $0x1fc8] sm:$0xff]  }
 0x3d1   : > { %14532 = vmatprep.subr.bf16.mxu1 %v15626_v3  ;;  %v15665_v3 = vld [vmem:[%s15749_s25 + $0x1f50] sm:$0xff]  }
 0x3d2   : > { %11768 = vmatmul.mubr.bf16.vlgmr.msra.gmra.mrb[116].mxu0 %v3075_v1  ;;  %v15663_v1 = vld [vmem:[%s15749_s25 + $0x1f08] sm:$0xff]   ;;  %v3142_v2 = vcombine.high %v3138_v63, %v3138_v63 }
 0x3d3   : > { %14511 = vmatpush3.bf16.msra.mxu0 %v15627_v4  ;;  %11808 = vmatmul.mubr.bf16.vlgmr.msra.gmra.mrb[116].mxu1 %v3091_v7  ;;  %v15664_v4 = vld [vmem:[%s15749_s25 + $0x1f88] sm:$0xff]   ;;  %v15667_v7 = vld [vmem:[%s15749_s25 + $0x1f10] sm:$0xff]  }
 0x3d4   : > { %14512 = vmatprep.subr.bf16.mxu0 %v15629_v8  ;;  %14533 = vmatpush3.bf16.msra.mxu1 %v15628_v5  ;;  %v15666_v5 = vld [vmem:[%s15749_s25 + $0x1fd0] sm:$0xff]   ;;  %v15669_v8 = vld [vmem:[%s15749_s25 + $0x1f58] sm:$0xff]  }
 0x3d5   : > { %14534 = vmatprep.subr.bf16.mxu1 %v15630_v9  ;;  %11847 = vmatprep.mubr.bf16.mxu0 %v3131_v56  ;;  %v15668_v9 = vld [vmem:[%s15749_s25 + $0x1f90] sm:$0xff]  }
 0x3d6   : > { %11887 = vmatprep.mubr.bf16.mxu1 %v3141_v61 }
 0x3d7   : > { %14513 = vmatpush3.bf16.msra.mxu0 %v15631_v10  ;;  %v15670_v10 = vld [vmem:[%s15749_s25 + $0x1fd8] sm:$0xff]  }
 0x3d8   : > { %14514 = vmatprep.subr.bf16.mxu0 %v15633_v12  ;;  %14535 = vmatpush3.bf16.msra.mxu1 %v15632_v11  ;;  %v15671_v11 = vld [vmem:[%s15749_s25 + $0x1f18] sm:$0xff]   ;;  %v15673_v12 = vld [vmem:[%s15749_s25 + $0x1f60] sm:$0xff]  }
 0x3d9   : > { %14536 = vmatprep.subr.bf16.mxu1 %v15634_v13  ;;  %v15672_v13 = vld [vmem:[%s15749_s25 + $0x1f98] sm:$0xff]  }
 0x3db   : > { %14515 = vmatpush3.bf16.msra.mxu0 %v15635_v14  ;;  %v15674_v14 = vld [vmem:[%s15749_s25 + $0x1fe0] sm:$0xff]  }
 0x3dc   : > { %14516 = vmatprep.subr.bf16.mxu0 %v15637_v16  ;;  %14537 = vmatpush3.bf16.msra.mxu1 %v15636_v15  ;;  %v15675_v15 = vld [vmem:[%s15749_s25 + $0x1f20] sm:$0xff]   ;;  %v15677_v16 = vld [vmem:[%s15749_s25 + $0x1f68] sm:$0xff]  }
 0x3dd   : > { %14538 = vmatprep.subr.bf16.mxu1 %v15638_v17  ;;  %v15676_v17 = vld [vmem:[%s15749_s25 + $0x1fa0] sm:$0xff]  }
 0x3df   : > { %14517 = vmatpush3.bf16.msra.mxu0 %v15639_v18 }
 0x3e0   : > { %14518 = vmatprep.subr.bf16.mxu0 %v15641_v20  ;;  %14539 = vmatpush3.bf16.msra.mxu1 %v15640_v19  ;;  %v15678_v19 = vld [vmem:[%s15749_s25 + $0x1fe8] sm:$0xff]  }
 0x3e1   : > { %14540 = vmatprep.subr.bf16.mxu1 %v15642_v21  ;;  %v15679_v21 = vld [vmem:[%s15749_s25 + $0x1f28] sm:$0xff]  }
 0x3e3   : > { %14519 = vmatpush3.bf16.msra.mxu0 %v15643_v22 }
 0x3e4   : > { %14520 = vmatprep.subr.bf16.mxu0 %v15645_v24  ;;  %14541 = vmatpush3.bf16.msra.mxu1 %v15644_v23 }
 0x3e5   : > { %v14218_v26 = vpop.f32.mrb[92].mxu0  ;;  %14542 = vmatprep.subr.bf16.mxu1 %v15646_v25  ;;  %v15680_v25 = vld [vmem:[%s15749_s25 + $0x1fa8] sm:$0xff]  }
 0x3e6   : > { %v14219_v28 = vpop.f32.mrb[93].mxu0  ;;  %v14240_v30 = vpop.f32.mrb[92].mxu1 }
 0x3e7   : > { %v14220_v31 = vadd.f32 %v14219_v28, %v14218_v26  ;;  %v14221_v32 = vpop.f32.mrb[94].mxu0  ;;  %v14241_v33 = vpop.f32.mrb[93].mxu1  ;;  %14521 = vmatpush3.bf16.msra.mxu0 %v15647_v27  ;;  %v15681_v26 = vld [vmem:[%s15749_s25 + $0x1f70] sm:$0xff]  }
 0x3e8   : > { %v14222_v35 = vpop.f32.mrb[95].mxu0  ;;  %v14242_v38 = vadd.f32 %v14241_v33, %v14240_v30  ;;  %v14243_v39 = vpop.f32.mrb[94].mxu1  ;;  %14522 = vmatprep.subr.bf16.mxu0 %v15649_v29  ;;  %14543 = vmatpush3.bf16.msra.mxu1 %v15648_v34  ;;  %v15682_v32 = vld [vmem:[%s15749_s25 + $0x1ff0] sm:$0xff]  }
 0x3e9   : > { %v11290_v37 = vadd.f32 %v14220_v31, %v16999_v60  ;;  %v14244_v41 = vpop.f32.mrb[95].mxu1  ;;  %14544 = vmatprep.subr.bf16.mxu1 %v15650_v36  ;;  %v15661_v60 = vld [vmem:[%s15749_s25 + $0x1f48] sm:$0xff]   ;;  %v15683_v34 = vld [vmem:[%s15749_s25 + $0x1f30] sm:$0xff]   ;;  %v15685_v36 = vld [vmem:[%s15749_s25 + $0x1f78] sm:$0xff]  }
 0x3ea   : > { %v15687_v39 = vld [vmem:[%s15749_s25 + $0x1f38] sm:$0xff]  }
 0x3eb   : > { %v17036_v43 = vadd.f32 %v14242_v38, %v11290_v37  ;;  %14523 = vmatpush3.bf16.msra.mxu0 %v15651_v40  ;;  %v15684_v37 = vld [vmem:[%s15749_s25 + $0x1fb0] sm:$0xff]   ;;  %v15686_v38 = vld [vmem:[%s15749_s25 + $0x1ff8] sm:$0xff]   ;;  %v3124_v40 = vrot.slane %v17050_v55, %v15751_v6 }
 0x3ec   : > { %14524 = vmatprep.subr.bf16.mxu0 %v15653_v42  ;;  %14545 = vmatpush3.bf16.msra.mxu1 %v15652_v44  ;;  %v15688_v41 = vld [vmem:[%s15749_s25 + $0x1fb8] sm:$0xff]   ;;  %s13189_s25 = sshll.u32 %s17111_s19, 6 }
 0x3ed   : > { %14546 = vmatprep.subr.bf16.mxu1 %v15654_v45  ;;  %v3140_v42 = vcombine.high %v3124_v40, %v3124_v40  ;;  %s263_s14 = scalar_lea.vmem %s17107_s3, %s13189_s25 }
 0x3ef   : > { %14525 = vmatpush3.bf16.msra.mxu0 %v15655_v46 }
 0x3f0   : > { %14554 = vmatprep.subr.bf16.mxu0 %v15657_v49  ;;  %14547 = vmatpush3.bf16.msra.mxu1 %v15656_v51 }
 0x3f1   : > { %14576 = vmatprep.subr.bf16.mxu1 %v15658_v54 }
 0x3f2   : > { %11848 = vmatmul.mubr.bf16.vlgmr.msra.gmra.mrb[120].mxu0 %v3117_v53 }
 0x3f3   : > { %14555 = vmatpush3.bf16.msra.mxu0 %v15659_v57  ;;  %11888 = vmatmul.mubr.bf16.vlgmr.msra.gmra.mrb[120].mxu1 %v3139_v59 }
 0x3f4   : > { %14556 = vmatprep.subr.bf16.mxu0 %v15661_v60  ;;  %14577 = vmatpush3.bf16.msra.mxu1 %v15660_v62 }
 0x3f5   : > { %11927 = vmatprep.mubr.bf16.mxu0 %v3138_v63  ;;  %14578 = vmatprep.subr.bf16.mxu1 %v15662_v0 }
 0x3f6   : > { %11967 = vmatprep.mubr.bf16.mxu1 %v3142_v2  ;;  %v15699_v2 = vmov 0.0|0.0  }
 0x3f7   : > { %14557 = vmatpush3.bf16.msra.mxu0 %v15663_v1 }
 0x3f8   : > { %14558 = vmatprep.subr.bf16.mxu0 %v15665_v3  ;;  %14579 = vmatpush3.bf16.msra.mxu1 %v15664_v4  ;;  %v11976_v3 = vld [vmem:[%s263_s14] sm:$0xff]  ;;  %v11977_v4 = vld [vmem:[%s263_s14 + $0x8] sm:$0xff] }
 0x3f9   : > { %14580 = vmatprep.subr.bf16.mxu1 %v15666_v5  ;;  %v11978_v5 = vld [vmem:[%s263_s14 + $0x10] sm:$0xff] }
 0x3fb   : > { %14559 = vmatpush3.bf16.msra.mxu0 %v15667_v7  ;;  %v14627_v7 = vpack.c.bf16 %v11977_v4, %v11976_v3 }
 0x3fc   : > { %14560 = vmatprep.subr.bf16.mxu0 %v15669_v8  ;;  %14581 = vmatpush3.bf16.msra.mxu1 %v15668_v9  ;;  %v11979_v8 = vld [vmem:[%s263_s14 + $0x18] sm:$0xff] }
 0x3fd   : > { %14582 = vmatprep.subr.bf16.mxu1 %v15670_v10  ;;  %v14630_v9 = vpack.c.bf16 %v11979_v8, %v11978_v5 }
 0x3ff   : > { %14561 = vmatpush3.bf16.msra.mxu0 %v15671_v11 }
 0x400   : > { %14562 = vmatprep.subr.bf16.mxu0 %v15673_v12  ;;  %14583 = vmatpush3.bf16.msra.mxu1 %v15672_v13 }
 0x401   : > { %14584 = vmatprep.subr.bf16.mxu1 %v15674_v14 }
 0x403   : > { %14563 = vmatpush3.bf16.msra.mxu0 %v15675_v15 }
 0x404   : > { %14564 = vmatprep.subr.bf16.mxu0 %v15677_v16  ;;  %14585 = vmatpush3.bf16.msra.mxu1 %v15676_v17 }
 0x405   : > { %v14262_v18 = vpop.f32.mrb[96].mxu0  ;;  %14586 = vmatprep.subr.bf16.mxu1 %v15678_v19 }
 0x406   : > { %v14263_v20 = vpop.f32.mrb[97].mxu0  ;;  %v14284_v22 = vpop.f32.mrb[96].mxu1 }
 0x407   : > { %v14264_v23 = vadd.f32 %v14263_v20, %v14262_v18  ;;  %v14265_v24 = vpop.f32.mrb[98].mxu0  ;;  %v14285_v27 = vpop.f32.mrb[97].mxu1  ;;  %14565 = vmatpush3.bf16.msra.mxu0 %v15679_v21  ;;  %v11980_v20 = vld [vmem:[%s263_s14 + $0x20] sm:$0xff]  ;;  %v11981_v21 = vld [vmem:[%s263_s14 + $0x28] sm:$0xff] }
 0x408   : > { %v14266_v28 = vpop.f32.mrb[99].mxu0  ;;  %v14286_v30 = vadd.f32 %v14285_v27, %v14284_v22  ;;  %v14287_v31 = vpop.f32.mrb[98].mxu1  ;;  %14566 = vmatprep.subr.bf16.mxu0 %v15681_v26  ;;  %14587 = vmatpush3.bf16.msra.mxu1 %v15680_v25  ;;  %v11982_v25 = vld [vmem:[%s263_s14 + $0x30] sm:$0xff]  ;;  %v11983_v26 = vld [vmem:[%s263_s14 + $0x38] sm:$0xff] }
 0x409   : > { %v11370_v29 = vadd.f32 %v14264_v23, %v17036_v43  ;;  %v14288_v33 = vpop.f32.mrb[99].mxu1  ;;  %14588 = vmatprep.subr.bf16.mxu1 %v15682_v32  ;;  %v14633_v23 = vpack.c.bf16 %v11981_v21, %v11980_v20  ;;  %v14636_v27 = vpack.c.bf16 %v11983_v26, %v11982_v25  ;;  %v15701_v28 = vmov 0.0  }
 0x40b   : > { %v11410_v35 = vadd.f32 %v14286_v30, %v11370_v29  ;;  %14567 = vmatpush3.bf16.msra.mxu0 %v15683_v34 }
 0x40c   : > { %14568 = vmatprep.subr.bf16.mxu0 %v15685_v36  ;;  %14589 = vmatpush3.bf16.msra.mxu1 %v15684_v37 }
 0x40d   : > { %14590 = vmatprep.subr.bf16.mxu1 %v15686_v38 }
 0x40f   : > { %14569 = vmatpush3.bf16.msra.mxu0 %v15687_v39 }
 0x410   : > { %14591 = vmatpush3.bf16.msra.mxu1 %v15688_v41  ;;  %14626 = vmatprep.subr.bf16.mxu0 %v15699_v2 }
 0x412   : > { %11928 = vmatmul.mubr.bf16.vlgmr.msra.gmra.mrb[124].mxu0 %v3124_v40 }
 0x413   : > { %11968 = vmatmul.mubr.bf16.vlgmr.msra.gmra.mrb[124].mxu1 %v3140_v42  ;;  %14628 = vmatpush3.bf16.msra.mxu0 %v14627_v7 }
 0x414   : > { %14629 = vmatprep.subr.bf16.mxu0 %v15699_v2  ;;  %14623 = vmatprep.mubr.msk.f32.mxu0 %vm15700_vm0, %v15701_v28 }
 0x417   : > { %14631 = vmatpush3.bf16.msra.mxu0 %v14630_v9 }
 0x418   : > { %14632 = vmatprep.subr.bf16.mxu0 %v15699_v2 }
 0x41b   : > { %14634 = vmatpush3.bf16.msra.mxu0 %v14633_v23 }
 0x41c   : > { %14635 = vmatprep.subr.bf16.mxu0 %v15699_v2 }
 0x41f   : > { %14637 = vmatpush3.bf16.msra.mxu0 %v14636_v27 }
 0x425   : > { %v14306_v43 = vpop.f32.mrb[100].mxu0 }
 0x426   : > { %v14307_v44 = vpop.f32.mrb[101].mxu0  ;;  %v14328_v45 = vpop.f32.mrb[100].mxu1 }
 0x427   : > { %v14308_v46 = vadd.f32 %v14307_v44, %v14306_v43  ;;  %v14309_v47 = vpop.f32.mrb[102].mxu0  ;;  %v14329_v48 = vpop.f32.mrb[101].mxu1 }
 0x428   : > { %v14310_v49 = vpop.f32.mrb[103].mxu0  ;;  %v14330_v51 = vadd.f32 %v14329_v48, %v14328_v45  ;;  %v14331_v52 = vpop.f32.mrb[102].mxu1 }
 0x429   : > { %v11450_v50 = vadd.f32 %v14308_v46, %v11410_v35  ;;  %v14332_v6 = vpop.f32.mrb[103].mxu1 }
 0x42b   : > { %v11490_v53 = vadd.f32 %v14330_v51, %v11450_v50 }
 0x445   : > { %v14350_v54 = vpop.f32.mrb[104].mxu0 }
 0x446   : > { %v14351_v55 = vpop.f32.mrb[105].mxu0  ;;  %v14372_v56 = vpop.f32.mrb[104].mxu1 }
 0x447   : > { %v14352_v57 = vadd.f32 %v14351_v55, %v14350_v54  ;;  %v14353_v58 = vpop.f32.mrb[106].mxu0  ;;  %v14373_v59 = vpop.f32.mrb[105].mxu1 }
 0x448   : > { %v14354_v60 = vpop.f32.mrb[107].mxu0  ;;  %v14374_v62 = vadd.f32 %v14373_v59, %v14372_v56  ;;  %v14375_v63 = vpop.f32.mrb[106].mxu1 }
 0x449   : > { %v11530_v61 = vadd.f32 %v14352_v57, %v11490_v53  ;;  %v14376_v0 = vpop.f32.mrb[107].mxu1 }
 0x44b   : > { %v11570_v1 = vadd.f32 %v14374_v62, %v11530_v61 }
 0x465   : > { %v14394_v10 = vpop.f32.mrb[108].mxu0 }
 0x466   : > { %v14395_v11 = vpop.f32.mrb[109].mxu0  ;;  %v14416_v12 = vpop.f32.mrb[108].mxu1 }
 0x467   : > { %v14396_v13 = vadd.f32 %v14395_v11, %v14394_v10  ;;  %v14397_v14 = vpop.f32.mrb[110].mxu0  ;;  %v14417_v15 = vpop.f32.mrb[109].mxu1 }
 0x468   : > { %v14398_v16 = vpop.f32.mrb[111].mxu0  ;;  %v14418_v18 = vadd.f32 %v14417_v15, %v14416_v12  ;;  %v14419_v19 = vpop.f32.mrb[110].mxu1  ;;  %v13184_v14 = vld [vmem:[%s266_s17] ss:$0 sm:$0xff] }
 0x469   : > { %v11610_v17 = vadd.f32 %v14396_v13, %v11570_v1  ;;  %v14420_v22 = vpop.f32.mrb[111].mxu1 }
 0x46b   : > { %v11650_v24 = vadd.f32 %v14418_v18, %v11610_v17 }
 0x485   : > { %v14438_v29 = vpop.f32.mrb[112].mxu0 }
 0x486   : > { %v14439_v30 = vpop.f32.mrb[113].mxu0  ;;  %v14460_v31 = vpop.f32.mrb[112].mxu1 }
 0x487   : > { %v14440_v32 = vadd.f32 %v14439_v30, %v14438_v29  ;;  %v14441_v33 = vpop.f32.mrb[114].mxu0  ;;  %v14461_v34 = vpop.f32.mrb[113].mxu1 }
 0x488   : > { %v14442_v35 = vpop.f32.mrb[115].mxu0  ;;  %v14462_v37 = vadd.f32 %v14461_v34, %v14460_v31  ;;  %v14463_v38 = vpop.f32.mrb[114].mxu1 }
 0x489   : > { %v11690_v36 = vadd.f32 %v14440_v32, %v11650_v24  ;;  %v14464_v39 = vpop.f32.mrb[115].mxu1 }
 0x48b   : > { %v11730_v40 = vadd.f32 %v14462_v37, %v11690_v36 }
 0x4a5   : > { %v14482_v41 = vpop.f32.mrb[116].mxu0 }
 0x4a6   : > { %v14483_v42 = vpop.f32.mrb[117].mxu0  ;;  %v14504_v43 = vpop.f32.mrb[116].mxu1 }
 0x4a7   : > { %v14484_v44 = vadd.f32 %v14483_v42, %v14482_v41  ;;  %v14485_v45 = vpop.f32.mrb[118].mxu0  ;;  %v14505_v46 = vpop.f32.mrb[117].mxu1 }
 0x4a8   : > { %v14486_v47 = vpop.f32.mrb[119].mxu0  ;;  %v14506_v49 = vadd.f32 %v14505_v46, %v14504_v43  ;;  %v14507_v50 = vpop.f32.mrb[118].mxu1 }
 0x4a9   : > { %v11770_v48 = vadd.f32 %v14484_v44, %v11730_v40  ;;  %v14508_v51 = vpop.f32.mrb[119].mxu1 }
 0x4ab   : > { %v11810_v52 = vadd.f32 %v14506_v49, %v11770_v48 }
 0x4c5   : > { %v14526_v6 = vpop.f32.mrb[120].mxu0 }
 0x4c6   : > { %v14527_v53 = vpop.f32.mrb[121].mxu0  ;;  %v14548_v54 = vpop.f32.mrb[120].mxu1 }
 0x4c7   : > { %v14528_v55 = vadd.f32 %v14527_v53, %v14526_v6  ;;  %v14529_v56 = vpop.f32.mrb[122].mxu0  ;;  %v14549_v57 = vpop.f32.mrb[121].mxu1 }
 0x4c8   : > { %v14530_v58 = vpop.f32.mrb[123].mxu0  ;;  %v14550_v60 = vadd.f32 %v14549_v57, %v14548_v54  ;;  %v14551_v61 = vpop.f32.mrb[122].mxu1 }
 0x4c9   : > { %v11850_v59 = vadd.f32 %v14528_v55, %v11810_v52  ;;  %v14552_v62 = vpop.f32.mrb[123].mxu1 }
 0x4cb   : > { %v11890_v63 = vadd.f32 %v14550_v60, %v11850_v59 }
 0x4e5   : > { %v14570_v0 = vpop.f32.mrb[124].mxu0 }
 0x4e6   : > { %v14571_v1 = vpop.f32.mrb[125].mxu0  ;;  %v14592_v2 = vpop.f32.mrb[124].mxu1 }
 0x4e7   : > { %v14572_v3 = vadd.f32 %v14571_v1, %v14570_v0  ;;  %v14573_v4 = vpop.f32.mrb[126].mxu0  ;;  %v14593_v5 = vpop.f32.mrb[125].mxu1 }
 0x4e8   : > { %v14574_v7 = vpop.f32.mrb[127].mxu0  ;;  %v14594_v9 = vadd.f32 %v14593_v5, %v14592_v2  ;;  %v14595_v10 = vpop.f32.mrb[126].mxu1 }
 0x4e9   : > { %v11930_v8 = vadd.f32 %v14572_v3, %v11890_v63  ;;  %v14596_v11 = vpop.f32.mrb[127].mxu1 }
 0x4eb   : > { %v11970_v12 = vadd.f32 %v14594_v9, %v11930_v8 }
 0x4ed   : > { %v11975_v13 = vmax.f32 %v11970_v12, 0.0 }
 0x4ef   : > { %14624 = vmatmul.mubr.msk.f32.vlgmr.msra.gmra.mrb[128].mxu0 %vm11991_vm1, %v11975_v13 }
 0x5c2   : > { %v12061_v15 = vpop.f32.mrb[128].mxu0 }
 0x5c3   : > { %v12062_v16 = vadd.f32 %v13184_v14, %v12061_v15  ;;  %v14625_v17 = vpop.f32.mrb[129].mxu0 }
 0x5c5   : > { %12065 = vst [vmem:[%s270_s23] sm:$0x3] %v12062_v16 }
 0x5c6 PF: > { %s15_s18 = sadd.s32 1, %s15696_s18  }
 0x5c7   : > { %p12_p4 = scmp.ge.s32.totalorder %s15_s18, 4  }
 0x5c9   :  { %14 = sbr.rel (!%p12_p4) target bundleno = 1 (0x1), region = 79 }

</bundles_post_ra>
